<compile_context>
chip_gen: v7x
topology: tpu7x:2x2x1
jax: 0.10.0
libtpu: 0.0.40
codegen_flags: <defaults>
</compile_context>

<pallas_src>
import numpy as np
import jax
import jax.numpy as jnp
from jax.experimental import pallas as pl
from jax.experimental.pallas import tpu as pltpu


def _round_up(v, m):
    return (v + m - 1) // m * m


# ----------------------------------------------------------------------------
# Pallas kernel: two independent GEMM+bias+ReLU problems (one per tower) in a
# single pallas_call, tiled over rows with a "parallel" grid axis.
# x, w are bf16; accumulation and the bias/ReLU epilogue are f32 on the MXU/VPU.
# ----------------------------------------------------------------------------
def _conv_pair_kernel(pa_ref, wa_ref, ba_ref, pb_ref, wb_ref, bb_ref,
                      oa_ref, ob_ref):
    ya = jnp.dot(pa_ref[...], wa_ref[...], preferred_element_type=jnp.float32)
    oa_ref[...] = jnp.maximum(ya + ba_ref[...], 0.0).astype(oa_ref.dtype)
    yb = jnp.dot(pb_ref[...], wb_ref[...], preferred_element_type=jnp.float32)
    ob_ref[...] = jnp.maximum(yb + bb_ref[...], 0.0).astype(ob_ref.dtype)


def conv_pair(pa, wa, ba, pb, wb, bb, *, grid_steps=2):
    """relu(pa @ wa + ba), relu(pb @ wb + bb): both towers in one kernel."""
    ma, ka = pa.shape
    mb, kb = pb.shape
    na = wa.shape[1]
    nb = wb.shape[1]
    # 16-row-multiple tiles (bf16 native (16,128) tile) chosen so both towers
    # need exactly `grid_steps` blocks; the last blocks may be partial.
    tma = _round_up(-(-ma // grid_steps), 16)
    tmb = _round_up(-(-mb // grid_steps), 16)
    assert pl.cdiv(ma, tma) == grid_steps and pl.cdiv(mb, tmb) == grid_steps
    return pl.pallas_call(
        _conv_pair_kernel,
        out_shape=(jax.ShapeDtypeStruct((ma, na), jnp.bfloat16),
                   jax.ShapeDtypeStruct((mb, nb), jnp.bfloat16)),
        grid=(grid_steps,),
        in_specs=[
            pl.BlockSpec((tma, ka), lambda i: (i, 0)),   # tower-1 patch rows
            pl.BlockSpec((ka, na), lambda i: (0, 0)),    # tower-1 weight
            pl.BlockSpec((1, na), lambda i: (0, 0)),     # tower-1 bias row
            pl.BlockSpec((tmb, kb), lambda i: (i, 0)),   # tower-2 patch rows
            pl.BlockSpec((kb, nb), lambda i: (0, 0)),    # tower-2 weight
            pl.BlockSpec((1, nb), lambda i: (0, 0)),     # tower-2 bias row
        ],
        out_specs=(pl.BlockSpec((tma, na), lambda i: (i, 0)),
                   pl.BlockSpec((tmb, nb), lambda i: (i, 0))),
        compiler_params=pltpu.CompilerParams(
            dimension_semantics=("parallel",)),
    )(pa, wa, ba, pb, wb, bb)


# ----------------------------------------------------------------------------
# Fused MLP head: sigmoid(relu(x @ w1 + b1) @ w2 + b2) in one kernel.
# fc2 is done in f32 to keep the final logits close to the f32 reference.
# ----------------------------------------------------------------------------
def _mlp_head_kernel(x_ref, w1_ref, b1_ref, w2_ref, b2_ref, o_ref):
    h = jnp.dot(x_ref[...], w1_ref[...], preferred_element_type=jnp.float32)
    h = jnp.maximum(h + b1_ref[...], 0.0)
    y = jnp.dot(h, w2_ref[...], preferred_element_type=jnp.float32)
    o_ref[...] = jax.nn.sigmoid(y + b2_ref[...]).astype(o_ref.dtype)


def mlp_head(x, w1, b1, w2, b2):
    m, k = x.shape
    hdim = w1.shape[1]
    nout = w2.shape[1]
    return pl.pallas_call(
        _mlp_head_kernel,
        out_shape=jax.ShapeDtypeStruct((m, nout), jnp.float32),
        grid=(1,),
        in_specs=[
            pl.BlockSpec((m, k), lambda i: (0, 0)),
            pl.BlockSpec((k, hdim), lambda i: (0, 0)),
            pl.BlockSpec((1, hdim), lambda i: (0, 0)),
            pl.BlockSpec((hdim, nout), lambda i: (0, 0)),
            pl.BlockSpec((1, nout), lambda i: (0, 0)),
        ],
        out_specs=pl.BlockSpec((m, nout), lambda i: (0, 0)),
        compiler_params=pltpu.CompilerParams(
            dimension_semantics=("arbitrary",)),
    )(x, w1, b1, w2, b2)


# ----------------------------------------------------------------------------
# XLA-side layout glue: NCHW->NHWC + channel pad, and im2col patch extraction
# (strided slices + one concat; pure layout, no gathers).
# ----------------------------------------------------------------------------
def _prep_input(x_nchw, c_pad):
    x = jnp.transpose(x_nchw, (0, 2, 3, 1)).astype(jnp.bfloat16)   # NHWC bf16
    c = x.shape[-1]
    if c_pad > c:
        x = jnp.pad(x, ((0, 0), (0, 0), (0, 0), (0, c_pad - c)))
    return x


def _im2col(x_nhwc, k, stride):
    n, h, w, c = x_nhwc.shape
    ho = (h - k) // stride + 1
    wo = (w - k) // stride + 1
    cols = []
    for di in range(k):
        for dj in range(k):
            cols.append(x_nhwc[:, di:di + stride * ho:stride,
                                  dj:dj + stride * wo:stride, :])
    # feature order = (di, dj, c), matching the packed weight row order
    patches = jnp.concatenate(cols, axis=-1)            # (N, Ho, Wo, k*k*C)
    return patches.reshape(n * ho * wo, k * k * c), ho, wo


# ----------------------------------------------------------------------------
# Parameters: PyTorch-style init, packed ONCE into kernel-friendly layouts
# (zero-padded channels, fc1 rows permuted to (H, W, C) flatten order).
# ----------------------------------------------------------------------------
def _init_conv(key, c_out, c_in, k):
    kw_key, kb_key = jax.random.split(key)
    bound = 1.0 / np.sqrt(c_in * k * k)
    w = jax.random.uniform(kw_key, (c_out, c_in, k, k), jnp.float32, -bound, bound)
    b = jax.random.uniform(kb_key, (c_out,), jnp.float32, -bound, bound)
    return w, b


def _init_linear(key, out_f, in_f):
    kw_key, kb_key = jax.random.split(key)
    bound = 1.0 / np.sqrt(in_f)
    w = jax.random.uniform(kw_key, (out_f, in_f), jnp.float32, -bound, bound)
    b = jax.random.uniform(kb_key, (out_f,), jnp.float32, -bound, bound)
    return w, b


def _pack_conv(w_oihw, b, c_in_pad, c_out_pad):
    """(C_out, C_in, k, k) torch weight -> (k*k*C_in_pad, C_out_pad) bf16."""
    c_out, c_in, kh, kw = w_oihw.shape
    w_kkio = jnp.transpose(w_oihw, (2, 3, 1, 0))        # (kh, kw, C_in, C_out)
    w_full = jnp.zeros((kh, kw, c_in_pad, c_out_pad), jnp.float32)
    w_full = w_full.at[:, :, :c_in, :c_out].set(w_kkio)
    w_mat = w_full.reshape(kh * kw * c_in_pad, c_out_pad).astype(jnp.bfloat16)
    b_row = jnp.zeros((1, c_out_pad), jnp.float32).at[0, :c_out].set(b)
    return w_mat, b_row


def _hwc_perm(c, h, w):
    # new feature index (h, w, c) -> old index in torch's (c, h, w) flatten
    return np.arange(c * h * w).reshape(c, h, w).transpose(1, 2, 0).reshape(-1)


def init_params(hidden_units=256, num_out=9, seed=0):
    keys = jax.random.split(jax.random.PRNGKey(seed), 8)
    p = {}
    # name, key, C_out, C_in, k, C_in_pad, C_out_pad
    conv_cfg = [
        ("m1c1", keys[0], 32, 3, 8, 8, 128),
        ("m1c2", keys[1], 64, 32, 4, 128, 128),
        ("m1c3", keys[2], 32, 64, 4, 128, 32),
        ("m2c1", keys[3], 32, 3, 3, 8, 128),
        ("m2c2", keys[4], 64, 32, 3, 128, 128),
        ("m2c3", keys[5], 32, 64, 3, 128, 32),
    ]
    for name, key, co, ci, k, ci_pad, co_pad in conv_cfg:
        w, b = _init_conv(key, co, ci, k)
        p[name + "_w"], p[name + "_b"] = _pack_conv(w, b, ci_pad, co_pad)

    in_f = 32 * 6 * 7 + 32 * 7 * 7                      # 2912
    fc1_w, fc1_b = _init_linear(keys[6], hidden_units, in_f)
    fc2_w, fc2_b = _init_linear(keys[7], num_out, hidden_units)
    # Permute fc1 rows from torch's (C, H, W) flatten order to our (H, W, C)
    # order so the runtime flatten is a plain reshape (no transposes).
    perm = np.concatenate([_hwc_perm(32, 6, 7),
                           32 * 6 * 7 + _hwc_perm(32, 7, 7)])
    fc1_w = fc1_w[:, perm]
    p["fc1_w"] = jnp.asarray(fc1_w.T, dtype=jnp.bfloat16)          # (2912, H)
    p["fc1_b"] = fc1_b.reshape(1, -1).astype(jnp.float32)
    p["fc2_w"] = fc2_w.T.astype(jnp.float32)                       # (H, out)
    p["fc2_b"] = fc2_b.reshape(1, -1).astype(jnp.float32)
    return p


# ----------------------------------------------------------------------------
# Forward pass (matches SimCameraNet.forward semantics)
# ----------------------------------------------------------------------------
def sim_camera_net_forward(params, x1, x2):
    n = x1.shape[0]
    a = _prep_input(x1, c_pad=8)                       # (N, 124, 140, 8) bf16
    b = _prep_input(x2, c_pad=8)                       # (N, 63, 63, 8)  bf16

    # conv stage 1:  main1 k8 s4  |  main2 k3 s2
    pa, ha, wa = _im2col(a, 8, 4)                      # (N*30*34, 512)
    pb, hb, wb = _im2col(b, 3, 2)                      # (N*31*31, 72)
    ya, yb = conv_pair(pa, params["m1c1_w"], params["m1c1_b"],
                       pb, params["m2c1_w"], params["m2c1_b"], grid_steps=4)
    a = ya.reshape(n, ha, wa, ya.shape[-1])            # (N, 30, 34, 128)
    b = yb.reshape(n, hb, wb, yb.shape[-1])            # (N, 31, 31, 128)

    # conv stage 2:  main1 k4 s2  |  main2 k3 s2
    pa, ha, wa = _im2col(a, 4, 2)                      # (N*14*16, 2048)
    pb, hb, wb = _im2col(b, 3, 2)                      # (N*15*15, 1152)
    ya, yb = conv_pair(pa, params["m1c2_w"], params["m1c2_b"],
                       pb, params["m2c2_w"], params["m2c2_b"], grid_steps=2)
    a = ya.reshape(n, ha, wa, ya.shape[-1])            # (N, 14, 16, 128)
    b = yb.reshape(n, hb, wb, yb.shape[-1])            # (N, 15, 15, 128)

    # conv stage 3:  main1 k4 s2  |  main2 k3 s2
    pa, ha, wa = _im2col(a, 4, 2)                      # (N*6*7, 2048)
    pb, hb, wb = _im2col(b, 3, 2)                      # (N*7*7, 1152)
    ya, yb = conv_pair(pa, params["m1c3_w"], params["m1c3_b"],
                       pb, params["m2c3_w"], params["m2c3_b"], grid_steps=2)
    # rows are (n, h, w), last dim is c -> plain reshape flattens in (h, w, c)
    # order, matching the fc1 row permutation done at init.
    f = jnp.concatenate([ya.reshape(n, -1), yb.reshape(n, -1)], axis=1)  # (N,2912)

    # fused fc1 + ReLU + fc2 + sigmoid
    return mlp_head(f, params["fc1_w"], params["fc1_b"],
                    params["fc2_w"], params["fc2_b"])


if __name__ == "__main__":
    # Input spatial sizes are dictated by fc1's in_features (32*6*7 + 32*7*7):
    #   main1: 124x140 -> 30x34 -> 14x16 -> 6x7
    #   main2: 63x63   -> 31x31 -> 15x15 -> 7x7
    key = jax.random.PRNGKey(0)
    k1, k2 = jax.random.split(key)
    x1 = jax.random.normal(k1, (2, 3, 124, 140), jnp.float32)
    x2 = jax.random.normal(k2, (2, 3, 63, 63), jnp.float32)

    params = init_params(hidden_units=256, num_out=9, seed=0)

    forward = jax.jit(sim_camera_net_forward)
    out = jax.block_until_ready(forward(params, x1, x2))

    assert out.shape == (2, 9)
    assert bool(jnp.all(jnp.isfinite(out)))
    assert bool(jnp.all((out >= 0.0) & (out <= 1.0)))   # sigmoid output range
    print("KERNEL_OK")
</pallas_src>

<mosaic_0001>
module attributes {stable_mosaic.version = 11 : i64} {
  func.func @_conv_pair_kernel(%arg0: i32, %arg1: memref<512x512xbf16, #tpu.memory_space<vmem>>, %arg2: memref<512x128xbf16, #tpu.memory_space<vmem>>, %arg3: memref<1x128xf32, #tpu.memory_space<vmem>>, %arg4: memref<496x72xbf16, #tpu.memory_space<vmem>>, %arg5: memref<72x128xbf16, #tpu.memory_space<vmem>>, %arg6: memref<1x128xf32, #tpu.memory_space<vmem>>, %arg7: memref<512x128xbf16, #tpu.memory_space<vmem>>, %arg8: memref<496x128xbf16, #tpu.memory_space<vmem>>) attributes {dimension_semantics = [#tpu.dimension_semantics<parallel>], iteration_bounds = array<i64: 4>, scalar_prefetch = 0 : i64, scratch_operands = 0 : i64, tpu.core_type = #tpu.core_type<tc>, window_params = [{transform_indices = @transform_0, window_bounds = array<i64: 512, 512>}, {pipeline_mode = #tpu.pipeline_mode<synchronous>, transform_indices = @transform_1, window_bounds = array<i64: 512, 128>}, {pipeline_mode = #tpu.pipeline_mode<synchronous>, transform_indices = @transform_2, window_bounds = array<i64: 1, 128>}, {transform_indices = @transform_3, window_bounds = array<i64: 496, 72>}, {pipeline_mode = #tpu.pipeline_mode<synchronous>, transform_indices = @transform_4, window_bounds = array<i64: 72, 128>}, {pipeline_mode = #tpu.pipeline_mode<synchronous>, transform_indices = @transform_5, window_bounds = array<i64: 1, 128>}, {transform_indices = @transform_6, window_bounds = array<i64: 512, 128>}, {transform_indices = @transform_7, window_bounds = array<i64: 496, 128>}]} {
    %c0 = arith.constant 0 : index
    %c0_0 = arith.constant 0 : index
    %0 = vector.load %arg1[%c0, %c0_0] : memref<512x512xbf16, #tpu.memory_space<vmem>>, vector<512x512xbf16>
    %c0_1 = arith.constant 0 : index
    %c0_2 = arith.constant 0 : index
    %1 = vector.load %arg2[%c0_1, %c0_2] : memref<512x128xbf16, #tpu.memory_space<vmem>>, vector<512x128xbf16>
    %cst = arith.constant dense<0.000000e+00> : vector<512x128xf32>
    %2 = tpu.matmul %0, %1, %cst {dimension_numbers = #tpu.dot_dimension_numbers<[1], [0], [0], [1], [0, 0, 1, 1], [], []>} : vector<512x512xbf16>, vector<512x128xbf16>, vector<512x128xf32> -> vector<512x128xf32>
    %c0_3 = arith.constant 0 : index
    %c0_4 = arith.constant 0 : index
    %3 = vector.load %arg3[%c0_3, %c0_4] : memref<1x128xf32, #tpu.memory_space<vmem>>, vector<1x128xf32>
    %4 = vector.broadcast %3 : vector<1x128xf32> to vector<512x128xf32>
    %5 = arith.addf %2, %4 : vector<512x128xf32>
    %cst_5 = arith.constant 0.000000e+00 : f32
    %6 = vector.broadcast %cst_5 : f32 to vector<512x128xf32>
    %7 = arith.maximumf %5, %6 : vector<512x128xf32>
    %8 = arith.truncf %7 : vector<512x128xf32> to vector<512x128xbf16>
    %c0_6 = arith.constant 0 : index
    %c0_7 = arith.constant 0 : index
    %9 = vector.load %arg7[%c0_6, %c0_7] : memref<512x128xbf16, #tpu.memory_space<vmem>>, vector<512x128xbf16>
    tpu.vector_store %arg7[%c0_6, %c0_7], %8 {strides = array<i32>} : memref<512x128xbf16, #tpu.memory_space<vmem>>, vector<512x128xbf16>,
    %c0_8 = arith.constant 0 : index
    %c0_9 = arith.constant 0 : index
    %10 = vector.load %arg4[%c0_8, %c0_9] : memref<496x72xbf16, #tpu.memory_space<vmem>>, vector<496x72xbf16>
    %c0_10 = arith.constant 0 : index
    %c0_11 = arith.constant 0 : index
    %11 = vector.load %arg5[%c0_10, %c0_11] : memref<72x128xbf16, #tpu.memory_space<vmem>>, vector<72x128xbf16>
    %cst_12 = arith.constant dense<0.000000e+00> : vector<496x128xf32>
    %12 = tpu.matmul %10, %11, %cst_12 {dimension_numbers = #tpu.dot_dimension_numbers<[1], [0], [0], [1], [0, 0, 1, 1], [], []>} : vector<496x72xbf16>, vector<72x128xbf16>, vector<496x128xf32> -> vector<496x128xf32>
    %c0_13 = arith.constant 0 : index
    %c0_14 = arith.constant 0 : index
    %13 = vector.load %arg6[%c0_13, %c0_14] : memref<1x128xf32, #tpu.memory_space<vmem>>, vector<1x128xf32>
    %14 = vector.broadcast %13 : vector<1x128xf32> to vector<496x128xf32>
    %15 = arith.addf %12, %14 : vector<496x128xf32>
    %cst_15 = arith.constant 0.000000e+00 : f32
    %16 = vector.broadcast %cst_15 : f32 to vector<496x128xf32>
    %17 = arith.maximumf %15, %16 : vector<496x128xf32>
    %18 = arith.truncf %17 : vector<496x128xf32> to vector<496x128xbf16>
    %c0_16 = arith.constant 0 : index
    %c0_17 = arith.constant 0 : index
    %19 = vector.load %arg8[%c0_16, %c0_17] : memref<496x128xbf16, #tpu.memory_space<vmem>>, vector<496x128xbf16>
    tpu.vector_store %arg8[%c0_16, %c0_17], %18 {strides = array<i32>} : memref<496x128xbf16, #tpu.memory_space<vmem>>, vector<496x128xbf16>,
    return
  }
  func.func @transform_0(%arg0: i32) -> (i32, i32) {
    %c0_i32 = arith.constant 0 : i32
    %c0_i32_0 = arith.constant 0 : i32
    return %arg0, %c0_i32 : i32, i32
  }
  func.func @transform_1(%arg0: i32) -> (i32, i32) {
    %c0_i32 = arith.constant 0 : i32
    %c0_i32_0 = arith.constant 0 : i32
    %c0_i32_1 = arith.constant 0 : i32
    return %c0_i32, %c0_i32_0 : i32, i32
  }
  func.func @transform_2(%arg0: i32) -> (i32, i32) {
    %c0_i32 = arith.constant 0 : i32
    %c0_i32_0 = arith.constant 0 : i32
    %c0_i32_1 = arith.constant 0 : i32
    return %c0_i32, %c0_i32_0 : i32, i32
  }
  func.func @transform_3(%arg0: i32) -> (i32, i32) {
    %c0_i32 = arith.constant 0 : i32
    %c0_i32_0 = arith.constant 0 : i32
    return %arg0, %c0_i32 : i32, i32
  }
  func.func @transform_4(%arg0: i32) -> (i32, i32) {
    %c0_i32 = arith.constant 0 : i32
    %c0_i32_0 = arith.constant 0 : i32
    %c0_i32_1 = arith.constant 0 : i32
    return %c0_i32, %c0_i32_0 : i32, i32
  }
  func.func @transform_5(%arg0: i32) -> (i32, i32) {
    %c0_i32 = arith.constant 0 : i32
    %c0_i32_0 = arith.constant 0 : i32
    %c0_i32_1 = arith.constant 0 : i32
    return %c0_i32, %c0_i32_0 : i32, i32
  }
  func.func @transform_6(%arg0: i32) -> (i32, i32) {
    %c0_i32 = arith.constant 0 : i32
    %c0_i32_0 = arith.constant 0 : i32
    return %arg0, %c0_i32 : i32, i32
  }
  func.func @transform_7(%arg0: i32) -> (i32, i32) {
    %c0_i32 = arith.constant 0 : i32
    %c0_i32_0 = arith.constant 0 : i32
    return %arg0, %c0_i32 : i32, i32
  }
}

module attributes {stable_mosaic.version = 11 : i64} {
  func.func @_conv_pair_kernel(%arg0: i32, %arg1: memref<224x2048xbf16, #tpu.memory_space<vmem>>, %arg2: memref<2048x128xbf16, #tpu.memory_space<vmem>>, %arg3: memref<1x128xf32, #tpu.memory_space<vmem>>, %arg4: memref<240x1152xbf16, #tpu.memory_space<vmem>>, %arg5: memref<1152x128xbf16, #tpu.memory_space<vmem>>, %arg6: memref<1x128xf32, #tpu.memory_space<vmem>>, %arg7: memref<224x128xbf16, #tpu.memory_space<vmem>>, %arg8: memref<240x128xbf16, #tpu.memory_space<vmem>>) attributes {dimension_semantics = [#tpu.dimension_semantics<parallel>], iteration_bounds = array<i64: 2>, scalar_prefetch = 0 : i64, scratch_operands = 0 : i64, tpu.core_type = #tpu.core_type<tc>, window_params = [{transform_indices = @transform_0, window_bounds = array<i64: 224, 2048>}, {pipeline_mode = #tpu.pipeline_mode<synchronous>, transform_indices = @transform_1, window_bounds = array<i64: 2048, 128>}, {pipeline_mode = #tpu.pipeline_mode<synchronous>, transform_indices = @transform_2, window_bounds = array<i64: 1, 128>}, {transform_indices = @transform_3, window_bounds = array<i64: 240, 1152>}, {pipeline_mode = #tpu.pipeline_mode<synchronous>, transform_indices = @transform_4, window_bounds = array<i64: 1152, 128>}, {pipeline_mode = #tpu.pipeline_mode<synchronous>, transform_indices = @transform_5, window_bounds = array<i64: 1, 128>}, {transform_indices = @transform_6, window_bounds = array<i64: 224, 128>}, {transform_indices = @transform_7, window_bounds = array<i64: 240, 128>}]} {
    %c0 = arith.constant 0 : index
    %c0_0 = arith.constant 0 : index
    %0 = vector.load %arg1[%c0, %c0_0] : memref<224x2048xbf16, #tpu.memory_space<vmem>>, vector<224x2048xbf16>
    %c0_1 = arith.constant 0 : index
    %c0_2 = arith.constant 0 : index
    %1 = vector.load %arg2[%c0_1, %c0_2] : memref<2048x128xbf16, #tpu.memory_space<vmem>>, vector<2048x128xbf16>
    %cst = arith.constant dense<0.000000e+00> : vector<224x128xf32>
    %2 = tpu.matmul %0, %1, %cst {dimension_numbers = #tpu.dot_dimension_numbers<[1], [0], [0], [1], [0, 0, 1, 1], [], []>} : vector<224x2048xbf16>, vector<2048x128xbf16>, vector<224x128xf32> -> vector<224x128xf32>
    %c0_3 = arith.constant 0 : index
    %c0_4 = arith.constant 0 : index
    %3 = vector.load %arg3[%c0_3, %c0_4] : memref<1x128xf32, #tpu.memory_space<vmem>>, vector<1x128xf32>
    %4 = vector.broadcast %3 : vector<1x128xf32> to vector<224x128xf32>
    %5 = arith.addf %2, %4 : vector<224x128xf32>
    %cst_5 = arith.constant 0.000000e+00 : f32
    %6 = vector.broadcast %cst_5 : f32 to vector<224x128xf32>
    %7 = arith.maximumf %5, %6 : vector<224x128xf32>
    %8 = arith.truncf %7 : vector<224x128xf32> to vector<224x128xbf16>
    %c0_6 = arith.constant 0 : index
    %c0_7 = arith.constant 0 : index
    %9 = vector.load %arg7[%c0_6, %c0_7] : memref<224x128xbf16, #tpu.memory_space<vmem>>, vector<224x128xbf16>
    tpu.vector_store %arg7[%c0_6, %c0_7], %8 {strides = array<i32>} : memref<224x128xbf16, #tpu.memory_space<vmem>>, vector<224x128xbf16>,
    %c0_8 = arith.constant 0 : index
    %c0_9 = arith.constant 0 : index
    %10 = vector.load %arg4[%c0_8, %c0_9] : memref<240x1152xbf16, #tpu.memory_space<vmem>>, vector<240x1152xbf16>
    %c0_10 = arith.constant 0 : index
    %c0_11 = arith.constant 0 : index
    %11 = vector.load %arg5[%c0_10, %c0_11] : memref<1152x128xbf16, #tpu.memory_space<vmem>>, vector<1152x128xbf16>
    %cst_12 = arith.constant dense<0.000000e+00> : vector<240x128xf32>
    %12 = tpu.matmul %10, %11, %cst_12 {dimension_numbers = #tpu.dot_dimension_numbers<[1], [0], [0], [1], [0, 0, 1, 1], [], []>} : vector<240x1152xbf16>, vector<1152x128xbf16>, vector<240x128xf32> -> vector<240x128xf32>
    %c0_13 = arith.constant 0 : index
    %c0_14 = arith.constant 0 : index
    %13 = vector.load %arg6[%c0_13, %c0_14] : memref<1x128xf32, #tpu.memory_space<vmem>>, vector<1x128xf32>
    %14 = vector.broadcast %13 : vector<1x128xf32> to vector<240x128xf32>
    %15 = arith.addf %12, %14 : vector<240x128xf32>
    %cst_15 = arith.constant 0.000000e+00 : f32
    %16 = vector.broadcast %cst_15 : f32 to vector<240x128xf32>
    %17 = arith.maximumf %15, %16 : vector<240x128xf32>
    %18 = arith.truncf %17 : vector<240x128xf32> to vector<240x128xbf16>
    %c0_16 = arith.constant 0 : index
    %c0_17 = arith.constant 0 : index
    %19 = vector.load %arg8[%c0_16, %c0_17] : memref<240x128xbf16, #tpu.memory_space<vmem>>, vector<240x128xbf16>
    tpu.vector_store %arg8[%c0_16, %c0_17], %18 {strides = array<i32>} : memref<240x128xbf16, #tpu.memory_space<vmem>>, vector<240x128xbf16>,
    return
  }
  func.func @transform_0(%arg0: i32) -> (i32, i32) {
    %c0_i32 = arith.constant 0 : i32
    %c0_i32_0 = arith.constant 0 : i32
    return %arg0, %c0_i32 : i32, i32
  }
  func.func @transform_1(%arg0: i32) -> (i32, i32) {
    %c0_i32 = arith.constant 0 : i32
    %c0_i32_0 = arith.constant 0 : i32
    %c0_i32_1 = arith.constant 0 : i32
    return %c0_i32, %c0_i32_0 : i32, i32
  }
  func.func @transform_2(%arg0: i32) -> (i32, i32) {
    %c0_i32 = arith.constant 0 : i32
    %c0_i32_0 = arith.constant 0 : i32
    %c0_i32_1 = arith.constant 0 : i32
    return %c0_i32, %c0_i32_0 : i32, i32
  }
  func.func @transform_3(%arg0: i32) -> (i32, i32) {
    %c0_i32 = arith.constant 0 : i32
    %c0_i32_0 = arith.constant 0 : i32
    return %arg0, %c0_i32 : i32, i32
  }
  func.func @transform_4(%arg0: i32) -> (i32, i32) {
    %c0_i32 = arith.constant 0 : i32
    %c0_i32_0 = arith.constant 0 : i32
    %c0_i32_1 = arith.constant 0 : i32
    return %c0_i32, %c0_i32_0 : i32, i32
  }
  func.func @transform_5(%arg0: i32) -> (i32, i32) {
    %c0_i32 = arith.constant 0 : i32
    %c0_i32_0 = arith.constant 0 : i32
    %c0_i32_1 = arith.constant 0 : i32
    return %c0_i32, %c0_i32_0 : i32, i32
  }
  func.func @transform_6(%arg0: i32) -> (i32, i32) {
    %c0_i32 = arith.constant 0 : i32
    %c0_i32_0 = arith.constant 0 : i32
    return %arg0, %c0_i32 : i32, i32
  }
  func.func @transform_7(%arg0: i32) -> (i32, i32) {
    %c0_i32 = arith.constant 0 : i32
    %c0_i32_0 = arith.constant 0 : i32
    return %arg0, %c0_i32 : i32, i32
  }
}

module attributes {stable_mosaic.version = 11 : i64} {
  func.func @_conv_pair_kernel(%arg0: i32, %arg1: memref<48x2048xbf16, #tpu.memory_space<vmem>>, %arg2: memref<2048x32xbf16, #tpu.memory_space<vmem>>, %arg3: memref<1x32xf32, #tpu.memory_space<vmem>>, %arg4: memref<64x1152xbf16, #tpu.memory_space<vmem>>, %arg5: memref<1152x32xbf16, #tpu.memory_space<vmem>>, %arg6: memref<1x32xf32, #tpu.memory_space<vmem>>, %arg7: memref<48x32xbf16, #tpu.memory_space<vmem>>, %arg8: memref<64x32xbf16, #tpu.memory_space<vmem>>) attributes {dimension_semantics = [#tpu.dimension_semantics<parallel>], iteration_bounds = array<i64: 2>, scalar_prefetch = 0 : i64, scratch_operands = 0 : i64, tpu.core_type = #tpu.core_type<tc>, window_params = [{transform_indices = @transform_0, window_bounds = array<i64: 48, 2048>}, {pipeline_mode = #tpu.pipeline_mode<synchronous>, transform_indices = @transform_1, window_bounds = array<i64: 2048, 32>}, {pipeline_mode = #tpu.pipeline_mode<synchronous>, transform_indices = @transform_2, window_bounds = array<i64: 1, 32>}, {transform_indices = @transform_3, window_bounds = array<i64: 64, 1152>}, {pipeline_mode = #tpu.pipeline_mode<synchronous>, transform_indices = @transform_4, window_bounds = array<i64: 1152, 32>}, {pipeline_mode = #tpu.pipeline_mode<synchronous>, transform_indices = @transform_5, window_bounds = array<i64: 1, 32>}, {transform_indices = @transform_6, window_bounds = array<i64: 48, 32>}, {transform_indices = @transform_7, window_bounds = array<i64: 64, 32>}]} {
    %c0 = arith.constant 0 : index
    %c0_0 = arith.constant 0 : index
    %0 = vector.load %arg1[%c0, %c0_0] : memref<48x2048xbf16, #tpu.memory_space<vmem>>, vector<48x2048xbf16>
    %c0_1 = arith.constant 0 : index
    %c0_2 = arith.constant 0 : index
    %1 = vector.load %arg2[%c0_1, %c0_2] : memref<2048x32xbf16, #tpu.memory_space<vmem>>, vector<2048x32xbf16>
    %cst = arith.constant dense<0.000000e+00> : vector<48x32xf32>
    %2 = tpu.matmul %0, %1, %cst {dimension_numbers = #tpu.dot_dimension_numbers<[1], [0], [0], [1], [0, 0, 1, 1], [], []>} : vector<48x2048xbf16>, vector<2048x32xbf16>, vector<48x32xf32> -> vector<48x32xf32>
    %c0_3 = arith.constant 0 : index
    %c0_4 = arith.constant 0 : index
    %3 = vector.load %arg3[%c0_3, %c0_4] : memref<1x32xf32, #tpu.memory_space<vmem>>, vector<1x32xf32>
    %4 = vector.broadcast %3 : vector<1x32xf32> to vector<48x32xf32>
    %5 = arith.addf %2, %4 : vector<48x32xf32>
    %cst_5 = arith.constant 0.000000e+00 : f32
    %6 = vector.broadcast %cst_5 : f32 to vector<48x32xf32>
    %7 = arith.maximumf %5, %6 : vector<48x32xf32>
    %8 = arith.truncf %7 : vector<48x32xf32> to vector<48x32xbf16>
    %c0_6 = arith.constant 0 : index
    %c0_7 = arith.constant 0 : index
    %9 = vector.load %arg7[%c0_6, %c0_7] : memref<48x32xbf16, #tpu.memory_space<vmem>>, vector<48x32xbf16>
    tpu.vector_store %arg7[%c0_6, %c0_7], %8 {strides = array<i32>} : memref<48x32xbf16, #tpu.memory_space<vmem>>, vector<48x32xbf16>,
    %c0_8 = arith.constant 0 : index
    %c0_9 = arith.constant 0 : index
    %10 = vector.load %arg4[%c0_8, %c0_9] : memref<64x1152xbf16, #tpu.memory_space<vmem>>, vector<64x1152xbf16>
    %c0_10 = arith.constant 0 : index
    %c0_11 = arith.constant 0 : index
    %11 = vector.load %arg5[%c0_10, %c0_11] : memref<1152x32xbf16, #tpu.memory_space<vmem>>, vector<1152x32xbf16>
    %cst_12 = arith.constant dense<0.000000e+00> : vector<64x32xf32>
    %12 = tpu.matmul %10, %11, %cst_12 {dimension_numbers = #tpu.dot_dimension_numbers<[1], [0], [0], [1], [0, 0, 1, 1], [], []>} : vector<64x1152xbf16>, vector<1152x32xbf16>, vector<64x32xf32> -> vector<64x32xf32>
    %c0_13 = arith.constant 0 : index
    %c0_14 = arith.constant 0 : index
    %13 = vector.load %arg6[%c0_13, %c0_14] : memref<1x32xf32, #tpu.memory_space<vmem>>, vector<1x32xf32>
    %14 = vector.broadcast %13 : vector<1x32xf32> to vector<64x32xf32>
    %15 = arith.addf %12, %14 : vector<64x32xf32>
    %cst_15 = arith.constant 0.000000e+00 : f32
    %16 = vector.broadcast %cst_15 : f32 to vector<64x32xf32>
    %17 = arith.maximumf %15, %16 : vector<64x32xf32>
    %18 = arith.truncf %17 : vector<64x32xf32> to vector<64x32xbf16>
    %c0_16 = arith.constant 0 : index
    %c0_17 = arith.constant 0 : index
    %19 = vector.load %arg8[%c0_16, %c0_17] : memref<64x32xbf16, #tpu.memory_space<vmem>>, vector<64x32xbf16>
    tpu.vector_store %arg8[%c0_16, %c0_17], %18 {strides = array<i32>} : memref<64x32xbf16, #tpu.memory_space<vmem>>, vector<64x32xbf16>,
    return
  }
  func.func @transform_0(%arg0: i32) -> (i32, i32) {
    %c0_i32 = arith.constant 0 : i32
    %c0_i32_0 = arith.constant 0 : i32
    return %arg0, %c0_i32 : i32, i32
  }
  func.func @transform_1(%arg0: i32) -> (i32, i32) {
    %c0_i32 = arith.constant 0 : i32
    %c0_i32_0 = arith.constant 0 : i32
    %c0_i32_1 = arith.constant 0 : i32
    return %c0_i32, %c0_i32_0 : i32, i32
  }
  func.func @transform_2(%arg0: i32) -> (i32, i32) {
    %c0_i32 = arith.constant 0 : i32
    %c0_i32_0 = arith.constant 0 : i32
    %c0_i32_1 = arith.constant 0 : i32
    return %c0_i32, %c0_i32_0 : i32, i32
  }
  func.func @transform_3(%arg0: i32) -> (i32, i32) {
    %c0_i32 = arith.constant 0 : i32
    %c0_i32_0 = arith.constant 0 : i32
    return %arg0, %c0_i32 : i32, i32
  }
  func.func @transform_4(%arg0: i32) -> (i32, i32) {
    %c0_i32 = arith.constant 0 : i32
    %c0_i32_0 = arith.constant 0 : i32
    %c0_i32_1 = arith.constant 0 : i32
    return %c0_i32, %c0_i32_0 : i32, i32
  }
  func.func @transform_5(%arg0: i32) -> (i32, i32) {
    %c0_i32 = arith.constant 0 : i32
    %c0_i32_0 = arith.constant 0 : i32
    %c0_i32_1 = arith.constant 0 : i32
    return %c0_i32, %c0_i32_0 : i32, i32
  }
  func.func @transform_6(%arg0: i32) -> (i32, i32) {
    %c0_i32 = arith.constant 0 : i32
    %c0_i32_0 = arith.constant 0 : i32
    return %arg0, %c0_i32 : i32, i32
  }
  func.func @transform_7(%arg0: i32) -> (i32, i32) {
    %c0_i32 = arith.constant 0 : i32
    %c0_i32_0 = arith.constant 0 : i32
    return %arg0, %c0_i32 : i32, i32
  }
}

module attributes {stable_mosaic.version = 11 : i64} {
  func.func @_mlp_head_kernel(%arg0: i32, %arg1: memref<2x2912xbf16, #tpu.memory_space<vmem>>, %arg2: memref<2912x256xbf16, #tpu.memory_space<vmem>>, %arg3: memref<1x256xf32, #tpu.memory_space<vmem>>, %arg4: memref<256x9xf32, #tpu.memory_space<vmem>>, %arg5: memref<1x9xf32, #tpu.memory_space<vmem>>, %arg6: memref<2x9xf32, #tpu.memory_space<vmem>>) attributes {dimension_semantics = [#tpu.dimension_semantics<arbitrary>], iteration_bounds = array<i64: 1>, scalar_prefetch = 0 : i64, scratch_operands = 0 : i64, tpu.core_type = #tpu.core_type<tc>, window_params = [{pipeline_mode = #tpu.pipeline_mode<synchronous>, transform_indices = @transform_0, window_bounds = array<i64: 2, 2912>}, {pipeline_mode = #tpu.pipeline_mode<synchronous>, transform_indices = @transform_1, window_bounds = array<i64: 2912, 256>}, {pipeline_mode = #tpu.pipeline_mode<synchronous>, transform_indices = @transform_2, window_bounds = array<i64: 1, 256>}, {pipeline_mode = #tpu.pipeline_mode<synchronous>, transform_indices = @transform_3, window_bounds = array<i64: 256, 9>}, {pipeline_mode = #tpu.pipeline_mode<synchronous>, transform_indices = @transform_4, window_bounds = array<i64: 1, 9>}, {pipeline_mode = #tpu.pipeline_mode<synchronous>, transform_indices = @transform_5, window_bounds = array<i64: 2, 9>}]} {
    %c0 = arith.constant 0 : index
    %c0_0 = arith.constant 0 : index
    %0 = vector.load %arg1[%c0, %c0_0] : memref<2x2912xbf16, #tpu.memory_space<vmem>>, vector<2x2912xbf16>
    %c0_1 = arith.constant 0 : index
    %c0_2 = arith.constant 0 : index
    %1 = vector.load %arg2[%c0_1, %c0_2] : memref<2912x256xbf16, #tpu.memory_space<vmem>>, vector<2912x256xbf16>
    %cst = arith.constant dense<0.000000e+00> : vector<2x256xf32>
    %2 = tpu.matmul %0, %1, %cst {dimension_numbers = #tpu.dot_dimension_numbers<[1], [0], [0], [1], [0, 0, 1, 1], [], []>} : vector<2x2912xbf16>, vector<2912x256xbf16>, vector<2x256xf32> -> vector<2x256xf32>
    %c0_3 = arith.constant 0 : index
    %c0_4 = arith.constant 0 : index
    %3 = vector.load %arg3[%c0_3, %c0_4] : memref<1x256xf32, #tpu.memory_space<vmem>>, vector<1x256xf32>
    %4 = vector.broadcast %3 : vector<1x256xf32> to vector<2x256xf32>
    %5 = arith.addf %2, %4 : vector<2x256xf32>
    %cst_5 = arith.constant 0.000000e+00 : f32
    %6 = vector.broadcast %cst_5 : f32 to vector<2x256xf32>
    %7 = arith.maximumf %5, %6 : vector<2x256xf32>
    %c0_6 = arith.constant 0 : index
    %c0_7 = arith.constant 0 : index
    %8 = vector.load %arg4[%c0_6, %c0_7] : memref<256x9xf32, #tpu.memory_space<vmem>>, vector<256x9xf32>
    %cst_8 = arith.constant dense<0.000000e+00> : vector<2x9xf32>
    %9 = tpu.matmul %7, %8, %cst_8 {dimension_numbers = #tpu.dot_dimension_numbers<[1], [0], [0], [1], [0, 0, 1, 1], [], []>} : vector<2x256xf32>, vector<256x9xf32>, vector<2x9xf32> -> vector<2x9xf32>
    %c0_9 = arith.constant 0 : index
    %c0_10 = arith.constant 0 : index
    %10 = vector.load %arg5[%c0_9, %c0_10] : memref<1x9xf32, #tpu.memory_space<vmem>>, vector<1x9xf32>
    %11 = vector.broadcast %10 : vector<1x9xf32> to vector<2x9xf32>
    %12 = arith.addf %9, %11 : vector<2x9xf32>
    %13 = arith.negf %12 : vector<2x9xf32>
    %14 = math.exp %13 : vector<2x9xf32>
    %cst_11 = arith.constant 1.000000e+00 : f32
    %15 = vector.broadcast %cst_11 : f32 to vector<2x9xf32>
    %16 = arith.addf %15, %14 : vector<2x9xf32>
    %17 = arith.divf %15, %16 : vector<2x9xf32>
    %c0_12 = arith.constant 0 : index
    %c0_13 = arith.constant 0 : index
    %18 = vector.load %arg6[%c0_12, %c0_13] : memref<2x9xf32, #tpu.memory_space<vmem>>, vector<2x9xf32>
    tpu.vector_store %arg6[%c0_12, %c0_13], %17 {strides = array<i32>} : memref<2x9xf32, #tpu.memory_space<vmem>>, vector<2x9xf32>,
    return
  }
  func.func @transform_0(%arg0: i32) -> (i32, i32) {
    %c0_i32 = arith.constant 0 : i32
    %c0_i32_0 = arith.constant 0 : i32
    %c0_i32_1 = arith.constant 0 : i32
    return %c0_i32, %c0_i32_0 : i32, i32
  }
  func.func @transform_1(%arg0: i32) -> (i32, i32) {
    %c0_i32 = arith.constant 0 : i32
    %c0_i32_0 = arith.constant 0 : i32
    %c0_i32_1 = arith.constant 0 : i32
    return %c0_i32, %c0_i32_0 : i32, i32
  }
  func.func @transform_2(%arg0: i32) -> (i32, i32) {
    %c0_i32 = arith.constant 0 : i32
    %c0_i32_0 = arith.constant 0 : i32
    %c0_i32_1 = arith.constant 0 : i32
    return %c0_i32, %c0_i32_0 : i32, i32
  }
  func.func @transform_3(%arg0: i32) -> (i32, i32) {
    %c0_i32 = arith.constant 0 : i32
    %c0_i32_0 = arith.constant 0 : i32
    %c0_i32_1 = arith.constant 0 : i32
    return %c0_i32, %c0_i32_0 : i32, i32
  }
  func.func @transform_4(%arg0: i32) -> (i32, i32) {
    %c0_i32 = arith.constant 0 : i32
    %c0_i32_0 = arith.constant 0 : i32
    %c0_i32_1 = arith.constant 0 : i32
    return %c0_i32, %c0_i32_0 : i32, i32
  }
  func.func @transform_5(%arg0: i32) -> (i32, i32) {
    %c0_i32 = arith.constant 0 : i32
    %c0_i32_0 = arith.constant 0 : i32
    %c0_i32_1 = arith.constant 0 : i32
    return %c0_i32, %c0_i32_0 : i32, i32
  }
}

</mosaic_0001>

<bundles_post_ra>
// kernel: sim_camera_net_forward.4
= control target key start
LH: loop header
LB: loop body
LE: loop exit
PB: predicated region body
PF: predicated region fallthrough
CT: control target
= control target key end

     0   :  { %s6160_s24 = smov 0   ;;  %s6162_s25 = smov 0   ;;  %s7314_s0 = inlined_call_operand.vmem [shape: bf16[2040,512], index: 0, kind: input, shape index: {}]   ;;  %s7315_s1 = inlined_call_operand.vmem [shape: bf16[512,128], index: 1, kind: input, shape index: {}]   ;;  %s7316_s2 = inlined_call_operand.vmem [shape: f32[1,128], index: 2, kind: input, shape index: {}]   ;;  %s7317_s3 = inlined_call_operand.vmem [shape: bf16[1922,72], index: 3, kind: input, shape index: {}]   ;;  %s7318_s4 = inlined_call_operand.vmem [shape: bf16[72,128], index: 4, kind: input, shape index: {}]   ;;  %s7319_s5 = inlined_call_operand.vmem [shape: f32[1,128], index: 5, kind: input, shape index: {}]   ;;  %s7320_s6 = inlined_call_operand.vmem [shape: bf16[2040,128], index: 6, kind: output, shape index: {0}]   ;;  %s7321_s7 = inlined_call_operand.vmem [shape: bf16[1922,128], index: 7, kind: output, shape index: {1}]  }
   0x1   :  { %s6164_s26 = smov 0  }
   0x2 LB: > { %s6173_s27 = sadd.s32 4294967295, %s6051_s26   ;;  %s6175_s28 = sadd.s32 1, %s6051_s26   ;;  %s6051_s26 = sphi %s6164_s26, %s7331_s26   ;;  %s6047_s25 = sphi %s6162_s25, %s7330_s25   ;;  %s6043_s24 = sphi %s6160_s24, %s7329_s24  }
   0x3   : > { %s158_s29 = ssub.s32 %s6051_s26, %s6175_s28  ;;  %s161_s30 = sadd.s32 1, %s6047_s25 }
   0x4   : > { %p159_p0 = scmp.eq.s32.totalorder %s158_s29, 0  ;;  %p171_p1 = scmp.ne.s32.totalorder %s6047_s25, %s6043_s24 }
   0x5   : > { %p172_p2 = scmp.eq.s32.totalorder %s6173_s27, 3  ;;  %p4285_p3 = scmp.ge.s32.totalorder %s6051_s26, 1 }
   0x6   : > { %s6183_s8 = scalar_select %p159_p0, %s6047_s25, %s161_s30  }
   0x7   : > { %p6185_p4 = por %p172_p2, %p171_p1  ;;  %p271_p5 = scmp.lt.s32.totalorder %s6051_s26, 5 }
   0x9   : > { %p272_p6 = pnand %p4285_p3, %p271_p5 }
   0xa   : > { %v5699_v0 = vld [vmem:[%s7315_s1] sm:$0xff] (!%p272_p6)   ;;  %v6117_v1 = vmov (!%p272_p6), 0   ;;  %s6195_s12 = sshll.u32 (!%p272_p6), %s6173_s27, 6  ;;  %v5700_v2 = vld [vmem:[%s7315_s1 + $0x8] sm:$0xff] (!%p272_p6)   ;;  %v5701_v3 = vld [vmem:[%s7315_s1 + $0x10] sm:$0xff] (!%p272_p6)   ;;  %v6118_v23 = vmov (!%p272_p6), 0.0  }
   0xb   : > { %275 = sbr.rel (%p272_p6) target bundleno = 873 (0x369), region = 44  ;;  %1394 = vmatprep.subr.bf16.mxu0 (!%p272_p6), %v6117_v1  ;;  %5350 = vmatprep.subr.bf16.mxu1 (!%p272_p6), %v6117_v1  ;;  %p327_p7 = scmp.lt.s32.totalorder (!%p272_p6), %s6195_s12, 254  ;;  %v5702_v4 = vld [vmem:[%s7315_s1 + $0x18] sm:$0xff] (!%p272_p6)   ;;  %v5703_v5 = vld [vmem:[%s7315_s1 + $0x20] sm:$0xff] (!%p272_p6)   ;;  %v5704_v7 = vld [vmem:[%s7315_s1 + $0x28] sm:$0xff] (!%p272_p6)   ;;  %vm2710_vm0 = vcmask (!%p272_p6), 1043456  }
   0xc   : > { %1395 = vmatpush1.bf16.msra.mxu0 (!%p272_p6), %v5699_v0  ;;  %5366 = vmatpush1.bf16.msra.mxu1 (!%p272_p6), %v5699_v0  ;;  %v5705_v9 = vld [vmem:[%s7315_s1 + $0x30] sm:$0xff] (!%p272_p6)   ;;  %v5706_v10 = vld [vmem:[%s7315_s1 + $0x38] sm:$0xff] (!%p272_p6)   ;;  %v5707_v11 = vld [vmem:[%s7315_s1 + $0x40] sm:$0xff] (!%p272_p6)   ;;  %s6294_s21 = smul.u32 (!%p272_p6), 62, %s6173_s27  ;;  %vm6119_vm1 = vmmov (!%p272_p6), 0   ;;  %vm2616_vm2 = vcmask (!%p272_p6), 588800  }
   0xd   : > { %1396 = vmatprep.subr.bf16.mxu0 (!%p272_p6), %v6117_v1  ;;  %5351 = vmatprep.subr.bf16.mxu1 (!%p272_p6), %v6117_v1  ;;  %v5708_v12 = vld [vmem:[%s7315_s1 + $0x48] sm:$0xff] (!%p272_p6)   ;;  %v5709_v13 = vld [vmem:[%s7315_s1 + $0x50] sm:$0xff] (!%p272_p6)   ;;  %v5710_v14 = vld [vmem:[%s7315_s1 + $0x58] sm:$0xff] (!%p272_p6)   ;;  %s312_s14 = sand.u32 (!%p272_p6), 1, %s6043_s24  }
   0xe   : > { %v5711_v15 = vld [vmem:[%s7315_s1 + $0x60] sm:$0xff] (!%p272_p6)   ;;  %v5712_v16 = vld [vmem:[%s7315_s1 + $0x68] sm:$0xff] (!%p272_p6)   ;;  %v5713_v17 = vld [vmem:[%s7315_s1 + $0x70] sm:$0xff] (!%p272_p6)   ;;  %p343_p8 = scmp.lt.s32.totalorder (!%p272_p6), %s6294_s21, 240  ;;  %s4286_s16 = sshll.u32 (!%p272_p6), %s312_s14, 8 }
   0xf   : > { %v5714_v18 = vld [vmem:[%s7315_s1 + $0x78] sm:$0xff] (!%p272_p6)   ;;  %v5718_v20 = vld [vmem:[%s7315_s1 + $0x80] sm:$0xff] (!%p272_p6)   ;;  %v5725_v26 = vld [vmem:[%s7315_s1 + $0x88] sm:$0xff] (!%p272_p6)   ;;  %s6687_s24 = scalar_lea.vmem (!%p272_p6), [#allocation2], %s4286_s16  }
  0x10   : > { %1397 = vmatpush1.bf16.msra.mxu0 (!%p272_p6), %v5700_v2  ;;  %5367 = vmatpush1.bf16.msra.mxu1 (!%p272_p6), %v5700_v2  ;;  %v5726_v24 = vld [vmem:[%s7318_s4] sm:$0xff] (!%p272_p6)   ;;  %v5748_v27 = vld [vmem:[%s7318_s4 + $0x8] sm:$0xff] (!%p272_p6)   ;;  %v5733_v31 = vld [vmem:[%s7315_s1 + $0x90] sm:$0xff] (!%p272_p6)  }
  0x11   : > { %1398 = vmatprep.subr.bf16.mxu0 (!%p272_p6), %v6117_v1  ;;  %5352 = vmatprep.subr.bf16.mxu1 (!%p272_p6), %v6117_v1  ;;  %v5772_v33 = vld [vmem:[%s7318_s4 + $0x10] sm:$0xff] (!%p272_p6)   ;;  %v5740_v34 = vld [vmem:[%s7315_s1 + $0x98] sm:$0xff] (!%p272_p6)   ;;  %v5820_v39 = vld [vmem:[%s7318_s4 + $0x20] ss:$0 sps:$4 sm:$0xff] (!%p272_p6)  }
  0x12   : > { %s328_s17 = scalar_select %p327_p7, %s6195_s12, 254  ;;  %v5795_v38 = vld [vmem:[%s7318_s4 + $0x18] sm:$0xff]   ;;  %v5747_v41 = vld [vmem:[%s7315_s1 + $0xa0] sm:$0xff]   ;;  %v2712_v42 = vsel %vm2710_vm0, %v5820_v39, 0  ;;  %v5755_v44 = vld [vmem:[%s7315_s1 + $0xa8] sm:$0xff]  }
  0x13   : > { %s344_s15 = scalar_select %p343_p8, %s6294_s21, 240  ;;  %v5762_v48 = vld [vmem:[%s7315_s1 + $0xb0] sm:$0xff]   ;;  %v5769_v49 = vld [vmem:[%s7315_s1 + $0xb8] sm:$0xff]   ;;  %v5777_v54 = vld [vmem:[%s7315_s1 + $0xc0] sm:$0xff]  }
  0x14   : > { %1399 = vmatpush1.bf16.msra.mxu0 %v5701_v3  ;;  %5368 = vmatpush1.bf16.msra.mxu1 %v5701_v3  ;;  %s4673_s20 = sshll.u32 %s328_s17, 4  ;;  %v5784_v55 = vld [vmem:[%s7315_s1 + $0xc8] sm:$0xff]   ;;  %v5791_v60 = vld [vmem:[%s7315_s1 + $0xd0] sm:$0xff]   ;;  %v5799_v61 = vld [vmem:[%s7315_s1 + $0xd8] sm:$0xff]   ;;  %s4800_s22 = sshll.u32 (%p6185_p4), %s6173_s27, 8 }
  0x15   : > { %1400 = vmatprep.subr.bf16.mxu0 %v6117_v1  ;;  %5353 = vmatprep.subr.bf16.mxu1 %v6117_v1  ;;  %s6220_s29 = scalar_lea.vmem %s7314_s0, %s4673_s20  ;;  %s4290_s20 = sshll.u32 %s344_s15, 2  ;;  %v5806_v3 = vld [vmem:[%s7315_s1 + $0xe0] sm:$0xff]  }
  0x16   : > { %v5717_v6 = vld [vmem:[%s6220_s29 + $0x4] ss:$16 sps:$4 sm:$0xff]   ;;  %v5715_v19 = vld [vmem:[%s6220_s29] ss:$16 sps:$4 sm:$0xff]   ;;  %s6340_s13 = scalar_lea.vmem %s7317_s3, %s4290_s20  ;;  %s5542_s15 = smul.u32 248, %s312_s14 }
  0x17   : > { %v5721_v8 = vld [vmem:[%s6220_s29 + $0x204] ss:$16 sps:$4 sm:$0xff]   ;;  %1426 = vmatprep.mubr.bf16.mxu0 %v5717_v6  ;;  %v5719_v21 = vld [vmem:[%s6220_s29 + $0x200] ss:$16 sps:$4 sm:$0xff]   ;;  %s3379_s20 = ssub.s32 (%p6185_p4), 255, %s6195_s12  ;;  %s6942_s30 = scalar_lea.vmem (%p6185_p4), %s7320_s6, %s4800_s22  }
  0x18   : > { %1401 = vmatpush1.bf16.msra.mxu0 %v5702_v4  ;;  %5369 = vmatpush1.bf16.msra.mxu1 %v5702_v4  ;;  %v5722_v22 = vld [vmem:[%s6220_s29 + $0x24] ss:$16 sps:$4 sm:$0xff]   ;;  %v5724_v28 = vld [vmem:[%s6220_s29 + $0x20] ss:$16 sps:$4 sm:$0xff]   ;;  %v5813_v4 = vld [vmem:[%s7315_s1 + $0xe8] sm:$0xff]   ;;  %s6691_s17 = scalar_lea.vmem [#allocation3], %s5542_s15  }
  0x19   : > { %1402 = vmatprep.subr.bf16.mxu0 %v6117_v1  ;;  %5354 = vmatprep.subr.bf16.mxu1 %v6117_v1  ;;  %v5727_v25 = vld [vmem:[%s6220_s29 + $0x224] ss:$16 sps:$4 sm:$0xff]   ;;  %v5729_v29 = vld [vmem:[%s6220_s29 + $0x220] ss:$16 sps:$4 sm:$0xff]   ;;  %p3380_p9 = scmp.lt.s32.totalorder (%p6185_p4), %s3379_s20, 64 }
  0x1a   : > { %1554 = vmatprep.mubr.bf16.mxu1 %v5721_v8  ;;  %v5730_v30 = vld [vmem:[%s6220_s29 + $0x44] ss:$16 sps:$4 sm:$0xff]   ;;  %v5732_v35 = vld [vmem:[%s6220_s29 + $0x40] ss:$16 sps:$4 sm:$0xff]  }
  0x1b   : > { %v5734_v32 = vld [vmem:[%s6220_s29 + $0x244] ss:$16 sps:$4 sm:$0xff]   ;;  %v5736_v36 = vld [vmem:[%s6220_s29 + $0x240] ss:$16 sps:$4 sm:$0xff]  }
  0x1c   : > { %1403 = vmatpush1.bf16.msra.mxu0 %v5703_v5  ;;  %5370 = vmatpush1.bf16.msra.mxu1 %v5703_v5  ;;  %v5737_v37 = vld [vmem:[%s6220_s29 + $0x64] ss:$16 sps:$4 sm:$0xff]   ;;  %v5739_v43 = vld [vmem:[%s6220_s29 + $0x60] ss:$16 sps:$4 sm:$0xff]  }
  0x1d   : > { %1404 = vmatprep.subr.bf16.mxu0 %v6117_v1  ;;  %5355 = vmatprep.subr.bf16.mxu1 %v6117_v1  ;;  %v5741_v40 = vld [vmem:[%s6220_s29 + $0x264] ss:$16 sps:$4 sm:$0xff]   ;;  %v5743_v45 = vld [vmem:[%s6220_s29 + $0x260] ss:$16 sps:$4 sm:$0xff]  }
  0x1e   : > { %v5744_v46 = vld [vmem:[%s6220_s29 + $0x84] ss:$16 sps:$4 sm:$0xff]   ;;  %v5746_v50 = vld [vmem:[%s6220_s29 + $0x80] ss:$16 sps:$4 sm:$0xff]  }
  0x1f   : > { %v5749_v47 = vld [vmem:[%s6220_s29 + $0x284] ss:$16 sps:$4 sm:$0xff]   ;;  %v5751_v51 = vld [vmem:[%s6220_s29 + $0x280] ss:$16 sps:$4 sm:$0xff]  }
  0x20   : > { %1405 = vmatpush1.bf16.msra.mxu0 %v5704_v7  ;;  %5371 = vmatpush1.bf16.msra.mxu1 %v5704_v7  ;;  %v5752_v52 = vld [vmem:[%s6220_s29 + $0xa4] ss:$16 sps:$4 sm:$0xff]   ;;  %v5754_v56 = vld [vmem:[%s6220_s29 + $0xa0] ss:$16 sps:$4 sm:$0xff]  }
  0x21   : > { %1406 = vmatprep.subr.bf16.mxu0 %v6117_v1  ;;  %5356 = vmatprep.subr.bf16.mxu1 %v6117_v1  ;;  %v5756_v53 = vld [vmem:[%s6220_s29 + $0x2a4] ss:$16 sps:$4 sm:$0xff]   ;;  %v5758_v57 = vld [vmem:[%s6220_s29 + $0x2a0] ss:$16 sps:$4 sm:$0xff]  }
  0x22   : > { %v5759_v58 = vld [vmem:[%s6220_s29 + $0xc4] ss:$16 sps:$4 sm:$0xff]   ;;  %v5761_v62 = vld [vmem:[%s6220_s29 + $0xc0] ss:$16 sps:$4 sm:$0xff]  }
  0x23   : > { %v5763_v59 = vld [vmem:[%s6220_s29 + $0x2c4] ss:$16 sps:$4 sm:$0xff]   ;;  %v5765_v63 = vld [vmem:[%s6220_s29 + $0x2c0] ss:$16 sps:$4 sm:$0xff]  }
  0x24   : > { %1407 = vmatpush1.bf16.msra.mxu0 %v5705_v9  ;;  %5372 = vmatpush1.bf16.msra.mxu1 %v5705_v9  ;;  %v5766_v0 = vld [vmem:[%s6220_s29 + $0xe4] ss:$16 sps:$4 sm:$0xff]   ;;  %v5768_v5 = vld [vmem:[%s6220_s29 + $0xe0] ss:$16 sps:$4 sm:$0xff]  }
  0x25   : > { %1408 = vmatprep.subr.bf16.mxu0 %v6117_v1  ;;  %5357 = vmatprep.subr.bf16.mxu1 %v6117_v1  ;;  %v5770_v2 = vld [vmem:[%s6220_s29 + $0x2e4] ss:$16 sps:$4 sm:$0xff]   ;;  %v5773_v6 = vld [vmem:[%s6220_s29 + $0x2e0] ss:$16 sps:$4 sm:$0xff]  }
  0x26   : > { %v5774_v7 = vld [vmem:[%s6220_s29 + $0x104] ss:$16 sps:$4 sm:$0xff]   ;;  %v5827_v39 = vld [vmem:[%s6220_s29 + $0x1e0] ss:$16 sps:$4 sm:$0xff]  }
  0x27   : > { %v5778_v8 = vld [vmem:[%s6220_s29 + $0x304] ss:$16 sps:$4 sm:$0xff]  }
  0x28   : > { %1409 = vmatpush1.bf16.msra.mxu0 %v5706_v10  ;;  %5373 = vmatpush1.bf16.msra.mxu1 %v5706_v10  ;;  %v5821_v9 = vld [vmem:[%s7315_s1 + $0xf0] sm:$0xff]   ;;  %v5828_v10 = vld [vmem:[%s7315_s1 + $0xf8] sm:$0xff]  }
  0x29   : > { %1410 = vmatprep.subr.bf16.mxu0 %v6117_v1  ;;  %5358 = vmatprep.subr.bf16.mxu1 %v6117_v1 }
  0x2c   : > { %1411 = vmatpush1.bf16.msra.mxu0 %v5707_v11  ;;  %5374 = vmatpush1.bf16.msra.mxu1 %v5707_v11  ;;  %v5776_v11 = vld [vmem:[%s6220_s29 + $0x100] ss:$16 sps:$4 sm:$0xff]  }
  0x2d   : > { %1412 = vmatprep.subr.bf16.mxu0 %v6117_v1  ;;  %5359 = vmatprep.subr.bf16.mxu1 %v6117_v1 }
  0x30   : > { %1413 = vmatpush1.bf16.msra.mxu0 %v5708_v12  ;;  %5375 = vmatpush1.bf16.msra.mxu1 %v5708_v12  ;;  %v5780_v12 = vld [vmem:[%s6220_s29 + $0x300] ss:$16 sps:$4 sm:$0xff]  }
  0x31   : > { %1414 = vmatprep.subr.bf16.mxu0 %v6117_v1  ;;  %5360 = vmatprep.subr.bf16.mxu1 %v6117_v1 }
  0x34   : > { %1415 = vmatpush1.bf16.msra.mxu0 %v5709_v13  ;;  %5376 = vmatpush1.bf16.msra.mxu1 %v5709_v13  ;;  %v5781_v13 = vld [vmem:[%s6220_s29 + $0x124] ss:$16 sps:$4 sm:$0xff]  }
  0x35   : > { %1416 = vmatprep.subr.bf16.mxu0 %v6117_v1  ;;  %5361 = vmatprep.subr.bf16.mxu1 %v6117_v1 }
  0x38   : > { %1417 = vmatpush1.bf16.msra.mxu0 %v5710_v14  ;;  %5377 = vmatpush1.bf16.msra.mxu1 %v5710_v14  ;;  %v5785_v14 = vld [vmem:[%s6220_s29 + $0x324] ss:$16 sps:$4 sm:$0xff]  }
  0x39   : > { %1418 = vmatprep.subr.bf16.mxu0 %v6117_v1  ;;  %5362 = vmatprep.subr.bf16.mxu1 %v6117_v1 }
  0x3c   : > { %1419 = vmatpush1.bf16.msra.mxu0 %v5711_v15  ;;  %5378 = vmatpush1.bf16.msra.mxu1 %v5711_v15  ;;  %v5783_v15 = vld [vmem:[%s6220_s29 + $0x120] ss:$16 sps:$4 sm:$0xff]  }
  0x3d   : > { %1420 = vmatprep.subr.bf16.mxu0 %v6117_v1  ;;  %5363 = vmatprep.subr.bf16.mxu1 %v6117_v1 }
  0x40   : > { %1421 = vmatpush1.bf16.msra.mxu0 %v5712_v16  ;;  %5379 = vmatpush1.bf16.msra.mxu1 %v5712_v16  ;;  %v5787_v16 = vld [vmem:[%s6220_s29 + $0x320] ss:$16 sps:$4 sm:$0xff]  }
  0x41   : > { %1422 = vmatprep.subr.bf16.mxu0 %v6117_v1  ;;  %5364 = vmatprep.subr.bf16.mxu1 %v6117_v1 }
  0x44   : > { %1423 = vmatpush1.bf16.msra.mxu0 %v5713_v17  ;;  %5380 = vmatpush1.bf16.msra.mxu1 %v5713_v17  ;;  %v5788_v17 = vld [vmem:[%s6220_s29 + $0x144] ss:$16 sps:$4 sm:$0xff]  }
  0x45   : > { %1424 = vmatprep.subr.bf16.mxu0 %v6117_v1  ;;  %5365 = vmatprep.subr.bf16.mxu1 %v6117_v1 }
  0x48   : > { %1425 = vmatpush1.bf16.msra.mxu0 %v5714_v18  ;;  %5381 = vmatpush1.bf16.msra.mxu1 %v5714_v18  ;;  %v5792_v18 = vld [vmem:[%s6220_s29 + $0x344] ss:$16 sps:$4 sm:$0xff]  }
  0x49   : > { %1683 = vmatprep.subr.bf16.mxu0 %v6117_v1  ;;  %5216 = vmatprep.subr.bf16.mxu1 %v6118_v23 }
  0x4b   : > { %1427 = vmatmul.mubr.bf16.vlgmr.msra.gmra.mrb[0].mxu0 %v5715_v19  ;;  %1555 = vmatmul.mubr.bf16.vlgmr.msra.gmra.mrb[0].mxu1 %v5719_v21  ;;  %v5794_v19 = vld [vmem:[%s6220_s29 + $0x340] ss:$16 sps:$4 sm:$0xff]   ;;  %v5800_v21 = vld [vmem:[%s6220_s29 + $0x364] ss:$16 sps:$4 sm:$0xff]  }
  0x4c   : > { %1684 = vmatpush1.bf16.msra.mxu0 %v5718_v20  ;;  %1434 = vmatprep.mubr.bf16.mxu0 %v5722_v22  ;;  %v5796_v20 = vld [vmem:[%s6220_s29 + $0x164] ss:$16 sps:$4 sm:$0xff]   ;;  %v5798_v22 = vld [vmem:[%s6220_s29 + $0x160] ss:$16 sps:$4 sm:$0xff]  }
  0x4d   : > { %1685 = vmatprep.subr.bf16.mxu0 %v6117_v1  ;;  %5217 = vmatpush3.bf16.msra.mxu1 %v5726_v24  ;;  %v5802_v24 = vld [vmem:[%s6220_s29 + $0x360] ss:$16 sps:$4 sm:$0xff]  }
  0x4e   : > { %1562 = vmatprep.mubr.bf16.mxu1 %v5727_v25  ;;  %5218 = vmatprep.subr.bf16.mxu1 %v6118_v23  ;;  %v5803_v25 = vld [vmem:[%s6220_s29 + $0x184] ss:$16 sps:$4 sm:$0xff]  }
  0x50   : > { %1686 = vmatpush1.bf16.msra.mxu0 %v5725_v26  ;;  %v5807_v26 = vld [vmem:[%s6220_s29 + $0x384] ss:$16 sps:$4 sm:$0xff]  }
  0x51   : > { %1687 = vmatprep.subr.bf16.mxu0 %v6117_v1  ;;  %5219 = vmatpush3.bf16.msra.mxu1 %v5748_v27  ;;  %v5805_v27 = vld [vmem:[%s6220_s29 + $0x180] ss:$16 sps:$4 sm:$0xff]  }
  0x52   : > { %5220 = vmatprep.subr.bf16.mxu1 %v6118_v23 }
  0x53   : > { %1435 = vmatmul.mubr.bf16.gmra.mrb[4].mxu0 %v5724_v28  ;;  %1563 = vmatmul.mubr.bf16.gmra.mrb[4].mxu1 %v5729_v29  ;;  %v5809_v28 = vld [vmem:[%s6220_s29 + $0x380] ss:$16 sps:$4 sm:$0xff]   ;;  %v5810_v29 = vld [vmem:[%s6220_s29 + $0x1a4] ss:$16 sps:$4 sm:$0xff]  }
  0x54   : > { %1442 = vmatprep.mubr.bf16.mxu0 %v5730_v30  ;;  %1688 = vmatpush1.bf16.msra.mxu0 %v5733_v31  ;;  %v5814_v30 = vld [vmem:[%s6220_s29 + $0x3a4] ss:$16 sps:$4 sm:$0xff]   ;;  %v5812_v31 = vld [vmem:[%s6220_s29 + $0x1a0] ss:$16 sps:$4 sm:$0xff]  }
  0x55   : > { %1570 = vmatprep.mubr.bf16.mxu1 %v5734_v32  ;;  %1689 = vmatprep.subr.bf16.mxu0 %v6117_v1  ;;  %v5816_v32 = vld [vmem:[%s6220_s29 + $0x3a0] ss:$16 sps:$4 sm:$0xff]  }
  0x56   : > { %5221 = vmatpush3.bf16.msra.mxu1 %v5772_v33  ;;  %v5817_v33 = vld [vmem:[%s6220_s29 + $0x1c4] ss:$16 sps:$4 sm:$0xff]  }
  0x57   : > { %5222 = vmatprep.subr.bf16.mxu1 %v6118_v23 }
  0x58   : > { %1690 = vmatpush1.bf16.msra.mxu0 %v5740_v34  ;;  %v5822_v34 = vld [vmem:[%s6220_s29 + $0x3c4] ss:$16 sps:$4 sm:$0xff]  }
  0x59   : > { %1691 = vmatprep.subr.bf16.mxu0 %v6117_v1 }
  0x5a   : > { %5223 = vmatpush3.bf16.msra.mxu1 %v5795_v38  ;;  %v5829_v38 = vld [vmem:[%s6220_s29 + $0x3e4] ss:$16 sps:$4 sm:$0xff]  }
  0x5b   : > { %1443 = vmatmul.mubr.bf16.gmra.mrb[8].mxu0 %v5732_v35  ;;  %1571 = vmatmul.mubr.bf16.gmra.mrb[8].mxu1 %v5736_v36  ;;  %v5819_v35 = vld [vmem:[%s6220_s29 + $0x1c0] ss:$16 sps:$4 sm:$0xff]  }
  0x5c   : > { %1450 = vmatprep.mubr.bf16.mxu0 %v5737_v37  ;;  %1578 = vmatprep.mubr.bf16.mxu1 %v5741_v40  ;;  %v5824_v36 = vld [vmem:[%s6220_s29 + $0x3c0] ss:$16 sps:$4 sm:$0xff]   ;;  %v5825_v37 = vld [vmem:[%s6220_s29 + $0x1e4] ss:$16 sps:$4 sm:$0xff]  }
  0x5d   : > { %1692 = vmatpush1.bf16.msra.mxu0 %v5747_v41  ;;  %5224 = vmatprep.subr.bf16.mxu1 %v6118_v23  ;;  %v5831_v40 = vld [vmem:[%s6220_s29 + $0x3e0] ss:$16 sps:$4 sm:$0xff]   ;;  %v5834_v41 = vld [vmem:[%s6220_s29 + $0xc] ss:$16 sps:$4 sm:$0xff]  }
  0x5e   : > { %1693 = vmatprep.subr.bf16.mxu0 %v6117_v1  ;;  %5225 = vmatpush3.bf16.msra.mxu1 %v2712_v42  ;;  %v5832_v42 = vld [vmem:[%s6220_s29 + $0x8] ss:$16 sps:$4 sm:$0xff]  }
  0x61   : > { %1694 = vmatpush1.bf16.msra.mxu0 %v5755_v44  ;;  %v5836_v44 = vld [vmem:[%s6220_s29 + $0x2c] ss:$16 sps:$4 sm:$0xff]  }
  0x62   : > { %1695 = vmatprep.subr.bf16.mxu0 %v6117_v1 }
  0x63   : > { %1451 = vmatmul.mubr.bf16.gmra.mrb[12].mxu0 %v5739_v43  ;;  %1579 = vmatmul.mubr.bf16.gmra.mrb[12].mxu1 %v5743_v45  ;;  %v5835_v43 = vld [vmem:[%s6340_s13] sm:$0xff]   ;;  %v5838_v45 = vld [vmem:[%s6220_s29 + $0x28] ss:$16 sps:$4 sm:$0xff]  }
  0x64   : > { %1458 = vmatprep.mubr.bf16.mxu0 %v5744_v46  ;;  %1586 = vmatprep.mubr.bf16.mxu1 %v5749_v47  ;;  %v5839_v46 = vld [vmem:[%s6340_s13 + $0x8] sm:$0xff]  }
  0x65   : > { %1696 = vmatpush1.bf16.msra.mxu0 %v5762_v48  ;;  %v5840_v47 = vld [vmem:[%s6220_s29 + $0x4c] ss:$16 sps:$4 sm:$0xff]   ;;  %v5842_v48 = vld [vmem:[%s6220_s29 + $0x48] ss:$16 sps:$4 sm:$0xff]  }
  0x66   : > { %1697 = vmatprep.subr.bf16.mxu0 %v6117_v1 }
  0x69   : > { %1698 = vmatpush1.bf16.msra.mxu0 %v5769_v49  ;;  %v5843_v49 = vld [vmem:[%s6340_s13 + $0x10] sm:$0xff]  }
  0x6a   : > { %1699 = vmatprep.subr.bf16.mxu0 %v6117_v1 }
  0x6b   : > { %1459 = vmatmul.mubr.bf16.gmra.mrb[16].mxu0 %v5746_v50  ;;  %1587 = vmatmul.mubr.bf16.gmra.mrb[16].mxu1 %v5751_v51  ;;  %v5844_v50 = vld [vmem:[%s6220_s29 + $0x6c] ss:$16 sps:$4 sm:$0xff]   ;;  %v5846_v51 = vld [vmem:[%s6220_s29 + $0x68] ss:$16 sps:$4 sm:$0xff]  }
  0x6c   : > { %1466 = vmatprep.mubr.bf16.mxu0 %v5752_v52  ;;  %1594 = vmatprep.mubr.bf16.mxu1 %v5756_v53  ;;  %v5847_v52 = vld [vmem:[%s6340_s13 + $0x18] sm:$0xff]  }
  0x6d   : > { %1700 = vmatpush1.bf16.msra.mxu0 %v5777_v54  ;;  %v5848_v53 = vld [vmem:[%s6220_s29 + $0x8c] ss:$16 sps:$4 sm:$0xff]   ;;  %v5850_v54 = vld [vmem:[%s6220_s29 + $0x88] ss:$16 sps:$4 sm:$0xff]  }
  0x6e   : > { %1701 = vmatprep.subr.bf16.mxu0 %v6117_v1 }
  0x71   : > { %1702 = vmatpush1.bf16.msra.mxu0 %v5784_v55  ;;  %v5851_v55 = vld [vmem:[%s6340_s13 + $0x20] sm:$0xff]  }
  0x72   : > { %1703 = vmatprep.subr.bf16.mxu0 %v6117_v1 }
  0x73   : > { %1467 = vmatmul.mubr.bf16.gmra.mrb[20].mxu0 %v5754_v56  ;;  %1595 = vmatmul.mubr.bf16.gmra.mrb[20].mxu1 %v5758_v57  ;;  %v5852_v56 = vld [vmem:[%s6220_s29 + $0xac] ss:$16 sps:$4 sm:$0xff]   ;;  %v5854_v57 = vld [vmem:[%s6220_s29 + $0xa8] ss:$16 sps:$4 sm:$0xff]  }
  0x74   : > { %1474 = vmatprep.mubr.bf16.mxu0 %v5759_v58  ;;  %1602 = vmatprep.mubr.bf16.mxu1 %v5763_v59  ;;  %v5855_v58 = vld [vmem:[%s6340_s13 + $0x28] sm:$0xff]  }
  0x75   : > { %1704 = vmatpush1.bf16.msra.mxu0 %v5791_v60  ;;  %v5856_v59 = vld [vmem:[%s6220_s29 + $0xcc] ss:$16 sps:$4 sm:$0xff]   ;;  %v5858_v60 = vld [vmem:[%s6220_s29 + $0xc8] ss:$16 sps:$4 sm:$0xff]  }
  0x76   : > { %1705 = vmatprep.subr.bf16.mxu0 %v6117_v1 }
  0x79   : > { %1706 = vmatpush1.bf16.msra.mxu0 %v5799_v61  ;;  %v5859_v61 = vld [vmem:[%s6340_s13 + $0x30] sm:$0xff]  }
  0x7a   : > { %1707 = vmatprep.subr.bf16.mxu0 %v6117_v1 }
  0x7b   : > { %1475 = vmatmul.mubr.bf16.gmra.mrb[24].mxu0 %v5761_v62  ;;  %1603 = vmatmul.mubr.bf16.gmra.mrb[24].mxu1 %v5765_v63  ;;  %v5860_v62 = vld [vmem:[%s6220_s29 + $0xec] ss:$16 sps:$4 sm:$0xff]   ;;  %v5862_v63 = vld [vmem:[%s6220_s29 + $0xe8] ss:$16 sps:$4 sm:$0xff]  }
  0x7c   : > { %1482 = vmatprep.mubr.bf16.mxu0 %v5766_v0  ;;  %1610 = vmatprep.mubr.bf16.mxu1 %v5770_v2  ;;  %v5863_v0 = vld [vmem:[%s6340_s13 + $0x38] sm:$0xff]  }
  0x7d   : > { %1708 = vmatpush1.bf16.msra.mxu0 %v5806_v3  ;;  %v5864_v2 = vld [vmem:[%s6220_s29 + $0x10c] ss:$16 sps:$4 sm:$0xff]   ;;  %v5866_v3 = vld [vmem:[%s6220_s29 + $0x108] ss:$16 sps:$4 sm:$0xff]  }
  0x7e   : > { %1709 = vmatprep.subr.bf16.mxu0 %v6117_v1 }
  0x81   : > { %1710 = vmatpush1.bf16.msra.mxu0 %v5813_v4  ;;  %v5867_v4 = vld [vmem:[%s6340_s13 + $0x40] sm:$0xff]  }
  0x82   : > { %1711 = vmatprep.subr.bf16.mxu0 %v6117_v1 }
  0x83   : > { %1483 = vmatmul.mubr.bf16.gmra.mrb[28].mxu0 %v5768_v5  ;;  %1611 = vmatmul.mubr.bf16.gmra.mrb[28].mxu1 %v5773_v6  ;;  %v5868_v5 = vld [vmem:[%s6220_s29 + $0x12c] ss:$16 sps:$4 sm:$0xff]   ;;  %v5870_v6 = vld [vmem:[%s6220_s29 + $0x128] ss:$16 sps:$4 sm:$0xff]  }
  0x84   : > { %1490 = vmatprep.mubr.bf16.mxu0 %v5774_v7  ;;  %1618 = vmatprep.mubr.bf16.mxu1 %v5778_v8  ;;  %v5871_v7 = vld [vmem:[%s6340_s13 + $0x48] sm:$0xff]  }
  0x85   : > { %1712 = vmatpush1.bf16.msra.mxu0 %v5821_v9  ;;  %v5872_v8 = vld [vmem:[%s6220_s29 + $0x14c] ss:$16 sps:$4 sm:$0xff]   ;;  %v5874_v9 = vld [vmem:[%s6220_s29 + $0x148] ss:$16 sps:$4 sm:$0xff]  }
  0x86   : > { %1713 = vmatprep.subr.bf16.mxu0 %v6117_v1  ;;  %v5790_v1 = vld [vmem:[%s6220_s29 + $0x140] ss:$16 sps:$4 sm:$0xff]  }
  0x89   : > { %1714 = vmatpush1.bf16.msra.mxu0 %v5828_v10  ;;  %v5875_v10 = vld [vmem:[%s6340_s13 + $0x50] sm:$0xff]  }
  0x8b   : > { %1491 = vmatmul.mubr.bf16.gmra.mrb[32].mxu0 %v5776_v11  ;;  %1619 = vmatmul.mubr.bf16.gmra.mrb[32].mxu1 %v5780_v12  ;;  %v5876_v11 = vld [vmem:[%s6220_s29 + $0x16c] ss:$16 sps:$4 sm:$0xff]  }
  0x8c   : > { %1498 = vmatprep.mubr.bf16.mxu0 %v5781_v13  ;;  %1626 = vmatprep.mubr.bf16.mxu1 %v5785_v14  ;;  %v5878_v13 = vld [vmem:[%s6220_s29 + $0x168] ss:$16 sps:$4 sm:$0xff]  }
  0x93   : > { %1499 = vmatmul.mubr.bf16.gmra.mrb[36].mxu0 %v5783_v15  ;;  %1627 = vmatmul.mubr.bf16.gmra.mrb[36].mxu1 %v5787_v16  ;;  %v5879_v15 = vld [vmem:[%s6340_s13 + $0x58] sm:$0xff]  }
  0x94   : > { %1506 = vmatprep.mubr.bf16.mxu0 %v5788_v17  ;;  %1634 = vmatprep.mubr.bf16.mxu1 %v5792_v18  ;;  %v5880_v17 = vld [vmem:[%s6220_s29 + $0x18c] ss:$16 sps:$4 sm:$0xff]  }
  0x9b   : > { %1507 = vmatmul.mubr.bf16.gmra.mrb[40].mxu0 %v5790_v1  ;;  %1635 = vmatmul.mubr.bf16.gmra.mrb[40].mxu1 %v5794_v19  ;;  %v5882_v19 = vld [vmem:[%s6220_s29 + $0x188] ss:$16 sps:$4 sm:$0xff]  }
  0x9c   : > { %1514 = vmatprep.mubr.bf16.mxu0 %v5796_v20  ;;  %1642 = vmatprep.mubr.bf16.mxu1 %v5800_v21  ;;  %v5883_v21 = vld [vmem:[%s6340_s13 + $0x60] sm:$0xff]  }
  0xa3   : > { %1515 = vmatmul.mubr.bf16.gmra.mrb[44].mxu0 %v5798_v22  ;;  %1643 = vmatmul.mubr.bf16.gmra.mrb[44].mxu1 %v5802_v24  ;;  %v5884_v24 = vld [vmem:[%s6220_s29 + $0x1ac] ss:$16 sps:$4 sm:$0xff]  }
  0xa4   : > { %1522 = vmatprep.mubr.bf16.mxu0 %v5803_v25  ;;  %1650 = vmatprep.mubr.bf16.mxu1 %v5807_v26 }
  0xab   : > { %1523 = vmatmul.mubr.bf16.gmra.mrb[48].mxu0 %v5805_v27  ;;  %1651 = vmatmul.mubr.bf16.gmra.mrb[48].mxu1 %v5809_v28  ;;  %v5886_v27 = vld [vmem:[%s6220_s29 + $0x1a8] ss:$16 sps:$4 sm:$0xff]  }
  0xac   : > { %1530 = vmatprep.mubr.bf16.mxu0 %v5810_v29  ;;  %1658 = vmatprep.mubr.bf16.mxu1 %v5814_v30  ;;  %v5887_v29 = vld [vmem:[%s6340_s13 + $0x68] sm:$0xff]  }
  0xb3   : > { %1531 = vmatmul.mubr.bf16.gmra.mrb[52].mxu0 %v5812_v31  ;;  %1659 = vmatmul.mubr.bf16.gmra.mrb[52].mxu1 %v5816_v32  ;;  %v5888_v31 = vld [vmem:[%s6220_s29 + $0x1cc] ss:$16 sps:$4 sm:$0xff]  }
  0xb4   : > { %1538 = vmatprep.mubr.bf16.mxu0 %v5817_v33  ;;  %1666 = vmatprep.mubr.bf16.mxu1 %v5822_v34  ;;  %v5890_v34 = vld [vmem:[%s6220_s29 + $0x1c8] ss:$16 sps:$4 sm:$0xff]  }
  0xbb   : > { %1539 = vmatmul.mubr.bf16.gmra.mrb[56].mxu0 %v5819_v35  ;;  %1667 = vmatmul.mubr.bf16.gmra.mrb[56].mxu1 %v5824_v36  ;;  %v5891_v36 = vld [vmem:[%s6340_s13 + $0x70] sm:$0xff]  }
  0xbc   : > { %1546 = vmatprep.mubr.bf16.mxu0 %v5825_v37  ;;  %1674 = vmatprep.mubr.bf16.mxu1 %v5829_v38  ;;  %v5892_v38 = vld [vmem:[%s6220_s29 + $0x1ec] ss:$16 sps:$4 sm:$0xff]  }
  0xc3   : > { %1547 = vmatmul.mubr.bf16.gmra.mrb[60].mxu0 %v5827_v39  ;;  %1675 = vmatmul.mubr.bf16.gmra.mrb[60].mxu1 %v5831_v40 }
  0xc4   : > { %1715 = vmatprep.mubr.bf16.mxu0 %v5834_v41  ;;  %5226 = vmatprep.mubr.msk.bf16.mxu1 %vm6119_vm1, %v6118_v23  ;;  %v5894_v41 = vld [vmem:[%s6220_s29 + $0x1e8] ss:$16 sps:$4 sm:$0xff]  }
  0xcb   : > { %1716 = vmatmul.mubr.bf16.vlgmr.msra.gmra.mrb[0].mxu0 %v5832_v42  ;;  %5227 = vmatmul.mubr.msk.bf16.vlgmr.msra.gmra.mrb[64].mxu1 %vm2616_vm2, %v5835_v43  ;;  %v5895_v43 = vld [vmem:[%s6340_s13 + $0x78] sm:$0xff]  }
  0xcc   : > { %1723 = vmatprep.mubr.bf16.mxu0 %v5836_v44  ;;  %5230 = vmatprep.mubr.msk.bf16.mxu1 %vm6119_vm1, %v6118_v23 }
  0xd3   : > { %1724 = vmatmul.mubr.bf16.gmra.mrb[4].mxu0 %v5838_v45  ;;  %5231 = vmatmul.mubr.msk.bf16.gmra.mrb[68].mxu1 %vm2616_vm2, %v5839_v46  ;;  %v5896_v45 = vld [vmem:[%s6220_s29 + $0x20c] ss:$16 sps:$4 sm:$0xff]  }
  0xd4   : > { %1731 = vmatprep.mubr.bf16.mxu0 %v5840_v47  ;;  %5234 = vmatprep.mubr.msk.bf16.mxu1 %vm6119_vm1, %v6118_v23 }
  0xdb   : > { %1732 = vmatmul.mubr.bf16.gmra.mrb[8].mxu0 %v5842_v48  ;;  %5235 = vmatmul.mubr.msk.bf16.gmra.mrb[72].mxu1 %vm2616_vm2, %v5843_v49  ;;  %v5898_v48 = vld [vmem:[%s6220_s29 + $0x208] ss:$16 sps:$4 sm:$0xff]  }
  0xdc   : > { %1739 = vmatprep.mubr.bf16.mxu0 %v5844_v50  ;;  %5238 = vmatprep.mubr.msk.bf16.mxu1 %vm6119_vm1, %v6118_v23  ;;  %v5899_v50 = vld [vmem:[%s6340_s13 + $0x80] sm:$0xff]  }
  0xe3   : > { %1740 = vmatmul.mubr.bf16.gmra.mrb[12].mxu0 %v5846_v51  ;;  %5239 = vmatmul.mubr.msk.bf16.gmra.mrb[76].mxu1 %vm2616_vm2, %v5847_v52  ;;  %v5900_v52 = vld [vmem:[%s6220_s29 + $0x22c] ss:$16 sps:$4 sm:$0xff]  }
  0xe4   : > { %1747 = vmatprep.mubr.bf16.mxu0 %v5848_v53  ;;  %5242 = vmatprep.mubr.msk.bf16.mxu1 %vm6119_vm1, %v6118_v23 }
  0xeb   : > { %1748 = vmatmul.mubr.bf16.gmra.mrb[16].mxu0 %v5850_v54  ;;  %5243 = vmatmul.mubr.msk.bf16.gmra.mrb[80].mxu1 %vm2616_vm2, %v5851_v55  ;;  %v5902_v55 = vld [vmem:[%s6220_s29 + $0x228] ss:$16 sps:$4 sm:$0xff]  }
  0xec   : > { %1755 = vmatprep.mubr.bf16.mxu0 %v5852_v56  ;;  %5246 = vmatprep.mubr.msk.bf16.mxu1 %vm6119_vm1, %v6118_v23 }
  0xf3   : > { %1756 = vmatmul.mubr.bf16.gmra.mrb[20].mxu0 %v5854_v57  ;;  %5247 = vmatmul.mubr.msk.bf16.gmra.mrb[84].mxu1 %vm2616_vm2, %v5855_v58  ;;  %v5903_v57 = vld [vmem:[%s6340_s13 + $0x88] sm:$0xff]  }
  0xf4   : > { %1763 = vmatprep.mubr.bf16.mxu0 %v5856_v59  ;;  %5250 = vmatprep.mubr.msk.bf16.mxu1 %vm6119_vm1, %v6118_v23  ;;  %v5904_v59 = vld [vmem:[%s6220_s29 + $0x24c] ss:$16 sps:$4 sm:$0xff]  }
  0xfb   : > { %1764 = vmatmul.mubr.bf16.gmra.mrb[24].mxu0 %v5858_v60  ;;  %5251 = vmatmul.mubr.msk.bf16.gmra.mrb[88].mxu1 %vm2616_vm2, %v5859_v61 }
  0xfc   : > { %1771 = vmatprep.mubr.bf16.mxu0 %v5860_v62  ;;  %5254 = vmatprep.mubr.msk.bf16.mxu1 %vm6119_vm1, %v6118_v23  ;;  %v5906_v62 = vld [vmem:[%s6220_s29 + $0x248] ss:$16 sps:$4 sm:$0xff]  }
 0x103   : > { %1772 = vmatmul.mubr.bf16.gmra.mrb[28].mxu0 %v5862_v63  ;;  %5255 = vmatmul.mubr.msk.bf16.gmra.mrb[92].mxu1 %vm2616_vm2, %v5863_v0  ;;  %v5907_v0 = vld [vmem:[%s6340_s13 + $0x90] sm:$0xff]  }
 0x104   : > { %1779 = vmatprep.mubr.bf16.mxu0 %v5864_v2  ;;  %5258 = vmatprep.mubr.msk.bf16.mxu1 %vm6119_vm1, %v6118_v23 }
 0x10b   : > { %1780 = vmatmul.mubr.bf16.gmra.mrb[32].mxu0 %v5866_v3  ;;  %5259 = vmatmul.mubr.msk.bf16.gmra.mrb[96].mxu1 %vm2616_vm2, %v5867_v4  ;;  %v5908_v3 = vld [vmem:[%s6220_s29 + $0x26c] ss:$16 sps:$4 sm:$0xff]  }
 0x10c   : > { %1787 = vmatprep.mubr.bf16.mxu0 %v5868_v5  ;;  %5262 = vmatprep.mubr.msk.bf16.mxu1 %vm6119_vm1, %v6118_v23 }
 0x113   : > { %1788 = vmatmul.mubr.bf16.gmra.mrb[36].mxu0 %v5870_v6  ;;  %5263 = vmatmul.mubr.msk.bf16.gmra.mrb[100].mxu1 %vm2616_vm2, %v5871_v7  ;;  %v5910_v6 = vld [vmem:[%s6220_s29 + $0x268] ss:$16 sps:$4 sm:$0xff]  }
 0x114   : > { %1795 = vmatprep.mubr.bf16.mxu0 %v5872_v8  ;;  %5266 = vmatprep.mubr.msk.bf16.mxu1 %vm6119_vm1, %v6118_v23  ;;  %v5911_v8 = vld [vmem:[%s6340_s13 + $0x98] sm:$0xff]  }
 0x11b   : > { %1796 = vmatmul.mubr.bf16.gmra.mrb[40].mxu0 %v5874_v9  ;;  %5267 = vmatmul.mubr.msk.bf16.gmra.mrb[104].mxu1 %vm2616_vm2, %v5875_v10  ;;  %v5912_v10 = vld [vmem:[%s6220_s29 + $0x28c] ss:$16 sps:$4 sm:$0xff]  }
 0x11c   : > { %1803 = vmatprep.mubr.bf16.mxu0 %v5876_v11  ;;  %5270 = vmatprep.mubr.msk.bf16.mxu1 %vm6119_vm1, %v6118_v23 }
 0x11e   : > { %v6506_v12 = vpop.f32.mrb[0].mxu1 }
 0x11f   : > { %v1558_v14 = vpop.f32.mrb[1].mxu1 }
 0x120   : > { %v6510_v16 = vpop.f32.mrb[2].mxu1  ;;  %v5914_v14 = vld [vmem:[%s6220_s29 + $0x288] ss:$16 sps:$4 sm:$0xff]  }
 0x121   : > { %v1561_v18 = vpop.f32.mrb[3].mxu1 }
 0x123   : > { %1804 = vmatmul.mubr.bf16.gmra.mrb[44].mxu0 %v5878_v13  ;;  %5271 = vmatmul.mubr.msk.bf16.gmra.mrb[108].mxu1 %vm2616_vm2, %v5879_v15 }
 0x124   : > { %1811 = vmatprep.mubr.bf16.mxu0 %v5880_v17  ;;  %5274 = vmatprep.mubr.msk.bf16.mxu1 %vm6119_vm1, %v6118_v23  ;;  %v5915_v17 = vld [vmem:[%s6340_s13 + $0xa0] sm:$0xff]  }
 0x126   : > { %v6516_v1 = vpop.f32.mrb[4].mxu1 }
 0x127   : > { %v1566_v20 = vpop.f32.mrb[5].mxu1 }
 0x128   : > { %v6520_v22 = vpop.f32.mrb[6].mxu1 }
 0x129   : > { %v1569_v25 = vpop.f32.mrb[7].mxu1 }
 0x12b   : > { %1812 = vmatmul.mubr.bf16.gmra.mrb[48].mxu0 %v5882_v19  ;;  %5275 = vmatmul.mubr.msk.bf16.gmra.mrb[112].mxu1 %vm2616_vm2, %v5883_v21  ;;  %v5916_v19 = vld [vmem:[%s6220_s29 + $0x2ac] ss:$16 sps:$4 sm:$0xff]  }
 0x12c   : > { %1819 = vmatprep.mubr.bf16.mxu0 %v5884_v24  ;;  %5278 = vmatprep.mubr.msk.bf16.mxu1 %vm6119_vm1, %v6118_v23  ;;  %v5918_v24 = vld [vmem:[%s6220_s29 + $0x2a8] ss:$16 sps:$4 sm:$0xff]  }
 0x12e   : > { %v6526_v26 = vpop.f32.mrb[8].mxu1 }
 0x12f   : > { %v1574_v28 = vpop.f32.mrb[9].mxu1 }
 0x130   : > { %v6530_v30 = vpop.f32.mrb[10].mxu1 }
 0x131   : > { %v1577_v32 = vpop.f32.mrb[11].mxu1 }
 0x133   : > { %1820 = vmatmul.mubr.bf16.gmra.mrb[52].mxu0 %v5886_v27  ;;  %5279 = vmatmul.mubr.msk.bf16.gmra.mrb[116].mxu1 %vm2616_vm2, %v5887_v29  ;;  %v5919_v27 = vld [vmem:[%s6340_s13 + $0xa8] sm:$0xff]  }
 0x134   : > { %1827 = vmatprep.mubr.bf16.mxu0 %v5888_v31  ;;  %5282 = vmatprep.mubr.msk.bf16.mxu1 %vm6119_vm1, %v6118_v23  ;;  %v5920_v29 = vld [vmem:[%s6220_s29 + $0x2cc] ss:$16 sps:$4 sm:$0xff]  }
 0x136   : > { %v6536_v33 = vpop.f32.mrb[12].mxu1 }
 0x137   : > { %v1582_v35 = vpop.f32.mrb[13].mxu1 }
 0x138   : > { %v6540_v37 = vpop.f32.mrb[14].mxu1 }
 0x139   : > { %v1585_v39 = vpop.f32.mrb[15].mxu1 }
 0x13a   : > { %v5924_v39 = vld [vmem:[%s6220_s29 + $0x2ec] ss:$16 sps:$4 sm:$0xff]  }
 0x13b   : > { %1828 = vmatmul.mubr.bf16.gmra.mrb[56].mxu0 %v5890_v34  ;;  %5283 = vmatmul.mubr.msk.bf16.gmra.mrb[120].mxu1 %vm2616_vm2, %v5891_v36  ;;  %v5922_v34 = vld [vmem:[%s6220_s29 + $0x2c8] ss:$16 sps:$4 sm:$0xff]   ;;  %v5923_v36 = vld [vmem:[%s6340_s13 + $0xb0] sm:$0xff]  }
 0x13c   : > { %1835 = vmatprep.mubr.bf16.mxu0 %v5892_v38  ;;  %5286 = vmatprep.mubr.msk.bf16.mxu1 %vm6119_vm1, %v6118_v23 }
 0x13e   : > { %v6546_v40 = vpop.f32.mrb[16].mxu1 }
 0x13f   : > { %v1590_v42 = vpop.f32.mrb[17].mxu1 }
 0x140   : > { %v6550_v44 = vpop.f32.mrb[18].mxu1 }
 0x141   : > { %v1593_v46 = vpop.f32.mrb[19].mxu1 }
 0x142   : > { %v5927_v46 = vld [vmem:[%s6340_s13 + $0xb8] sm:$0xff]  }
 0x143   : > { %1836 = vmatmul.mubr.bf16.gmra.mrb[60].mxu0 %v5894_v41  ;;  %5287 = vmatmul.mubr.msk.bf16.gmra.mrb[124].mxu1 %vm2616_vm2, %v5895_v43  ;;  %v5926_v43 = vld [vmem:[%s6220_s29 + $0x2e8] ss:$16 sps:$4 sm:$0xff]  }
 0x144   : > { %1843 = vmatprep.mubr.bf16.mxu0 %v5896_v45  ;;  %5290 = vmatprep.mubr.msk.bf16.mxu1 %vm6119_vm1, %v6118_v23 }
 0x146   : > { %v6556_v47 = vpop.f32.mrb[20].mxu1 }
 0x147   : > { %v1598_v49 = vpop.f32.mrb[21].mxu1 }
 0x148   : > { %v6560_v51 = vpop.f32.mrb[22].mxu1  ;;  %v5928_v49 = vld [vmem:[%s6220_s29 + $0x30c] ss:$16 sps:$4 sm:$0xff]  }
 0x149   : > { %v1601_v53 = vpop.f32.mrb[23].mxu1 }
 0x14a   : > { %v5930_v53 = vld [vmem:[%s6220_s29 + $0x308] ss:$16 sps:$4 sm:$0xff]  }
 0x14b   : > { %1844 = vmatmul.mubr.bf16.gmra.mrb[64].mxu0 %v5898_v48  ;;  %5291 = vmatmul.mubr.msk.bf16.gmra.mrb[128].mxu1 %vm2616_vm2, %v5899_v50 }
 0x14c   : > { %1851 = vmatprep.mubr.bf16.mxu0 %v5900_v52  ;;  %5294 = vmatprep.mubr.msk.bf16.mxu1 %vm6119_vm1, %v6118_v23 }
 0x14e   : > { %v6566_v54 = vpop.f32.mrb[24].mxu1 }
 0x14f   : > { %v1606_v56 = vpop.f32.mrb[25].mxu1 }
 0x150   : > { %v6570_v58 = vpop.f32.mrb[26].mxu1  ;;  %v5931_v56 = vld [vmem:[%s6340_s13 + $0xc0] sm:$0xff]  }
 0x151   : > { %v1609_v60 = vpop.f32.mrb[27].mxu1 }
 0x153   : > { %1852 = vmatmul.mubr.bf16.gmra.mrb[68].mxu0 %v5902_v55  ;;  %5295 = vmatmul.mubr.msk.bf16.gmra.mrb[132].mxu1 %vm2616_vm2, %v5903_v57 }
 0x154   : > { %1859 = vmatprep.mubr.bf16.mxu0 %v5904_v59  ;;  %5298 = vmatprep.mubr.msk.bf16.mxu1 %vm6119_vm1, %v6118_v23  ;;  %v5932_v59 = vld [vmem:[%s6220_s29 + $0x32c] ss:$16 sps:$4 sm:$0xff]  }
 0x156   : > { %v6576_v61 = vpop.f32.mrb[28].mxu1 }
 0x157   : > { %v1614_v63 = vpop.f32.mrb[29].mxu1 }
 0x158   : > { %v6580_v2 = vpop.f32.mrb[30].mxu1  ;;  %v5934_v63 = vld [vmem:[%s6220_s29 + $0x328] ss:$16 sps:$4 sm:$0xff]  }
 0x159   : > { %v1617_v4 = vpop.f32.mrb[31].mxu1 }
 0x15b   : > { %1860 = vmatmul.mubr.bf16.gmra.mrb[72].mxu0 %v5906_v62  ;;  %5299 = vmatmul.mubr.msk.bf16.gmra.mrb[136].mxu1 %vm2616_vm2, %v5907_v0 }
 0x15c   : > { %1867 = vmatprep.mubr.bf16.mxu0 %v5908_v3  ;;  %5302 = vmatprep.mubr.msk.bf16.mxu1 %vm6119_vm1, %v6118_v23  ;;  %v5935_v3 = vld [vmem:[%s6340_s13 + $0xc8] sm:$0xff]  }
 0x15e   : > { %v6586_v5 = vpop.f32.mrb[32].mxu1 }
 0x15f   : > { %v1622_v7 = vpop.f32.mrb[33].mxu1 }
 0x160   : > { %v6590_v9 = vpop.f32.mrb[34].mxu1 }
 0x161   : > { %v1625_v11 = vpop.f32.mrb[35].mxu1 }
 0x163   : > { %1868 = vmatmul.mubr.bf16.gmra.mrb[76].mxu0 %v5910_v6  ;;  %5303 = vmatmul.mubr.msk.bf16.gmra.mrb[140].mxu1 %vm2616_vm2, %v5911_v8  ;;  %v5936_v6 = vld [vmem:[%s6220_s29 + $0x34c] ss:$16 sps:$4 sm:$0xff]  }
 0x164   : > { %1875 = vmatprep.mubr.bf16.mxu0 %v5912_v10  ;;  %5306 = vmatprep.mubr.msk.bf16.mxu1 %vm6119_vm1, %v6118_v23  ;;  %v5938_v10 = vld [vmem:[%s6220_s29 + $0x348] ss:$16 sps:$4 sm:$0xff]  }
 0x166   : > { %v6596_v13 = vpop.f32.mrb[36].mxu1 }
 0x167   : > { %v1630_v15 = vpop.f32.mrb[37].mxu1 }
 0x168   : > { %v6600_v18 = vpop.f32.mrb[38].mxu1 }
 0x169   : > { %v1633_v20 = vpop.f32.mrb[39].mxu1 }
 0x16a   : > { %v6667_v20 = vld [vmem:[%s7319_s5] ss:$0 sm:$0xff] }
 0x16b   : > { %1876 = vmatmul.mubr.bf16.gmra.mrb[80].mxu0 %v5914_v14  ;;  %5307 = vmatmul.mubr.msk.bf16.gmra.mrb[144].mxu1 %vm2616_vm2, %v5915_v17  ;;  %v5939_v14 = vld [vmem:[%s6340_s13 + $0xd0] sm:$0xff]   ;;  %v5940_v17 = vld [vmem:[%s6220_s29 + $0x36c] ss:$16 sps:$4 sm:$0xff]  }
 0x16c   : > { %1883 = vmatprep.mubr.bf16.mxu0 %v5916_v19  ;;  %5310 = vmatprep.mubr.msk.bf16.mxu1 %vm6119_vm1, %v6118_v23 }
 0x16e   : > { %v6606_v21 = vpop.f32.mrb[40].mxu1 }
 0x16f   : > { %v1638_v25 = vpop.f32.mrb[41].mxu1 }
 0x170   : > { %v6610_v28 = vpop.f32.mrb[42].mxu1 }
 0x171   : > { %v1641_v31 = vpop.f32.mrb[43].mxu1 }
 0x173   : > { %1884 = vmatmul.mubr.bf16.gmra.mrb[84].mxu0 %v5918_v24  ;;  %5311 = vmatmul.mubr.msk.bf16.gmra.mrb[148].mxu1 %vm2616_vm2, %v5919_v27  ;;  %v6674_v24 = vld [vmem:[%s7316_s2] ss:$0 sm:$0xff] }
 0x174   : > { %1891 = vmatprep.mubr.bf16.mxu0 %v5920_v29  ;;  %5314 = vmatprep.mubr.msk.bf16.mxu1 %vm6119_vm1, %v6118_v23 }
 0x176   : > { %v6616_v32 = vpop.f32.mrb[44].mxu1 }
 0x177   : > { %v1646_v35 = vpop.f32.mrb[45].mxu1 }
 0x178   : > { %v6620_v38 = vpop.f32.mrb[46].mxu1 }
 0x179   : > { %v1649_v41 = vpop.f32.mrb[47].mxu1 }
 0x17b   : > { %1892 = vmatmul.mubr.bf16.gmra.mrb[88].mxu0 %v5922_v34  ;;  %5315 = vmatmul.mubr.msk.bf16.gmra.mrb[152].mxu1 %vm2616_vm2, %v5923_v36  ;;  %v5942_v34 = vld [vmem:[%s6220_s29 + $0x368] ss:$16 sps:$4 sm:$0xff]  }
 0x17c   : > { %1899 = vmatprep.mubr.bf16.mxu0 %v5924_v39  ;;  %5318 = vmatprep.mubr.msk.bf16.mxu1 %vm6119_vm1, %v6118_v23  ;;  %v5943_v39 = vld [vmem:[%s6340_s13 + $0xd8] sm:$0xff]  }
 0x17e   : > { %v6626_v42 = vpop.f32.mrb[48].mxu1 }
 0x17f   : > { %v1654_v45 = vpop.f32.mrb[49].mxu1 }
 0x180   : > { %v6630_v48 = vpop.f32.mrb[50].mxu1  ;;  %v5944_v45 = vld [vmem:[%s6220_s29 + $0x38c] ss:$16 sps:$4 sm:$0xff]  }
 0x181   : > { %v1657_v50 = vpop.f32.mrb[51].mxu1 }
 0x183   : > { %1900 = vmatmul.mubr.bf16.gmra.mrb[92].mxu0 %v5926_v43  ;;  %5319 = vmatmul.mubr.msk.bf16.gmra.mrb[156].mxu1 %vm2616_vm2, %v5927_v46 }
 0x184   : > { %1907 = vmatprep.mubr.bf16.mxu0 %v5928_v49  ;;  %5322 = vmatprep.mubr.msk.bf16.mxu1 %vm6119_vm1, %v6118_v23 }
 0x186   : > { %v6636_v52 = vpop.f32.mrb[52].mxu1 }
 0x187   : > { %v1662_v55 = vpop.f32.mrb[53].mxu1 }
 0x188   : > { %v6640_v57 = vpop.f32.mrb[54].mxu1 }
 0x189   : > { %v1665_v60 = vpop.f32.mrb[55].mxu1 }
 0x18b   : > { %1908 = vmatmul.mubr.bf16.gmra.mrb[96].mxu0 %v5930_v53  ;;  %5323 = vmatmul.mubr.msk.bf16.gmra.mrb[160].mxu1 %vm2616_vm2, %v5931_v56 }
 0x18c   : > { %1915 = vmatprep.mubr.bf16.mxu0 %v5932_v59  ;;  %5326 = vmatprep.mubr.msk.bf16.mxu1 %vm6119_vm1, %v6118_v23 }
 0x18e   : > { %v6646_v62 = vpop.f32.mrb[56].mxu1 }
 0x18f   : > { %v1670_v0 = vpop.f32.mrb[57].mxu1 }
 0x190   : > { %v6650_v4 = vpop.f32.mrb[58].mxu1 }
 0x191   : > { %v1673_v7 = vpop.f32.mrb[59].mxu1 }
 0x193   : > { %1916 = vmatmul.mubr.bf16.gmra.mrb[100].mxu0 %v5934_v63  ;;  %5327 = vmatmul.mubr.msk.bf16.gmra.mrb[164].mxu1 %vm2616_vm2, %v5935_v3 }
 0x194   : > { %1923 = vmatprep.mubr.bf16.mxu0 %v5936_v6  ;;  %5330 = vmatprep.mubr.msk.bf16.mxu1 %vm6119_vm1, %v6118_v23 }
 0x196   : > { %v6656_v8 = vpop.f32.mrb[60].mxu1 }
 0x197   : > { %v1678_v11 = vpop.f32.mrb[61].mxu1 }
 0x198   : > { %v6660_v15 = vpop.f32.mrb[62].mxu1  ;;  %v5946_v11 = vld [vmem:[%s6220_s29 + $0x388] ss:$16 sps:$4 sm:$0xff]  }
 0x199   : > { %v1681_v19 = vpop.f32.mrb[63].mxu1 }
 0x19a   : > { %v5947_v19 = vld [vmem:[%s6340_s13 + $0xe0] sm:$0xff]  }
 0x19b   : > { %1924 = vmatmul.mubr.bf16.gmra.mrb[104].mxu0 %v5938_v10  ;;  %5331 = vmatmul.mubr.msk.bf16.gmra.mrb[168].mxu1 %vm2616_vm2, %v5939_v14 }
 0x19c   : > { %1931 = vmatprep.mubr.bf16.mxu0 %v5940_v17  ;;  %5334 = vmatprep.mubr.msk.bf16.mxu1 %vm6119_vm1, %v6118_v23 }
 0x19e   : > { %v1717_v25 = vpop.f32.mrb[0].mxu0  ;;  %v2748_v27 = vpop.f32.mrb[64].mxu1 }
 0x19f   : > { %v5382_v29 = vadd.f32 %v6674_v24, %v1717_v25  ;;  %v1719_v31 = vpop.f32.mrb[1].mxu0  ;;  %v2749_v35 = vadd.f32 %v6667_v20, %v2748_v27  ;;  %v5228_v36 = vpop.f32.mrb[65].mxu1 }
 0x1a0   : > { %v1720_v41 = vpop.f32.mrb[2].mxu0  ;;  %v2751_v43 = vpop.f32.mrb[66].mxu1 }
 0x1a1   : > { %v5383_v46 = vadd.f32 %v6674_v24, %v1720_v41  ;;  %v1722_v49 = vpop.f32.mrb[3].mxu0  ;;  %v2995_v50 = vmax.f32 %v2749_v35, 0.0  ;;  %v2752_v53 = vadd.f32 %v6667_v20, %v2751_v43  ;;  %v5229_v55 = vpop.f32.mrb[67].mxu1  ;;  %v1972_v56 = vmax.f32 %v5382_v29, 0.0  ;;  %v5948_v29 = vld [vmem:[%s6220_s29 + $0x3ac] ss:$16 sps:$4 sm:$0xff]  }
 0x1a3   : > { %v1973_v59 = vmax.f32 %v5383_v46, 0.0  ;;  %1932 = vmatmul.mubr.bf16.gmra.mrb[108].mxu0 %v5942_v34  ;;  %v2996_v60 = vmax.f32 %v2752_v53, 0.0  ;;  %5335 = vmatmul.mubr.msk.bf16.gmra.mrb[172].mxu1 %vm2616_vm2, %v5943_v39 }
 0x1a4   : > { %1939 = vmatprep.mubr.bf16.mxu0 %v5944_v45  ;;  %5338 = vmatprep.mubr.msk.bf16.mxu1 %vm6119_vm1, %v6118_v23 }
 0x1a5   : > { %v4807_v63 = vpack.c.bf16 %v1973_v59, %v1972_v56  ;;  %v4967_v0 = vpack.c.bf16 %v2996_v60, %v2995_v50  ;;  %v5950_v59 = vld [vmem:[%s6220_s29 + $0x3a8] ss:$16 sps:$4 sm:$0xff]  }
 0x1a6   : > { %v1725_v3 = vpop.f32.mrb[4].mxu0  ;;  %v2756_v6 = vpop.f32.mrb[68].mxu1 }
 0x1a7   : > { %4808 = vst [vmem:[%s6687_s24] sm:$0xff] %v4807_v63   ;;  %v5384_v7 = vadd.f32 %v6674_v24, %v1725_v3  ;;  %4968 = vst [vmem:[%s6691_s17] sm:$0xff] %v4967_v0   ;;  %v1727_v10 = vpop.f32.mrb[5].mxu0  ;;  %v2757_v14 = vadd.f32 %v6667_v20, %v2756_v6  ;;  %v5232_v17 = vpop.f32.mrb[69].mxu1  ;;  %v5951_v0 = vld [vmem:[%s6340_s13 + $0xe8] sm:$0xff]  }
 0x1a8   : > { %v1728_v25 = vpop.f32.mrb[6].mxu0  ;;  %v2759_v27 = vpop.f32.mrb[70].mxu1 }
 0x1a9   : > { %v5385_v31 = vadd.f32 %v6674_v24, %v1728_v25  ;;  %v1730_v34 = vpop.f32.mrb[7].mxu0  ;;  %v2997_v35 = vmax.f32 %v2757_v14, 0.0  ;;  %v2760_v36 = vadd.f32 %v6667_v20, %v2759_v27  ;;  %v5233_v39 = vpop.f32.mrb[71].mxu1  ;;  %v1974_v41 = vmax.f32 %v5384_v7, 0.0  ;;  %v5952_v7 = vld [vmem:[%s6220_s29 + $0x3cc] ss:$16 sps:$4 sm:$0xff]  }
 0x1ab   : > { %v1975_v43 = vmax.f32 %v5385_v31, 0.0  ;;  %1940 = vmatmul.mubr.bf16.gmra.mrb[112].mxu0 %v5946_v11  ;;  %v2998_v45 = vmax.f32 %v2760_v36, 0.0  ;;  %5339 = vmatmul.mubr.msk.bf16.gmra.mrb[176].mxu1 %vm2616_vm2, %v5947_v19 }
 0x1ac   : > { %1947 = vmatprep.mubr.bf16.mxu0 %v5948_v29  ;;  %5342 = vmatprep.mubr.msk.bf16.mxu1 %vm6119_vm1, %v6118_v23 }
 0x1ad   : > { %v4812_v46 = vpack.c.bf16 %v1975_v43, %v1974_v41  ;;  %v4972_v49 = vpack.c.bf16 %v2998_v45, %v2997_v35  ;;  %v5954_v43 = vld [vmem:[%s6220_s29 + $0x3c8] ss:$16 sps:$4 sm:$0xff]  }
 0x1ae   : > { %v1733_v50 = vpop.f32.mrb[8].mxu0  ;;  %v2764_v53 = vpop.f32.mrb[72].mxu1 }
 0x1af   : > { %5119 = vst [vmem:[%s6687_s24 + $0x8] sm:$0xff] %v4812_v46   ;;  %v5386_v55 = vadd.f32 %v6674_v24, %v1733_v50  ;;  %5150 = vst [vmem:[%s6691_s17 + $0x8] sm:$0xff] %v4972_v49   ;;  %v1735_v56 = vpop.f32.mrb[9].mxu0  ;;  %v2765_v60 = vadd.f32 %v6667_v20, %v2764_v53  ;;  %v5236_v63 = vpop.f32.mrb[73].mxu1  ;;  %v5955_v49 = vld [vmem:[%s6340_s13 + $0xf0] sm:$0xff]  }
 0x1b0   : > { %v1736_v3 = vpop.f32.mrb[10].mxu0  ;;  %v2767_v6 = vpop.f32.mrb[74].mxu1 }
 0x1b1   : > { %v5387_v10 = vadd.f32 %v6674_v24, %v1736_v3  ;;  %v1738_v11 = vpop.f32.mrb[11].mxu0  ;;  %v2999_v14 = vmax.f32 %v2765_v60, 0.0  ;;  %v2768_v17 = vadd.f32 %v6667_v20, %v2767_v6  ;;  %v5237_v19 = vpop.f32.mrb[75].mxu1  ;;  %v1976_v25 = vmax.f32 %v5386_v55, 0.0  ;;  %v5956_v55 = vld [vmem:[%s6220_s29 + $0x3ec] ss:$16 sps:$4 sm:$0xff]  }
 0x1b3   : > { %v1977_v27 = vmax.f32 %v5387_v10, 0.0  ;;  %1948 = vmatmul.mubr.bf16.gmra.mrb[116].mxu0 %v5950_v59  ;;  %v3000_v29 = vmax.f32 %v2768_v17, 0.0  ;;  %5343 = vmatmul.mubr.msk.bf16.gmra.mrb[180].mxu1 %vm2616_vm2, %v5951_v0 }
 0x1b4   : > { %1955 = vmatprep.mubr.bf16.mxu0 %v5952_v7  ;;  %5346 = vmatprep.mubr.msk.bf16.mxu1 %vm6119_vm1, %v6118_v23 }
 0x1b5   : > { %v4817_v31 = vpack.c.bf16 %v1977_v27, %v1976_v25  ;;  %v4977_v34 = vpack.c.bf16 %v3000_v29, %v2999_v14  ;;  %v5958_v25 = vld [vmem:[%s6220_s29 + $0x3e8] ss:$16 sps:$4 sm:$0xff]  }
 0x1b6   : > { %v1741_v35 = vpop.f32.mrb[12].mxu0  ;;  %v2772_v36 = vpop.f32.mrb[76].mxu1 }
 0x1b7   : > { %5120 = vst [vmem:[%s6687_s24 + $0x10] sm:$0xff] %v4817_v31   ;;  %v5388_v39 = vadd.f32 %v6674_v24, %v1741_v35  ;;  %5151 = vst [vmem:[%s6691_s17 + $0x10] sm:$0xff] %v4977_v34   ;;  %v1743_v41 = vpop.f32.mrb[13].mxu0  ;;  %v2773_v45 = vadd.f32 %v6667_v20, %v2772_v36  ;;  %v5240_v46 = vpop.f32.mrb[77].mxu1 }
 0x1b8   : > { %v1744_v50 = vpop.f32.mrb[14].mxu0  ;;  %v2775_v53 = vpop.f32.mrb[78].mxu1 }
 0x1b9   : > { %v5389_v23 = vadd.f32 %v6674_v24, %v1744_v50  ;;  %v1746_v56 = vpop.f32.mrb[15].mxu0  ;;  %v3001_v59 = vmax.f32 %v2773_v45, 0.0  ;;  %v2776_v60 = vadd.f32 %v6667_v20, %v2775_v53  ;;  %v5241_v63 = vpop.f32.mrb[79].mxu1  ;;  %v1978_v0 = vmax.f32 %v5388_v39, 0.0 }
 0x1bb   : > { %v1979_v3 = vmax.f32 %v5389_v23, 0.0  ;;  %1956 = vmatmul.mubr.bf16.gmra.mrb[120].mxu0 %v5954_v43  ;;  %v3002_v6 = vmax.f32 %v2776_v60, 0.0  ;;  %5347 = vmatmul.mubr.msk.bf16.gmra.mrb[184].mxu1 %vm2616_vm2, %v5955_v49 }
 0x1bc   : > { %1963 = vmatprep.mubr.bf16.mxu0 %v5956_v55 }
 0x1bd   : > { %v4822_v7 = vpack.c.bf16 %v1979_v3, %v1978_v0  ;;  %v4982_v10 = vpack.c.bf16 %v3002_v6, %v3001_v59 }
 0x1be   : > { %v1749_v11 = vpop.f32.mrb[16].mxu0  ;;  %v2780_v14 = vpop.f32.mrb[80].mxu1 }
 0x1bf   : > { %5121 = vst [vmem:[%s6687_s24 + $0x18] sm:$0xff] %v4822_v7   ;;  %v5390_v17 = vadd.f32 %v6674_v24, %v1749_v11  ;;  %5152 = vst [vmem:[%s6691_s17 + $0x18] sm:$0xff] %v4982_v10   ;;  %v1751_v19 = vpop.f32.mrb[17].mxu0  ;;  %v2781_v27 = vadd.f32 %v6667_v20, %v2780_v14  ;;  %v5244_v29 = vpop.f32.mrb[81].mxu1 }
 0x1c0   : > { %v1752_v31 = vpop.f32.mrb[18].mxu0  ;;  %v2783_v34 = vpop.f32.mrb[82].mxu1 }
 0x1c1   : > { %v5391_v35 = vadd.f32 %v6674_v24, %v1752_v31  ;;  %v1754_v36 = vpop.f32.mrb[19].mxu0  ;;  %v3003_v39 = vmax.f32 %v2781_v27, 0.0  ;;  %v2784_v41 = vadd.f32 %v6667_v20, %v2783_v34  ;;  %v5245_v43 = vpop.f32.mrb[83].mxu1  ;;  %v1980_v45 = vmax.f32 %v5390_v17, 0.0 }
 0x1c3   : > { %v1981_v46 = vmax.f32 %v5391_v35, 0.0  ;;  %1964 = vmatmul.mubr.bf16.gmra.mrb[124].mxu0 %v5958_v25  ;;  %v3004_v49 = vmax.f32 %v2784_v41, 0.0 }
 0x1c5   : > { %v4827_v50 = vpack.c.bf16 %v1981_v46, %v1980_v45  ;;  %v4987_v53 = vpack.c.bf16 %v3004_v49, %v3003_v39 }
 0x1c6   : > { %v1757_v55 = vpop.f32.mrb[20].mxu0  ;;  %v2788_v23 = vpop.f32.mrb[84].mxu1 }
 0x1c7   : > { %5122 = vst [vmem:[%s6687_s24 + $0x20] sm:$0xff] %v4827_v50   ;;  %v5392_v56 = vadd.f32 %v6674_v24, %v1757_v55  ;;  %5153 = vst [vmem:[%s6691_s17 + $0x20] sm:$0xff] %v4987_v53   ;;  %v1759_v59 = vpop.f32.mrb[21].mxu0  ;;  %v2789_v60 = vadd.f32 %v6667_v20, %v2788_v23  ;;  %v5248_v63 = vpop.f32.mrb[85].mxu1 }
 0x1c8   : > { %v1760_v0 = vpop.f32.mrb[22].mxu0  ;;  %v2791_v3 = vpop.f32.mrb[86].mxu1 }
 0x1c9   : > { %v5393_v6 = vadd.f32 %v6674_v24, %v1760_v0  ;;  %v1762_v7 = vpop.f32.mrb[23].mxu0  ;;  %v3005_v10 = vmax.f32 %v2789_v60, 0.0  ;;  %v2792_v11 = vadd.f32 %v6667_v20, %v2791_v3  ;;  %v5249_v14 = vpop.f32.mrb[87].mxu1  ;;  %v1982_v17 = vmax.f32 %v5392_v56, 0.0 }
 0x1cb   : > { %v1983_v19 = vmax.f32 %v5393_v6, 0.0  ;;  %v3006_v25 = vmax.f32 %v2792_v11, 0.0 }
 0x1cd   : > { %v4832_v27 = vpack.c.bf16 %v1983_v19, %v1982_v17  ;;  %v4992_v29 = vpack.c.bf16 %v3006_v25, %v3005_v10 }
 0x1ce   : > { %v1765_v31 = vpop.f32.mrb[24].mxu0  ;;  %v2796_v34 = vpop.f32.mrb[88].mxu1 }
 0x1cf   : > { %5123 = vst [vmem:[%s6687_s24 + $0x28] sm:$0xff] %v4832_v27   ;;  %v5394_v35 = vadd.f32 %v6674_v24, %v1765_v31  ;;  %5154 = vst [vmem:[%s6691_s17 + $0x28] sm:$0xff] %v4992_v29   ;;  %v1767_v36 = vpop.f32.mrb[25].mxu0  ;;  %v2797_v39 = vadd.f32 %v6667_v20, %v2796_v34  ;;  %v5252_v41 = vpop.f32.mrb[89].mxu1 }
 0x1d0   : > { %v1768_v43 = vpop.f32.mrb[26].mxu0  ;;  %v2799_v45 = vpop.f32.mrb[90].mxu1 }
 0x1d1   : > { %v5395_v46 = vadd.f32 %v6674_v24, %v1768_v43  ;;  %v1770_v49 = vpop.f32.mrb[27].mxu0  ;;  %v3007_v50 = vmax.f32 %v2797_v39, 0.0  ;;  %v2800_v53 = vadd.f32 %v6667_v20, %v2799_v45  ;;  %v5253_v55 = vpop.f32.mrb[91].mxu1  ;;  %v1984_v23 = vmax.f32 %v5394_v35, 0.0 }
 0x1d3   : > { %v1985_v56 = vmax.f32 %v5395_v46, 0.0  ;;  %v3008_v59 = vmax.f32 %v2800_v53, 0.0 }
 0x1d5   : > { %v4837_v60 = vpack.c.bf16 %v1985_v56, %v1984_v23  ;;  %v4997_v63 = vpack.c.bf16 %v3008_v59, %v3007_v50 }
 0x1d6   : > { %v1773_v0 = vpop.f32.mrb[28].mxu0  ;;  %v2804_v3 = vpop.f32.mrb[92].mxu1 }
 0x1d7   : > { %5124 = vst [vmem:[%s6687_s24 + $0x30] sm:$0xff] %v4837_v60   ;;  %v5396_v6 = vadd.f32 %v6674_v24, %v1773_v0  ;;  %5155 = vst [vmem:[%s6691_s17 + $0x30] sm:$0xff] %v4997_v63   ;;  %v1775_v7 = vpop.f32.mrb[29].mxu0  ;;  %v2805_v10 = vadd.f32 %v6667_v20, %v2804_v3  ;;  %v5256_v11 = vpop.f32.mrb[93].mxu1 }
 0x1d8   : > { %v1776_v14 = vpop.f32.mrb[30].mxu0  ;;  %v2807_v17 = vpop.f32.mrb[94].mxu1 }
 0x1d9   : > { %v5397_v19 = vadd.f32 %v6674_v24, %v1776_v14  ;;  %v1778_v25 = vpop.f32.mrb[31].mxu0  ;;  %v3009_v27 = vmax.f32 %v2805_v10, 0.0  ;;  %v2808_v29 = vadd.f32 %v6667_v20, %v2807_v17  ;;  %v5257_v31 = vpop.f32.mrb[95].mxu1  ;;  %v1986_v34 = vmax.f32 %v5396_v6, 0.0 }
 0x1db   : > { %v1987_v35 = vmax.f32 %v5397_v19, 0.0  ;;  %v3010_v36 = vmax.f32 %v2808_v29, 0.0 }
 0x1dd   : > { %v4842_v39 = vpack.c.bf16 %v1987_v35, %v1986_v34  ;;  %v5002_v41 = vpack.c.bf16 %v3010_v36, %v3009_v27 }
 0x1de   : > { %v1781_v43 = vpop.f32.mrb[32].mxu0  ;;  %v2812_v45 = vpop.f32.mrb[96].mxu1 }
 0x1df   : > { %5125 = vst [vmem:[%s6687_s24 + $0x38] sm:$0xff] %v4842_v39   ;;  %v5398_v46 = vadd.f32 %v6674_v24, %v1781_v43  ;;  %5156 = vst [vmem:[%s6691_s17 + $0x38] sm:$0xff] %v5002_v41   ;;  %v1783_v49 = vpop.f32.mrb[33].mxu0  ;;  %v2813_v50 = vadd.f32 %v6667_v20, %v2812_v45  ;;  %v5260_v53 = vpop.f32.mrb[97].mxu1 }
 0x1e0   : > { %v1784_v55 = vpop.f32.mrb[34].mxu0  ;;  %v2815_v23 = vpop.f32.mrb[98].mxu1 }
 0x1e1   : > { %v5399_v56 = vadd.f32 %v6674_v24, %v1784_v55  ;;  %v1786_v59 = vpop.f32.mrb[35].mxu0  ;;  %v3011_v60 = vmax.f32 %v2813_v50, 0.0  ;;  %v2816_v63 = vadd.f32 %v6667_v20, %v2815_v23  ;;  %v5261_v0 = vpop.f32.mrb[99].mxu1  ;;  %v1988_v3 = vmax.f32 %v5398_v46, 0.0 }
 0x1e3   : > { %v1989_v6 = vmax.f32 %v5399_v56, 0.0  ;;  %v3012_v7 = vmax.f32 %v2816_v63, 0.0 }
 0x1e5   : > { %v4847_v10 = vpack.c.bf16 %v1989_v6, %v1988_v3  ;;  %v5007_v11 = vpack.c.bf16 %v3012_v7, %v3011_v60 }
 0x1e6   : > { %v1789_v14 = vpop.f32.mrb[36].mxu0  ;;  %v2820_v17 = vpop.f32.mrb[100].mxu1 }
 0x1e7   : > { %5126 = vst [vmem:[%s6687_s24 + $0x40] sm:$0xff] %v4847_v10   ;;  %v5400_v19 = vadd.f32 %v6674_v24, %v1789_v14  ;;  %5157 = vst [vmem:[%s6691_s17 + $0x40] sm:$0xff] %v5007_v11   ;;  %v1791_v25 = vpop.f32.mrb[37].mxu0  ;;  %v2821_v27 = vadd.f32 %v6667_v20, %v2820_v17  ;;  %v5264_v29 = vpop.f32.mrb[101].mxu1 }
 0x1e8   : > { %v1792_v31 = vpop.f32.mrb[38].mxu0  ;;  %v2823_v34 = vpop.f32.mrb[102].mxu1 }
 0x1e9   : > { %v5401_v35 = vadd.f32 %v6674_v24, %v1792_v31  ;;  %v1794_v36 = vpop.f32.mrb[39].mxu0  ;;  %v3013_v39 = vmax.f32 %v2821_v27, 0.0  ;;  %v2824_v41 = vadd.f32 %v6667_v20, %v2823_v34  ;;  %v5265_v43 = vpop.f32.mrb[103].mxu1  ;;  %v1990_v45 = vmax.f32 %v5400_v19, 0.0 }
 0x1eb   : > { %v1991_v46 = vmax.f32 %v5401_v35, 0.0  ;;  %v3014_v49 = vmax.f32 %v2824_v41, 0.0 }
 0x1ed   : > { %v4852_v50 = vpack.c.bf16 %v1991_v46, %v1990_v45  ;;  %v5012_v53 = vpack.c.bf16 %v3014_v49, %v3013_v39 }
 0x1ee   : > { %v1797_v55 = vpop.f32.mrb[40].mxu0  ;;  %v2828_v23 = vpop.f32.mrb[104].mxu1 }
 0x1ef   : > { %5127 = vst [vmem:[%s6687_s24 + $0x48] sm:$0xff] %v4852_v50   ;;  %v5402_v56 = vadd.f32 %v6674_v24, %v1797_v55  ;;  %5158 = vst [vmem:[%s6691_s17 + $0x48] sm:$0xff] %v5012_v53   ;;  %v1799_v59 = vpop.f32.mrb[41].mxu0  ;;  %v2829_v60 = vadd.f32 %v6667_v20, %v2828_v23  ;;  %v5268_v63 = vpop.f32.mrb[105].mxu1 }
 0x1f0   : > { %v1800_v0 = vpop.f32.mrb[42].mxu0  ;;  %v2831_v3 = vpop.f32.mrb[106].mxu1 }
 0x1f1   : > { %v5403_v6 = vadd.f32 %v6674_v24, %v1800_v0  ;;  %v1802_v7 = vpop.f32.mrb[43].mxu0  ;;  %v3015_v10 = vmax.f32 %v2829_v60, 0.0  ;;  %v2832_v11 = vadd.f32 %v6667_v20, %v2831_v3  ;;  %v5269_v14 = vpop.f32.mrb[107].mxu1  ;;  %v1992_v17 = vmax.f32 %v5402_v56, 0.0 }
 0x1f3   : > { %v1993_v19 = vmax.f32 %v5403_v6, 0.0  ;;  %v3016_v25 = vmax.f32 %v2832_v11, 0.0 }
 0x1f5   : > { %v4857_v27 = vpack.c.bf16 %v1993_v19, %v1992_v17  ;;  %v5017_v29 = vpack.c.bf16 %v3016_v25, %v3015_v10 }
 0x1f6   : > { %v1805_v31 = vpop.f32.mrb[44].mxu0  ;;  %v2836_v34 = vpop.f32.mrb[108].mxu1 }
 0x1f7   : > { %5128 = vst [vmem:[%s6687_s24 + $0x50] sm:$0xff] %v4857_v27   ;;  %v5404_v35 = vadd.f32 %v6674_v24, %v1805_v31  ;;  %5159 = vst [vmem:[%s6691_s17 + $0x50] sm:$0xff] %v5017_v29   ;;  %v1807_v36 = vpop.f32.mrb[45].mxu0  ;;  %v2837_v39 = vadd.f32 %v6667_v20, %v2836_v34  ;;  %v5272_v41 = vpop.f32.mrb[109].mxu1 }
 0x1f8   : > { %v1808_v43 = vpop.f32.mrb[46].mxu0  ;;  %v2839_v45 = vpop.f32.mrb[110].mxu1 }
 0x1f9   : > { %v5405_v46 = vadd.f32 %v6674_v24, %v1808_v43  ;;  %v1810_v49 = vpop.f32.mrb[47].mxu0  ;;  %v3017_v50 = vmax.f32 %v2837_v39, 0.0  ;;  %v2840_v53 = vadd.f32 %v6667_v20, %v2839_v45  ;;  %v5273_v55 = vpop.f32.mrb[111].mxu1  ;;  %v1994_v23 = vmax.f32 %v5404_v35, 0.0 }
 0x1fb   : > { %v1995_v56 = vmax.f32 %v5405_v46, 0.0  ;;  %v3018_v59 = vmax.f32 %v2840_v53, 0.0 }
 0x1fd   : > { %v4862_v60 = vpack.c.bf16 %v1995_v56, %v1994_v23  ;;  %v5022_v63 = vpack.c.bf16 %v3018_v59, %v3017_v50 }
 0x1fe   : > { %v1813_v0 = vpop.f32.mrb[48].mxu0  ;;  %v2844_v3 = vpop.f32.mrb[112].mxu1 }
 0x1ff   : > { %5129 = vst [vmem:[%s6687_s24 + $0x58] sm:$0xff] %v4862_v60   ;;  %v5406_v6 = vadd.f32 %v6674_v24, %v1813_v0  ;;  %5160 = vst [vmem:[%s6691_s17 + $0x58] sm:$0xff] %v5022_v63   ;;  %v1815_v7 = vpop.f32.mrb[49].mxu0  ;;  %v2845_v10 = vadd.f32 %v6667_v20, %v2844_v3  ;;  %v5276_v11 = vpop.f32.mrb[113].mxu1 }
 0x200   : > { %v1816_v14 = vpop.f32.mrb[50].mxu0  ;;  %v2847_v17 = vpop.f32.mrb[114].mxu1 }
 0x201   : > { %v5407_v19 = vadd.f32 %v6674_v24, %v1816_v14  ;;  %v1818_v25 = vpop.f32.mrb[51].mxu0  ;;  %v3019_v27 = vmax.f32 %v2845_v10, 0.0  ;;  %v2848_v29 = vadd.f32 %v6667_v20, %v2847_v17  ;;  %v5277_v31 = vpop.f32.mrb[115].mxu1  ;;  %v1996_v34 = vmax.f32 %v5406_v6, 0.0 }
 0x203   : > { %v1997_v35 = vmax.f32 %v5407_v19, 0.0  ;;  %v3020_v36 = vmax.f32 %v2848_v29, 0.0 }
 0x205   : > { %v4867_v39 = vpack.c.bf16 %v1997_v35, %v1996_v34  ;;  %v5027_v41 = vpack.c.bf16 %v3020_v36, %v3019_v27 }
 0x206   : > { %v1821_v43 = vpop.f32.mrb[52].mxu0  ;;  %v2852_v45 = vpop.f32.mrb[116].mxu1 }
 0x207   : > { %5130 = vst [vmem:[%s6687_s24 + $0x60] sm:$0xff] %v4867_v39   ;;  %v5408_v46 = vadd.f32 %v6674_v24, %v1821_v43  ;;  %5161 = vst [vmem:[%s6691_s17 + $0x60] sm:$0xff] %v5027_v41   ;;  %v1823_v49 = vpop.f32.mrb[53].mxu0  ;;  %v2853_v50 = vadd.f32 %v6667_v20, %v2852_v45  ;;  %v5280_v53 = vpop.f32.mrb[117].mxu1 }
 0x208   : > { %v1824_v55 = vpop.f32.mrb[54].mxu0  ;;  %v2855_v23 = vpop.f32.mrb[118].mxu1 }
 0x209   : > { %v5409_v56 = vadd.f32 %v6674_v24, %v1824_v55  ;;  %v1826_v59 = vpop.f32.mrb[55].mxu0  ;;  %v3021_v60 = vmax.f32 %v2853_v50, 0.0  ;;  %v2856_v63 = vadd.f32 %v6667_v20, %v2855_v23  ;;  %v5281_v0 = vpop.f32.mrb[119].mxu1  ;;  %v1998_v3 = vmax.f32 %v5408_v46, 0.0 }
 0x20b   : > { %v1999_v6 = vmax.f32 %v5409_v56, 0.0  ;;  %v3022_v7 = vmax.f32 %v2856_v63, 0.0 }
 0x20d   : > { %v4872_v10 = vpack.c.bf16 %v1999_v6, %v1998_v3  ;;  %v5032_v11 = vpack.c.bf16 %v3022_v7, %v3021_v60 }
 0x20e   : > { %v1829_v14 = vpop.f32.mrb[56].mxu0  ;;  %v2860_v17 = vpop.f32.mrb[120].mxu1 }
 0x20f   : > { %5131 = vst [vmem:[%s6687_s24 + $0x68] sm:$0xff] %v4872_v10   ;;  %v5410_v19 = vadd.f32 %v6674_v24, %v1829_v14  ;;  %5162 = vst [vmem:[%s6691_s17 + $0x68] sm:$0xff] %v5032_v11   ;;  %v1831_v25 = vpop.f32.mrb[57].mxu0  ;;  %v2861_v27 = vadd.f32 %v6667_v20, %v2860_v17  ;;  %v5284_v29 = vpop.f32.mrb[121].mxu1 }
 0x210   : > { %v1832_v31 = vpop.f32.mrb[58].mxu0  ;;  %v2863_v34 = vpop.f32.mrb[122].mxu1 }
 0x211   : > { %v5411_v35 = vadd.f32 %v6674_v24, %v1832_v31  ;;  %v1834_v36 = vpop.f32.mrb[59].mxu0  ;;  %v3023_v39 = vmax.f32 %v2861_v27, 0.0  ;;  %v2864_v41 = vadd.f32 %v6667_v20, %v2863_v34  ;;  %v5285_v43 = vpop.f32.mrb[123].mxu1  ;;  %v2000_v45 = vmax.f32 %v5410_v19, 0.0 }
 0x212   : > { %v1557_v27 = vadd.f32 %v6674_v24, %v6506_v12  ;;  %v1560_v36 = vadd.f32 %v6674_v24, %v6510_v16 }
 0x213   : > { %v2001_v46 = vmax.f32 %v5411_v35, 0.0  ;;  %v3024_v49 = vmax.f32 %v2864_v41, 0.0 }
 0x215   : > { %v4877_v50 = vpack.c.bf16 %v2001_v46, %v2000_v45  ;;  %v5037_v53 = vpack.c.bf16 %v3024_v49, %v3023_v39 }
 0x216   : > { %v1837_v55 = vpop.f32.mrb[60].mxu0  ;;  %v2868_v23 = vpop.f32.mrb[124].mxu1 }
 0x217   : > { %5132 = vst [vmem:[%s6687_s24 + $0x70] sm:$0xff] %v4877_v50   ;;  %v5412_v56 = vadd.f32 %v6674_v24, %v1837_v55  ;;  %5163 = vst [vmem:[%s6691_s17 + $0x70] sm:$0xff] %v5037_v53   ;;  %v1839_v59 = vpop.f32.mrb[61].mxu0  ;;  %v2869_v60 = vadd.f32 %v6667_v20, %v2868_v23  ;;  %v5288_v63 = vpop.f32.mrb[125].mxu1 }
 0x218   : > { %v1840_v0 = vpop.f32.mrb[62].mxu0  ;;  %v2871_v3 = vpop.f32.mrb[126].mxu1 }
 0x219   : > { %v5413_v6 = vadd.f32 %v6674_v24, %v1840_v0  ;;  %v1842_v7 = vpop.f32.mrb[63].mxu0  ;;  %v3025_v10 = vmax.f32 %v2869_v60, 0.0  ;;  %v2872_v11 = vadd.f32 %v6667_v20, %v2871_v3  ;;  %v5289_v14 = vpop.f32.mrb[127].mxu1  ;;  %v2002_v17 = vmax.f32 %v5412_v56, 0.0 }
 0x21a   : > { %v1565_v60 = vadd.f32 %v6674_v24, %v6516_v1  ;;  %v1568_v7 = vadd.f32 %v6674_v24, %v6520_v22 }
 0x21b   : > { %v2003_v19 = vmax.f32 %v5413_v6, 0.0  ;;  %v3026_v25 = vmax.f32 %v2872_v11, 0.0 }
 0x21d   : > { %v4882_v29 = vpack.c.bf16 %v2003_v19, %v2002_v17  ;;  %v5042_v31 = vpack.c.bf16 %v3026_v25, %v3025_v10 }
 0x21e   : > { %v1845_v34 = vpop.f32.mrb[64].mxu0  ;;  %v2876_v35 = vpop.f32.mrb[128].mxu1 }
 0x21f   : > { %5133 = vst [vmem:[%s6687_s24 + $0x78] sm:$0xff] %v4882_v29   ;;  %v1846_v39 = vadd.f32 %v1845_v34, %v1557_v27  ;;  %5164 = vst [vmem:[%s6691_s17 + $0x78] sm:$0xff] %v5042_v31   ;;  %v1847_v41 = vpop.f32.mrb[65].mxu0  ;;  %v2877_v43 = vadd.f32 %v6667_v20, %v2876_v35  ;;  %v5292_v45 = vpop.f32.mrb[129].mxu1 }
 0x220   : > { %v1848_v46 = vpop.f32.mrb[66].mxu0  ;;  %v2879_v49 = vpop.f32.mrb[130].mxu1 }
 0x221   : > { %v1849_v50 = vadd.f32 %v1848_v46, %v1560_v36  ;;  %v1850_v12 = vpop.f32.mrb[67].mxu0  ;;  %v3027_v53 = vmax.f32 %v2877_v43, 0.0  ;;  %v2880_v55 = vadd.f32 %v6667_v20, %v2879_v49  ;;  %v5293_v23 = vpop.f32.mrb[131].mxu1  ;;  %v2004_v56 = vmax.f32 %v1846_v39, 0.0 }
 0x222   : > { %v1573_v39 = vadd.f32 %v6674_v24, %v6526_v26  ;;  %v1576_v49 = vadd.f32 %v6674_v24, %v6530_v30 }
 0x223   : > { %v2005_v59 = vmax.f32 %v1849_v50, 0.0  ;;  %v3028_v16 = vmax.f32 %v2880_v55, 0.0 }
 0x225   : > { %v4887_v63 = vpack.c.bf16 %v2005_v59, %v2004_v56  ;;  %v5047_v0 = vpack.c.bf16 %v3028_v16, %v3027_v53 }
 0x226   : > { %v1853_v3 = vpop.f32.mrb[68].mxu0  ;;  %v2884_v6 = vpop.f32.mrb[132].mxu1 }
 0x227   : > { %5134 = vst [vmem:[%s6687_s24 + $0x80] sm:$0xff] %v4887_v63   ;;  %v1854_v10 = vadd.f32 %v1853_v3, %v1565_v60  ;;  %5165 = vst [vmem:[%s6691_s17 + $0x80] sm:$0xff] %v5047_v0   ;;  %v1855_v11 = vpop.f32.mrb[69].mxu0  ;;  %v2885_v14 = vadd.f32 %v6667_v20, %v2884_v6  ;;  %v5296_v17 = vpop.f32.mrb[133].mxu1  ;;  %v1581_v6 = vadd.f32 %v6674_v24, %v6536_v33 }
 0x228   : > { %v1856_v19 = vpop.f32.mrb[70].mxu0  ;;  %v2887_v25 = vpop.f32.mrb[134].mxu1  ;;  %v1584_v17 = vadd.f32 %v6674_v24, %v6540_v37 }
 0x229   : > { %v1857_v27 = vadd.f32 %v1856_v19, %v1568_v7  ;;  %v1858_v1 = vpop.f32.mrb[71].mxu0  ;;  %v3029_v29 = vmax.f32 %v2885_v14, 0.0  ;;  %v2888_v31 = vadd.f32 %v6667_v20, %v2887_v25  ;;  %v5297_v34 = vpop.f32.mrb[135].mxu1  ;;  %v2006_v35 = vmax.f32 %v1854_v10, 0.0 }
 0x22b   : > { %v2007_v36 = vmax.f32 %v1857_v27, 0.0  ;;  %v3030_v22 = vmax.f32 %v2888_v31, 0.0 }
 0x22d   : > { %v4892_v41 = vpack.c.bf16 %v2007_v36, %v2006_v35  ;;  %v5052_v43 = vpack.c.bf16 %v3030_v22, %v3029_v29 }
 0x22e   : > { %v1861_v45 = vpop.f32.mrb[72].mxu0  ;;  %v2892_v46 = vpop.f32.mrb[136].mxu1 }
 0x22f   : > { %5135 = vst [vmem:[%s6687_s24 + $0x88] sm:$0xff] %v4892_v41   ;;  %v1862_v50 = vadd.f32 %v1861_v45, %v1573_v39  ;;  %5166 = vst [vmem:[%s6691_s17 + $0x88] sm:$0xff] %v5052_v43   ;;  %v1863_v12 = vpop.f32.mrb[73].mxu0  ;;  %v2893_v53 = vadd.f32 %v6667_v20, %v2892_v46  ;;  %v5300_v55 = vpop.f32.mrb[137].mxu1  ;;  %v1589_v43 = vadd.f32 %v6674_v24, %v6546_v40 }
 0x230   : > { %v1864_v23 = vpop.f32.mrb[74].mxu0  ;;  %v2895_v56 = vpop.f32.mrb[138].mxu1  ;;  %v1592_v12 = vadd.f32 %v6674_v24, %v6550_v44 }
 0x231   : > { %v1865_v59 = vadd.f32 %v1864_v23, %v1576_v49  ;;  %v1866_v26 = vpop.f32.mrb[75].mxu0  ;;  %v3031_v16 = vmax.f32 %v2893_v53, 0.0  ;;  %v2896_v60 = vadd.f32 %v6667_v20, %v2895_v56  ;;  %v5301_v63 = vpop.f32.mrb[139].mxu1  ;;  %v2008_v0 = vmax.f32 %v1862_v50, 0.0 }
 0x233   : > { %v2009_v3 = vmax.f32 %v1865_v59, 0.0  ;;  %v3032_v30 = vmax.f32 %v2896_v60, 0.0 }
 0x235   : > { %v4897_v7 = vpack.c.bf16 %v2009_v3, %v2008_v0  ;;  %v5057_v10 = vpack.c.bf16 %v3032_v30, %v3031_v16 }
 0x236   : > { %v1869_v11 = vpop.f32.mrb[76].mxu0  ;;  %v2900_v14 = vpop.f32.mrb[140].mxu1 }
 0x237   : > { %5136 = vst [vmem:[%s6687_s24 + $0x90] sm:$0xff] %v4897_v7   ;;  %v1870_v19 = vadd.f32 %v1869_v11, %v1581_v6  ;;  %5167 = vst [vmem:[%s6691_s17 + $0x90] sm:$0xff] %v5057_v10   ;;  %v1871_v25 = vpop.f32.mrb[77].mxu0  ;;  %v2901_v27 = vadd.f32 %v6667_v20, %v2900_v14  ;;  %v5304_v1 = vpop.f32.mrb[141].mxu1  ;;  %v1597_v6 = vadd.f32 %v6674_v24, %v6556_v47 }
 0x238   : > { %v1872_v29 = vpop.f32.mrb[78].mxu0  ;;  %v2903_v31 = vpop.f32.mrb[142].mxu1 }
 0x239   : > { %v1873_v34 = vadd.f32 %v1872_v29, %v1584_v17  ;;  %v1874_v33 = vpop.f32.mrb[79].mxu0  ;;  %v3033_v35 = vmax.f32 %v2901_v27, 0.0  ;;  %v2904_v36 = vadd.f32 %v6667_v20, %v2903_v31  ;;  %v5305_v22 = vpop.f32.mrb[143].mxu1  ;;  %v2010_v39 = vmax.f32 %v1870_v19, 0.0 }
 0x23a   : > { %v1600_v17 = vadd.f32 %v6674_v24, %v6560_v51 }
 0x23b   : > { %v2011_v41 = vmax.f32 %v1873_v34, 0.0  ;;  %v3034_v37 = vmax.f32 %v2904_v36, 0.0 }
 0x23d   : > { %v4902_v45 = vpack.c.bf16 %v2011_v41, %v2010_v39  ;;  %v5062_v46 = vpack.c.bf16 %v3034_v37, %v3033_v35  ;;  %v1605_v41 = vadd.f32 %v6674_v24, %v6566_v54 }
 0x23e   : > { %v1877_v49 = vpop.f32.mrb[80].mxu0  ;;  %v2908_v50 = vpop.f32.mrb[144].mxu1 }
 0x23f   : > { %5137 = vst [vmem:[%s6687_s24 + $0x98] sm:$0xff] %v4902_v45   ;;  %v1878_v53 = vadd.f32 %v1877_v49, %v1589_v43  ;;  %5168 = vst [vmem:[%s6691_s17 + $0x98] sm:$0xff] %v5062_v46   ;;  %v1879_v55 = vpop.f32.mrb[81].mxu0  ;;  %v2909_v23 = vadd.f32 %v6667_v20, %v2908_v50  ;;  %v5308_v56 = vpop.f32.mrb[145].mxu1  ;;  %v1608_v49 = vadd.f32 %v6674_v24, %v6570_v58 }
 0x240   : > { %v1880_v59 = vpop.f32.mrb[82].mxu0  ;;  %v2911_v26 = vpop.f32.mrb[146].mxu1 }
 0x241   : > { %v1881_v16 = vadd.f32 %v1880_v59, %v1592_v12  ;;  %v1882_v40 = vpop.f32.mrb[83].mxu0  ;;  %v3035_v60 = vmax.f32 %v2909_v23, 0.0  ;;  %v2912_v63 = vadd.f32 %v6667_v20, %v2911_v26  ;;  %v5309_v0 = vpop.f32.mrb[147].mxu1  ;;  %v2012_v3 = vmax.f32 %v1878_v53, 0.0 }
 0x242   : > { %v1613_v0 = vadd.f32 %v6674_v24, %v6576_v61 }
 0x243   : > { %v2013_v30 = vmax.f32 %v1881_v16, 0.0  ;;  %v3036_v44 = vmax.f32 %v2912_v63, 0.0 }
 0x245   : > { %v4907_v7 = vpack.c.bf16 %v2013_v30, %v2012_v3  ;;  %v5067_v10 = vpack.c.bf16 %v3036_v44, %v3035_v60 }
 0x246   : > { %v1885_v11 = vpop.f32.mrb[84].mxu0  ;;  %v2916_v14 = vpop.f32.mrb[148].mxu1 }
 0x247   : > { %5138 = vst [vmem:[%s6687_s24 + $0xa0] sm:$0xff] %v4907_v7   ;;  %v1886_v19 = vadd.f32 %v1885_v11, %v1597_v6  ;;  %5169 = vst [vmem:[%s6691_s17 + $0xa0] sm:$0xff] %v5067_v10   ;;  %v1887_v25 = vpop.f32.mrb[85].mxu0  ;;  %v2917_v27 = vadd.f32 %v6667_v20, %v2916_v14  ;;  %v5312_v1 = vpop.f32.mrb[149].mxu1  ;;  %v1616_v7 = vadd.f32 %v6674_v24, %v6580_v2 }
 0x248   : > { %v1888_v29 = vpop.f32.mrb[86].mxu0  ;;  %v2919_v31 = vpop.f32.mrb[150].mxu1 }
 0x249   : > { %v1889_v34 = vadd.f32 %v1888_v29, %v1600_v17  ;;  %v1890_v47 = vpop.f32.mrb[87].mxu0  ;;  %v3037_v33 = vmax.f32 %v2917_v27, 0.0  ;;  %v2920_v35 = vadd.f32 %v6667_v20, %v2919_v31  ;;  %v5313_v36 = vpop.f32.mrb[151].mxu1  ;;  %v2014_v22 = vmax.f32 %v1886_v19, 0.0 }
 0x24a   : > { %v6870_v47 = vld [vmem:[%s7316_s2] ss:$0 sm:$0xff] }
 0x24b   : > { %v2015_v39 = vmax.f32 %v1889_v34, 0.0  ;;  %v3038_v51 = vmax.f32 %v2920_v35, 0.0 }
 0x24d   : > { %v4912_v37 = vpack.c.bf16 %v2015_v39, %v2014_v22  ;;  %v5072_v43 = vpack.c.bf16 %v3038_v51, %v3037_v33  ;;  %v1621_v33 = vadd.f32 %v6870_v47, %v6586_v5  ;;  %v1624_v51 = vadd.f32 %v6870_v47, %v6590_v9 }
 0x24e   : > { %v1893_v45 = vpop.f32.mrb[88].mxu0  ;;  %v2924_v46 = vpop.f32.mrb[152].mxu1 }
 0x24f   : > { %5139 = vst [vmem:[%s6687_s24 + $0xa8] sm:$0xff] %v4912_v37   ;;  %v1894_v50 = vadd.f32 %v1893_v45, %v1605_v41  ;;  %5170 = vst [vmem:[%s6691_s17 + $0xa8] sm:$0xff] %v5072_v43   ;;  %v1895_v12 = vpop.f32.mrb[89].mxu0  ;;  %v2925_v53 = vadd.f32 %v6667_v20, %v2924_v46  ;;  %v5316_v55 = vpop.f32.mrb[153].mxu1 }
 0x250   : > { %v1896_v23 = vpop.f32.mrb[90].mxu0  ;;  %v2927_v56 = vpop.f32.mrb[154].mxu1 }
 0x251   : > { %v1897_v59 = vadd.f32 %v1896_v23, %v1608_v49  ;;  %v1898_v54 = vpop.f32.mrb[91].mxu0  ;;  %v3039_v26 = vmax.f32 %v2925_v53, 0.0  ;;  %v2928_v16 = vadd.f32 %v6667_v20, %v2927_v56  ;;  %v5317_v40 = vpop.f32.mrb[155].mxu1  ;;  %v2016_v60 = vmax.f32 %v1894_v50, 0.0  ;;  %v6863_v20 = vld [vmem:[%s7319_s5] ss:$0 sm:$0xff] }
 0x253   : > { %v2017_v63 = vmax.f32 %v1897_v59, 0.0  ;;  %v3040_v58 = vmax.f32 %v2928_v16, 0.0  ;;  %v1629_v59 = vadd.f32 %v6870_v47, %v6596_v13 }
 0x255   : > { %v4917_v3 = vpack.c.bf16 %v2017_v63, %v2016_v60  ;;  %v5077_v30 = vpack.c.bf16 %v3040_v58, %v3039_v26  ;;  %v1632_v60 = vadd.f32 %v6870_v47, %v6600_v18 }
 0x256   : > { %v1901_v44 = vpop.f32.mrb[92].mxu0  ;;  %v2932_v6 = vpop.f32.mrb[156].mxu1 }
 0x257   : > { %5140 = vst [vmem:[%s6687_s24 + $0xb0] sm:$0xff] %v4917_v3   ;;  %v1902_v10 = vadd.f32 %v1901_v44, %v1613_v0  ;;  %5171 = vst [vmem:[%s6691_s17 + $0xb0] sm:$0xff] %v5077_v30   ;;  %v1903_v11 = vpop.f32.mrb[93].mxu0  ;;  %v2933_v14 = vadd.f32 %v6863_v20, %v2932_v6  ;;  %v5320_v17 = vpop.f32.mrb[157].mxu1 }
 0x258   : > { %v1904_v61 = vpop.f32.mrb[94].mxu0  ;;  %v2935_v19 = vpop.f32.mrb[158].mxu1 }
 0x259   : > { %v1905_v25 = vadd.f32 %v1904_v61, %v1616_v7  ;;  %v1906_v27 = vpop.f32.mrb[95].mxu0  ;;  %v3041_v1 = vmax.f32 %v2933_v14, 0.0  ;;  %v2936_v2 = vadd.f32 %v6863_v20, %v2935_v19  ;;  %v5321_v24 = vpop.f32.mrb[159].mxu1  ;;  %v2018_v29 = vmax.f32 %v1902_v10, 0.0 }
 0x25a   : > { %v1637_v61 = vadd.f32 %v6870_v47, %v6606_v21 }
 0x25b   : > { %v2019_v31 = vmax.f32 %v1905_v25, 0.0  ;;  %v3042_v34 = vmax.f32 %v2936_v2, 0.0  ;;  %v1640_v2 = vadd.f32 %v6870_v47, %v6610_v28 }
 0x25d   : > { %v4922_v35 = vpack.c.bf16 %v2019_v31, %v2018_v29  ;;  %v5082_v36 = vpack.c.bf16 %v3042_v34, %v3041_v1 }
 0x25e   : > { %v1909_v22 = vpop.f32.mrb[96].mxu0  ;;  %v2940_v39 = vpop.f32.mrb[160].mxu1 }
 0x25f   : > { %5141 = vst [vmem:[%s6687_s24 + $0xb8] sm:$0xff] %v4922_v35   ;;  %v1910_v41 = vadd.f32 %v1909_v22, %v1621_v33  ;;  %5172 = vst [vmem:[%s6691_s17 + $0xb8] sm:$0xff] %v5082_v36   ;;  %v1911_v37 = vpop.f32.mrb[97].mxu0  ;;  %v2941_v43 = vadd.f32 %v6863_v20, %v2940_v39  ;;  %v5324_v45 = vpop.f32.mrb[161].mxu1 }
 0x260   : > { %v1912_v46 = vpop.f32.mrb[98].mxu0  ;;  %v2943_v49 = vpop.f32.mrb[162].mxu1 }
 0x261   : > { %v1913_v50 = vadd.f32 %v1912_v46, %v1624_v51  ;;  %v1914_v5 = vpop.f32.mrb[99].mxu0  ;;  %v3043_v12 = vmax.f32 %v2941_v43, 0.0  ;;  %v2944_v53 = vadd.f32 %v6863_v20, %v2943_v49  ;;  %v5325_v55 = vpop.f32.mrb[163].mxu1  ;;  %v2020_v23 = vmax.f32 %v1910_v41, 0.0 }
 0x262   : > { %v1645_v43 = vadd.f32 %v6870_v47, %v6616_v32  ;;  %v1648_v5 = vadd.f32 %v6870_v47, %v6620_v38 }
 0x263   : > { %v2021_v56 = vmax.f32 %v1913_v50, 0.0  ;;  %v3044_v9 = vmax.f32 %v2944_v53, 0.0 }
 0x265   : > { %v4927_v54 = vpack.c.bf16 %v2021_v56, %v2020_v23  ;;  %v5087_v26 = vpack.c.bf16 %v3044_v9, %v3043_v12 }
 0x266   : > { %v1917_v16 = vpop.f32.mrb[100].mxu0  ;;  %v2948_v40 = vpop.f32.mrb[164].mxu1 }
 0x267   : > { %5142 = vst [vmem:[%s6687_s24 + $0xc0] sm:$0xff] %v4927_v54   ;;  %v1918_v63 = vadd.f32 %v1917_v16, %v1629_v59  ;;  %5173 = vst [vmem:[%s6691_s17 + $0xc0] sm:$0xff] %v5087_v26   ;;  %v1919_v58 = vpop.f32.mrb[101].mxu0  ;;  %v2949_v0 = vadd.f32 %v6863_v20, %v2948_v40  ;;  %v5328_v3 = vpop.f32.mrb[165].mxu1 }
 0x268   : > { %v1920_v30 = vpop.f32.mrb[102].mxu0  ;;  %v2951_v44 = vpop.f32.mrb[166].mxu1 }
 0x269   : > { %v1921_v6 = vadd.f32 %v1920_v30, %v1632_v60  ;;  %v1922_v13 = vpop.f32.mrb[103].mxu0  ;;  %v3045_v7 = vmax.f32 %v2949_v0, 0.0  ;;  %v2952_v10 = vadd.f32 %v6863_v20, %v2951_v44  ;;  %v5329_v11 = vpop.f32.mrb[167].mxu1  ;;  %v2022_v14 = vmax.f32 %v1918_v63, 0.0 }
 0x26a   : > { %v1653_v63 = vadd.f32 %v6870_v47, %v6626_v42  ;;  %v1656_v44 = vadd.f32 %v6870_v47, %v6630_v48 }
 0x26b   : > { %v2023_v17 = vmax.f32 %v1921_v6, 0.0  ;;  %v3046_v18 = vmax.f32 %v2952_v10, 0.0 }
 0x26d   : > { %v4932_v19 = vpack.c.bf16 %v2023_v17, %v2022_v14  ;;  %v5092_v25 = vpack.c.bf16 %v3046_v18, %v3045_v7 }
 0x26e   : > { %v1925_v27 = vpop.f32.mrb[104].mxu0  ;;  %v2956_v1 = vpop.f32.mrb[168].mxu1 }
 0x26f   : > { %5143 = vst [vmem:[%s6687_s24 + $0xc8] sm:$0xff] %v4932_v19   ;;  %v1926_v24 = vadd.f32 %v1925_v27, %v1637_v61  ;;  %5174 = vst [vmem:[%s6691_s17 + $0xc8] sm:$0xff] %v5092_v25   ;;  %v1927_v29 = vpop.f32.mrb[105].mxu0  ;;  %v2957_v31 = vadd.f32 %v6863_v20, %v2956_v1  ;;  %v5332_v34 = vpop.f32.mrb[169].mxu1  ;;  %v1661_v1 = vadd.f32 %v6870_v47, %v6636_v52 }
 0x270   : > { %v1928_v33 = vpop.f32.mrb[106].mxu0  ;;  %v2959_v35 = vpop.f32.mrb[170].mxu1  ;;  %v1664_v34 = vadd.f32 %v6870_v47, %v6640_v57 }
 0x271   : > { %v1929_v36 = vadd.f32 %v1928_v33, %v1640_v2  ;;  %v1930_v21 = vpop.f32.mrb[107].mxu0  ;;  %v3047_v22 = vmax.f32 %v2957_v31, 0.0  ;;  %v2960_v39 = vadd.f32 %v6863_v20, %v2959_v35  ;;  %v5333_v51 = vpop.f32.mrb[171].mxu1  ;;  %v2024_v41 = vmax.f32 %v1926_v24, 0.0 }
 0x273   : > { %v2025_v37 = vmax.f32 %v1929_v36, 0.0  ;;  %v3048_v28 = vmax.f32 %v2960_v39, 0.0 }
 0x275   : > { %v4937_v45 = vpack.c.bf16 %v2025_v37, %v2024_v41  ;;  %v5097_v46 = vpack.c.bf16 %v3048_v28, %v3047_v22 }
 0x276   : > { %v1933_v49 = vpop.f32.mrb[108].mxu0  ;;  %v2964_v50 = vpop.f32.mrb[172].mxu1 }
 0x277   : > { %5144 = vst [vmem:[%s6687_s24 + $0xd0] sm:$0xff] %v4937_v45   ;;  %v1934_v12 = vadd.f32 %v1933_v49, %v1645_v43  ;;  %5175 = vst [vmem:[%s6691_s17 + $0xd0] sm:$0xff] %v5097_v46   ;;  %v1935_v53 = vpop.f32.mrb[109].mxu0  ;;  %v2965_v55 = vadd.f32 %v6863_v20, %v2964_v50  ;;  %v5336_v23 = vpop.f32.mrb[173].mxu1  ;;  %v1669_v46 = vadd.f32 %v6870_v47, %v6646_v62 }
 0x278   : > { %v1936_v56 = vpop.f32.mrb[110].mxu0  ;;  %v2967_v9 = vpop.f32.mrb[174].mxu1  ;;  %v1672_v53 = vadd.f32 %v6870_v47, %v6650_v4 }
 0x279   : > { %v1937_v59 = vadd.f32 %v1936_v56, %v1648_v5  ;;  %v1938_v32 = vpop.f32.mrb[111].mxu0  ;;  %v3049_v54 = vmax.f32 %v2965_v55, 0.0  ;;  %v2968_v26 = vadd.f32 %v6863_v20, %v2967_v9  ;;  %v5337_v16 = vpop.f32.mrb[175].mxu1  ;;  %v2026_v40 = vmax.f32 %v1934_v12, 0.0 }
 0x27b   : > { %v2027_v60 = vmax.f32 %v1937_v59, 0.0  ;;  %v3050_v38 = vmax.f32 %v2968_v26, 0.0 }
 0x27d   : > { %v4942_v58 = vpack.c.bf16 %v2027_v60, %v2026_v40  ;;  %v5102_v0 = vpack.c.bf16 %v3050_v38, %v3049_v54 }
 0x27e   : > { %v1941_v3 = vpop.f32.mrb[112].mxu0  ;;  %v2972_v30 = vpop.f32.mrb[176].mxu1 }
 0x27f   : > { %5145 = vst [vmem:[%s6687_s24 + $0xd8] sm:$0xff] %v4942_v58   ;;  %v1942_v6 = vadd.f32 %v1941_v3, %v1653_v63  ;;  %5176 = vst [vmem:[%s6691_s17 + $0xd8] sm:$0xff] %v5102_v0   ;;  %v1943_v13 = vpop.f32.mrb[113].mxu0  ;;  %v2973_v7 = vadd.f32 %v6863_v20, %v2972_v30  ;;  %v5340_v10 = vpop.f32.mrb[177].mxu1  ;;  %v1677_v63 = vadd.f32 %v6870_v47, %v6656_v8 }
 0x280   : > { %v1944_v11 = vpop.f32.mrb[114].mxu0  ;;  %v2975_v14 = vpop.f32.mrb[178].mxu1  ;;  %v1680_v30 = vadd.f32 %v6870_v47, %v6660_v15 }
 0x281   : > { %v1945_v17 = vadd.f32 %v1944_v11, %v1656_v44  ;;  %v1946_v42 = vpop.f32.mrb[115].mxu0  ;;  %v3051_v18 = vmax.f32 %v2973_v7, 0.0  ;;  %v2976_v61 = vadd.f32 %v6863_v20, %v2975_v14  ;;  %v5341_v19 = vpop.f32.mrb[179].mxu1  ;;  %v2028_v25 = vmax.f32 %v1942_v6, 0.0 }
 0x283   : > { %v2029_v27 = vmax.f32 %v1945_v17, 0.0  ;;  %v3052_v48 = vmax.f32 %v2976_v61, 0.0 }
 0x285   : > { %v4947_v2 = vpack.c.bf16 %v2029_v27, %v2028_v25  ;;  %v5107_v24 = vpack.c.bf16 %v3052_v48, %v3051_v18 }
 0x286   : > { %v1949_v29 = vpop.f32.mrb[116].mxu0  ;;  %v2980_v31 = vpop.f32.mrb[180].mxu1 }
 0x287   : > { %5146 = vst [vmem:[%s6687_s24 + $0xe0] sm:$0xff] %v4947_v2   ;;  %v1950_v33 = vadd.f32 %v1949_v29, %v1661_v1  ;;  %5177 = vst [vmem:[%s6691_s17 + $0xe0] sm:$0xff] %v5107_v24   ;;  %v1951_v35 = vpop.f32.mrb[117].mxu0  ;;  %v2981_v36 = vadd.f32 %v6863_v20, %v2980_v31  ;;  %v5344_v21 = vpop.f32.mrb[181].mxu1 }
 0x288   : > { %v1952_v22 = vpop.f32.mrb[118].mxu0  ;;  %v2983_v39 = vpop.f32.mrb[182].mxu1 }
 0x289   : > { %v1953_v51 = vadd.f32 %v1952_v22, %v1664_v34  ;;  %v1954_v52 = vpop.f32.mrb[119].mxu0  ;;  %v3053_v41 = vmax.f32 %v2981_v36, 0.0  ;;  %v2984_v37 = vadd.f32 %v6863_v20, %v2983_v39  ;;  %v5345_v28 = vpop.f32.mrb[183].mxu1  ;;  %v2030_v43 = vmax.f32 %v1950_v33, 0.0 }
 0x28b   : > { %v2031_v45 = vmax.f32 %v1953_v51, 0.0  ;;  %v3054_v57 = vmax.f32 %v2984_v37, 0.0 }
 0x28d   : > { %v4952_v49 = vpack.c.bf16 %v2031_v45, %v2030_v43  ;;  %v5112_v50 = vpack.c.bf16 %v3054_v57, %v3053_v41 }
 0x28e   : > { %v1957_v5 = vpop.f32.mrb[120].mxu0  ;;  %v2988_v12 = vpop.f32.mrb[184].mxu1 }
 0x28f   : > { %5147 = vst [vmem:[%s6687_s24 + $0xe8] sm:$0xff] %v4952_v49   ;;  %v1958_v55 = vadd.f32 %v1957_v5, %v1669_v46  ;;  %5178 = vst [vmem:[%s6691_s17 + $0xe8] sm:$0xff] %v5112_v50   ;;  %v1959_v23 = vpop.f32.mrb[121].mxu0  ;;  %v2989_v56 = vadd.f32 %v6863_v20, %v2988_v12  ;;  %v5348_v9 = vpop.f32.mrb[185].mxu1 }
 0x290   : > { %v1960_v59 = vpop.f32.mrb[122].mxu0  ;;  %v2991_v32 = vpop.f32.mrb[186].mxu1 }
 0x291   : > { %v1961_v54 = vadd.f32 %v1960_v59, %v1672_v53  ;;  %v1962_v62 = vpop.f32.mrb[123].mxu0  ;;  %v3055_v26 = vmax.f32 %v2989_v56, 0.0  ;;  %v2992_v16 = vadd.f32 %v6863_v20, %v2991_v32  ;;  %v5349_v40 = vpop.f32.mrb[187].mxu1  ;;  %v2032_v60 = vmax.f32 %v1958_v55, 0.0 }
 0x293   : > { %v2033_v38 = vmax.f32 %v1961_v54, 0.0  ;;  %v3056_v4 = vmax.f32 %v2992_v16, 0.0 }
 0x295   : > { %v4957_v58 = vpack.c.bf16 %v2033_v38, %v2032_v60  ;;  %v5117_v0 = vpack.c.bf16 %v3056_v4, %v3055_v26 }
 0x296   : > { %v1965_v3 = vpop.f32.mrb[124].mxu0 }
 0x297   : > { %5148 = vst [vmem:[%s6687_s24 + $0xf0] sm:$0xff] %v4957_v58   ;;  %v1966_v44 = vadd.f32 %v1965_v3, %v1677_v63  ;;  %5179 = vst [vmem:[%s6691_s17 + $0xf0] sm:$0xff] %v5117_v0   ;;  %v1967_v6 = vpop.f32.mrb[125].mxu0 }
 0x298   : > { %v1968_v13 = vpop.f32.mrb[126].mxu0 }
 0x299   : > { %v1969_v20 = vadd.f32 %v1968_v13, %v1680_v30  ;;  %v1970_v7 = vpop.f32.mrb[127].mxu0  ;;  %v2034_v10 = vmax.f32 %v1966_v44, 0.0  ;;  %3377 = sbr.rel (!%p6185_p4) target bundleno = 763 (0x2fb), region = 48 }
 0x29b   : > { %v2035_v11 = vmax.f32 %v1969_v20, 0.0 }
 0x29d   : > { %v4962_v14 = vpack.c.bf16 %v2035_v11, %v2034_v10 }
 0x29f   : > { %5149 = vst [vmem:[%s6687_s24 + $0xf8] sm:$0xff] %v4962_v14  }
 0x2a0   : > { %s7333_s20 = smov (!%p3380_p9, %s3379_s20), 64 }
 0x2a1   : > { %s4648_s10 = sshll.u32 %s7333_s20, 6 }
 0x2a2   : > { %p4651_p10 = scmp.eq.s32.totalorder %s4648_s10, 0 }
 0x2a3   : > { %s6948_s11 = sshrl.u32 (!%p4651_p10), %s7333_s20, 6 }
 0x2a4   : > { %3388 = sbr.rel (%p4651_p10) target bundleno = 763 (0x2fb), region = 52  ;;  %p4652_p11 = scmp.le.s32.totalorder (!%p4651_p10), %s6948_s11, 0 }
 0x2ab   : > { %4195 = sbr.rel (%p4652_p11) target bundleno = 742 (0x2e6), region = 195  ;;  %s7323_s12 = smov (!%p4652_p11), %s6942_s30 }
 0x2ac   : > { %s7324_s14 = smov (!%p4652_p11), %s6687_s24  ;;  %s6957_s15 = smov (!%p4652_p11), 0  }
 0x2ad   : > { %s6959_s16 = smov (!%p4652_p11), 0  }
 0x2b2 LB: >> { %v3404_v8 = vld [vmem:[%s6059_s14] sm:$0xf]  ;;  %v3406_v15 = vld [vmem:[%s6059_s14 + $0x4] sm:$0xf]  ;;  %v3408_v47 = vld [vmem:[%s6059_s14 + $0x8] sm:$0xf]  ;;  %s6067_s16 = sphi %s6959_s16, %s3398_s16   ;;  %s6063_s15 = sphi %s6957_s15, %s7325_s15   ;;  %s6059_s14 = sphi %s7324_s14, %s3537_s14   ;;  %s6055_s12 = sphi %s7323_s12, %s3538_s12  }
 0x2b3   : >> { %3405 = vst [vmem:[%s6055_s12] sm:$0xf] %v3404_v8  ;;  %3407 = vst [vmem:[%s6055_s12 + $0x4] sm:$0xf] %v3406_v15  ;;  %v3410_v17 = vld [vmem:[%s6059_s14 + $0xc] sm:$0xf]  ;;  %s3532_s29 = sadd.s32 1, %s6063_s15 }
 0x2b4   : >> { %3409 = vst [vmem:[%s6055_s12 + $0x8] sm:$0xf] %v3408_v47  ;;  %v3412_v42 = vld [vmem:[%s6059_s14 + $0x10] sm:$0xf]  ;;  %v3414_v18 = vld [vmem:[%s6059_s14 + $0x14] sm:$0xf]  ;;  %p3533_p12 = scmp.ge.s32.totalorder %s3532_s29, %s6948_s11 }
 0x2b5   : >> { %3411 = vst [vmem:[%s6055_s12 + $0xc] sm:$0xf] %v3410_v17  ;;  %3413 = vst [vmem:[%s6055_s12 + $0x10] sm:$0xf] %v3412_v42  ;;  %v3416_v61 = vld [vmem:[%s6059_s14 + $0x18] sm:$0xf] }
 0x2b6   : >> { %3415 = vst [vmem:[%s6055_s12 + $0x14] sm:$0xf] %v3414_v18  ;;  %v3418_v19 = vld [vmem:[%s6059_s14 + $0x1c] sm:$0xf]  ;;  %v3420_v25 = vld [vmem:[%s6059_s14 + $0x20] sm:$0xf] }
 0x2b7   : >> { %3417 = vst [vmem:[%s6055_s12 + $0x18] sm:$0xf] %v3416_v61  ;;  %3419 = vst [vmem:[%s6055_s12 + $0x1c] sm:$0xf] %v3418_v19  ;;  %v3422_v27 = vld [vmem:[%s6059_s14 + $0x24] sm:$0xf] }
 0x2b8   : >> { %3421 = vst [vmem:[%s6055_s12 + $0x20] sm:$0xf] %v3420_v25  ;;  %v3424_v48 = vld [vmem:[%s6059_s14 + $0x28] sm:$0xf]  ;;  %v3426_v1 = vld [vmem:[%s6059_s14 + $0x2c] sm:$0xf] }
 0x2b9   : >> { %3423 = vst [vmem:[%s6055_s12 + $0x24] sm:$0xf] %v3422_v27  ;;  %3425 = vst [vmem:[%s6055_s12 + $0x28] sm:$0xf] %v3424_v48  ;;  %v3428_v2 = vld [vmem:[%s6059_s14 + $0x30] sm:$0xf] }
 0x2ba   : >> { %3427 = vst [vmem:[%s6055_s12 + $0x2c] sm:$0xf] %v3426_v1  ;;  %v3430_v24 = vld [vmem:[%s6059_s14 + $0x34] sm:$0xf]  ;;  %v3432_v29 = vld [vmem:[%s6059_s14 + $0x38] sm:$0xf] }
 0x2bb   : >> { %3429 = vst [vmem:[%s6055_s12 + $0x30] sm:$0xf] %v3428_v2  ;;  %3431 = vst [vmem:[%s6055_s12 + $0x34] sm:$0xf] %v3430_v24  ;;  %v3434_v31 = vld [vmem:[%s6059_s14 + $0x3c] sm:$0xf] }
 0x2bc   : >> { %3433 = vst [vmem:[%s6055_s12 + $0x38] sm:$0xf] %v3432_v29  ;;  %v3436_v34 = vld [vmem:[%s6059_s14 + $0x40] sm:$0xf]  ;;  %v3438_v33 = vld [vmem:[%s6059_s14 + $0x44] sm:$0xf] }
 0x2bd   : >> { %3435 = vst [vmem:[%s6055_s12 + $0x3c] sm:$0xf] %v3434_v31  ;;  %3437 = vst [vmem:[%s6055_s12 + $0x40] sm:$0xf] %v3436_v34  ;;  %v3440_v35 = vld [vmem:[%s6059_s14 + $0x48] sm:$0xf] }
 0x2be   : >> { %3439 = vst [vmem:[%s6055_s12 + $0x44] sm:$0xf] %v3438_v33  ;;  %v3442_v36 = vld [vmem:[%s6059_s14 + $0x4c] sm:$0xf]  ;;  %v3444_v21 = vld [vmem:[%s6059_s14 + $0x50] sm:$0xf] }
 0x2bf   : >> { %3441 = vst [vmem:[%s6055_s12 + $0x48] sm:$0xf] %v3440_v35  ;;  %3443 = vst [vmem:[%s6055_s12 + $0x4c] sm:$0xf] %v3442_v36  ;;  %v3446_v22 = vld [vmem:[%s6059_s14 + $0x54] sm:$0xf] }
 0x2c0   : >> { %3445 = vst [vmem:[%s6055_s12 + $0x50] sm:$0xf] %v3444_v21  ;;  %v3448_v39 = vld [vmem:[%s6059_s14 + $0x58] sm:$0xf]  ;;  %v3450_v51 = vld [vmem:[%s6059_s14 + $0x5c] sm:$0xf] }
 0x2c1   : >> { %3447 = vst [vmem:[%s6055_s12 + $0x54] sm:$0xf] %v3446_v22  ;;  %3449 = vst [vmem:[%s6055_s12 + $0x58] sm:$0xf] %v3448_v39  ;;  %v3452_v52 = vld [vmem:[%s6059_s14 + $0x60] sm:$0xf] }
 0x2c2   : >> { %3451 = vst [vmem:[%s6055_s12 + $0x5c] sm:$0xf] %v3450_v51  ;;  %v3454_v41 = vld [vmem:[%s6059_s14 + $0x64] sm:$0xf]  ;;  %v3456_v37 = vld [vmem:[%s6059_s14 + $0x68] sm:$0xf] }
 0x2c3   : >> { %3453 = vst [vmem:[%s6055_s12 + $0x60] sm:$0xf] %v3452_v52  ;;  %3455 = vst [vmem:[%s6055_s12 + $0x64] sm:$0xf] %v3454_v41  ;;  %v3458_v28 = vld [vmem:[%s6059_s14 + $0x6c] sm:$0xf] }
 0x2c4   : >> { %3457 = vst [vmem:[%s6055_s12 + $0x68] sm:$0xf] %v3456_v37  ;;  %v3460_v43 = vld [vmem:[%s6059_s14 + $0x70] sm:$0xf]  ;;  %v3462_v45 = vld [vmem:[%s6059_s14 + $0x74] sm:$0xf] }
 0x2c5   : >> { %3459 = vst [vmem:[%s6055_s12 + $0x6c] sm:$0xf] %v3458_v28  ;;  %3461 = vst [vmem:[%s6055_s12 + $0x70] sm:$0xf] %v3460_v43  ;;  %v3464_v57 = vld [vmem:[%s6059_s14 + $0x78] sm:$0xf] }
 0x2c6   : >> { %3463 = vst [vmem:[%s6055_s12 + $0x74] sm:$0xf] %v3462_v45  ;;  %v3466_v46 = vld [vmem:[%s6059_s14 + $0x7c] sm:$0xf]  ;;  %v3468_v49 = vld [vmem:[%s6059_s14 + $0x80] sm:$0xf] }
 0x2c7   : >> { %3465 = vst [vmem:[%s6055_s12 + $0x78] sm:$0xf] %v3464_v57  ;;  %3467 = vst [vmem:[%s6055_s12 + $0x7c] sm:$0xf] %v3466_v46  ;;  %v3470_v50 = vld [vmem:[%s6059_s14 + $0x84] sm:$0xf] }
 0x2c8   : >> { %3469 = vst [vmem:[%s6055_s12 + $0x80] sm:$0xf] %v3468_v49  ;;  %v3472_v5 = vld [vmem:[%s6059_s14 + $0x88] sm:$0xf]  ;;  %v3474_v12 = vld [vmem:[%s6059_s14 + $0x8c] sm:$0xf] }
 0x2c9   : >> { %3471 = vst [vmem:[%s6055_s12 + $0x84] sm:$0xf] %v3470_v50  ;;  %3473 = vst [vmem:[%s6055_s12 + $0x88] sm:$0xf] %v3472_v5  ;;  %v3476_v53 = vld [vmem:[%s6059_s14 + $0x90] sm:$0xf] }
 0x2ca   : >> { %3475 = vst [vmem:[%s6055_s12 + $0x8c] sm:$0xf] %v3474_v12  ;;  %v3478_v55 = vld [vmem:[%s6059_s14 + $0x94] sm:$0xf]  ;;  %v3480_v23 = vld [vmem:[%s6059_s14 + $0x98] sm:$0xf] }
 0x2cb   : >> { %3477 = vst [vmem:[%s6055_s12 + $0x90] sm:$0xf] %v3476_v53  ;;  %3479 = vst [vmem:[%s6055_s12 + $0x94] sm:$0xf] %v3478_v55  ;;  %v3482_v56 = vld [vmem:[%s6059_s14 + $0x9c] sm:$0xf] }
 0x2cc   : >> { %3481 = vst [vmem:[%s6055_s12 + $0x98] sm:$0xf] %v3480_v23  ;;  %v3484_v9 = vld [vmem:[%s6059_s14 + $0xa0] sm:$0xf]  ;;  %v3486_v59 = vld [vmem:[%s6059_s14 + $0xa4] sm:$0xf] }
 0x2cd   : >> { %3483 = vst [vmem:[%s6055_s12 + $0x9c] sm:$0xf] %v3482_v56  ;;  %3485 = vst [vmem:[%s6055_s12 + $0xa0] sm:$0xf] %v3484_v9  ;;  %v3488_v32 = vld [vmem:[%s6059_s14 + $0xa8] sm:$0xf] }
 0x2ce   : >> { %3487 = vst [vmem:[%s6055_s12 + $0xa4] sm:$0xf] %v3486_v59  ;;  %v3490_v54 = vld [vmem:[%s6059_s14 + $0xac] sm:$0xf]  ;;  %v3492_v62 = vld [vmem:[%s6059_s14 + $0xb0] sm:$0xf] }
 0x2cf   : >> { %3489 = vst [vmem:[%s6055_s12 + $0xa8] sm:$0xf] %v3488_v32  ;;  %3491 = vst [vmem:[%s6055_s12 + $0xac] sm:$0xf] %v3490_v54  ;;  %v3494_v26 = vld [vmem:[%s6059_s14 + $0xb4] sm:$0xf] }
 0x2d0   : >> { %3493 = vst [vmem:[%s6055_s12 + $0xb0] sm:$0xf] %v3492_v62  ;;  %v3496_v16 = vld [vmem:[%s6059_s14 + $0xb8] sm:$0xf]  ;;  %v3498_v40 = vld [vmem:[%s6059_s14 + $0xbc] sm:$0xf] }
 0x2d1   : >> { %3495 = vst [vmem:[%s6055_s12 + $0xb4] sm:$0xf] %v3494_v26  ;;  %3497 = vst [vmem:[%s6055_s12 + $0xb8] sm:$0xf] %v3496_v16  ;;  %v3500_v60 = vld [vmem:[%s6059_s14 + $0xc0] sm:$0xf] }
 0x2d2   : >> { %3499 = vst [vmem:[%s6055_s12 + $0xbc] sm:$0xf] %v3498_v40  ;;  %v3502_v38 = vld [vmem:[%s6059_s14 + $0xc4] sm:$0xf]  ;;  %v3504_v4 = vld [vmem:[%s6059_s14 + $0xc8] sm:$0xf] }
 0x2d3   : >> { %3501 = vst [vmem:[%s6055_s12 + $0xc0] sm:$0xf] %v3500_v60  ;;  %3503 = vst [vmem:[%s6055_s12 + $0xc4] sm:$0xf] %v3502_v38  ;;  %v3506_v63 = vld [vmem:[%s6059_s14 + $0xcc] sm:$0xf] }
 0x2d4   : >> { %3505 = vst [vmem:[%s6055_s12 + $0xc8] sm:$0xf] %v3504_v4  ;;  %v3508_v58 = vld [vmem:[%s6059_s14 + $0xd0] sm:$0xf]  ;;  %v3510_v0 = vld [vmem:[%s6059_s14 + $0xd4] sm:$0xf] }
 0x2d5   : >> { %3507 = vst [vmem:[%s6055_s12 + $0xcc] sm:$0xf] %v3506_v63  ;;  %3509 = vst [vmem:[%s6055_s12 + $0xd0] sm:$0xf] %v3508_v58  ;;  %v3512_v3 = vld [vmem:[%s6059_s14 + $0xd8] sm:$0xf] }
 0x2d6   : >> { %3511 = vst [vmem:[%s6055_s12 + $0xd4] sm:$0xf] %v3510_v0  ;;  %v3514_v30 = vld [vmem:[%s6059_s14 + $0xdc] sm:$0xf]  ;;  %v3516_v44 = vld [vmem:[%s6059_s14 + $0xe0] sm:$0xf] }
 0x2d7   : >> { %3513 = vst [vmem:[%s6055_s12 + $0xd8] sm:$0xf] %v3512_v3  ;;  %3515 = vst [vmem:[%s6055_s12 + $0xdc] sm:$0xf] %v3514_v30  ;;  %v3518_v6 = vld [vmem:[%s6059_s14 + $0xe4] sm:$0xf] }
 0x2d8   : >> { %3517 = vst [vmem:[%s6055_s12 + $0xe0] sm:$0xf] %v3516_v44  ;;  %v3520_v13 = vld [vmem:[%s6059_s14 + $0xe8] sm:$0xf]  ;;  %v3522_v20 = vld [vmem:[%s6059_s14 + $0xec] sm:$0xf] }
 0x2d9   : >> { %3519 = vst [vmem:[%s6055_s12 + $0xe4] sm:$0xf] %v3518_v6  ;;  %3521 = vst [vmem:[%s6055_s12 + $0xe8] sm:$0xf] %v3520_v13  ;;  %v3524_v7 = vld [vmem:[%s6059_s14 + $0xf0] sm:$0xf] }
 0x2da   : >> { %3523 = vst [vmem:[%s6055_s12 + $0xec] sm:$0xf] %v3522_v20  ;;  %v3526_v10 = vld [vmem:[%s6059_s14 + $0xf4] sm:$0xf]  ;;  %v3528_v11 = vld [vmem:[%s6059_s14 + $0xf8] sm:$0xf] }
 0x2db   : >> { %3525 = vst [vmem:[%s6055_s12 + $0xf0] sm:$0xf] %v3524_v7  ;;  %3527 = vst [vmem:[%s6055_s12 + $0xf4] sm:$0xf] %v3526_v10  ;;  %v3530_v14 = vld [vmem:[%s6059_s14 + $0xfc] sm:$0xf] }
 0x2dc   : >> { %3529 = vst [vmem:[%s6055_s12 + $0xf8] sm:$0xf] %v3528_v11  ;;  %3531 = vst [vmem:[%s6055_s12 + $0xfc] sm:$0xf] %v3530_v14  ;;  %s7335_s29 = smov (%p3533_p12, %s3532_s29), 0  ;;  %s3398_s16 = sadd.s32 1, %s6067_s16  }
 0x2dd   : >> { %s4653_s13 = sshll.u32 %s7335_s29, 8  ;;  %p3397_p13 = scmp.ge.s32.totalorder %s3398_s16, %s6948_s11 }
 0x2de   : >> { %s3537_s14 = scalar_lea.vmem %s6687_s24, %s4653_s13 [#allocation2]   ;;  %s3538_s12 = scalar_lea.vmem %s6942_s30, %s4653_s13  }
 0x2df   : >> { %s7325_s15 = smov %s7335_s29  ;;  %3400 = sbr.rel (!%p3397_p13) target bundleno = 690 (0x2b2), region = 201 }
 0x2e6 PF: > { %s7116_s18 = sand.u32 63, %s7333_s20   ;;  %s4801_s19 = sshll.u32 %s6948_s11, 8 }
 0x2e7   : > { %s3543_s22 = scalar_lea.vmem %s6687_s24, %s4801_s19 [#allocation2]   ;;  %s3545_s23 = scalar_lea.vmem %s6942_s30, %s4801_s19  }
 0x2e8   : > { %p4658_p0 = scmp.le.s32.totalorder %s7116_s18, 0 }
 0x2e9   : > { %s6069_s26 = smov (!%p4658_p0), %s3545_s23   ;;  %s6073_s10 = smov (!%p4658_p0), %s3543_s22  }
 0x2ea   : > { %4209 = sbr.rel (%p4658_p0) target bundleno = 763 (0x2fb), region = 206  ;;  %s6077_s13 = smov (!%p4658_p0), 0  }
 0x2eb   : > { %s6081_s29 = smov (!%p4658_p0), 0  }
 0x2f1 LB: >> { %v3555_v8 = vld [vmem:[%s6075_s10] sm:$0xf]  ;;  %s3557_s20 = sadd.s32 1, %s6079_s13  ;;  %s3549_s29 = sadd.s32 1, %s6083_s29   ;;  %s6083_s29 = sphi %s6081_s29, %s3549_s29   ;;  %s6079_s13 = sphi %s6077_s13, %s6078_s13   ;;  %s6075_s10 = sphi %s6073_s10, %s3562_s10   ;;  %s6071_s26 = sphi %s6069_s26, %s3563_s26  }
 0x2f2   : >> { %3556 = vst [vmem:[%s6071_s26] sm:$0xf] %v3555_v8  ;;  %p3558_p1 = scmp.ge.s32.totalorder %s3557_s20, %s7116_s18  ;;  %p3548_p2 = scmp.ge.s32.totalorder %s3549_s29, %s7116_s18 }
 0x2f4   : >> { %s7337_s20 = smov (%p3558_p1, %s3557_s20), 0  ;;  %3551 = sbr.rel (!%p3548_p2) target bundleno = 753 (0x2f1), region = 212 }
 0x2f5   : >> { %s4659_s24 = sshll.u32 %s7337_s20, 2  ;;  %s6078_s13 = smov %s7337_s20  }
 0x2f6   : >> { %s3562_s10 = scalar_lea.vmem %s3543_s22, %s4659_s24 [#allocation2]   ;;  %s3563_s26 = scalar_lea.vmem %s3545_s23, %s4659_s24  }
 0x2fb PF: > { %3740 = sbr.rel (!%p6185_p4) target bundleno = 873 (0x369), region = 96  ;;  %s3742_s30 = ssub.s32 (%p6185_p4), 241, %s6294_s21 }
 0x2fc   : > { %s4803_s11 = smul.u32 (%p6185_p4), 248, %s6173_s27  ;;  %p3743_p3 = scmp.lt.s32.totalorder (%p6185_p4), %s3742_s30, 62 }
 0x2fe   : > { %s7131_s15 = scalar_lea.vmem (%p6185_p4), %s7321_s7, %s4803_s11  }
 0x302   : > { %s7339_s30 = smov (!%p3743_p3, %s3742_s30), 62 }
 0x303   : > { %s4661_s16 = sshll.u32 %s7339_s30, 6 }
 0x304   : > { %p4664_p5 = scmp.eq.s32.totalorder %s4661_s16, 0 }
 0x305   : > { %5961 = sdivrem.u32 (!%p4664_p5), %s7339_s30, 62 }
 0x306   : > { %3751 = sbr.rel (%p4664_p5) target bundleno = 873 (0x369), region = 100 }
 0x30e   : > { %s7137_s9 = spop.drf %5961 }
 0x30f   : > { %p4665_p4 = scmp.le.s32.totalorder %s7137_s9, 0 }
 0x310   : > { %s7326_s27 = smov (!%p4665_p4), %s7131_s15  ;;  %s7327_s21 = smov (!%p4665_p4), %s6691_s17 }
 0x311   : > { %4223 = sbr.rel (%p4665_p4) target bundleno = 844 (0x34c), region = 217  ;;  %s7146_s18 = smov (!%p4665_p4), 0  }
 0x312   : > { %s7148_s19 = smov (!%p4665_p4), 0  }
 0x318 LB: >> { %v3768_v15 = vld [vmem:[%s6091_s21] sm:$0xf]  ;;  %v3770_v47 = vld [vmem:[%s6091_s21 + $0x4] sm:$0xf]  ;;  %v3772_v17 = vld [vmem:[%s6091_s21 + $0x8] sm:$0xf]  ;;  %s6099_s19 = sphi %s7148_s19, %s3762_s19   ;;  %s6095_s18 = sphi %s7146_s18, %s7328_s18   ;;  %s6091_s21 = sphi %s7327_s21, %s3897_s21   ;;  %s6087_s27 = sphi %s7326_s27, %s3898_s27  }
 0x319   : >> { %3769 = vst [vmem:[%s6087_s27] sm:$0xf] %v3768_v15  ;;  %3771 = vst [vmem:[%s6087_s27 + $0x4] sm:$0xf] %v3770_v47  ;;  %v3774_v42 = vld [vmem:[%s6091_s21 + $0xc] sm:$0xf]  ;;  %s3892_s22 = sadd.s32 1, %s6095_s18 }
 0x31a   : >> { %3773 = vst [vmem:[%s6087_s27 + $0x8] sm:$0xf] %v3772_v17  ;;  %v3776_v18 = vld [vmem:[%s6091_s21 + $0x10] sm:$0xf]  ;;  %v3778_v61 = vld [vmem:[%s6091_s21 + $0x14] sm:$0xf]  ;;  %p3893_p6 = scmp.ge.s32.totalorder %s3892_s22, %s7137_s9 }
 0x31b   : >> { %3775 = vst [vmem:[%s6087_s27 + $0xc] sm:$0xf] %v3774_v42  ;;  %3777 = vst [vmem:[%s6087_s27 + $0x10] sm:$0xf] %v3776_v18  ;;  %v3780_v19 = vld [vmem:[%s6091_s21 + $0x18] sm:$0xf] }
 0x31c   : >> { %3779 = vst [vmem:[%s6087_s27 + $0x14] sm:$0xf] %v3778_v61  ;;  %v3782_v25 = vld [vmem:[%s6091_s21 + $0x1c] sm:$0xf]  ;;  %v3784_v27 = vld [vmem:[%s6091_s21 + $0x20] sm:$0xf] }
 0x31d   : >> { %3781 = vst [vmem:[%s6087_s27 + $0x18] sm:$0xf] %v3780_v19  ;;  %3783 = vst [vmem:[%s6087_s27 + $0x1c] sm:$0xf] %v3782_v25  ;;  %v3786_v48 = vld [vmem:[%s6091_s21 + $0x24] sm:$0xf] }
 0x31e   : >> { %3785 = vst [vmem:[%s6087_s27 + $0x20] sm:$0xf] %v3784_v27  ;;  %v3788_v1 = vld [vmem:[%s6091_s21 + $0x28] sm:$0xf]  ;;  %v3790_v2 = vld [vmem:[%s6091_s21 + $0x2c] sm:$0xf] }
 0x31f   : >> { %3787 = vst [vmem:[%s6087_s27 + $0x24] sm:$0xf] %v3786_v48  ;;  %3789 = vst [vmem:[%s6087_s27 + $0x28] sm:$0xf] %v3788_v1  ;;  %v3792_v24 = vld [vmem:[%s6091_s21 + $0x30] sm:$0xf] }
 0x320   : >> { %3791 = vst [vmem:[%s6087_s27 + $0x2c] sm:$0xf] %v3790_v2  ;;  %v3794_v29 = vld [vmem:[%s6091_s21 + $0x34] sm:$0xf]  ;;  %v3796_v31 = vld [vmem:[%s6091_s21 + $0x38] sm:$0xf] }
 0x321   : >> { %3793 = vst [vmem:[%s6087_s27 + $0x30] sm:$0xf] %v3792_v24  ;;  %3795 = vst [vmem:[%s6087_s27 + $0x34] sm:$0xf] %v3794_v29  ;;  %v3798_v34 = vld [vmem:[%s6091_s21 + $0x3c] sm:$0xf] }
 0x322   : >> { %3797 = vst [vmem:[%s6087_s27 + $0x38] sm:$0xf] %v3796_v31  ;;  %v3800_v33 = vld [vmem:[%s6091_s21 + $0x40] sm:$0xf]  ;;  %v3802_v35 = vld [vmem:[%s6091_s21 + $0x44] sm:$0xf] }
 0x323   : >> { %3799 = vst [vmem:[%s6087_s27 + $0x3c] sm:$0xf] %v3798_v34  ;;  %3801 = vst [vmem:[%s6087_s27 + $0x40] sm:$0xf] %v3800_v33  ;;  %v3804_v36 = vld [vmem:[%s6091_s21 + $0x48] sm:$0xf] }
 0x324   : >> { %3803 = vst [vmem:[%s6087_s27 + $0x44] sm:$0xf] %v3802_v35  ;;  %v3806_v21 = vld [vmem:[%s6091_s21 + $0x4c] sm:$0xf]  ;;  %v3808_v22 = vld [vmem:[%s6091_s21 + $0x50] sm:$0xf] }
 0x325   : >> { %3805 = vst [vmem:[%s6087_s27 + $0x48] sm:$0xf] %v3804_v36  ;;  %3807 = vst [vmem:[%s6087_s27 + $0x4c] sm:$0xf] %v3806_v21  ;;  %v3810_v39 = vld [vmem:[%s6091_s21 + $0x54] sm:$0xf] }
 0x326   : >> { %3809 = vst [vmem:[%s6087_s27 + $0x50] sm:$0xf] %v3808_v22  ;;  %v3812_v51 = vld [vmem:[%s6091_s21 + $0x58] sm:$0xf]  ;;  %v3814_v52 = vld [vmem:[%s6091_s21 + $0x5c] sm:$0xf] }
 0x327   : >> { %3811 = vst [vmem:[%s6087_s27 + $0x54] sm:$0xf] %v3810_v39  ;;  %3813 = vst [vmem:[%s6087_s27 + $0x58] sm:$0xf] %v3812_v51  ;;  %v3816_v41 = vld [vmem:[%s6091_s21 + $0x60] sm:$0xf] }
 0x328   : >> { %3815 = vst [vmem:[%s6087_s27 + $0x5c] sm:$0xf] %v3814_v52  ;;  %v3818_v37 = vld [vmem:[%s6091_s21 + $0x64] sm:$0xf]  ;;  %v3820_v28 = vld [vmem:[%s6091_s21 + $0x68] sm:$0xf] }
 0x329   : >> { %3817 = vst [vmem:[%s6087_s27 + $0x60] sm:$0xf] %v3816_v41  ;;  %3819 = vst [vmem:[%s6087_s27 + $0x64] sm:$0xf] %v3818_v37  ;;  %v3822_v43 = vld [vmem:[%s6091_s21 + $0x6c] sm:$0xf] }
 0x32a   : >> { %3821 = vst [vmem:[%s6087_s27 + $0x68] sm:$0xf] %v3820_v28  ;;  %v3824_v45 = vld [vmem:[%s6091_s21 + $0x70] sm:$0xf]  ;;  %v3826_v57 = vld [vmem:[%s6091_s21 + $0x74] sm:$0xf] }
 0x32b   : >> { %3823 = vst [vmem:[%s6087_s27 + $0x6c] sm:$0xf] %v3822_v43  ;;  %3825 = vst [vmem:[%s6087_s27 + $0x70] sm:$0xf] %v3824_v45  ;;  %v3828_v46 = vld [vmem:[%s6091_s21 + $0x78] sm:$0xf] }
 0x32c   : >> { %3827 = vst [vmem:[%s6087_s27 + $0x74] sm:$0xf] %v3826_v57  ;;  %v3830_v49 = vld [vmem:[%s6091_s21 + $0x7c] sm:$0xf]  ;;  %v3832_v50 = vld [vmem:[%s6091_s21 + $0x80] sm:$0xf] }
 0x32d   : >> { %3829 = vst [vmem:[%s6087_s27 + $0x78] sm:$0xf] %v3828_v46  ;;  %3831 = vst [vmem:[%s6087_s27 + $0x7c] sm:$0xf] %v3830_v49  ;;  %v3834_v5 = vld [vmem:[%s6091_s21 + $0x84] sm:$0xf] }
 0x32e   : >> { %3833 = vst [vmem:[%s6087_s27 + $0x80] sm:$0xf] %v3832_v50  ;;  %v3836_v12 = vld [vmem:[%s6091_s21 + $0x88] sm:$0xf]  ;;  %v3838_v53 = vld [vmem:[%s6091_s21 + $0x8c] sm:$0xf] }
 0x32f   : >> { %3835 = vst [vmem:[%s6087_s27 + $0x84] sm:$0xf] %v3834_v5  ;;  %3837 = vst [vmem:[%s6087_s27 + $0x88] sm:$0xf] %v3836_v12  ;;  %v3840_v55 = vld [vmem:[%s6091_s21 + $0x90] sm:$0xf] }
 0x330   : >> { %3839 = vst [vmem:[%s6087_s27 + $0x8c] sm:$0xf] %v3838_v53  ;;  %v3842_v23 = vld [vmem:[%s6091_s21 + $0x94] sm:$0xf]  ;;  %v3844_v56 = vld [vmem:[%s6091_s21 + $0x98] sm:$0xf] }
 0x331   : >> { %3841 = vst [vmem:[%s6087_s27 + $0x90] sm:$0xf] %v3840_v55  ;;  %3843 = vst [vmem:[%s6087_s27 + $0x94] sm:$0xf] %v3842_v23  ;;  %v3846_v9 = vld [vmem:[%s6091_s21 + $0x9c] sm:$0xf] }
 0x332   : >> { %3845 = vst [vmem:[%s6087_s27 + $0x98] sm:$0xf] %v3844_v56  ;;  %v3848_v59 = vld [vmem:[%s6091_s21 + $0xa0] sm:$0xf]  ;;  %v3850_v32 = vld [vmem:[%s6091_s21 + $0xa4] sm:$0xf] }
 0x333   : >> { %3847 = vst [vmem:[%s6087_s27 + $0x9c] sm:$0xf] %v3846_v9  ;;  %3849 = vst [vmem:[%s6087_s27 + $0xa0] sm:$0xf] %v3848_v59  ;;  %v3852_v54 = vld [vmem:[%s6091_s21 + $0xa8] sm:$0xf] }
 0x334   : >> { %3851 = vst [vmem:[%s6087_s27 + $0xa4] sm:$0xf] %v3850_v32  ;;  %v3854_v62 = vld [vmem:[%s6091_s21 + $0xac] sm:$0xf]  ;;  %v3856_v26 = vld [vmem:[%s6091_s21 + $0xb0] sm:$0xf] }
 0x335   : >> { %3853 = vst [vmem:[%s6087_s27 + $0xa8] sm:$0xf] %v3852_v54  ;;  %3855 = vst [vmem:[%s6087_s27 + $0xac] sm:$0xf] %v3854_v62  ;;  %v3858_v16 = vld [vmem:[%s6091_s21 + $0xb4] sm:$0xf] }
 0x336   : >> { %3857 = vst [vmem:[%s6087_s27 + $0xb0] sm:$0xf] %v3856_v26  ;;  %v3860_v40 = vld [vmem:[%s6091_s21 + $0xb8] sm:$0xf]  ;;  %v3862_v60 = vld [vmem:[%s6091_s21 + $0xbc] sm:$0xf] }
 0x337   : >> { %3859 = vst [vmem:[%s6087_s27 + $0xb4] sm:$0xf] %v3858_v16  ;;  %3861 = vst [vmem:[%s6087_s27 + $0xb8] sm:$0xf] %v3860_v40  ;;  %v3864_v38 = vld [vmem:[%s6091_s21 + $0xc0] sm:$0xf] }
 0x338   : >> { %3863 = vst [vmem:[%s6087_s27 + $0xbc] sm:$0xf] %v3862_v60  ;;  %v3866_v4 = vld [vmem:[%s6091_s21 + $0xc4] sm:$0xf]  ;;  %v3868_v63 = vld [vmem:[%s6091_s21 + $0xc8] sm:$0xf] }
 0x339   : >> { %3865 = vst [vmem:[%s6087_s27 + $0xc0] sm:$0xf] %v3864_v38  ;;  %3867 = vst [vmem:[%s6087_s27 + $0xc4] sm:$0xf] %v3866_v4  ;;  %v3870_v58 = vld [vmem:[%s6091_s21 + $0xcc] sm:$0xf] }
 0x33a   : >> { %3869 = vst [vmem:[%s6087_s27 + $0xc8] sm:$0xf] %v3868_v63  ;;  %v3872_v0 = vld [vmem:[%s6091_s21 + $0xd0] sm:$0xf]  ;;  %v3874_v3 = vld [vmem:[%s6091_s21 + $0xd4] sm:$0xf] }
 0x33b   : >> { %3871 = vst [vmem:[%s6087_s27 + $0xcc] sm:$0xf] %v3870_v58  ;;  %3873 = vst [vmem:[%s6087_s27 + $0xd0] sm:$0xf] %v3872_v0  ;;  %v3876_v30 = vld [vmem:[%s6091_s21 + $0xd8] sm:$0xf] }
 0x33c   : >> { %3875 = vst [vmem:[%s6087_s27 + $0xd4] sm:$0xf] %v3874_v3  ;;  %v3878_v44 = vld [vmem:[%s6091_s21 + $0xdc] sm:$0xf]  ;;  %v3880_v6 = vld [vmem:[%s6091_s21 + $0xe0] sm:$0xf] }
 0x33d   : >> { %3877 = vst [vmem:[%s6087_s27 + $0xd8] sm:$0xf] %v3876_v30  ;;  %3879 = vst [vmem:[%s6087_s27 + $0xdc] sm:$0xf] %v3878_v44  ;;  %v3882_v13 = vld [vmem:[%s6091_s21 + $0xe4] sm:$0xf] }
 0x33e   : >> { %3881 = vst [vmem:[%s6087_s27 + $0xe0] sm:$0xf] %v3880_v6  ;;  %v3884_v20 = vld [vmem:[%s6091_s21 + $0xe8] sm:$0xf]  ;;  %v3886_v7 = vld [vmem:[%s6091_s21 + $0xec] sm:$0xf] }
 0x33f   : >> { %3883 = vst [vmem:[%s6087_s27 + $0xe4] sm:$0xf] %v3882_v13  ;;  %3885 = vst [vmem:[%s6087_s27 + $0xe8] sm:$0xf] %v3884_v20  ;;  %v3888_v10 = vld [vmem:[%s6091_s21 + $0xf0] sm:$0xf] }
 0x340   : >> { %3887 = vst [vmem:[%s6087_s27 + $0xec] sm:$0xf] %v3886_v7  ;;  %v3890_v11 = vld [vmem:[%s6091_s21 + $0xf4] sm:$0xf]  ;;  %3889 = vst [vmem:[%s6087_s27 + $0xf0] sm:$0xf] %v3888_v10 }
 0x341   : >> { %3891 = vst [vmem:[%s6087_s27 + $0xf4] sm:$0xf] %v3890_v11  ;;  %s7341_s22 = smov (%p3893_p6, %s3892_s22), 0  ;;  %s3762_s19 = sadd.s32 1, %s6099_s19  }
 0x342   : >> { %s3895_s23 = smul.u32 248, %s7341_s22  ;;  %p3761_p7 = scmp.ge.s32.totalorder %s3762_s19, %s7137_s9 }
 0x343   : >> { %s7328_s18 = smov %s7341_s22 }
 0x344   : >> { %s3897_s21 = scalar_lea.vmem %s6691_s17, %s3895_s23 [#allocation3]   ;;  %s3898_s27 = scalar_lea.vmem %s7131_s15, %s3895_s23  }
 0x345   : > { %3764 = sbr.rel (!%p3761_p7) target bundleno = 792 (0x318), region = 223 }
 0x34c PF: > { %5963 = sdivrem.u32 %s7339_s30, 62 }
 0x34d   : > { %s4666_s26 = smul.u32 248, %s7137_s9 }
 0x34f   : > { %s3903_s10 = scalar_lea.vmem %s6691_s17, %s4666_s26 [#allocation3]   ;;  %s3905_s13 = scalar_lea.vmem %s7131_s15, %s4666_s26  }
 0x355   : > { %s5964_s29 = spop.drf %5963 }
 0x356   : > { %p4668_p8 = scmp.le.s32.totalorder %s5964_s29, 0 }
 0x357   : > { %s6101_s20 = smov (!%p4668_p8), %s3905_s13   ;;  %s6105_s24 = smov (!%p4668_p8), %s3903_s10  }
 0x358   : > { %4237 = sbr.rel (%p4668_p8) target bundleno = 873 (0x369), region = 228  ;;  %s6109_s11 = smov (!%p4668_p8), 0  }
 0x359   : > { %s6113_s12 = smov (!%p4668_p8), 0  }
 0x35f LB: >> { %v3915_v14 = vld [vmem:[%s6107_s24] sm:$0xf]  ;;  %s3917_s14 = sadd.s32 1, %s6111_s11  ;;  %s3909_s12 = sadd.s32 1, %s6115_s12   ;;  %s6115_s12 = sphi %s6113_s12, %s3909_s12   ;;  %s6111_s11 = sphi %s6109_s11, %s6110_s11   ;;  %s6107_s24 = sphi %s6105_s24, %s3922_s24   ;;  %s6103_s20 = sphi %s6101_s20, %s3923_s20  }
 0x360   : >> { %3916 = vst [vmem:[%s6103_s20] sm:$0xf] %v3915_v14  ;;  %p3918_p9 = scmp.ge.s32.totalorder %s3917_s14, %s5964_s29  ;;  %p3908_p10 = scmp.ge.s32.totalorder %s3909_s12, %s5964_s29 }
 0x362   : >> { %s7343_s14 = smov (%p3918_p9, %s3917_s14), 0  ;;  %3911 = sbr.rel (!%p3908_p10) target bundleno = 863 (0x35f), region = 234 }
 0x363   : >> { %s4669_s17 = sshll.u32 %s7343_s14, 2  ;;  %s6110_s11 = smov %s7343_s14  }
 0x364   : >> { %s3922_s24 = scalar_lea.vmem %s3903_s10, %s4669_s17 [#allocation3]   ;;  %s3923_s20 = scalar_lea.vmem %s3905_s13, %s4669_s17  }
 0x369 PF: > { %p15_p11 = scmp.ge.s32.totalorder %s6175_s28, 6   ;;  %s7329_s24 = smov %s6047_s25 }
 0x36a   : > { %s7330_s25 = smov %s6183_s8  ;;  %s7331_s26 = smov %s6175_s28 }
 0x36b   :  { %17 = sbr.rel (!%p15_p11) target bundleno = 2 (0x2), region = 245 }

// kernel: sim_camera_net_forward.5
= control target key start
LH: loop header
LB: loop body
LE: loop exit
PB: predicated region body
PF: predicated region fallthrough
CT: control target
= control target key end

     0   :  { %s9630_s24 = smov 0   ;;  %s9632_s25 = smov 0   ;;  %s11546_s0 = inlined_call_operand.vmem [shape: bf16[448,2048], index: 0, kind: input, shape index: {}]   ;;  %s11547_s1 = inlined_call_operand.vmem [shape: bf16[2048,128], index: 1, kind: input, shape index: {}]   ;;  %s11548_s2 = inlined_call_operand.vmem [shape: f32[1,128], index: 2, kind: input, shape index: {}]   ;;  %s11549_s3 = inlined_call_operand.vmem [shape: bf16[450,1152], index: 3, kind: input, shape index: {}]   ;;  %s11550_s4 = inlined_call_operand.vmem [shape: bf16[1152,128], index: 4, kind: input, shape index: {}]   ;;  %s11551_s5 = inlined_call_operand.vmem [shape: f32[1,128], index: 5, kind: input, shape index: {}]   ;;  %s11552_s6 = inlined_call_operand.vmem [shape: bf16[448,128], index: 6, kind: output, shape index: {0}]   ;;  %s11553_s7 = inlined_call_operand.vmem [shape: bf16[450,128], index: 7, kind: output, shape index: {1}]  }
   0x1   :  { %s9634_s26 = smov 0  }
   0x2 LB: > { %s9643_s27 = sadd.s32 4294967295, %s9554_s26   ;;  %s9645_s28 = sadd.s32 1, %s9554_s26   ;;  %s9554_s26 = sphi %s9634_s26, %s11560_s26   ;;  %s9550_s25 = sphi %s9632_s25, %s11559_s25   ;;  %s9546_s24 = sphi %s9630_s24, %s11558_s24  }
   0x3   : > { %s184_s29 = ssub.s32 %s9554_s26, %s9645_s28  ;;  %s187_s30 = sadd.s32 1, %s9550_s25 }
   0x4   : > { %p185_p0 = scmp.eq.s32.totalorder %s184_s29, 0  ;;  %p197_p1 = scmp.ne.s32.totalorder %s9550_s25, %s9546_s24 }
   0x5   : > { %p198_p2 = scmp.eq.s32.totalorder %s9643_s27, 1  ;;  %p6800_p3 = scmp.ge.s32.totalorder %s9554_s26, 1 }
   0x6   : > { %s9653_s8 = scalar_select %p185_p0, %s9550_s25, %s187_s30  }
   0x7   : > { %p9655_p4 = por %p198_p2, %p197_p1  ;;  %p264_p5 = scmp.lt.s32.totalorder %s9554_s26, 3 }
   0x9   : > { %p265_p6 = pnand %p6800_p3, %p264_p5 }
   0xa   : > { %v9100_v0 = vld [vmem:[%s11547_s1 + $0x40] sm:$0xff] (!%p265_p6)   ;;  %s312_s12 = smul.u32 (!%p265_p6), 28, %s9643_s27  ;;  %v9102_v2 = vld [vmem:[%s11547_s1 + $0x48] sm:$0xff] (!%p265_p6)   ;;  %v9104_v4 = vld [vmem:[%s11547_s1 + $0x50] sm:$0xff] (!%p265_p6)   ;;  %vm9589_vm0 = vmmov (!%p265_p6), 0  }
   0xb   : > { %268 = sbr.rel (%p265_p6) target bundleno = 1089 (0x441), region = 44  ;;  %v9101_v1 = vld [vmem:[%s11547_s1] sm:$0xff] (!%p265_p6)   ;;  %7668 = vmatprep.subr.bf16.mxu0 (!%p265_p6), %v9100_v0  ;;  %8991 = vmatprep.subr.bf16.mxu1 (!%p265_p6), %v9100_v0  ;;  %v9103_v3 = vld [vmem:[%s11547_s1 + $0x8] sm:$0xff] (!%p265_p6)   ;;  %v9105_v5 = vld [vmem:[%s11547_s1 + $0x10] sm:$0xff] (!%p265_p6)  }
   0xc   : > { %p313_p7 = scmp.lt.s32.totalorder (!%p265_p6), %s312_s12, 55  ;;  %7669 = vmatpush3.bf16.msra.mxu0 (!%p265_p6), %v9101_v1  ;;  %8999 = vmatpush3.bf16.msra.mxu1 (!%p265_p6), %v9101_v1  ;;  %v9106_v6 = vld [vmem:[%s11547_s1 + $0x58] sm:$0xff] (!%p265_p6)   ;;  %v9108_v8 = vld [vmem:[%s11547_s1 + $0x60] sm:$0xff] (!%p265_p6)   ;;  %v9110_v10 = vld [vmem:[%s11547_s1 + $0x68] sm:$0xff] (!%p265_p6)   ;;  %s10200_s19 = smul.u32 (!%p265_p6), 30, %s9643_s27 }
   0xd   : > { %7670 = vmatprep.subr.bf16.mxu0 (!%p265_p6), %v9102_v2  ;;  %8992 = vmatprep.subr.bf16.mxu1 (!%p265_p6), %v9102_v2  ;;  %v9107_v7 = vld [vmem:[%s11547_s1 + $0x18] sm:$0xff] (!%p265_p6)   ;;  %v9109_v9 = vld [vmem:[%s11547_s1 + $0x20] sm:$0xff] (!%p265_p6)   ;;  %v9111_v17 = vld [vmem:[%s11547_s1 + $0x28] sm:$0xff] (!%p265_p6)  }
   0xe   : > { %v9112_v18 = vld [vmem:[%s11547_s1 + $0x70] sm:$0xff] (!%p265_p6)   ;;  %v9114_v20 = vld [vmem:[%s11547_s1 + $0x78] sm:$0xff] (!%p265_p6)   ;;  %v9116_v22 = vld [vmem:[%s11547_s1 + $0x140] sm:$0xff] (!%p265_p6)   ;;  %p325_p8 = scmp.lt.s32.totalorder (!%p265_p6), %s10200_s19, 56 }
   0xf   : > { %v9113_v19 = vld [vmem:[%s11547_s1 + $0x30] sm:$0xff] (!%p265_p6)   ;;  %v9115_v21 = vld [vmem:[%s11547_s1 + $0x38] sm:$0xff] (!%p265_p6)   ;;  %v9118_v23 = vld [vmem:[%s11547_s1 + $0xc0] sm:$0xff] (!%p265_p6)  }
  0x10   : > { %7671 = vmatpush3.bf16.msra.mxu0 (!%p265_p6), %v9103_v3  ;;  %9000 = vmatpush3.bf16.msra.mxu1 (!%p265_p6), %v9103_v3  ;;  %v9117_v27 = vld [vmem:[%s11547_s1 + $0x100] sm:$0xff] (!%p265_p6)   ;;  %v9120_v32 = vld [vmem:[%s11547_s1 + $0x148] sm:$0xff] (!%p265_p6)   ;;  %v9124_v38 = vld [vmem:[%s11547_s1 + $0x150] sm:$0xff] (!%p265_p6)  }
  0x11   : > { %7672 = vmatprep.subr.bf16.mxu0 (!%p265_p6), %v9104_v4  ;;  %8993 = vmatprep.subr.bf16.mxu1 (!%p265_p6), %v9104_v4  ;;  %v9119_v31 = vld [vmem:[%s11547_s1 + $0x80] sm:$0xff] (!%p265_p6)   ;;  %v9122_v35 = vld [vmem:[%s11547_s1 + $0xc8] sm:$0xff] (!%p265_p6)   ;;  %v9126_v43 = vld [vmem:[%s11547_s1 + $0xd0] sm:$0xff] (!%p265_p6)  }
  0x12   : > { %s11562_s12 = smov (!%p313_p7, %s312_s12), 55  ;;  %v9121_v36 = vld [vmem:[%s11547_s1 + $0x108] sm:$0xff]   ;;  %v9125_v48 = vld [vmem:[%s11547_s1 + $0x110] sm:$0xff]   ;;  %v9128_v50 = vld [vmem:[%s11547_s1 + $0x158] sm:$0xff]   ;;  %s6436_s17 = ssub.s32 (%p9655_p4), 57, %s10200_s19 }
  0x13   : > { %s7436_s29 = sshll.u32 %s11562_s12, 6  ;;  %v9123_v37 = vld [vmem:[%s11547_s1 + $0x88] sm:$0xff]   ;;  %v9127_v49 = vld [vmem:[%s11547_s1 + $0x90] sm:$0xff]   ;;  %v9130_v51 = vld [vmem:[%s11547_s1 + $0xd8] sm:$0xff]   ;;  %s6804_s30 = sshll.u32 %s11562_s12, 2 }
  0x14   : > { %7673 = vmatpush3.bf16.msra.mxu0 %v9105_v5  ;;  %9001 = vmatpush3.bf16.msra.mxu1 %v9105_v5  ;;  %s9693_s16 = scalar_lea.vmem %s11546_s0, %s7436_s29  ;;  %v9129_v52 = vld [vmem:[%s11547_s1 + $0x118] sm:$0xff]   ;;  %v9132_v58 = vld [vmem:[%s11547_s1 + $0x160] sm:$0xff]   ;;  %v9136_v2 = vld [vmem:[%s11547_s1 + $0x168] sm:$0xff]   ;;  %s11070_s13 = scalar_lea.vmem %s11552_s6, %s6804_s30 }
  0x15   : > { %7674 = vmatprep.subr.bf16.mxu0 %v9106_v6  ;;  %8994 = vmatprep.subr.bf16.mxu1 %v9106_v6  ;;  %v348_v11 = vld [vmem:[%s9693_s16] sm:$0xff]  ;;  %v9131_v57 = vld [vmem:[%s11547_s1 + $0x98] sm:$0xff]   ;;  %v9138_v3 = vld [vmem:[%s11547_s1 + $0xe8] sm:$0xff]   ;;  %s326_s20 = scalar_select %p325_p8, %s10200_s19, 56 }
  0x16   : > { %v356_v12 = vld [vmem:[%s9693_s16 + $0x40] sm:$0xff]  ;;  %s7495_s18 = smul.u32 (%p9655_p4), 120, %s9643_s27  ;;  %p6437_p9 = scmp.lt.s32.totalorder (%p9655_p4), %s6436_s17, 30 }
  0x17   : > { %v460_v13 = vld [vmem:[%s9693_s16 + $0x380] sm:$0xff]  ;;  %v6807_v14 = vcombine.high %v348_v11, %v356_v12  ;;  %v6806_v29 = vcombine.low %v348_v11, %v356_v12  ;;  %v9142_v11 = vld [vmem:[%s11547_s1 + $0xf0] sm:$0xff]   ;;  %s9008_s21 = smul.u32 36, %s326_s20 }
  0x18   : > { %7675 = vmatpush3.bf16.msra.mxu0 %v9107_v7  ;;  %9002 = vmatpush3.bf16.msra.mxu1 %v9107_v7  ;;  %v468_v15 = vld [vmem:[%s9693_s16 + $0x3c0] sm:$0xff] }
  0x19   : > { %7676 = vmatprep.subr.bf16.mxu0 %v9108_v8  ;;  %8995 = vmatprep.subr.bf16.mxu1 %v9108_v8  ;;  %v6919_v16 = vcombine.high %v460_v13, %v468_v15  ;;  %v364_v24 = vld [vmem:[%s9693_s16 + $0x80] sm:$0xff]  ;;  %v6918_v30 = vcombine.low %v460_v13, %v468_v15  ;;  %v9137_v8 = vld [vmem:[%s11547_s1 + $0x128] sm:$0xff]   ;;  %s10221_s26 = scalar_lea.vmem %s11549_s3, %s9008_s21 }
  0x1a   : > { %2755 = vmatprep.mubr.bf16.mxu0 %v6807_v14  ;;  %v372_v25 = vld [vmem:[%s9693_s16 + $0xc0] sm:$0xff] }
  0x1b   : > { %2811 = vmatprep.mubr.bf16.mxu1 %v6919_v16  ;;  %v476_v26 = vld [vmem:[%s9693_s16 + $0x400] sm:$0xff]  ;;  %v6823_v33 = vcombine.high %v364_v24, %v372_v25  ;;  %v6822_v44 = vcombine.low %v364_v24, %v372_v25  ;;  %v9141_v16 = vld [vmem:[%s11547_s1 + $0x130] sm:$0xff]   ;;  %v9145_v24 = vld [vmem:[%s11547_s1 + $0x138] sm:$0xff]  }
  0x1c   : > { %7677 = vmatpush3.bf16.msra.mxu0 %v9109_v9  ;;  %9003 = vmatpush3.bf16.msra.mxu1 %v9109_v9  ;;  %v484_v28 = vld [vmem:[%s9693_s16 + $0x440] sm:$0xff]  ;;  %v9139_v9 = vld [vmem:[%s11547_s1 + $0xa8] sm:$0xff]   ;;  %v9147_v25 = vld [vmem:[%s11547_s1 + $0xb8] sm:$0xff]  }
  0x1d   : > { %7678 = vmatprep.subr.bf16.mxu0 %v9110_v10  ;;  %8996 = vmatprep.subr.bf16.mxu1 %v9110_v10  ;;  %v6935_v34 = vcombine.high %v476_v26, %v484_v28  ;;  %v380_v39 = vld [vmem:[%s9693_s16 + $0x100] sm:$0xff]  ;;  %v6934_v45 = vcombine.low %v476_v26, %v484_v28  ;;  %v9140_v10 = vld [vmem:[%s11547_s1 + $0x170] sm:$0xff]  }
  0x1e   : > { %v388_v40 = vld [vmem:[%s9693_s16 + $0x140] sm:$0xff] }
  0x1f   : > { %v492_v41 = vld [vmem:[%s9693_s16 + $0x480] sm:$0xff]  ;;  %v6839_v46 = vcombine.high %v380_v39, %v388_v40  ;;  %v6838_v60 = vcombine.low %v380_v39, %v388_v40  ;;  %v349_v40 = vld [vmem:[%s9693_s16 + $0x8] sm:$0xff] }
  0x20   : > { %7679 = vmatpush3.bf16.msra.mxu0 %v9111_v17  ;;  %9004 = vmatpush3.bf16.msra.mxu1 %v9111_v17  ;;  %v500_v42 = vld [vmem:[%s9693_s16 + $0x4c0] sm:$0xff]  ;;  %v9143_v17 = vld [vmem:[%s11547_s1 + $0xb0] sm:$0xff]  }
  0x21   : > { %7680 = vmatprep.subr.bf16.mxu0 %v9112_v18  ;;  %8997 = vmatprep.subr.bf16.mxu1 %v9112_v18  ;;  %v6951_v47 = vcombine.high %v492_v41, %v500_v42  ;;  %v396_v53 = vld [vmem:[%s9693_s16 + $0x180] sm:$0xff]  ;;  %v6950_v61 = vcombine.low %v492_v41, %v500_v42  ;;  %v9144_v18 = vld [vmem:[%s11547_s1 + $0x178] sm:$0xff]   ;;  %v357_v41 = vld [vmem:[%s9693_s16 + $0x48] sm:$0xff] }
  0x22   : > { %v404_v54 = vld [vmem:[%s9693_s16 + $0x1c0] sm:$0xff]  ;;  %v350_v42 = vld [vmem:[%s9693_s16 + $0x10] sm:$0xff] }
  0x23   : > { %v508_v55 = vld [vmem:[%s9693_s16 + $0x500] sm:$0xff]  ;;  %v6855_v63 = vcombine.high %v396_v53, %v404_v54  ;;  %v6854_v12 = vcombine.low %v396_v53, %v404_v54 }
  0x24   : > { %7681 = vmatpush3.bf16.msra.mxu0 %v9113_v19  ;;  %9005 = vmatpush3.bf16.msra.mxu1 %v9113_v19  ;;  %v516_v56 = vld [vmem:[%s9693_s16 + $0x540] sm:$0xff]  ;;  %v9146_v19 = vld [vmem:[%s11547_s1 + $0xf8] sm:$0xff]  }
  0x25   : > { %7682 = vmatprep.subr.bf16.mxu0 %v9114_v20  ;;  %8998 = vmatprep.subr.bf16.mxu1 %v9114_v20  ;;  %v9134_v59 = vld [vmem:[%s11547_s1 + $0xe0] sm:$0xff]   ;;  %v6967_v0 = vcombine.high %v508_v55, %v516_v56  ;;  %v6966_v13 = vcombine.low %v508_v55, %v516_v56 }
  0x26   : > { %v9133_v62 = vld [vmem:[%s11547_s1 + $0x120] sm:$0xff]  }
  0x27   : > { %v9135_v1 = vld [vmem:[%s11547_s1 + $0xa0] sm:$0xff]  }
  0x28   : > { %7683 = vmatpush3.bf16.msra.mxu0 %v9115_v21  ;;  %9006 = vmatpush3.bf16.msra.mxu1 %v9115_v21  ;;  %v412_v4 = vld [vmem:[%s9693_s16 + $0x200] sm:$0xff] }
  0x29   : > { %7868 = vmatprep.subr.bf16.mxu0 %v9116_v22  ;;  %7768 = vmatprep.subr.bf16.mxu1 %v9118_v23  ;;  %v420_v5 = vld [vmem:[%s9693_s16 + $0x240] sm:$0xff] }
  0x2a   : > { %v524_v6 = vld [vmem:[%s9693_s16 + $0x580] sm:$0xff]  ;;  %v6871_v14 = vcombine.high %v412_v4, %v420_v5  ;;  %v6870_v28 = vcombine.low %v412_v4, %v420_v5 }
  0x2b   : > { %2756 = vmatmul.mubr.bf16.vlgmr.msra.gmra.mrb[0].mxu0 %v6806_v29  ;;  %2812 = vmatmul.mubr.bf16.vlgmr.msra.gmra.mrb[0].mxu1 %v6918_v30  ;;  %v532_v7 = vld [vmem:[%s9693_s16 + $0x5c0] sm:$0xff] }
  0x2c   : > { %7869 = vmatpush3.bf16.msra.mxu0 %v9117_v27  ;;  %7769 = vmatpush3.bf16.msra.mxu1 %v9119_v31  ;;  %v6983_v15 = vcombine.high %v524_v6, %v532_v7  ;;  %v428_v20 = vld [vmem:[%s9693_s16 + $0x280] sm:$0xff]  ;;  %v6982_v29 = vcombine.low %v524_v6, %v532_v7 }
  0x2d   : > { %2763 = vmatprep.mubr.bf16.mxu0 %v6823_v33  ;;  %2819 = vmatprep.mubr.bf16.mxu1 %v6935_v34  ;;  %v436_v21 = vld [vmem:[%s9693_s16 + $0x2c0] sm:$0xff] }
  0x2e   : > { %7870 = vmatprep.subr.bf16.mxu0 %v9120_v32  ;;  %7770 = vmatprep.subr.bf16.mxu1 %v9122_v35  ;;  %v540_v22 = vld [vmem:[%s9693_s16 + $0x600] sm:$0xff]  ;;  %v6887_v30 = vcombine.high %v428_v20, %v436_v21 }
  0x2f   : > { %v548_v23 = vld [vmem:[%s9693_s16 + $0x640] sm:$0xff] }
  0x30   : > { %7871 = vmatpush3.bf16.msra.mxu0 %v9121_v36  ;;  %7771 = vmatpush3.bf16.msra.mxu1 %v9123_v37  ;;  %v9148_v26 = vld [vmem:[%s11547_s1 + $0x240] sm:$0xff]   ;;  %v6999_v31 = vcombine.high %v540_v22, %v548_v23  ;;  %v6886_v36 = vcombine.low %v428_v20, %v436_v21  ;;  %v6998_v37 = vcombine.low %v540_v22, %v548_v23 }
  0x31   : > { %7872 = vmatprep.subr.bf16.mxu0 %v9124_v38  ;;  %7772 = vmatprep.subr.bf16.mxu1 %v9126_v43  ;;  %v9150_v27 = vld [vmem:[%s11547_s1 + $0x1c0] sm:$0xff]   ;;  %v358_v43 = vld [vmem:[%s9693_s16 + $0x50] sm:$0xff] }
  0x32   : > { %v444_v32 = vld [vmem:[%s9693_s16 + $0x300] sm:$0xff]  ;;  %v6810_v53 = vcombine.low %v350_v42, %v358_v43 }
  0x33   : > { %2764 = vmatmul.mubr.bf16.gmra.mrb[4].mxu0 %v6822_v44  ;;  %2820 = vmatmul.mubr.bf16.gmra.mrb[4].mxu1 %v6934_v45  ;;  %v452_v33 = vld [vmem:[%s9693_s16 + $0x340] sm:$0xff] }
  0x34   : > { %2771 = vmatprep.mubr.bf16.mxu0 %v6839_v46  ;;  %2827 = vmatprep.mubr.bf16.mxu1 %v6951_v47  ;;  %v556_v34 = vld [vmem:[%s9693_s16 + $0x680] sm:$0xff]  ;;  %v6903_v38 = vcombine.high %v444_v32, %v452_v33  ;;  %v6902_v44 = vcombine.low %v444_v32, %v452_v33  ;;  %v6809_v46 = vcombine.high %v349_v40, %v357_v41  ;;  %v9169_v32 = vld [vmem:[%s11547_s1 + $0x228] sm:$0xff]  }
  0x35   : > { %7873 = vmatpush3.bf16.msra.mxu0 %v9125_v48  ;;  %7773 = vmatpush3.bf16.msra.mxu1 %v9127_v49  ;;  %v564_v35 = vld [vmem:[%s9693_s16 + $0x6c0] sm:$0xff]  ;;  %v6811_v47 = vcombine.high %v350_v42, %v358_v43  ;;  %v365_v48 = vld [vmem:[%s9693_s16 + $0x88] sm:$0xff]  ;;  %v9176_v42 = vld [vmem:[%s11547_s1 + $0x278] sm:$0xff]  }
  0x36   : > { %7874 = vmatprep.subr.bf16.mxu0 %v9128_v50  ;;  %7774 = vmatprep.subr.bf16.mxu1 %v9130_v51  ;;  %v7015_v39 = vcombine.high %v556_v34, %v564_v35  ;;  %v7014_v45 = vcombine.low %v556_v34, %v564_v35  ;;  %v373_v49 = vld [vmem:[%s9693_s16 + $0xc8] sm:$0xff]  ;;  %v366_v50 = vld [vmem:[%s9693_s16 + $0x90] sm:$0xff]  ;;  %v9149_v54 = vld [vmem:[%s11547_s1 + $0x200] sm:$0xff]  }
  0x37   : > { %v374_v51 = vld [vmem:[%s9693_s16 + $0xd0] sm:$0xff]  ;;  %v9151_v55 = vld [vmem:[%s11547_s1 + $0x180] sm:$0xff]   ;;  %v6825_v56 = vcombine.high %v365_v48, %v373_v49  ;;  %v6824_v4 = vcombine.low %v365_v48, %v373_v49  ;;  %v9171_v33 = vld [vmem:[%s11547_s1 + $0x1a8] sm:$0xff]  }
  0x38   : > { %v6826_v5 = vcombine.low %v366_v50, %v374_v51  ;;  %v9165_v22 = vld [vmem:[%s11547_s1 + $0x220] sm:$0xff]   ;;  %v9172_v34 = vld [vmem:[%s11547_s1 + $0x270] sm:$0xff]   ;;  %v9178_v43 = vld [vmem:[%s11547_s1 + $0x1f8] sm:$0xff]  }
  0x39   : > { %7875 = vmatpush3.bf16.msra.mxu0 %v9129_v52  ;;  %7775 = vmatpush3.bf16.msra.mxu1 %v9131_v57  ;;  %v6808_v52 = vcombine.low %v349_v40, %v357_v41  ;;  %v6827_v57 = vcombine.high %v366_v50, %v374_v51  ;;  %v9174_v35 = vld [vmem:[%s11547_s1 + $0x1f0] sm:$0xff]   ;;  %v9177_v48 = vld [vmem:[%s11547_s1 + $0x238] sm:$0xff]   ;;  %v9180_v50 = vld [vmem:[%s11547_s1 + $0x340] sm:$0xff]  }
  0x3a   : > { %7876 = vmatprep.subr.bf16.mxu0 %v9132_v58  ;;  %7776 = vmatprep.subr.bf16.mxu1 %v9134_v59  ;;  %v9152_v58 = vld [vmem:[%s11547_s1 + $0x248] sm:$0xff]   ;;  %v9173_v40 = vld [vmem:[%s11547_s1 + $0x230] sm:$0xff]   ;;  %v9179_v49 = vld [vmem:[%s11547_s1 + $0x1b8] sm:$0xff]  }
  0x3b   : > { %2772 = vmatmul.mubr.bf16.gmra.mrb[8].mxu0 %v6838_v60  ;;  %2828 = vmatmul.mubr.bf16.gmra.mrb[8].mxu1 %v6950_v61  ;;  %v9154_v59 = vld [vmem:[%s11547_s1 + $0x1c8] sm:$0xff]   ;;  %v9175_v41 = vld [vmem:[%s11547_s1 + $0x1b0] sm:$0xff]   ;;  %v9182_v51 = vld [vmem:[%s11547_s1 + $0x2c0] sm:$0xff]  }
  0x3c   : > { %2779 = vmatprep.mubr.bf16.mxu0 %v6855_v63  ;;  %2835 = vmatprep.mubr.bf16.mxu1 %v6967_v0  ;;  %v381_v60 = vld [vmem:[%s9693_s16 + $0x108] sm:$0xff]  ;;  %v390_v63 = vld [vmem:[%s9693_s16 + $0x150] sm:$0xff] }
  0x3d   : > { %7877 = vmatpush3.bf16.msra.mxu0 %v9133_v62  ;;  %7777 = vmatpush3.bf16.msra.mxu1 %v9135_v1  ;;  %v389_v61 = vld [vmem:[%s9693_s16 + $0x148] sm:$0xff]  ;;  %v382_v62 = vld [vmem:[%s9693_s16 + $0x110] sm:$0xff] }
  0x3e   : > { %7878 = vmatprep.subr.bf16.mxu0 %v9136_v2  ;;  %7778 = vmatprep.subr.bf16.mxu1 %v9138_v3  ;;  %v9153_v0 = vld [vmem:[%s11547_s1 + $0x208] sm:$0xff]   ;;  %v9156_v2 = vld [vmem:[%s11547_s1 + $0x250] sm:$0xff]   ;;  %v6841_v6 = vcombine.high %v381_v60, %v389_v61  ;;  %v6843_v7 = vcombine.high %v382_v62, %v390_v63  ;;  %v6840_v20 = vcombine.low %v381_v60, %v389_v61 }
  0x3f   : > { %v9155_v1 = vld [vmem:[%s11547_s1 + $0x188] sm:$0xff]   ;;  %v9158_v3 = vld [vmem:[%s11547_s1 + $0x1d0] sm:$0xff]   ;;  %v6842_v21 = vcombine.low %v382_v62, %v390_v63 }
  0x41   : > { %7879 = vmatpush3.bf16.msra.mxu0 %v9137_v8  ;;  %7779 = vmatpush3.bf16.msra.mxu1 %v9139_v9  ;;  %v9157_v8 = vld [vmem:[%s11547_s1 + $0x210] sm:$0xff]  }
  0x42   : > { %7880 = vmatprep.subr.bf16.mxu0 %v9140_v10  ;;  %7780 = vmatprep.subr.bf16.mxu1 %v9142_v11  ;;  %v9159_v9 = vld [vmem:[%s11547_s1 + $0x190] sm:$0xff]   ;;  %v9160_v10 = vld [vmem:[%s11547_s1 + $0x258] sm:$0xff]  }
  0x43   : > { %2780 = vmatmul.mubr.bf16.gmra.mrb[12].mxu0 %v6854_v12  ;;  %2836 = vmatmul.mubr.bf16.gmra.mrb[12].mxu1 %v6966_v13  ;;  %v9162_v11 = vld [vmem:[%s11547_s1 + $0x1d8] sm:$0xff]   ;;  %v397_v12 = vld [vmem:[%s9693_s16 + $0x188] sm:$0xff] }
  0x44   : > { %2787 = vmatprep.mubr.bf16.mxu0 %v6871_v14  ;;  %2843 = vmatprep.mubr.bf16.mxu1 %v6983_v15  ;;  %v405_v13 = vld [vmem:[%s9693_s16 + $0x1c8] sm:$0xff]  ;;  %v398_v14 = vld [vmem:[%s9693_s16 + $0x190] sm:$0xff] }
  0x45   : > { %7881 = vmatpush3.bf16.msra.mxu0 %v9141_v16  ;;  %7781 = vmatpush3.bf16.msra.mxu1 %v9143_v17  ;;  %v406_v15 = vld [vmem:[%s9693_s16 + $0x1d0] sm:$0xff]  ;;  %v9161_v16 = vld [vmem:[%s11547_s1 + $0x218] sm:$0xff]   ;;  %v6857_v23 = vcombine.high %v397_v12, %v405_v13 }
  0x46   : > { %7882 = vmatprep.subr.bf16.mxu0 %v9144_v18  ;;  %7782 = vmatprep.subr.bf16.mxu1 %v9146_v19  ;;  %v9163_v17 = vld [vmem:[%s11547_s1 + $0x198] sm:$0xff]   ;;  %v9164_v18 = vld [vmem:[%s11547_s1 + $0x260] sm:$0xff]  }
  0x47   : > { %v9166_v19 = vld [vmem:[%s11547_s1 + $0x1e0] sm:$0xff]  }
  0x49   : > { %7883 = vmatpush3.bf16.msra.mxu0 %v9145_v24  ;;  %7783 = vmatpush3.bf16.msra.mxu1 %v9147_v25  ;;  %v6859_v24 = vcombine.high %v398_v14, %v406_v15  ;;  %v9167_v25 = vld [vmem:[%s11547_s1 + $0x1a0] sm:$0xff]  }
  0x4a   : > { %8068 = vmatprep.subr.bf16.mxu0 %v9148_v26  ;;  %7968 = vmatprep.subr.bf16.mxu1 %v9150_v27  ;;  %v9168_v26 = vld [vmem:[%s11547_s1 + $0x268] sm:$0xff]  }
  0x4b   : > { %2788 = vmatmul.mubr.bf16.gmra.mrb[16].mxu0 %v6870_v28  ;;  %2844 = vmatmul.mubr.bf16.gmra.mrb[16].mxu1 %v6982_v29  ;;  %v9170_v27 = vld [vmem:[%s11547_s1 + $0x1e8] sm:$0xff]  }
  0x4c   : > { %2795 = vmatprep.mubr.bf16.mxu0 %v6887_v30  ;;  %2851 = vmatprep.mubr.bf16.mxu1 %v6999_v31  ;;  %v413_v28 = vld [vmem:[%s9693_s16 + $0x208] sm:$0xff]  ;;  %v414_v30 = vld [vmem:[%s9693_s16 + $0x210] sm:$0xff] }
  0x4d   : > { %v421_v29 = vld [vmem:[%s9693_s16 + $0x248] sm:$0xff]  ;;  %v422_v31 = vld [vmem:[%s9693_s16 + $0x250] sm:$0xff] }
  0x53   : > { %2796 = vmatmul.mubr.bf16.gmra.mrb[20].mxu0 %v6886_v36  ;;  %2852 = vmatmul.mubr.bf16.gmra.mrb[20].mxu1 %v6998_v37  ;;  %v6856_v36 = vcombine.low %v397_v12, %v405_v13  ;;  %v6858_v37 = vcombine.low %v398_v14, %v406_v15 }
  0x54   : > { %2803 = vmatprep.mubr.bf16.mxu0 %v6903_v38  ;;  %2859 = vmatprep.mubr.bf16.mxu1 %v7015_v39  ;;  %v6873_v38 = vcombine.high %v413_v28, %v421_v29  ;;  %v6875_v39 = vcombine.high %v414_v30, %v422_v31 }
  0x5b   : > { %2804 = vmatmul.mubr.bf16.gmra.mrb[24].mxu0 %v6902_v44  ;;  %2860 = vmatmul.mubr.bf16.gmra.mrb[24].mxu1 %v7014_v45  ;;  %v429_v44 = vld [vmem:[%s9693_s16 + $0x288] sm:$0xff] }
  0x5c   : > { %2900 = vmatprep.mubr.bf16.mxu1 %v6809_v46  ;;  %3045 = vmatprep.mubr.bf16.mxu0 %v6811_v47  ;;  %v437_v45 = vld [vmem:[%s9693_s16 + $0x2c8] sm:$0xff]  ;;  %v430_v46 = vld [vmem:[%s9693_s16 + $0x290] sm:$0xff] }
  0x5d   : > { %v438_v47 = vld [vmem:[%s9693_s16 + $0x2d0] sm:$0xff]  ;;  %v6888_v60 = vcombine.low %v429_v44, %v437_v45 }
  0x5e   : > { %v6890_v61 = vcombine.low %v430_v46, %v438_v47 }
  0x63   : > { %2901 = vmatmul.mubr.bf16.vlgmr.msra.gmra.mrb[28].mxu1 %v6808_v52  ;;  %3046 = vmatmul.mubr.bf16.vlgmr.msra.gmra.mrb[28].mxu0 %v6810_v53  ;;  %v6872_v52 = vcombine.low %v413_v28, %v421_v29  ;;  %v6874_v53 = vcombine.low %v414_v30, %v422_v31 }
  0x64   : > { %8069 = vmatpush3.bf16.msra.mxu0 %v9149_v54  ;;  %7969 = vmatpush3.bf16.msra.mxu1 %v9151_v55  ;;  %v6889_v54 = vcombine.high %v429_v44, %v437_v45  ;;  %v6891_v55 = vcombine.high %v430_v46, %v438_v47 }
  0x65   : > { %2908 = vmatprep.mubr.bf16.mxu1 %v6825_v56  ;;  %3053 = vmatprep.mubr.bf16.mxu0 %v6827_v57  ;;  %v445_v56 = vld [vmem:[%s9693_s16 + $0x308] sm:$0xff] }
  0x66   : > { %8070 = vmatprep.subr.bf16.mxu0 %v9152_v58  ;;  %7970 = vmatprep.subr.bf16.mxu1 %v9154_v59  ;;  %v453_v57 = vld [vmem:[%s9693_s16 + $0x348] sm:$0xff]  ;;  %v446_v58 = vld [vmem:[%s9693_s16 + $0x310] sm:$0xff] }
  0x67   : > { %v454_v59 = vld [vmem:[%s9693_s16 + $0x350] sm:$0xff]  ;;  %v6905_v62 = vcombine.high %v445_v56, %v453_v57 }
  0x68   : > { %8071 = vmatpush3.bf16.msra.mxu0 %v9153_v0  ;;  %7971 = vmatpush3.bf16.msra.mxu1 %v9155_v1  ;;  %v6907_v63 = vcombine.high %v446_v58, %v454_v59  ;;  %v461_v0 = vld [vmem:[%s9693_s16 + $0x388] sm:$0xff] }
  0x69   : > { %8072 = vmatprep.subr.bf16.mxu0 %v9156_v2  ;;  %7972 = vmatprep.subr.bf16.mxu1 %v9158_v3  ;;  %v469_v1 = vld [vmem:[%s9693_s16 + $0x3c8] sm:$0xff]  ;;  %v462_v2 = vld [vmem:[%s9693_s16 + $0x390] sm:$0xff] }
  0x6a   : > { %v470_v3 = vld [vmem:[%s9693_s16 + $0x3d0] sm:$0xff]  ;;  %v6920_v12 = vcombine.low %v461_v0, %v469_v1 }
  0x6b   : > { %2909 = vmatmul.mubr.bf16.gmra.mrb[32].mxu1 %v6824_v4  ;;  %3054 = vmatmul.mubr.bf16.gmra.mrb[32].mxu0 %v6826_v5  ;;  %v6904_v4 = vcombine.low %v445_v56, %v453_v57  ;;  %v6906_v5 = vcombine.low %v446_v58, %v454_v59  ;;  %v6922_v13 = vcombine.low %v462_v2, %v470_v3  ;;  %v351_v56 = vld [vmem:[%s9693_s16 + $0x18] sm:$0xff]  ;;  %v352_v58 = vld [vmem:[%s9693_s16 + $0x20] sm:$0xff] }
  0x6c   : > { %2916 = vmatprep.mubr.bf16.mxu1 %v6841_v6  ;;  %3061 = vmatprep.mubr.bf16.mxu0 %v6843_v7  ;;  %v6921_v6 = vcombine.high %v461_v0, %v469_v1  ;;  %v6923_v7 = vcombine.high %v462_v2, %v470_v3  ;;  %v359_v57 = vld [vmem:[%s9693_s16 + $0x58] sm:$0xff]  ;;  %v360_v59 = vld [vmem:[%s9693_s16 + $0x60] sm:$0xff] }
  0x6d   : > { %8073 = vmatpush3.bf16.msra.mxu0 %v9157_v8  ;;  %7973 = vmatpush3.bf16.msra.mxu1 %v9159_v9  ;;  %v477_v8 = vld [vmem:[%s9693_s16 + $0x408] sm:$0xff]  ;;  %v367_v0 = vld [vmem:[%s9693_s16 + $0x98] sm:$0xff]  ;;  %v368_v2 = vld [vmem:[%s9693_s16 + $0xa0] sm:$0xff] }
  0x6e   : > { %8074 = vmatprep.subr.bf16.mxu0 %v9160_v10  ;;  %7974 = vmatprep.subr.bf16.mxu1 %v9162_v11  ;;  %v485_v9 = vld [vmem:[%s9693_s16 + $0x448] sm:$0xff]  ;;  %v478_v10 = vld [vmem:[%s9693_s16 + $0x410] sm:$0xff]  ;;  %v375_v1 = vld [vmem:[%s9693_s16 + $0xd8] sm:$0xff] }
  0x6f   : > { %v486_v11 = vld [vmem:[%s9693_s16 + $0x450] sm:$0xff]  ;;  %v6937_v14 = vcombine.high %v477_v8, %v485_v9  ;;  %v376_v3 = vld [vmem:[%s9693_s16 + $0xe0] sm:$0xff] }
  0x70   : > { %v6939_v15 = vcombine.high %v478_v10, %v486_v11 }
  0x71   : > { %8075 = vmatpush3.bf16.msra.mxu0 %v9161_v16  ;;  %7975 = vmatpush3.bf16.msra.mxu1 %v9163_v17  ;;  %v493_v16 = vld [vmem:[%s9693_s16 + $0x488] sm:$0xff] }
  0x72   : > { %8076 = vmatprep.subr.bf16.mxu0 %v9164_v18  ;;  %7976 = vmatprep.subr.bf16.mxu1 %v9166_v19  ;;  %v501_v17 = vld [vmem:[%s9693_s16 + $0x4c8] sm:$0xff]  ;;  %v494_v18 = vld [vmem:[%s9693_s16 + $0x490] sm:$0xff] }
  0x73   : > { %2917 = vmatmul.mubr.bf16.gmra.mrb[36].mxu1 %v6840_v20  ;;  %3062 = vmatmul.mubr.bf16.gmra.mrb[36].mxu0 %v6842_v21  ;;  %v502_v19 = vld [vmem:[%s9693_s16 + $0x4d0] sm:$0xff]  ;;  %v6936_v20 = vcombine.low %v477_v8, %v485_v9  ;;  %v6938_v21 = vcombine.low %v478_v10, %v486_v11  ;;  %v6952_v28 = vcombine.low %v493_v16, %v501_v17  ;;  %v9184_v8 = vld [vmem:[%s11547_s1 + $0x348] sm:$0xff]  }
  0x74   : > { %2924 = vmatprep.mubr.bf16.mxu1 %v6857_v23  ;;  %3069 = vmatprep.mubr.bf16.mxu0 %v6859_v24  ;;  %v6955_v23 = vcombine.high %v494_v18, %v502_v19  ;;  %v509_v24 = vld [vmem:[%s9693_s16 + $0x508] sm:$0xff]  ;;  %v6954_v29 = vcombine.low %v494_v18, %v502_v19  ;;  %v6829_v10 = vcombine.high %v367_v0, %v375_v1  ;;  %v9188_v18 = vld [vmem:[%s11547_s1 + $0x350] sm:$0xff]  }
  0x75   : > { %8077 = vmatpush3.bf16.msra.mxu0 %v9165_v22  ;;  %7977 = vmatpush3.bf16.msra.mxu1 %v9167_v25  ;;  %v6953_v22 = vcombine.high %v493_v16, %v501_v17  ;;  %v517_v25 = vld [vmem:[%s9693_s16 + $0x548] sm:$0xff]  ;;  %v6831_v11 = vcombine.high %v368_v2, %v376_v3  ;;  %v384_v16 = vld [vmem:[%s9693_s16 + $0x120] sm:$0xff]  ;;  %v9190_v19 = vld [vmem:[%s11547_s1 + $0x2d0] sm:$0xff]  }
  0x76   : > { %8078 = vmatprep.subr.bf16.mxu0 %v9168_v26  ;;  %7978 = vmatprep.subr.bf16.mxu1 %v9170_v27  ;;  %v510_v26 = vld [vmem:[%s9693_s16 + $0x510] sm:$0xff]  ;;  %v6969_v30 = vcombine.high %v509_v24, %v517_v25  ;;  %v9186_v9 = vld [vmem:[%s11547_s1 + $0x2c8] sm:$0xff]   ;;  %v392_v17 = vld [vmem:[%s9693_s16 + $0x160] sm:$0xff] }
  0x77   : > { %v518_v27 = vld [vmem:[%s9693_s16 + $0x550] sm:$0xff] }
  0x78   : > { %v6971_v31 = vcombine.high %v510_v26, %v518_v27 }
  0x79   : > { %8079 = vmatpush3.bf16.msra.mxu0 %v9169_v32  ;;  %7979 = vmatpush3.bf16.msra.mxu1 %v9171_v33  ;;  %v525_v32 = vld [vmem:[%s9693_s16 + $0x588] sm:$0xff] }
  0x7a   : > { %8080 = vmatprep.subr.bf16.mxu0 %v9172_v34  ;;  %7980 = vmatprep.subr.bf16.mxu1 %v9174_v35  ;;  %v533_v33 = vld [vmem:[%s9693_s16 + $0x5c8] sm:$0xff]  ;;  %v526_v34 = vld [vmem:[%s9693_s16 + $0x590] sm:$0xff] }
  0x7b   : > { %2925 = vmatmul.mubr.bf16.gmra.mrb[40].mxu1 %v6856_v36  ;;  %3070 = vmatmul.mubr.bf16.gmra.mrb[40].mxu0 %v6858_v37  ;;  %v534_v35 = vld [vmem:[%s9693_s16 + $0x5d0] sm:$0xff]  ;;  %v6968_v36 = vcombine.low %v509_v24, %v517_v25  ;;  %v6970_v37 = vcombine.low %v510_v26, %v518_v27  ;;  %v6984_v44 = vcombine.low %v525_v32, %v533_v33  ;;  %v9192_v26 = vld [vmem:[%s11547_s1 + $0x358] sm:$0xff]  }
  0x7c   : > { %2932 = vmatprep.mubr.bf16.mxu1 %v6873_v38  ;;  %3077 = vmatprep.mubr.bf16.mxu0 %v6875_v39  ;;  %v6985_v38 = vcombine.high %v525_v32, %v533_v33  ;;  %v6987_v39 = vcombine.high %v526_v34, %v534_v35  ;;  %v6986_v45 = vcombine.low %v526_v34, %v534_v35  ;;  %v9194_v27 = vld [vmem:[%s11547_s1 + $0x2d8] sm:$0xff]   ;;  %v9196_v34 = vld [vmem:[%s11547_s1 + $0x360] sm:$0xff]  }
  0x7d   : > { %8081 = vmatpush3.bf16.msra.mxu0 %v9173_v40  ;;  %7981 = vmatpush3.bf16.msra.mxu1 %v9175_v41  ;;  %v541_v40 = vld [vmem:[%s9693_s16 + $0x608] sm:$0xff]  ;;  %v6847_v25 = vcombine.high %v384_v16, %v392_v17  ;;  %v9193_v32 = vld [vmem:[%s11547_s1 + $0x318] sm:$0xff]   ;;  %v9198_v35 = vld [vmem:[%s11547_s1 + $0x2e0] sm:$0xff]  }
  0x7e   : > { %8082 = vmatprep.subr.bf16.mxu0 %v9176_v42  ;;  %7982 = vmatprep.subr.bf16.mxu1 %v9178_v43  ;;  %v549_v41 = vld [vmem:[%s9693_s16 + $0x648] sm:$0xff]  ;;  %v542_v42 = vld [vmem:[%s9693_s16 + $0x610] sm:$0xff]  ;;  %v9195_v33 = vld [vmem:[%s11547_s1 + $0x298] sm:$0xff]  }
  0x7f   : > { %v550_v43 = vld [vmem:[%s9693_s16 + $0x650] sm:$0xff]  ;;  %v7001_v46 = vcombine.high %v541_v40, %v549_v41 }
  0x80   : > { %v7003_v47 = vcombine.high %v542_v42, %v550_v43 }
  0x81   : > { %8083 = vmatpush3.bf16.msra.mxu0 %v9177_v48  ;;  %7983 = vmatpush3.bf16.msra.mxu1 %v9179_v49  ;;  %v557_v48 = vld [vmem:[%s9693_s16 + $0x688] sm:$0xff] }
  0x82   : > { %8268 = vmatprep.subr.bf16.mxu0 %v9180_v50  ;;  %8168 = vmatprep.subr.bf16.mxu1 %v9182_v51  ;;  %v565_v49 = vld [vmem:[%s9693_s16 + $0x6c8] sm:$0xff]  ;;  %v558_v50 = vld [vmem:[%s9693_s16 + $0x690] sm:$0xff] }
  0x83   : > { %2933 = vmatmul.mubr.bf16.gmra.mrb[44].mxu1 %v6872_v52  ;;  %3078 = vmatmul.mubr.bf16.gmra.mrb[44].mxu0 %v6874_v53  ;;  %v566_v51 = vld [vmem:[%s9693_s16 + $0x6d0] sm:$0xff]  ;;  %v7000_v52 = vcombine.low %v541_v40, %v549_v41  ;;  %v7002_v53 = vcombine.low %v542_v42, %v550_v43  ;;  %v9200_v42 = vld [vmem:[%s11547_s1 + $0x368] sm:$0xff]  }
  0x84   : > { %2940 = vmatprep.mubr.bf16.mxu1 %v6889_v54  ;;  %3085 = vmatprep.mubr.bf16.mxu0 %v6891_v55  ;;  %v7017_v54 = vcombine.high %v557_v48, %v565_v49  ;;  %v7019_v55 = vcombine.high %v558_v50, %v566_v51  ;;  %v9202_v43 = vld [vmem:[%s11547_s1 + $0x2e8] sm:$0xff]  }
  0x8b   : > { %2941 = vmatmul.mubr.bf16.gmra.mrb[48].mxu1 %v6888_v60  ;;  %3086 = vmatmul.mubr.bf16.gmra.mrb[48].mxu0 %v6890_v61  ;;  %v7016_v60 = vcombine.low %v557_v48, %v565_v49  ;;  %v7018_v61 = vcombine.low %v558_v50, %v566_v51  ;;  %v9201_v48 = vld [vmem:[%s11547_s1 + $0x328] sm:$0xff]   ;;  %v9204_v50 = vld [vmem:[%s11547_s1 + $0x370] sm:$0xff]  }
  0x8c   : > { %2948 = vmatprep.mubr.bf16.mxu1 %v6905_v62  ;;  %3093 = vmatprep.mubr.bf16.mxu0 %v6907_v63  ;;  %v6813_v62 = vcombine.high %v351_v56, %v359_v57  ;;  %v6815_v63 = vcombine.high %v352_v58, %v360_v59  ;;  %v9203_v49 = vld [vmem:[%s11547_s1 + $0x2a8] sm:$0xff]   ;;  %v9206_v51 = vld [vmem:[%s11547_s1 + $0x2f0] sm:$0xff]  }
  0x93   : > { %2949 = vmatmul.mubr.bf16.gmra.mrb[52].mxu1 %v6904_v4  ;;  %3094 = vmatmul.mubr.bf16.gmra.mrb[52].mxu0 %v6906_v5  ;;  %v6812_v4 = vcombine.low %v351_v56, %v359_v57  ;;  %v6814_v5 = vcombine.low %v352_v58, %v360_v59  ;;  %v9208_v58 = vld [vmem:[%s11547_s1 + $0x378] sm:$0xff]  }
  0x94   : > { %2956 = vmatprep.mubr.bf16.mxu1 %v6921_v6  ;;  %3101 = vmatprep.mubr.bf16.mxu0 %v6923_v7  ;;  %v9181_v6 = vld [vmem:[%s11547_s1 + $0x300] sm:$0xff]   ;;  %v9210_v59 = vld [vmem:[%s11547_s1 + $0x2f8] sm:$0xff]  }
  0x95   : > { %v9183_v7 = vld [vmem:[%s11547_s1 + $0x280] sm:$0xff]  }
  0x9b   : > { %2957 = vmatmul.mubr.bf16.gmra.mrb[56].mxu1 %v6920_v12  ;;  %3102 = vmatmul.mubr.bf16.gmra.mrb[56].mxu0 %v6922_v13  ;;  %v9185_v12 = vld [vmem:[%s11547_s1 + $0x308] sm:$0xff]  }
  0x9c   : > { %2964 = vmatprep.mubr.bf16.mxu1 %v6937_v14  ;;  %3109 = vmatprep.mubr.bf16.mxu0 %v6939_v15  ;;  %v9187_v13 = vld [vmem:[%s11547_s1 + $0x288] sm:$0xff]   ;;  %v383_v14 = vld [vmem:[%s9693_s16 + $0x118] sm:$0xff] }
  0x9d   : > { %v391_v15 = vld [vmem:[%s9693_s16 + $0x158] sm:$0xff] }
  0x9e   : > { %v6845_v24 = vcombine.high %v383_v14, %v391_v15 }
  0xa3   : > { %2965 = vmatmul.mubr.bf16.gmra.mrb[60].mxu1 %v6936_v20  ;;  %3110 = vmatmul.mubr.bf16.gmra.mrb[60].mxu0 %v6938_v21  ;;  %v6828_v20 = vcombine.low %v367_v0, %v375_v1  ;;  %v6830_v21 = vcombine.low %v368_v2, %v376_v3  ;;  %v9209_v0 = vld [vmem:[%s11547_s1 + $0x338] sm:$0xff]   ;;  %v9212_v2 = vld [vmem:[%s11550_s4 + $0x40] sm:$0xff]  }
  0xa4   : > { %2972 = vmatprep.mubr.bf16.mxu1 %v6953_v22  ;;  %3117 = vmatprep.mubr.bf16.mxu0 %v6955_v23  ;;  %v9189_v22 = vld [vmem:[%s11547_s1 + $0x310] sm:$0xff]   ;;  %v9211_v1 = vld [vmem:[%s11547_s1 + $0x2b8] sm:$0xff]   ;;  %v9214_v3 = vld [vmem:[%s11547_s1 + $0x3c0] sm:$0xff]  }
  0xa5   : > { %v9191_v23 = vld [vmem:[%s11547_s1 + $0x290] sm:$0xff]  }
  0xab   : > { %2973 = vmatmul.mubr.bf16.gmra.mrb[64].mxu1 %v6952_v28  ;;  %3118 = vmatmul.mubr.bf16.gmra.mrb[64].mxu0 %v6954_v29  ;;  %v399_v28 = vld [vmem:[%s9693_s16 + $0x198] sm:$0xff] }
  0xac   : > { %2980 = vmatprep.mubr.bf16.mxu1 %v6969_v30  ;;  %3125 = vmatprep.mubr.bf16.mxu0 %v6971_v31  ;;  %v407_v29 = vld [vmem:[%s9693_s16 + $0x1d8] sm:$0xff]  ;;  %v400_v30 = vld [vmem:[%s9693_s16 + $0x1a0] sm:$0xff] }
  0xad   : > { %v408_v31 = vld [vmem:[%s9693_s16 + $0x1e0] sm:$0xff]  ;;  %v6861_v40 = vcombine.high %v399_v28, %v407_v29 }
  0xae   : > { %v6863_v41 = vcombine.high %v400_v30, %v408_v31 }
  0xb3   : > { %2981 = vmatmul.mubr.bf16.gmra.mrb[68].mxu1 %v6968_v36  ;;  %3126 = vmatmul.mubr.bf16.gmra.mrb[68].mxu0 %v6970_v37  ;;  %v6844_v36 = vcombine.low %v383_v14, %v391_v15  ;;  %v6846_v37 = vcombine.low %v384_v16, %v392_v17  ;;  %v463_v16 = vld [vmem:[%s9693_s16 + $0x398] sm:$0xff] }
  0xb4   : > { %2988 = vmatprep.mubr.bf16.mxu1 %v6985_v38  ;;  %3133 = vmatprep.mubr.bf16.mxu0 %v6987_v39  ;;  %v9197_v38 = vld [vmem:[%s11547_s1 + $0x320] sm:$0xff]   ;;  %v471_v17 = vld [vmem:[%s9693_s16 + $0x3d8] sm:$0xff] }
  0xb5   : > { %v9199_v39 = vld [vmem:[%s11547_s1 + $0x2a0] sm:$0xff]  }
  0xbb   : > { %2989 = vmatmul.mubr.bf16.gmra.mrb[72].mxu1 %v6984_v44  ;;  %3134 = vmatmul.mubr.bf16.gmra.mrb[72].mxu0 %v6986_v45  ;;  %v415_v44 = vld [vmem:[%s9693_s16 + $0x218] sm:$0xff] }
  0xbc   : > { %2996 = vmatprep.mubr.bf16.mxu1 %v7001_v46  ;;  %3141 = vmatprep.mubr.bf16.mxu0 %v7003_v47  ;;  %v423_v45 = vld [vmem:[%s9693_s16 + $0x258] sm:$0xff]  ;;  %v416_v46 = vld [vmem:[%s9693_s16 + $0x220] sm:$0xff] }
  0xbd   : > { %v424_v47 = vld [vmem:[%s9693_s16 + $0x260] sm:$0xff]  ;;  %v6877_v56 = vcombine.high %v415_v44, %v423_v45 }
  0xbe   : > { %v6879_v57 = vcombine.high %v416_v46, %v424_v47 }
  0xc3   : > { %2997 = vmatmul.mubr.bf16.gmra.mrb[76].mxu1 %v7000_v52  ;;  %3142 = vmatmul.mubr.bf16.gmra.mrb[76].mxu0 %v7002_v53  ;;  %v6860_v52 = vcombine.low %v399_v28, %v407_v29  ;;  %v6862_v53 = vcombine.low %v400_v30, %v408_v31  ;;  %v6925_v30 = vcombine.high %v463_v16, %v471_v17 }
  0xc4   : > { %3004 = vmatprep.mubr.bf16.mxu1 %v7017_v54  ;;  %3149 = vmatprep.mubr.bf16.mxu0 %v7019_v55  ;;  %v9205_v54 = vld [vmem:[%s11547_s1 + $0x330] sm:$0xff]  }
  0xc5   : > { %v9207_v55 = vld [vmem:[%s11547_s1 + $0x2b0] sm:$0xff]  }
  0xcb   : > { %3005 = vmatmul.mubr.bf16.gmra.mrb[80].mxu1 %v7016_v60  ;;  %3150 = vmatmul.mubr.bf16.gmra.mrb[80].mxu0 %v7018_v61  ;;  %v431_v60 = vld [vmem:[%s9693_s16 + $0x298] sm:$0xff] }
  0xcc   : > { %3190 = vmatprep.mubr.bf16.mxu1 %v6813_v62  ;;  %3335 = vmatprep.mubr.bf16.mxu0 %v6815_v63  ;;  %v439_v61 = vld [vmem:[%s9693_s16 + $0x2d8] sm:$0xff]  ;;  %v432_v62 = vld [vmem:[%s9693_s16 + $0x2a0] sm:$0xff] }
  0xcd   : > { %v440_v63 = vld [vmem:[%s9693_s16 + $0x2e0] sm:$0xff] }
  0xd3   : > { %3191 = vmatmul.mubr.bf16.vlgmr.msra.gmra.mrb[84].mxu1 %v6812_v4  ;;  %3336 = vmatmul.mubr.bf16.vlgmr.msra.gmra.mrb[84].mxu0 %v6814_v5  ;;  %v6876_v4 = vcombine.low %v415_v44, %v423_v45  ;;  %v6878_v5 = vcombine.low %v416_v46, %v424_v47  ;;  %v6924_v44 = vcombine.low %v463_v16, %v471_v17  ;;  %v511_v17 = vld [vmem:[%s9693_s16 + $0x518] sm:$0xff] }
  0xd4   : > { %8269 = vmatpush3.bf16.msra.mxu0 %v9181_v6  ;;  %8169 = vmatpush3.bf16.msra.mxu1 %v9183_v7  ;;  %v6893_v6 = vcombine.high %v431_v60, %v439_v61  ;;  %v6895_v7 = vcombine.high %v432_v62, %v440_v63 }
  0xd5   : > { %3198 = vmatprep.mubr.bf16.mxu1 %v6829_v10  ;;  %3343 = vmatprep.mubr.bf16.mxu0 %v6831_v11  ;;  %v448_v10 = vld [vmem:[%s9693_s16 + $0x320] sm:$0xff] }
  0xd6   : > { %8270 = vmatprep.subr.bf16.mxu0 %v9184_v8  ;;  %8170 = vmatprep.subr.bf16.mxu1 %v9186_v9  ;;  %v447_v8 = vld [vmem:[%s9693_s16 + $0x318] sm:$0xff]  ;;  %v456_v11 = vld [vmem:[%s9693_s16 + $0x360] sm:$0xff] }
  0xd7   : > { %v455_v9 = vld [vmem:[%s9693_s16 + $0x358] sm:$0xff]  ;;  %v6911_v15 = vcombine.high %v448_v10, %v456_v11 }
  0xd8   : > { %8271 = vmatpush3.bf16.msra.mxu0 %v9185_v12  ;;  %8171 = vmatpush3.bf16.msra.mxu1 %v9187_v13  ;;  %v6892_v12 = vcombine.low %v431_v60, %v439_v61  ;;  %v6894_v13 = vcombine.low %v432_v62, %v440_v63  ;;  %v6909_v14 = vcombine.high %v447_v8, %v455_v9  ;;  %v503_v60 = vld [vmem:[%s9693_s16 + $0x4d8] sm:$0xff]  ;;  %v496_v61 = vld [vmem:[%s9693_s16 + $0x4a0] sm:$0xff] }
  0xd9   : > { %8272 = vmatprep.subr.bf16.mxu0 %v9188_v18  ;;  %8172 = vmatprep.subr.bf16.mxu1 %v9190_v19  ;;  %v464_v18 = vld [vmem:[%s9693_s16 + $0x3a0] sm:$0xff] }
  0xda   : > { %v472_v19 = vld [vmem:[%s9693_s16 + $0x3e0] sm:$0xff] }
  0xdb   : > { %3199 = vmatmul.mubr.bf16.gmra.mrb[88].mxu1 %v6828_v20  ;;  %3344 = vmatmul.mubr.bf16.gmra.mrb[88].mxu0 %v6830_v21  ;;  %v6927_v31 = vcombine.high %v464_v18, %v472_v19  ;;  %v6926_v45 = vcombine.low %v464_v18, %v472_v19  ;;  %v504_v62 = vld [vmem:[%s9693_s16 + $0x4e0] sm:$0xff]  ;;  %v519_v18 = vld [vmem:[%s9693_s16 + $0x558] sm:$0xff] }
  0xdc   : > { %3206 = vmatprep.mubr.bf16.mxu1 %v6845_v24  ;;  %3351 = vmatprep.mubr.bf16.mxu0 %v6847_v25  ;;  %v6908_v24 = vcombine.low %v447_v8, %v455_v9  ;;  %v6910_v25 = vcombine.low %v448_v10, %v456_v11  ;;  %v6959_v10 = vcombine.high %v496_v61, %v504_v62  ;;  %v512_v19 = vld [vmem:[%s9693_s16 + $0x520] sm:$0xff] }
  0xdd   : > { %8273 = vmatpush3.bf16.msra.mxu0 %v9189_v22  ;;  %8173 = vmatpush3.bf16.msra.mxu1 %v9191_v23 }
  0xde   : > { %8274 = vmatprep.subr.bf16.mxu0 %v9192_v26  ;;  %8174 = vmatprep.subr.bf16.mxu1 %v9194_v27 }
  0xe1   : > { %8275 = vmatpush3.bf16.msra.mxu0 %v9193_v32  ;;  %8175 = vmatpush3.bf16.msra.mxu1 %v9195_v33 }
  0xe2   : > { %8276 = vmatprep.subr.bf16.mxu0 %v9196_v34  ;;  %8176 = vmatprep.subr.bf16.mxu1 %v9198_v35 }
  0xe3   : > { %3207 = vmatmul.mubr.bf16.gmra.mrb[92].mxu1 %v6844_v36  ;;  %3352 = vmatmul.mubr.bf16.gmra.mrb[92].mxu0 %v6846_v37  ;;  %v479_v36 = vld [vmem:[%s9693_s16 + $0x418] sm:$0xff] }
  0xe4   : > { %3214 = vmatprep.mubr.bf16.mxu1 %v6861_v40  ;;  %3359 = vmatprep.mubr.bf16.mxu0 %v6863_v41  ;;  %v487_v37 = vld [vmem:[%s9693_s16 + $0x458] sm:$0xff] }
  0xe5   : > { %8277 = vmatpush3.bf16.msra.mxu0 %v9197_v38  ;;  %8177 = vmatpush3.bf16.msra.mxu1 %v9199_v39  ;;  %v480_v38 = vld [vmem:[%s9693_s16 + $0x420] sm:$0xff] }
  0xe6   : > { %8278 = vmatprep.subr.bf16.mxu0 %v9200_v42  ;;  %8178 = vmatprep.subr.bf16.mxu1 %v9202_v43  ;;  %v488_v39 = vld [vmem:[%s9693_s16 + $0x460] sm:$0xff] }
  0xe9   : > { %8279 = vmatpush3.bf16.msra.mxu0 %v9201_v48  ;;  %8179 = vmatpush3.bf16.msra.mxu1 %v9203_v49 }
  0xea   : > { %8280 = vmatprep.subr.bf16.mxu0 %v9204_v50  ;;  %8180 = vmatprep.subr.bf16.mxu1 %v9206_v51  ;;  %v6941_v50 = vcombine.high %v479_v36, %v487_v37  ;;  %v6943_v51 = vcombine.high %v480_v38, %v488_v39 }
  0xeb   : > { %3215 = vmatmul.mubr.bf16.gmra.mrb[96].mxu1 %v6860_v52  ;;  %3360 = vmatmul.mubr.bf16.gmra.mrb[96].mxu0 %v6862_v53  ;;  %v10143_v52 = vld [vmem:[%s11548_s2] ss:$0 sm:$0xff] }
  0xec   : > { %3222 = vmatprep.mubr.bf16.mxu1 %v6877_v56  ;;  %3367 = vmatprep.mubr.bf16.mxu0 %v6879_v57 }
  0xed   : > { %8281 = vmatpush3.bf16.msra.mxu0 %v9205_v54  ;;  %8181 = vmatpush3.bf16.msra.mxu1 %v9207_v55 }
  0xee   : > { %8282 = vmatprep.subr.bf16.mxu0 %v9208_v58  ;;  %8182 = vmatprep.subr.bf16.mxu1 %v9210_v59  ;;  %v495_v59 = vld [vmem:[%s9693_s16 + $0x498] sm:$0xff] }
  0xef   : > { %v6957_v9 = vcombine.high %v495_v59, %v503_v60 }
  0xf1   : > { %8283 = vmatpush3.bf16.msra.mxu0 %v9209_v0  ;;  %8183 = vmatpush3.bf16.msra.mxu1 %v9211_v1 }
  0xf2   : > { %8468 = vmatprep.subr.bf16.mxu0 %v9212_v2  ;;  %8368 = vmatprep.subr.bf16.mxu1 %v9214_v3  ;;  %v6940_v3 = vcombine.low %v479_v36, %v487_v37 }
  0xf3   : > { %3223 = vmatmul.mubr.bf16.gmra.mrb[100].mxu1 %v6876_v4  ;;  %3368 = vmatmul.mubr.bf16.gmra.mrb[100].mxu0 %v6878_v5  ;;  %v6942_v4 = vcombine.low %v480_v38, %v488_v39 }
  0xf4   : > { %3230 = vmatprep.mubr.bf16.mxu1 %v6893_v6  ;;  %3375 = vmatprep.mubr.bf16.mxu0 %v6895_v7 }
  0xfb   : > { %3231 = vmatmul.mubr.bf16.gmra.mrb[104].mxu1 %v6892_v12  ;;  %3376 = vmatmul.mubr.bf16.gmra.mrb[104].mxu0 %v6894_v13 }
  0xfc   : > { %3238 = vmatprep.mubr.bf16.mxu1 %v6909_v14  ;;  %3383 = vmatprep.mubr.bf16.mxu0 %v6911_v15 }
  0xfe   : > { %v7684_v20 = vpop.f32.mrb[0].mxu0  ;;  %v7726_v21 = vpop.f32.mrb[0].mxu1 }
  0xff   : > { %v7685_v22 = vpop.f32.mrb[1].mxu0  ;;  %v7727_v23 = vpop.f32.mrb[1].mxu1 }
 0x100   : > { %v10126_v26 = vadd.f32 %v7685_v22, %v7684_v20  ;;  %v7687_v27 = vpop.f32.mrb[2].mxu0  ;;  %v10128_v28 = vadd.f32 %v7727_v23, %v7726_v21  ;;  %v7729_v29 = vpop.f32.mrb[2].mxu1  ;;  %v520_v20 = vld [vmem:[%s9693_s16 + $0x560] sm:$0xff] }
 0x101   : > { %v7688_v32 = vpop.f32.mrb[3].mxu0  ;;  %v7730_v33 = vpop.f32.mrb[3].mxu1  ;;  %v6975_v36 = vcombine.high %v512_v19, %v520_v20 }
 0x102   : > { %v10130_v34 = vadd.f32 %v7688_v32, %v7687_v27  ;;  %v10132_v35 = vadd.f32 %v7730_v33, %v7729_v29  ;;  %v6958_v27 = vcombine.low %v496_v61, %v504_v62  ;;  %v6973_v33 = vcombine.high %v511_v17, %v519_v18 }
 0x103   : > { %3239 = vmatmul.mubr.bf16.gmra.mrb[108].mxu1 %v6908_v24  ;;  %3384 = vmatmul.mubr.bf16.gmra.mrb[108].mxu0 %v6910_v25  ;;  %v6956_v25 = vcombine.low %v495_v59, %v503_v60 }
 0x104   : > { %3246 = vmatprep.mubr.bf16.mxu1 %v6925_v30  ;;  %3391 = vmatprep.mubr.bf16.mxu0 %v6927_v31 }
 0x106   : > { %v7690_v40 = vpop.f32.mrb[4].mxu0  ;;  %v7732_v41 = vpop.f32.mrb[4].mxu1 }
 0x107   : > { %v7691_v42 = vpop.f32.mrb[5].mxu0  ;;  %v7733_v43 = vpop.f32.mrb[5].mxu1 }
 0x108   : > { %v10138_v46 = vadd.f32 %v7691_v42, %v7690_v40  ;;  %v7693_v47 = vpop.f32.mrb[6].mxu0  ;;  %v7734_v48 = vadd.f32 %v7733_v43, %v7732_v41  ;;  %v7735_v49 = vpop.f32.mrb[6].mxu1  ;;  %v527_v43 = vld [vmem:[%s9693_s16 + $0x598] sm:$0xff] }
 0x109   : > { %v7694_v53 = vpop.f32.mrb[7].mxu0  ;;  %v7736_v54 = vpop.f32.mrb[7].mxu1 }
 0x10a   : > { %v10146_v55 = vadd.f32 %v7734_v48, %v10143_v52  ;;  %v10148_v56 = vadd.f32 %v7694_v53, %v7693_v47  ;;  %v7737_v57 = vadd.f32 %v7736_v54, %v7735_v49  ;;  %v536_v47 = vld [vmem:[%s9693_s16 + $0x5e0] sm:$0xff]  ;;  %v6972_v53 = vcombine.low %v511_v17, %v519_v18 }
 0x10b   : > { %3247 = vmatmul.mubr.bf16.gmra.mrb[112].mxu1 %v6924_v44  ;;  %3392 = vmatmul.mubr.bf16.gmra.mrb[112].mxu0 %v6926_v45  ;;  %v535_v44 = vld [vmem:[%s9693_s16 + $0x5d8] sm:$0xff]  ;;  %v528_v45 = vld [vmem:[%s9693_s16 + $0x5a0] sm:$0xff]  ;;  %v6974_v54 = vcombine.low %v512_v19, %v520_v20 }
 0x10c   : > { %v10151_v58 = vadd.f32 %v7737_v57, %v10143_v52  ;;  %3254 = vmatprep.mubr.bf16.mxu1 %v6941_v50  ;;  %3399 = vmatprep.mubr.bf16.mxu0 %v6943_v51  ;;  %v6989_v62 = vcombine.high %v527_v43, %v535_v44  ;;  %v6988_v18 = vcombine.low %v527_v43, %v535_v44  ;;  %v568_v43 = vld [vmem:[%s9693_s16 + $0x6e0] sm:$0xff] }
 0x10d   : > { %v6990_v19 = vcombine.low %v528_v45, %v536_v47 }
 0x10e   : > { %v7696_v63 = vpop.f32.mrb[8].mxu0  ;;  %v7738_v0 = vpop.f32.mrb[8].mxu1 }
 0x10f   : > { %v7697_v1 = vpop.f32.mrb[9].mxu0  ;;  %v7739_v2 = vpop.f32.mrb[9].mxu1 }
 0x110   : > { %v10157_v5 = vadd.f32 %v7697_v1, %v7696_v63  ;;  %v7699_v6 = vpop.f32.mrb[10].mxu0  ;;  %v7740_v7 = vadd.f32 %v7739_v2, %v7738_v0  ;;  %v7741_v8 = vpop.f32.mrb[10].mxu1  ;;  %v6991_v63 = vcombine.high %v528_v45, %v536_v47 }
 0x111   : > { %v7700_v11 = vpop.f32.mrb[11].mxu0  ;;  %v7742_v12 = vpop.f32.mrb[11].mxu1 }
 0x112   : > { %v10160_v13 = vadd.f32 %v7740_v7, %v10143_v52  ;;  %v10162_v14 = vadd.f32 %v7700_v11, %v7699_v6  ;;  %v7743_v15 = vadd.f32 %v7742_v12, %v7741_v8  ;;  %v543_v7 = vld [vmem:[%s9693_s16 + $0x618] sm:$0xff] }
 0x113   : > { %3255 = vmatmul.mubr.bf16.gmra.mrb[116].mxu1 %v6940_v3  ;;  %3400 = vmatmul.mubr.bf16.gmra.mrb[116].mxu0 %v6942_v4  ;;  %v551_v8 = vld [vmem:[%s9693_s16 + $0x658] sm:$0xff] }
 0x114   : > { %v10165_v16 = vadd.f32 %v7743_v15, %v10143_v52  ;;  %3262 = vmatprep.mubr.bf16.mxu1 %v6957_v9  ;;  %3407 = vmatprep.mubr.bf16.mxu0 %v6959_v10  ;;  %v544_v9 = vld [vmem:[%s9693_s16 + $0x620] sm:$0xff] }
 0x115   : > { %v552_v10 = vld [vmem:[%s9693_s16 + $0x660] sm:$0xff] }
 0x116   : > { %v7702_v21 = vpop.f32.mrb[12].mxu0  ;;  %v7744_v22 = vpop.f32.mrb[12].mxu1 }
 0x117   : > { %v7703_v23 = vpop.f32.mrb[13].mxu0  ;;  %v7745_v24 = vpop.f32.mrb[13].mxu1 }
 0x118   : > { %v10171_v29 = vadd.f32 %v7703_v23, %v7702_v21  ;;  %v7705_v30 = vpop.f32.mrb[14].mxu0  ;;  %v7746_v31 = vadd.f32 %v7745_v24, %v7744_v22  ;;  %v7747_v32 = vpop.f32.mrb[14].mxu1  ;;  %v7005_v24 = vcombine.high %v543_v7, %v551_v8 }
 0x119   : > { %v7706_v37 = vpop.f32.mrb[15].mxu0  ;;  %v7748_v38 = vpop.f32.mrb[15].mxu1 }
 0x11a   : > { %v10174_v39 = vadd.f32 %v7746_v31, %v10143_v52  ;;  %v10176_v40 = vadd.f32 %v7706_v37, %v7705_v30  ;;  %v7749_v41 = vadd.f32 %v7748_v38, %v7747_v32  ;;  %v559_v37 = vld [vmem:[%s9693_s16 + $0x698] sm:$0xff] }
 0x11b   : > { %3263 = vmatmul.mubr.bf16.gmra.mrb[120].mxu1 %v6956_v25  ;;  %3408 = vmatmul.mubr.bf16.gmra.mrb[120].mxu0 %v6958_v27  ;;  %v7007_v25 = vcombine.high %v544_v9, %v552_v10  ;;  %v567_v38 = vld [vmem:[%s9693_s16 + $0x6d8] sm:$0xff] }
 0x11c   : > { %v10179_v42 = vadd.f32 %v7749_v41, %v10143_v52  ;;  %3270 = vmatprep.mubr.bf16.mxu1 %v6973_v33  ;;  %3415 = vmatprep.mubr.bf16.mxu0 %v6975_v36  ;;  %v560_v41 = vld [vmem:[%s9693_s16 + $0x6a0] sm:$0xff] }
 0x11e   : > { %v7708_v48 = vpop.f32.mrb[16].mxu0  ;;  %v7750_v49 = vpop.f32.mrb[16].mxu1 }
 0x11f   : > { %v7709_v50 = vpop.f32.mrb[17].mxu0  ;;  %v7751_v51 = vpop.f32.mrb[17].mxu1 }
 0x120   : > { %v10185_v57 = vadd.f32 %v7709_v50, %v7708_v48  ;;  %v7711_v59 = vpop.f32.mrb[18].mxu0  ;;  %v7752_v60 = vadd.f32 %v7751_v51, %v7750_v49  ;;  %v7753_v61 = vpop.f32.mrb[18].mxu1  ;;  %v7004_v49 = vcombine.low %v543_v7, %v551_v8  ;;  %v7006_v50 = vcombine.low %v544_v9, %v552_v10  ;;  %v10231_v7 = vld [vmem:[%s9693_s16 + $0x28] sm:$0xff]  ;;  %v354_v10 = vld [vmem:[%s9693_s16 + $0x30] sm:$0xff] }
 0x121   : > { %v7712_v0 = vpop.f32.mrb[19].mxu0  ;;  %v7754_v1 = vpop.f32.mrb[19].mxu1  ;;  %v10234_v8 = vld [vmem:[%s9693_s16 + $0x68] sm:$0xff] }
 0x122   : > { %v10188_v2 = vadd.f32 %v7752_v60, %v10143_v52  ;;  %v10190_v3 = vadd.f32 %v7712_v0, %v7711_v59  ;;  %v7755_v4 = vadd.f32 %v7754_v1, %v7753_v61  ;;  %v7021_v60 = vcombine.high %v559_v37, %v567_v38 }
 0x123   : > { %3271 = vmatmul.mubr.bf16.gmra.mrb[124].mxu1 %v6972_v53  ;;  %3416 = vmatmul.mubr.bf16.gmra.mrb[124].mxu0 %v6974_v54  ;;  %v7023_v61 = vcombine.high %v560_v41, %v568_v43 }
 0x124   : > { %v10193_v6 = vadd.f32 %v7755_v4, %v10143_v52  ;;  %3278 = vmatprep.mubr.bf16.mxu1 %v6989_v62  ;;  %3423 = vmatprep.mubr.bf16.mxu0 %v6991_v63 }
 0x126   : > { %v7714_v11 = vpop.f32.mrb[20].mxu0  ;;  %v7756_v12 = vpop.f32.mrb[20].mxu1 }
 0x127   : > { %v7715_v15 = vpop.f32.mrb[21].mxu0  ;;  %v7757_v17 = vpop.f32.mrb[21].mxu1 }
 0x128   : > { %v10202_v20 = vadd.f32 %v7715_v15, %v7714_v11  ;;  %v7717_v21 = vpop.f32.mrb[22].mxu0  ;;  %v7758_v22 = vadd.f32 %v7757_v17, %v7756_v12  ;;  %v7759_v23 = vpop.f32.mrb[22].mxu1  ;;  %v362_v11 = vld [vmem:[%s9693_s16 + $0x70] sm:$0xff] }
 0x129   : > { %v7718_v27 = vpop.f32.mrb[23].mxu0  ;;  %v7760_v30 = vpop.f32.mrb[23].mxu1 }
 0x12a   : > { %v10206_v31 = vadd.f32 %v7758_v22, %v10143_v52  ;;  %v10208_v32 = vadd.f32 %v7718_v27, %v7717_v21  ;;  %v7761_v33 = vadd.f32 %v7760_v30, %v7759_v23  ;;  %v7022_v21 = vcombine.low %v560_v41, %v568_v43 }
 0x12b   : > { %3279 = vmatmul.mubr.bf16.gmra.mrb[128].mxu1 %v6988_v18  ;;  %3424 = vmatmul.mubr.bf16.gmra.mrb[128].mxu0 %v6990_v19  ;;  %v7020_v19 = vcombine.low %v559_v37, %v567_v38  ;;  %v6817_v22 = vcombine.high %v10231_v7, %v10234_v8  ;;  %v2758_v23 = vadd.f32 %v10126_v26, %v10143_v52 }
 0x12c   : > { %v10212_v36 = vadd.f32 %v7761_v33, %v10143_v52  ;;  %3286 = vmatprep.mubr.bf16.mxu1 %v7005_v24  ;;  %3431 = vmatprep.mubr.bf16.mxu0 %v7007_v25  ;;  %v6819_v33 = vcombine.high %v354_v10, %v362_v11  ;;  %v2761_v37 = vadd.f32 %v10130_v34, %v10143_v52 }
 0x12e   : > { %v7720_v44 = vpop.f32.mrb[24].mxu0  ;;  %v7762_v45 = vpop.f32.mrb[24].mxu1 }
 0x12f   : > { %v7721_v47 = vpop.f32.mrb[25].mxu0  ;;  %v7763_v48 = vpop.f32.mrb[25].mxu1 }
 0x130   : > { %v10223_v51 = vadd.f32 %v7721_v47, %v7720_v44  ;;  %v7723_v53 = vpop.f32.mrb[26].mxu0  ;;  %v7764_v54 = vadd.f32 %v7763_v48, %v7762_v45  ;;  %v7765_v59 = vpop.f32.mrb[26].mxu1  ;;  %v10250_v48 = vld [vmem:[%s9693_s16 + $0xa8] sm:$0xff] }
 0x131   : > { %v7724_v62 = vpop.f32.mrb[27].mxu0  ;;  %v7766_v63 = vpop.f32.mrb[27].mxu1 }
 0x132   : > { %v10226_v0 = vadd.f32 %v7764_v54, %v10143_v52  ;;  %v10228_v1 = vadd.f32 %v7724_v62, %v7723_v53  ;;  %v7767_v4 = vadd.f32 %v7766_v63, %v7765_v59  ;;  %v10259_v53 = vld [vmem:[%s9693_s16 + $0xf0] sm:$0xff]  ;;  %v6816_v62 = vcombine.low %v10231_v7, %v10234_v8  ;;  %v9216_v8 = vld [vmem:[%s11550_s4 + $0x48] sm:$0xff]  }
 0x133   : > { %3287 = vmatmul.mubr.bf16.gmra.mrb[132].mxu1 %v7004_v49  ;;  %3432 = vmatmul.mubr.bf16.gmra.mrb[132].mxu0 %v7006_v50  ;;  %v10253_v49 = vld [vmem:[%s9693_s16 + $0xe8] sm:$0xff]  ;;  %v10256_v50 = vld [vmem:[%s9693_s16 + $0xb0] sm:$0xff]  ;;  %v6818_v63 = vcombine.low %v354_v10, %v362_v11 }
 0x134   : > { %v10237_v9 = vadd.f32 %v7767_v4, %v10143_v52  ;;  %3294 = vmatprep.mubr.bf16.mxu1 %v7021_v60  ;;  %3439 = vmatprep.mubr.bf16.mxu0 %v7023_v61  ;;  %v9213_v4 = vld [vmem:[%s11550_s4] sm:$0xff]  }
 0x136   : > { %v7784_v12 = vpop.f32.mrb[28].mxu1  ;;  %v7884_v15 = vpop.f32.mrb[28].mxu0 }
 0x137   : > { %v7785_v17 = vpop.f32.mrb[29].mxu1  ;;  %v7885_v18 = vpop.f32.mrb[29].mxu0 }
 0x138   : > { %v7786_v24 = vadd.f32 %v7785_v17, %v7784_v12  ;;  %v7886_v25 = vadd.f32 %v7885_v18, %v7884_v15  ;;  %v7787_v27 = vpop.f32.mrb[30].mxu1  ;;  %v7887_v30 = vpop.f32.mrb[30].mxu0  ;;  %v9215_v12 = vld [vmem:[%s11547_s1 + $0x380] sm:$0xff]   ;;  %v2766_v15 = vadd.f32 %v10138_v46, %v10143_v52  ;;  %v9218_v46 = vld [vmem:[%s11547_s1 + $0x3c8] sm:$0xff]  }
 0x139   : > { %v7788_v44 = vpop.f32.mrb[31].mxu1  ;;  %v7888_v45 = vpop.f32.mrb[31].mxu0 }
 0x13a   : > { %v2903_v38 = vadd.f32 %v7786_v24, %v2758_v23  ;;  %v7789_v41 = vadd.f32 %v7788_v44, %v7787_v27  ;;  %v7889_v43 = vadd.f32 %v7888_v45, %v7887_v30  ;;  %v2769_v23 = vadd.f32 %v10148_v56, %v10143_v52  ;;  %v10286_v30 = vld [vmem:[%s9693_s16 + $0x128] sm:$0xff]  ;;  %v10292_v44 = vld [vmem:[%s9693_s16 + $0x130] sm:$0xff] }
 0x13b   : > { %3295 = vmatmul.mubr.bf16.gmra.mrb[136].mxu1 %v7020_v19  ;;  %3440 = vmatmul.mubr.bf16.gmra.mrb[136].mxu0 %v7022_v21  ;;  %v6833_v21 = vcombine.high %v10250_v48, %v10253_v49  ;;  %v10295_v45 = vld [vmem:[%s9693_s16 + $0x170] sm:$0xff]  ;;  %v9217_v56 = vld [vmem:[%s11550_s4 + $0x8] sm:$0xff]  }
 0x13c   : > { %v10247_v26 = vadd.f32 %v7886_v25, %v2903_v38  ;;  %v2906_v47 = vadd.f32 %v7789_v41, %v2761_v37  ;;  %3480 = vmatprep.mubr.bf16.mxu1 %v6817_v22  ;;  %3625 = vmatprep.mubr.bf16.mxu0 %v6819_v33  ;;  %v6835_v22 = vcombine.high %v10256_v50, %v10259_v53  ;;  %v10289_v33 = vld [vmem:[%s9693_s16 + $0x168] sm:$0xff] }
 0x13d   : > { %v9219_v41 = vld [vmem:[%s11547_s1 + $0x388] sm:$0xff]  }
 0x13e   : > { %v10261_v54 = vadd.f32 %v7889_v43, %v2906_v47  ;;  %v7790_v34 = vpop.f32.mrb[32].mxu1  ;;  %v7890_v59 = vpop.f32.mrb[32].mxu0  ;;  %v9220_v43 = vld [vmem:[%s11550_s4 + $0x50] sm:$0xff]  }
 0x13f   : > { %v7791_v60 = vpop.f32.mrb[33].mxu1  ;;  %v7891_v61 = vpop.f32.mrb[33].mxu0  ;;  %v9222_v47 = vld [vmem:[%s11547_s1 + $0x3d0] sm:$0xff]  }
 0x140   : > { %v7792_v17 = vadd.f32 %v7791_v60, %v7790_v34  ;;  %v7892_v18 = vadd.f32 %v7891_v61, %v7890_v59  ;;  %v7793_v19 = vpop.f32.mrb[34].mxu1  ;;  %v7893_v7 = vpop.f32.mrb[34].mxu0 }
 0x141   : > { %v7794_v10 = vpop.f32.mrb[35].mxu1  ;;  %v7894_v11 = vpop.f32.mrb[35].mxu0 }
 0x142   : > { %v2911_v24 = vadd.f32 %v7792_v17, %v2766_v15  ;;  %v7795_v25 = vadd.f32 %v7794_v10, %v7793_v19  ;;  %v7895_v27 = vadd.f32 %v7894_v11, %v7893_v7  ;;  %v6851_v15 = vcombine.high %v10292_v44, %v10295_v45  ;;  %v9221_v17 = vld [vmem:[%s11550_s4 + $0x10] sm:$0xff]   ;;  %v9224_v7 = vld [vmem:[%s11550_s4 + $0x58] sm:$0xff]  }
 0x143   : > { %3481 = vmatmul.mubr.bf16.vlgmr.msra.gmra.mrb[140].mxu1 %v6816_v62  ;;  %3626 = vmatmul.mubr.bf16.vlgmr.msra.gmra.mrb[140].mxu0 %v6818_v63  ;;  %v6832_v63 = vcombine.low %v10250_v48, %v10253_v49  ;;  %v2774_v48 = vadd.f32 %v10157_v5, %v10143_v52  ;;  %v9226_v5 = vld [vmem:[%s11547_s1 + $0x3d8] sm:$0xff]   ;;  %v2777_v11 = vadd.f32 %v10162_v14, %v10143_v52 }
 0x144   : > { %v10297_v37 = vadd.f32 %v7892_v18, %v2911_v24  ;;  %v2914_v38 = vadd.f32 %v7795_v25, %v2769_v23  ;;  %8469 = vmatpush3.bf16.msra.mxu0 %v9213_v4  ;;  %8369 = vmatpush3.bf16.msra.mxu1 %v9215_v12  ;;  %v6834_v4 = vcombine.low %v10256_v50, %v10259_v53  ;;  %v9223_v18 = vld [vmem:[%s11547_s1 + $0x390] sm:$0xff]   ;;  %v10338_v23 = vld [vmem:[%s9693_s16 + $0x1a8] sm:$0xff]  ;;  %v9227_v14 = vld [vmem:[%s11547_s1 + $0x398] sm:$0xff]  }
 0x145   : > { %3488 = vmatprep.mubr.bf16.mxu1 %v6833_v21  ;;  %3633 = vmatprep.mubr.bf16.mxu0 %v6835_v22  ;;  %v6849_v12 = vcombine.high %v10286_v30, %v10289_v33  ;;  %v10341_v24 = vld [vmem:[%s9693_s16 + $0x1e8] sm:$0xff]  ;;  %v10344_v25 = vld [vmem:[%s9693_s16 + $0x1b0] sm:$0xff] }
 0x146   : > { %v10311_v34 = vadd.f32 %v7895_v27, %v2914_v38  ;;  %v7796_v59 = vpop.f32.mrb[36].mxu1  ;;  %v7896_v60 = vpop.f32.mrb[36].mxu0  ;;  %8470 = vmatprep.subr.bf16.mxu0 %v9216_v8  ;;  %8370 = vmatprep.subr.bf16.mxu1 %v9218_v46  ;;  %v10347_v27 = vld [vmem:[%s9693_s16 + $0x1f0] sm:$0xff]  ;;  %v9225_v38 = vld [vmem:[%s11550_s4 + $0x18] sm:$0xff]  }
 0x147   : > { %v7797_v61 = vpop.f32.mrb[37].mxu1  ;;  %v7897_v62 = vpop.f32.mrb[37].mxu0 }
 0x148   : > { %v7798_v49 = vadd.f32 %v7797_v61, %v7796_v59  ;;  %v7898_v50 = vadd.f32 %v7897_v62, %v7896_v60  ;;  %v7799_v53 = vpop.f32.mrb[38].mxu1  ;;  %v7899_v19 = vpop.f32.mrb[38].mxu0  ;;  %8471 = vmatpush3.bf16.msra.mxu0 %v9217_v56  ;;  %8371 = vmatpush3.bf16.msra.mxu1 %v9219_v41 }
 0x149   : > { %v7800_v8 = vpop.f32.mrb[39].mxu1  ;;  %v7900_v10 = vpop.f32.mrb[39].mxu0  ;;  %8472 = vmatprep.subr.bf16.mxu0 %v9220_v43  ;;  %8372 = vmatprep.subr.bf16.mxu1 %v9222_v47  ;;  %v9228_v43 = vld [vmem:[%s11550_s4 + $0x60] sm:$0xff]  }
 0x14a   : > { %v2919_v21 = vadd.f32 %v7798_v49, %v2774_v48  ;;  %v7801_v22 = vadd.f32 %v7800_v8, %v7799_v53  ;;  %v7901_v46 = vadd.f32 %v7900_v10, %v7899_v19  ;;  %v9230_v47 = vld [vmem:[%s11547_s1 + $0x3e0] sm:$0xff]   ;;  %v2782_v48 = vadd.f32 %v10171_v29, %v10143_v52 }
 0x14b   : > { %3489 = vmatmul.mubr.bf16.gmra.mrb[144].mxu1 %v6832_v63  ;;  %3634 = vmatmul.mubr.bf16.gmra.mrb[144].mxu0 %v6834_v4  ;;  %v6848_v4 = vcombine.low %v10286_v30, %v10289_v33  ;;  %v2785_v53 = vadd.f32 %v10176_v40, %v10143_v52  ;;  %v10396_v40 = vld [vmem:[%s9693_s16 + $0x230] sm:$0xff] }
 0x14c   : > { %v10355_v56 = vadd.f32 %v7898_v50, %v2919_v21  ;;  %v2922_v41 = vadd.f32 %v7801_v22, %v2777_v11  ;;  %3496 = vmatprep.mubr.bf16.mxu1 %v6849_v12  ;;  %3641 = vmatprep.mubr.bf16.mxu0 %v6851_v15  ;;  %v6850_v12 = vcombine.low %v10292_v44, %v10295_v45  ;;  %v9232_v50 = vld [vmem:[%s11550_s4 + $0x68] sm:$0xff]   ;;  %v10399_v22 = vld [vmem:[%s9693_s16 + $0x270] sm:$0xff] }
 0x14d   : > { %8473 = vmatpush3.bf16.msra.mxu0 %v9221_v17  ;;  %8373 = vmatpush3.bf16.msra.mxu1 %v9223_v18  ;;  %v6865_v15 = vcombine.high %v10338_v23, %v10341_v24  ;;  %v9229_v17 = vld [vmem:[%s11550_s4 + $0x20] sm:$0xff]   ;;  %v6867_v45 = vcombine.high %v10344_v25, %v10347_v27  ;;  %v10390_v11 = vld [vmem:[%s9693_s16 + $0x228] sm:$0xff] }
 0x14e   : > { %v10363_v59 = vadd.f32 %v7901_v46, %v2922_v41  ;;  %v7802_v60 = vpop.f32.mrb[40].mxu1  ;;  %v7902_v61 = vpop.f32.mrb[40].mxu0  ;;  %8474 = vmatprep.subr.bf16.mxu0 %v9224_v7  ;;  %8374 = vmatprep.subr.bf16.mxu1 %v9226_v5  ;;  %v9231_v18 = vld [vmem:[%s11547_s1 + $0x3a0] sm:$0xff]   ;;  %v9234_v7 = vld [vmem:[%s11547_s1 + $0x3e8] sm:$0xff]  }
 0x14f   : > { %v7803_v62 = vpop.f32.mrb[41].mxu1  ;;  %v7903_v63 = vpop.f32.mrb[41].mxu0  ;;  %v10393_v21 = vld [vmem:[%s9693_s16 + $0x268] sm:$0xff] }
 0x150   : > { %v7804_v49 = vadd.f32 %v7803_v62, %v7802_v60  ;;  %v7904_v30 = vadd.f32 %v7903_v63, %v7902_v61  ;;  %v7805_v33 = vpop.f32.mrb[42].mxu1  ;;  %v7905_v44 = vpop.f32.mrb[42].mxu0  ;;  %v9235_v41 = vld [vmem:[%s11547_s1 + $0x3a8] sm:$0xff]  }
 0x151   : > { %v7806_v19 = vpop.f32.mrb[43].mxu1  ;;  %v7906_v29 = vpop.f32.mrb[43].mxu0  ;;  %8475 = vmatpush3.bf16.msra.mxu0 %v9225_v38  ;;  %8375 = vmatpush3.bf16.msra.mxu1 %v9227_v14  ;;  %v9233_v14 = vld [vmem:[%s11550_s4 + $0x28] sm:$0xff]  }
 0x152   : > { %v2927_v8 = vadd.f32 %v7804_v49, %v2782_v48  ;;  %v7807_v10 = vadd.f32 %v7806_v19, %v7805_v33  ;;  %v7907_v5 = vadd.f32 %v7906_v29, %v7905_v44  ;;  %8476 = vmatprep.subr.bf16.mxu0 %v9228_v43  ;;  %8376 = vmatprep.subr.bf16.mxu1 %v9230_v47  ;;  %v9236_v43 = vld [vmem:[%s11550_s4 + $0x70] sm:$0xff]   ;;  %v9240_v33 = vld [vmem:[%s11550_s4 + $0x78] sm:$0xff]  }
 0x153   : > { %3497 = vmatmul.mubr.bf16.gmra.mrb[148].mxu1 %v6848_v4  ;;  %3642 = vmatmul.mubr.bf16.gmra.mrb[148].mxu0 %v6850_v12  ;;  %v9238_v47 = vld [vmem:[%s11547_s1 + $0x3f0] sm:$0xff]   ;;  %v6864_v12 = vcombine.low %v10338_v23, %v10341_v24  ;;  %v2790_v49 = vadd.f32 %v10185_v57, %v10143_v52  ;;  %v2793_v44 = vadd.f32 %v10190_v3, %v10143_v52 }
 0x154   : > { %v10401_v46 = vadd.f32 %v7904_v30, %v2927_v8  ;;  %v2930_v38 = vadd.f32 %v7807_v10, %v2785_v53  ;;  %3504 = vmatprep.mubr.bf16.mxu1 %v6865_v15  ;;  %3649 = vmatprep.mubr.bf16.mxu0 %v6867_v45  ;;  %v6866_v15 = vcombine.low %v10344_v25, %v10347_v27  ;;  %v9239_v48 = vld [vmem:[%s11547_s1 + $0x3b0] sm:$0xff]   ;;  %v10445_v8 = vld [vmem:[%s9693_s16 + $0x2e8] sm:$0xff] }
 0x155   : > { %8477 = vmatpush3.bf16.msra.mxu0 %v9229_v17  ;;  %8377 = vmatpush3.bf16.msra.mxu1 %v9231_v18  ;;  %v6881_v17 = vcombine.high %v10390_v11, %v10393_v21  ;;  %v9237_v18 = vld [vmem:[%s11550_s4 + $0x30] sm:$0xff]   ;;  %v6883_v27 = vcombine.high %v10396_v40, %v10399_v22 }
 0x156   : > { %v10415_v60 = vadd.f32 %v7907_v5, %v2930_v38  ;;  %v7808_v61 = vpop.f32.mrb[44].mxu1  ;;  %v7908_v62 = vpop.f32.mrb[44].mxu0  ;;  %8478 = vmatprep.subr.bf16.mxu0 %v9232_v50  ;;  %8378 = vmatprep.subr.bf16.mxu1 %v9234_v7  ;;  %v9242_v50 = vld [vmem:[%s11547_s1 + $0x3f8] sm:$0xff]   ;;  %v10442_v7 = vld [vmem:[%s9693_s16 + $0x2a8] sm:$0xff]  ;;  %v10448_v3 = vld [vmem:[%s9693_s16 + $0x2b0] sm:$0xff] }
 0x157   : > { %v7809_v63 = vpop.f32.mrb[45].mxu1  ;;  %v7909_v4 = vpop.f32.mrb[45].mxu0  ;;  %v10451_v10 = vld [vmem:[%s9693_s16 + $0x2f0] sm:$0xff]  ;;  %v9241_v5 = vld [vmem:[%s11550_s4 + $0x38] sm:$0xff]  }
 0x158   : > { %v7810_v30 = vadd.f32 %v7809_v63, %v7808_v61  ;;  %v7910_v23 = vadd.f32 %v7909_v4, %v7908_v62  ;;  %v7811_v24 = vpop.f32.mrb[46].mxu1  ;;  %v7911_v25 = vpop.f32.mrb[46].mxu0  ;;  %v9243_v38 = vld [vmem:[%s11547_s1 + $0x3b8] sm:$0xff]  }
 0x159   : > { %v7812_v45 = vpop.f32.mrb[47].mxu1  ;;  %v7912_v57 = vpop.f32.mrb[47].mxu0  ;;  %8479 = vmatpush3.bf16.msra.mxu0 %v9233_v14  ;;  %8379 = vmatpush3.bf16.msra.mxu1 %v9235_v41 }
 0x15a   : > { %v2935_v53 = vadd.f32 %v7810_v30, %v2790_v49  ;;  %v7813_v19 = vadd.f32 %v7812_v45, %v7811_v24  ;;  %v7913_v29 = vadd.f32 %v7912_v57, %v7911_v25  ;;  %8480 = vmatprep.subr.bf16.mxu0 %v9236_v43  ;;  %8380 = vmatprep.subr.bf16.mxu1 %v9238_v47  ;;  %v9247_v43 = vld [vmem:[%s11550_s4 + $0x140] sm:$0xff]  }
 0x15b   : > { %3505 = vmatmul.mubr.bf16.gmra.mrb[152].mxu1 %v6864_v12  ;;  %3650 = vmatmul.mubr.bf16.gmra.mrb[152].mxu0 %v6866_v15  ;;  %v9249_v47 = vld [vmem:[%s11550_s4 + $0xc0] sm:$0xff]   ;;  %v6880_v15 = vcombine.low %v10390_v11, %v10393_v21  ;;  %v6897_v49 = vcombine.high %v10442_v7, %v10445_v8  ;;  %v6899_v25 = vcombine.high %v10448_v3, %v10451_v10 }
 0x15c   : > { %v10459_v14 = vadd.f32 %v7910_v23, %v2935_v53  ;;  %v2938_v41 = vadd.f32 %v7813_v19, %v2793_v44  ;;  %3512 = vmatprep.mubr.bf16.mxu1 %v6881_v17  ;;  %3657 = vmatprep.mubr.bf16.mxu0 %v6883_v27  ;;  %v6882_v17 = vcombine.low %v10396_v40, %v10399_v22  ;;  %v457_v44 = vld [vmem:[%s9693_s16 + $0x368] sm:$0xff] }
 0x15d   : > { %8481 = vmatpush3.bf16.msra.mxu0 %v9237_v18  ;;  %8381 = vmatpush3.bf16.msra.mxu1 %v9239_v48  ;;  %v2798_v18 = vadd.f32 %v10202_v20, %v10143_v52  ;;  %v2801_v11 = vadd.f32 %v10208_v32, %v10143_v52  ;;  %v10482_v20 = vld [vmem:[%s9693_s16 + $0x328] sm:$0xff]  ;;  %v450_v52 = vld [vmem:[%s9693_s16 + $0x330] sm:$0xff] }
 0x15e   : > { %v10467_v61 = vadd.f32 %v7913_v29, %v2938_v41  ;;  %v7814_v62 = vpop.f32.mrb[48].mxu1  ;;  %v7914_v63 = vpop.f32.mrb[48].mxu0  ;;  %8482 = vmatprep.subr.bf16.mxu0 %v9240_v33  ;;  %8382 = vmatprep.subr.bf16.mxu1 %v9242_v50  ;;  %v458_v32 = vld [vmem:[%s9693_s16 + $0x370] sm:$0xff]  ;;  %v6898_v41 = vcombine.low %v10448_v3, %v10451_v10 }
 0x15f   : > { %v7815_v4 = vpop.f32.mrb[49].mxu1  ;;  %v7915_v12 = vpop.f32.mrb[49].mxu0 }
 0x160   : > { %v7816_v48 = vadd.f32 %v7815_v4, %v7814_v62  ;;  %v7916_v30 = vadd.f32 %v7915_v12, %v7914_v63  ;;  %v7817_v23 = vpop.f32.mrb[50].mxu1  ;;  %v7917_v24 = vpop.f32.mrb[50].mxu0 }
 0x161   : > { %v7818_v21 = vpop.f32.mrb[51].mxu1  ;;  %v7918_v40 = vpop.f32.mrb[51].mxu0  ;;  %8483 = vmatpush3.bf16.msra.mxu0 %v9241_v5  ;;  %8383 = vmatpush3.bf16.msra.mxu1 %v9243_v38  ;;  %v6896_v38 = vcombine.low %v10442_v7, %v10445_v8  ;;  %v6915_v7 = vcombine.high %v450_v52, %v458_v32 }
 0x162   : > { %v2943_v22 = vadd.f32 %v7816_v48, %v2798_v18  ;;  %v7819_v27 = vadd.f32 %v7818_v21, %v7817_v23  ;;  %v7919_v33 = vadd.f32 %v7918_v40, %v7917_v24  ;;  %8680 = vmatprep.subr.bf16.mxu0 %v9247_v43  ;;  %8574 = vmatprep.subr.bf16.mxu1 %v9249_v47  ;;  %v9495_v47 = vld [vmem:[%s11548_s2] ss:$0 sm:$0xff]  ;;  %v465_v48 = vld [vmem:[%s9693_s16 + $0x3a8] sm:$0xff]  ;;  %v466_v23 = vld [vmem:[%s9693_s16 + $0x3b0] sm:$0xff] }
 0x163   : > { %3513 = vmatmul.mubr.bf16.gmra.mrb[156].mxu1 %v6880_v15  ;;  %3658 = vmatmul.mubr.bf16.gmra.mrb[156].mxu0 %v6882_v17  ;;  %v6913_v43 = vcombine.high %v10482_v20, %v457_v44  ;;  %v2806_v62 = vadd.f32 %v9495_v47, %v10223_v51  ;;  %v2809_v3 = vadd.f32 %v9495_v47, %v10228_v1  ;;  %v474_v51 = vld [vmem:[%s9693_s16 + $0x3f0] sm:$0xff] }
 0x164   : > { %v10485_v45 = vadd.f32 %v7916_v30, %v2943_v22  ;;  %v2946_v57 = vadd.f32 %v7819_v27, %v2801_v11  ;;  %3520 = vmatprep.mubr.bf16.mxu1 %v6897_v49  ;;  %3665 = vmatprep.mubr.bf16.mxu0 %v6899_v25  ;;  %v473_v30 = vld [vmem:[%s9693_s16 + $0x3e8] sm:$0xff]  ;;  %v6912_v27 = vcombine.low %v10482_v20, %v457_v44 }
 0x166   : > { %v10489_v50 = vadd.f32 %v7919_v33, %v2946_v57  ;;  %v7820_v53 = vpop.f32.mrb[52].mxu1  ;;  %v7920_v19 = vpop.f32.mrb[52].mxu0  ;;  %v6914_v33 = vcombine.low %v450_v52, %v458_v32  ;;  %v6929_v57 = vcombine.high %v465_v48, %v473_v30  ;;  %v481_v52 = vld [vmem:[%s9693_s16 + $0x428] sm:$0xff] }
 0x167   : > { %v7821_v29 = vpop.f32.mrb[53].mxu1  ;;  %v7921_v5 = vpop.f32.mrb[53].mxu0  ;;  %v489_v32 = vld [vmem:[%s9693_s16 + $0x468] sm:$0xff] }
 0x168   : > { %v7822_v63 = vadd.f32 %v7821_v29, %v7820_v53  ;;  %v7922_v4 = vadd.f32 %v7921_v5, %v7920_v19  ;;  %v7823_v12 = vpop.f32.mrb[54].mxu1  ;;  %v7923_v15 = vpop.f32.mrb[54].mxu0  ;;  %v2814_v53 = vadd.f32 %v9495_v47, %v10128_v28 }
 0x169   : > { %v7824_v8 = vpop.f32.mrb[55].mxu1  ;;  %v7924_v17 = vpop.f32.mrb[55].mxu0 }
 0x16a   : > { %v2951_v10 = vadd.f32 %v7822_v63, %v2806_v62  ;;  %v7825_v49 = vadd.f32 %v7824_v8, %v7823_v12  ;;  %v7925_v18 = vadd.f32 %v7924_v17, %v7923_v15  ;;  %v2817_v63 = vadd.f32 %v9495_v47, %v10132_v35  ;;  %v482_v15 = vld [vmem:[%s9693_s16 + $0x430] sm:$0xff] }
 0x16b   : > { %3521 = vmatmul.mubr.bf16.gmra.mrb[160].mxu1 %v6896_v38  ;;  %3666 = vmatmul.mubr.bf16.gmra.mrb[160].mxu0 %v6898_v41  ;;  %v6931_v41 = vcombine.high %v466_v23, %v474_v51  ;;  %v6928_v47 = vcombine.low %v465_v48, %v473_v30  ;;  %v497_v30 = vld [vmem:[%s9693_s16 + $0x4a8] sm:$0xff] }
 0x16c   : > { %v10505_v24 = vadd.f32 %v7922_v4, %v2951_v10  ;;  %v2954_v25 = vadd.f32 %v7825_v49, %v2809_v3  ;;  %3528 = vmatprep.mubr.bf16.mxu1 %v6913_v43  ;;  %3673 = vmatprep.mubr.bf16.mxu0 %v6915_v7  ;;  %v490_v7 = vld [vmem:[%s9693_s16 + $0x470] sm:$0xff]  ;;  %v6930_v49 = vcombine.low %v466_v23, %v474_v51  ;;  %v505_v51 = vld [vmem:[%s9693_s16 + $0x4e8] sm:$0xff] }
 0x16e   : > { %v10507_v11 = vadd.f32 %v7925_v18, %v2954_v25  ;;  %v7826_v21 = vpop.f32.mrb[56].mxu1  ;;  %v7926_v40 = vpop.f32.mrb[56].mxu0 }
 0x16f   : > { %v7827_v22 = vpop.f32.mrb[57].mxu1  ;;  %v7927_v1 = vpop.f32.mrb[57].mxu0 }
 0x170   : > { %v7828_v19 = vadd.f32 %v7827_v22, %v7826_v21  ;;  %v7928_v29 = vadd.f32 %v7927_v1, %v7926_v40  ;;  %v7829_v5 = vpop.f32.mrb[58].mxu1  ;;  %v7929_v38 = vpop.f32.mrb[58].mxu0  ;;  %v6945_v22 = vcombine.high %v481_v52, %v489_v32  ;;  %v6947_v1 = vcombine.high %v482_v15, %v490_v7 }
 0x171   : > { %v7830_v43 = vpop.f32.mrb[59].mxu1  ;;  %v7930_v62 = vpop.f32.mrb[59].mxu0 }
 0x172   : > { %v2959_v4 = vadd.f32 %v7828_v19, %v2814_v53  ;;  %v7831_v12 = vadd.f32 %v7830_v43, %v7829_v5  ;;  %v7931_v20 = vadd.f32 %v7930_v62, %v7929_v38  ;;  %v506_v5 = vld [vmem:[%s9693_s16 + $0x4f0] sm:$0xff] }
 0x173   : > { %3529 = vmatmul.mubr.bf16.gmra.mrb[164].mxu1 %v6912_v27  ;;  %3674 = vmatmul.mubr.bf16.gmra.mrb[164].mxu0 %v6914_v33 }
 0x174   : > { %v10512_v44 = vadd.f32 %v7928_v29, %v2959_v4  ;;  %v2962_v28 = vadd.f32 %v7831_v12, %v2817_v63  ;;  %3536 = vmatprep.mubr.bf16.mxu1 %v6929_v57  ;;  %3681 = vmatprep.mubr.bf16.mxu0 %v6931_v41  ;;  %v498_v29 = vld [vmem:[%s9693_s16 + $0x4b0] sm:$0xff]  ;;  %v6944_v63 = vcombine.low %v481_v52, %v489_v32  ;;  %v513_v32 = vld [vmem:[%s9693_s16 + $0x528] sm:$0xff] }
 0x175   : > { %v6946_v4 = vcombine.low %v482_v15, %v490_v7  ;;  %v521_v7 = vld [vmem:[%s9693_s16 + $0x568] sm:$0xff] }
 0x176   : > { %v10518_v8 = vadd.f32 %v7931_v20, %v2962_v28  ;;  %v7832_v17 = vpop.f32.mrb[60].mxu1  ;;  %v7932_v3 = vpop.f32.mrb[60].mxu0 }
 0x177   : > { %v7833_v10 = vpop.f32.mrb[61].mxu1  ;;  %v7933_v35 = vpop.f32.mrb[61].mxu0 }
 0x178   : > { %v7834_v18 = vadd.f32 %v7833_v10, %v7832_v17  ;;  %v7934_v25 = vadd.f32 %v7933_v35, %v7932_v3  ;;  %v7835_v21 = vpop.f32.mrb[62].mxu1  ;;  %v7935_v40 = vpop.f32.mrb[62].mxu0  ;;  %v6961_v17 = vcombine.high %v497_v30, %v505_v51  ;;  %v6963_v3 = vcombine.high %v498_v29, %v506_v5 }
 0x179   : > { %v7836_v27 = vpop.f32.mrb[63].mxu1  ;;  %v7936_v33 = vpop.f32.mrb[63].mxu0 }
 0x17a   : > { %v2967_v57 = vadd.f32 %v7834_v18, %v10146_v55  ;;  %v7837_v53 = vadd.f32 %v7836_v27, %v7835_v21  ;;  %v7937_v19 = vadd.f32 %v7936_v33, %v7935_v40  ;;  %v522_v21 = vld [vmem:[%s9693_s16 + $0x570] sm:$0xff]  ;;  %v6960_v33 = vcombine.low %v497_v30, %v505_v51  ;;  %v529_v51 = vld [vmem:[%s9693_s16 + $0x5a8] sm:$0xff] }
 0x17b   : > { %3537 = vmatmul.mubr.bf16.gmra.mrb[168].mxu1 %v6928_v47  ;;  %3682 = vmatmul.mubr.bf16.gmra.mrb[168].mxu0 %v6930_v49 }
 0x17c   : > { %v2970_v48 = vadd.f32 %v7837_v53, %v10151_v58  ;;  %3544 = vmatprep.mubr.bf16.mxu1 %v6945_v22  ;;  %3689 = vmatprep.mubr.bf16.mxu0 %v6947_v1  ;;  %v10523_v23 = vadd.f32 %v7934_v25, %v2967_v57  ;;  %v514_v25 = vld [vmem:[%s9693_s16 + $0x530] sm:$0xff]  ;;  %v6962_v57 = vcombine.low %v498_v29, %v506_v5  ;;  %v537_v5 = vld [vmem:[%s9693_s16 + $0x5e8] sm:$0xff] }
 0x17e   : > { %v7838_v38 = vpop.f32.mrb[64].mxu1  ;;  %v7938_v41 = vpop.f32.mrb[64].mxu0  ;;  %v10528_v43 = vadd.f32 %v7937_v19, %v2970_v48 }
 0x17f   : > { %v7839_v62 = vpop.f32.mrb[65].mxu1  ;;  %v7939_v55 = vpop.f32.mrb[65].mxu0 }
 0x180   : > { %v7840_v12 = vadd.f32 %v7839_v62, %v7838_v38  ;;  %v7940_v20 = vadd.f32 %v7939_v55, %v7938_v41  ;;  %v7841_v58 = vpop.f32.mrb[66].mxu1  ;;  %v7941_v28 = vpop.f32.mrb[66].mxu0  ;;  %v6977_v38 = vcombine.high %v513_v32, %v521_v7  ;;  %v6979_v41 = vcombine.high %v514_v25, %v522_v21 }
 0x181   : > { %v7842_v10 = vpop.f32.mrb[67].mxu1  ;;  %v7942_v35 = vpop.f32.mrb[67].mxu0 }
 0x182   : > { %v2975_v47 = vadd.f32 %v7840_v12, %v10160_v13  ;;  %v7843_v49 = vadd.f32 %v7842_v10, %v7841_v58  ;;  %v7943_v18 = vadd.f32 %v7942_v35, %v7941_v28  ;;  %v538_v58 = vld [vmem:[%s9693_s16 + $0x5f0] sm:$0xff]  ;;  %v6976_v35 = vcombine.low %v513_v32, %v521_v7  ;;  %v545_v7 = vld [vmem:[%s9693_s16 + $0x628] sm:$0xff] }
 0x183   : > { %3545 = vmatmul.mubr.bf16.gmra.mrb[172].mxu1 %v6944_v63  ;;  %3690 = vmatmul.mubr.bf16.gmra.mrb[172].mxu0 %v6946_v4 }
 0x184   : > { %v2978_v52 = vadd.f32 %v7843_v49, %v10165_v16  ;;  %3552 = vmatprep.mubr.bf16.mxu1 %v6961_v17  ;;  %3697 = vmatprep.mubr.bf16.mxu0 %v6963_v3  ;;  %v10533_v15 = vadd.f32 %v7940_v20, %v2975_v47  ;;  %v530_v20 = vld [vmem:[%s9693_s16 + $0x5b0] sm:$0xff]  ;;  %v6978_v47 = vcombine.low %v514_v25, %v522_v21  ;;  %v553_v21 = vld [vmem:[%s9693_s16 + $0x668] sm:$0xff] }
 0x186   : > { %v7844_v40 = vpop.f32.mrb[68].mxu1  ;;  %v7944_v22 = vpop.f32.mrb[68].mxu0  ;;  %v10538_v1 = vadd.f32 %v7943_v18, %v2978_v52 }
 0x187   : > { %v7845_v27 = vpop.f32.mrb[69].mxu1  ;;  %v7945_v13 = vpop.f32.mrb[69].mxu0 }
 0x188   : > { %v7846_v53 = vadd.f32 %v7845_v27, %v7844_v40  ;;  %v7946_v19 = vadd.f32 %v7945_v13, %v7944_v22  ;;  %v7847_v16 = vpop.f32.mrb[70].mxu1  ;;  %v7947_v48 = vpop.f32.mrb[70].mxu0  ;;  %v6993_v40 = vcombine.high %v529_v51, %v537_v5  ;;  %v6995_v22 = vcombine.high %v530_v20, %v538_v58 }
 0x189   : > { %v7848_v62 = vpop.f32.mrb[71].mxu1  ;;  %v7948_v55 = vpop.f32.mrb[71].mxu0 }
 0x18a   : > { %v2983_v63 = vadd.f32 %v7846_v53, %v10174_v39  ;;  %v7849_v4 = vadd.f32 %v7848_v62, %v7847_v16  ;;  %v7949_v12 = vadd.f32 %v7948_v55, %v7947_v48  ;;  %v554_v16 = vld [vmem:[%s9693_s16 + $0x670] sm:$0xff]  ;;  %v6992_v55 = vcombine.low %v529_v51, %v537_v5  ;;  %v561_v5 = vld [vmem:[%s9693_s16 + $0x6a8] sm:$0xff] }
 0x18b   : > { %3553 = vmatmul.mubr.bf16.gmra.mrb[176].mxu1 %v6960_v33  ;;  %3698 = vmatmul.mubr.bf16.gmra.mrb[176].mxu0 %v6962_v57 }
 0x18c   : > { %v2986_v30 = vadd.f32 %v7849_v4, %v10179_v42  ;;  %3560 = vmatprep.mubr.bf16.mxu1 %v6977_v38  ;;  %3705 = vmatprep.mubr.bf16.mxu0 %v6979_v41  ;;  %v10543_v29 = vadd.f32 %v7946_v19, %v2983_v63  ;;  %v546_v19 = vld [vmem:[%s9693_s16 + $0x630] sm:$0xff]  ;;  %v6994_v63 = vcombine.low %v530_v20, %v538_v58  ;;  %v569_v58 = vld [vmem:[%s9693_s16 + $0x6e8] sm:$0xff] }
 0x18e   : > { %v7850_v28 = vpop.f32.mrb[72].mxu1  ;;  %v7950_v17 = vpop.f32.mrb[72].mxu0  ;;  %v10548_v3 = vadd.f32 %v7949_v12, %v2986_v30 }
 0x18f   : > { %v7851_v10 = vpop.f32.mrb[73].mxu1  ;;  %v7951_v39 = vpop.f32.mrb[73].mxu0 }
 0x190   : > { %v7852_v49 = vadd.f32 %v7851_v10, %v7850_v28  ;;  %v7952_v18 = vadd.f32 %v7951_v39, %v7950_v17  ;;  %v7853_v42 = vpop.f32.mrb[74].mxu1  ;;  %v7953_v52 = vpop.f32.mrb[74].mxu0  ;;  %v7009_v28 = vcombine.high %v545_v7, %v553_v21  ;;  %v7011_v17 = vcombine.high %v546_v19, %v554_v16 }
 0x191   : > { %v7854_v27 = vpop.f32.mrb[75].mxu1  ;;  %v7954_v13 = vpop.f32.mrb[75].mxu0 }
 0x192   : > { %v2991_v33 = vadd.f32 %v7852_v49, %v10188_v2  ;;  %v7855_v57 = vadd.f32 %v7854_v27, %v7853_v42  ;;  %v7955_v53 = vadd.f32 %v7954_v13, %v7953_v52  ;;  %v570_v42 = vld [vmem:[%s9693_s16 + $0x6f0] sm:$0xff]  ;;  %v7008_v13 = vcombine.low %v545_v7, %v553_v21  ;;  %v355_v21 = vld [vmem:[%s9693_s16 + $0x38] sm:$0xff] }
 0x193   : > { %3561 = vmatmul.mubr.bf16.gmra.mrb[180].mxu1 %v6976_v35  ;;  %3706 = vmatmul.mubr.bf16.gmra.mrb[180].mxu0 %v6978_v47 }
 0x194   : > { %v2994_v32 = vadd.f32 %v7855_v57, %v10193_v6  ;;  %3568 = vmatprep.mubr.bf16.mxu1 %v6993_v40  ;;  %3713 = vmatprep.mubr.bf16.mxu0 %v6995_v22  ;;  %v10553_v25 = vadd.f32 %v7952_v18, %v2991_v33  ;;  %v562_v18 = vld [vmem:[%s9693_s16 + $0x6b0] sm:$0xff]  ;;  %v7010_v33 = vcombine.low %v546_v19, %v554_v16  ;;  %v363_v19 = vld [vmem:[%s9693_s16 + $0x78] sm:$0xff] }
 0x196   : > { %v7856_v48 = vpop.f32.mrb[76].mxu1  ;;  %v7956_v38 = vpop.f32.mrb[76].mxu0  ;;  %v10558_v41 = vadd.f32 %v7955_v53, %v2994_v32 }
 0x197   : > { %v7857_v62 = vpop.f32.mrb[77].mxu1  ;;  %v7957_v2 = vpop.f32.mrb[77].mxu0 }
 0x198   : > { %v7858_v4 = vadd.f32 %v7857_v62, %v7856_v48  ;;  %v7958_v12 = vadd.f32 %v7957_v2, %v7956_v38  ;;  %v7859_v6 = vpop.f32.mrb[78].mxu1  ;;  %v7959_v30 = vpop.f32.mrb[78].mxu0  ;;  %v7025_v48 = vcombine.high %v561_v5, %v569_v58  ;;  %v7027_v38 = vcombine.high %v562_v18, %v570_v42 }
 0x199   : > { %v7860_v10 = vpop.f32.mrb[79].mxu1  ;;  %v7960_v39 = vpop.f32.mrb[79].mxu0 }
 0x19a   : > { %v2999_v35 = vadd.f32 %v7858_v4, %v10206_v31  ;;  %v7861_v47 = vadd.f32 %v7860_v10, %v7859_v6  ;;  %v7961_v49 = vadd.f32 %v7960_v39, %v7959_v30  ;;  %v7026_v10 = vcombine.low %v562_v18, %v570_v42 }
 0x19b   : > { %3569 = vmatmul.mubr.bf16.gmra.mrb[184].mxu1 %v6992_v55  ;;  %3714 = vmatmul.mubr.bf16.gmra.mrb[184].mxu0 %v6994_v63 }
 0x19c   : > { %v3002_v51 = vadd.f32 %v7861_v47, %v10212_v36  ;;  %3576 = vmatprep.mubr.bf16.mxu1 %v7009_v28  ;;  %3721 = vmatprep.mubr.bf16.mxu0 %v7011_v17  ;;  %v10563_v20 = vadd.f32 %v7958_v12, %v2999_v35 }
 0x19e   : > { %v7862_v52 = vpop.f32.mrb[80].mxu1  ;;  %v7962_v40 = vpop.f32.mrb[80].mxu0  ;;  %v10568_v22 = vadd.f32 %v7961_v49, %v3002_v51  ;;  %v9246_v51 = vld [vmem:[%s10221_s26 + $0x4] ss:$36 sps:$4 sm:$0xff]  }
 0x19f   : > { %v7863_v27 = vpop.f32.mrb[81].mxu1  ;;  %v7963_v31 = vpop.f32.mrb[81].mxu0 }
 0x1a0   : > { %v7864_v57 = vadd.f32 %v7863_v27, %v7862_v52  ;;  %v7964_v53 = vadd.f32 %v7963_v31, %v7962_v40  ;;  %v7865_v36 = vpop.f32.mrb[82].mxu1  ;;  %v7965_v32 = vpop.f32.mrb[82].mxu0 }
 0x1a1   : > { %v7866_v62 = vpop.f32.mrb[83].mxu1  ;;  %v7966_v2 = vpop.f32.mrb[83].mxu0 }
 0x1a2   : > { %v3007_v55 = vadd.f32 %v7864_v57, %v10226_v0  ;;  %v7867_v63 = vadd.f32 %v7866_v62, %v7865_v36  ;;  %v7967_v4 = vadd.f32 %v7966_v2, %v7965_v32  ;;  %v7024_v0 = vcombine.low %v561_v5, %v569_v58  ;;  %v10587_v57 = vld [vmem:[%s9693_s16 + $0xf8] sm:$0xff] }
 0x1a3   : > { %3577 = vmatmul.mubr.bf16.gmra.mrb[188].mxu1 %v7008_v13  ;;  %3722 = vmatmul.mubr.bf16.gmra.mrb[188].mxu0 %v7010_v33  ;;  %v10584_v33 = vld [vmem:[%s9693_s16 + $0xb8] sm:$0xff]  ;;  %v6820_v32 = vcombine.low %v355_v21, %v363_v19 }
 0x1a4   : > { %v3010_v12 = vadd.f32 %v7867_v63, %v10237_v9  ;;  %3584 = vmatprep.mubr.bf16.mxu1 %v7025_v48  ;;  %3729 = vmatprep.mubr.bf16.mxu0 %v7027_v38  ;;  %v10572_v7 = vadd.f32 %v7964_v53, %v3007_v55  ;;  %v6821_v9 = vcombine.high %v355_v21, %v363_v19  ;;  %v9244_v48 = vld [vmem:[%s10221_s26] ss:$36 sps:$4 sm:$0xff]   ;;  %v9251_v21 = vld [vmem:[%s10221_s26 + $0x4c] ss:$36 sps:$4 sm:$0xff]  }
 0x1a5   : > { %v9248_v55 = vld [vmem:[%s11550_s4 + $0x100] sm:$0xff]  }
 0x1a6   : > { %v7984_v16 = vpop.f32.mrb[84].mxu1  ;;  %v8084_v6 = vpop.f32.mrb[84].mxu0  ;;  %v10576_v30 = vadd.f32 %v7967_v4, %v3010_v12  ;;  %v9250_v63 = vld [vmem:[%s11550_s4 + $0x80] sm:$0xff]  }
 0x1a7   : > { %v7985_v28 = vpop.f32.mrb[85].mxu1  ;;  %v8085_v17 = vpop.f32.mrb[85].mxu0 }
 0x1a8   : > { %v7986_v39 = vadd.f32 %v7985_v28, %v7984_v16  ;;  %v8086_v35 = vadd.f32 %v8085_v17, %v8084_v6  ;;  %v7987_v47 = vpop.f32.mrb[86].mxu1  ;;  %v8087_v49 = vpop.f32.mrb[86].mxu0  ;;  %v6837_v16 = vcombine.high %v10584_v33, %v10587_v57  ;;  %v9256_v17 = vld [vmem:[%s11550_s4 + $0x148] sm:$0xff]  }
 0x1a9   : > { %v7988_v52 = vpop.f32.mrb[87].mxu1  ;;  %v8088_v40 = vpop.f32.mrb[87].mxu0 }
 0x1aa   : > { %v3193_v27 = vadd.f32 %v7986_v39, %v10247_v26  ;;  %v7989_v31 = vadd.f32 %v7988_v52, %v7987_v47  ;;  %v8089_v13 = vadd.f32 %v8088_v40, %v8087_v49  ;;  %v10610_v39 = vld [vmem:[%s9693_s16 + $0x138] sm:$0xff] }
 0x1ab   : > { %3585 = vmatmul.mubr.bf16.gmra.mrb[192].mxu1 %v7024_v0  ;;  %3730 = vmatmul.mubr.bf16.gmra.mrb[192].mxu0 %v7026_v10  ;;  %v9259_v0 = vld [vmem:[%s11550_s4 + $0xc8] sm:$0xff]   ;;  %v10621_v49 = vld [vmem:[%s9693_s16 + $0x178] sm:$0xff] }
 0x1ac   : > { %v3196_v5 = vadd.f32 %v7989_v31, %v10261_v54  ;;  %3770 = vmatprep.mubr.bf16.mxu1 %v6821_v9  ;;  %5506 = vmatprep.mubr.bf16.mxu0 %v9246_v51  ;;  %v10581_v58 = vadd.f32 %v8086_v35, %v3193_v27  ;;  %v9260_v35 = vld [vmem:[%s11550_s4 + $0x88] sm:$0xff]   ;;  %v9267_v9 = vld [vmem:[%s11550_s4 + $0xd0] sm:$0xff]  }
 0x1ae   : > { %v7990_v18 = vpop.f32.mrb[88].mxu1  ;;  %v8090_v42 = vpop.f32.mrb[88].mxu0  ;;  %v10589_v53 = vadd.f32 %v8089_v13, %v3196_v5  ;;  %v6836_v13 = vcombine.low %v10584_v33, %v10587_v57  ;;  %v9253_v5 = vld [vmem:[%s10221_s26 + $0x48] ss:$36 sps:$4 sm:$0xff]   ;;  %v9268_v33 = vld [vmem:[%s11550_s4 + $0x110] sm:$0xff]  }
 0x1af   : > { %v7991_v26 = vpop.f32.mrb[89].mxu1  ;;  %v8091_v36 = vpop.f32.mrb[89].mxu0  ;;  %v9270_v57 = vld [vmem:[%s11550_s4 + $0x90] sm:$0xff]  }
 0x1b0   : > { %v7992_v38 = vadd.f32 %v7991_v26, %v7990_v18  ;;  %v8092_v62 = vadd.f32 %v8091_v36, %v8090_v42  ;;  %v7993_v54 = vpop.f32.mrb[90].mxu1  ;;  %v8093_v2 = vpop.f32.mrb[90].mxu0 }
 0x1b1   : > { %v7994_v4 = vpop.f32.mrb[91].mxu1  ;;  %v8094_v12 = vpop.f32.mrb[91].mxu0 }
 0x1b2   : > { %v3201_v19 = vadd.f32 %v7992_v38, %v10297_v37  ;;  %v7995_v6 = vadd.f32 %v7994_v4, %v7993_v54  ;;  %v8095_v28 = vadd.f32 %v8094_v12, %v8093_v2  ;;  %v9258_v37 = vld [vmem:[%s11550_s4 + $0x108] sm:$0xff]   ;;  %v9275_v4 = vld [vmem:[%s11550_s4 + $0x158] sm:$0xff]  }
 0x1b3   : > { %3771 = vmatmul.mubr.bf16.vlgmr.msra.gmra.mrb[196].mxu1 %v6820_v32  ;;  %5507 = vmatmul.mubr.bf16.vlgmr.msra.gmra.mrb[196].mxu0 %v9244_v48  ;;  %v6853_v32 = vcombine.high %v10610_v39, %v10621_v49  ;;  %v9254_v48 = vld [vmem:[%s10221_s26 + $0x94] ss:$36 sps:$4 sm:$0xff]  }
 0x1b4   : > { %v3204_v10 = vadd.f32 %v7995_v6, %v10311_v34  ;;  %8681 = vmatpush3.bf16.msra.mxu0 %v9248_v55  ;;  %8575 = vmatpush3.bf16.msra.mxu1 %v9250_v63  ;;  %v10618_v47 = vadd.f32 %v8092_v62, %v3201_v19  ;;  %v9264_v34 = vld [vmem:[%s11550_s4 + $0x150] sm:$0xff]   ;;  %v9274_v63 = vld [vmem:[%s11550_s4 + $0xd8] sm:$0xff]  }
 0x1b5   : > { %3778 = vmatprep.mubr.bf16.mxu1 %v6837_v16  ;;  %5514 = vmatprep.mubr.bf16.mxu0 %v9251_v21  ;;  %v10652_v16 = vld [vmem:[%s9693_s16 + $0x1b8] sm:$0xff] }
 0x1b6   : > { %v7996_v51 = vpop.f32.mrb[92].mxu1  ;;  %v8096_v52 = vpop.f32.mrb[92].mxu0  ;;  %8682 = vmatprep.subr.bf16.mxu0 %v9256_v17  ;;  %8576 = vmatprep.subr.bf16.mxu1 %v9259_v0  ;;  %v10629_v40 = vadd.f32 %v8095_v28, %v3204_v10  ;;  %v9276_v19 = vld [vmem:[%s11550_s4 + $0x98] sm:$0xff]   ;;  %v9284_v17 = vld [vmem:[%s11550_s4 + $0xe0] sm:$0xff]  }
 0x1b7   : > { %v7997_v27 = vpop.f32.mrb[93].mxu1  ;;  %v8097_v31 = vpop.f32.mrb[93].mxu0  ;;  %v9277_v6 = vld [vmem:[%s11550_s4 + $0x118] sm:$0xff]   ;;  %v9286_v0 = vld [vmem:[%s11550_s4 + $0x160] sm:$0xff]  }
 0x1b8   : > { %v7998_v18 = vadd.f32 %v7997_v27, %v7996_v51  ;;  %v8098_v42 = vadd.f32 %v8097_v31, %v8096_v52  ;;  %v7999_v26 = vpop.f32.mrb[94].mxu1  ;;  %v8099_v36 = vpop.f32.mrb[94].mxu0  ;;  %8683 = vmatpush3.bf16.msra.mxu0 %v9258_v37  ;;  %8577 = vmatpush3.bf16.msra.mxu1 %v9260_v35 }
 0x1b9   : > { %v8000_v38 = vpop.f32.mrb[95].mxu1  ;;  %v8100_v62 = vpop.f32.mrb[95].mxu0  ;;  %8684 = vmatprep.subr.bf16.mxu0 %v9264_v34  ;;  %8578 = vmatprep.subr.bf16.mxu1 %v9267_v9  ;;  %v6852_v34 = vcombine.low %v10610_v39, %v10621_v49  ;;  %v9257_v9 = vld [vmem:[%s10221_s26 + $0x90] ss:$36 sps:$4 sm:$0xff]   ;;  %v9287_v39 = vld [vmem:[%s11550_s4 + $0x120] sm:$0xff]  }
 0x1ba   : > { %v3209_v54 = vadd.f32 %v7998_v18, %v10355_v56  ;;  %v8001_v2 = vadd.f32 %v8000_v38, %v7999_v26  ;;  %v8101_v55 = vadd.f32 %v8100_v62, %v8099_v36  ;;  %v10657_v56 = vld [vmem:[%s9693_s16 + $0x1f8] sm:$0xff]  ;;  %v9285_v26 = vld [vmem:[%s11550_s4 + $0xa0] sm:$0xff]   ;;  %v9296_v38 = vld [vmem:[%s11550_s4 + $0x168] sm:$0xff]  }
 0x1bb   : > { %3779 = vmatmul.mubr.bf16.gmra.mrb[200].mxu1 %v6836_v13  ;;  %5515 = vmatmul.mubr.bf16.gmra.mrb[200].mxu0 %v9253_v5  ;;  %v6869_v13 = vcombine.high %v10652_v16, %v10657_v56  ;;  %v9261_v5 = vld [vmem:[%s10221_s26 + $0xdc] ss:$36 sps:$4 sm:$0xff]  }
 0x1bc   : > { %v3212_v12 = vadd.f32 %v8001_v2, %v10363_v59  ;;  %3786 = vmatprep.mubr.bf16.mxu1 %v6853_v32  ;;  %5522 = vmatprep.mubr.bf16.mxu0 %v9254_v48  ;;  %v10654_v21 = vadd.f32 %v8098_v42, %v3209_v54  ;;  %v9294_v48 = vld [vmem:[%s11550_s4 + $0xe8] sm:$0xff]  }
 0x1bd   : > { %8685 = vmatpush3.bf16.msra.mxu0 %v9268_v33  ;;  %8579 = vmatpush3.bf16.msra.mxu1 %v9270_v57  ;;  %v10694_v33 = vld [vmem:[%s9693_s16 + $0x238] sm:$0xff]  ;;  %v9295_v54 = vld [vmem:[%s11550_s4 + $0xa8] sm:$0xff]  }
 0x1be   : > { %v8002_v59 = vpop.f32.mrb[96].mxu1  ;;  %v8102_v28 = vpop.f32.mrb[96].mxu0  ;;  %8580 = vmatprep.subr.bf16.mxu1 %v9274_v63  ;;  %8686 = vmatprep.subr.bf16.mxu0 %v9275_v4  ;;  %v10671_v10 = vadd.f32 %v8101_v55, %v3212_v12  ;;  %v10699_v57 = vld [vmem:[%s9693_s16 + $0x278] sm:$0xff]  ;;  %v9297_v2 = vld [vmem:[%s11550_s4 + $0x128] sm:$0xff]   ;;  %v9303_v63 = vld [vmem:[%s11550_s4 + $0xf0] sm:$0xff]  }
 0x1bf   : > { %v8003_v37 = vpop.f32.mrb[97].mxu1  ;;  %v8103_v35 = vpop.f32.mrb[97].mxu0  ;;  %v9306_v4 = vld [vmem:[%s11550_s4 + $0x170] sm:$0xff]  }
 0x1c0   : > { %v8004_v51 = vadd.f32 %v8003_v37, %v8002_v59  ;;  %v8104_v52 = vadd.f32 %v8103_v35, %v8102_v28  ;;  %v8005_v27 = vpop.f32.mrb[98].mxu1  ;;  %v8105_v31 = vpop.f32.mrb[98].mxu0  ;;  %v6868_v59 = vcombine.low %v10652_v16, %v10657_v56  ;;  %v9263_v28 = vld [vmem:[%s10221_s26 + $0xd8] ss:$36 sps:$4 sm:$0xff]   ;;  %v9307_v16 = vld [vmem:[%s11550_s4 + $0x130] sm:$0xff]  }
 0x1c1   : > { %v8006_v18 = vpop.f32.mrb[99].mxu1  ;;  %v8106_v42 = vpop.f32.mrb[99].mxu0  ;;  %8581 = vmatpush3.bf16.msra.mxu1 %v9276_v19  ;;  %8687 = vmatpush3.bf16.msra.mxu0 %v9277_v6 }
 0x1c2   : > { %v3217_v49 = vadd.f32 %v8004_v51, %v10401_v46  ;;  %v8007_v36 = vadd.f32 %v8006_v18, %v8005_v27  ;;  %v8107_v32 = vadd.f32 %v8106_v42, %v8105_v31  ;;  %8582 = vmatprep.subr.bf16.mxu1 %v9284_v17  ;;  %8688 = vmatprep.subr.bf16.mxu0 %v9286_v0  ;;  %v9305_v27 = vld [vmem:[%s11550_s4 + $0xb0] sm:$0xff]   ;;  %v9316_v18 = vld [vmem:[%s11550_s4 + $0x178] sm:$0xff]  }
 0x1c3   : > { %3787 = vmatmul.mubr.bf16.gmra.mrb[204].mxu1 %v6852_v34  ;;  %5523 = vmatmul.mubr.bf16.gmra.mrb[204].mxu0 %v9257_v9  ;;  %v6885_v34 = vcombine.high %v10694_v33, %v10699_v57  ;;  %v9265_v9 = vld [vmem:[%s10221_s26 + $0x124] ss:$36 sps:$4 sm:$0xff]  }
 0x1c4   : > { %v3220_v62 = vadd.f32 %v8007_v36, %v10415_v60  ;;  %3794 = vmatprep.mubr.bf16.mxu1 %v6869_v13  ;;  %5530 = vmatprep.mubr.bf16.mxu0 %v9261_v5  ;;  %v10696_v46 = vadd.f32 %v8104_v52, %v3217_v49  ;;  %v9311_v5 = vld [vmem:[%s11550_s4 + $0xf8] sm:$0xff]  }
 0x1c5   : > { %8583 = vmatpush3.bf16.msra.mxu1 %v9285_v26  ;;  %8689 = vmatpush3.bf16.msra.mxu0 %v9287_v39  ;;  %v435_v26 = vld [vmem:[%s9693_s16 + $0x2b8] sm:$0xff] }
 0x1c6   : > { %v8008_v60 = vpop.f32.mrb[100].mxu1  ;;  %v8108_v55 = vpop.f32.mrb[100].mxu0  ;;  %8584 = vmatprep.subr.bf16.mxu1 %v9294_v48  ;;  %8690 = vmatprep.subr.bf16.mxu0 %v9296_v38  ;;  %v10713_v12 = vadd.f32 %v8107_v32, %v3220_v62  ;;  %v443_v39 = vld [vmem:[%s9693_s16 + $0x2f8] sm:$0xff]  ;;  %v9324_v48 = vld [vmem:[%s11550_s4 + $0x1c0] sm:$0xff]  }
 0x1c7   : > { %v8009_v19 = vpop.f32.mrb[101].mxu1  ;;  %v8109_v6 = vpop.f32.mrb[101].mxu0  ;;  %v9312_v49 = vld [vmem:[%s11550_s4 + $0xb8] sm:$0xff]  }
 0x1c8   : > { %v8010_v17 = vadd.f32 %v8009_v19, %v8008_v60  ;;  %v8110_v0 = vadd.f32 %v8109_v6, %v8108_v55  ;;  %v8011_v37 = vpop.f32.mrb[102].mxu1  ;;  %v8111_v35 = vpop.f32.mrb[102].mxu0  ;;  %v9317_v36 = vld [vmem:[%s11550_s4 + $0x138] sm:$0xff]   ;;  %v9269_v60 = vld [vmem:[%s10221_s26 + $0x120] ss:$36 sps:$4 sm:$0xff]   ;;  %v6901_v6 = vcombine.high %v435_v26, %v443_v39 }
 0x1c9   : > { %v8012_v51 = vpop.f32.mrb[103].mxu1  ;;  %v8112_v52 = vpop.f32.mrb[103].mxu0  ;;  %8585 = vmatpush3.bf16.msra.mxu1 %v9295_v54  ;;  %8691 = vmatpush3.bf16.msra.mxu0 %v9297_v2  ;;  %v6884_v2 = vcombine.low %v10694_v33, %v10699_v57 }
 0x1ca   : > { %v3225_v56 = vadd.f32 %v8010_v17, %v10459_v14  ;;  %v8013_v31 = vadd.f32 %v8012_v51, %v8011_v37  ;;  %v8113_v13 = vadd.f32 %v8112_v52, %v8111_v35  ;;  %8586 = vmatprep.subr.bf16.mxu1 %v9303_v63  ;;  %8692 = vmatprep.subr.bf16.mxu0 %v9306_v4  ;;  %v459_v51 = vld [vmem:[%s9693_s16 + $0x378] sm:$0xff] }
 0x1cb   : > { %3795 = vmatmul.mubr.bf16.gmra.mrb[208].mxu1 %v6868_v59  ;;  %5531 = vmatmul.mubr.bf16.gmra.mrb[208].mxu0 %v9263_v28  ;;  %v9271_v59 = vld [vmem:[%s10221_s26 + $0x16c] ss:$36 sps:$4 sm:$0xff]  }
 0x1cc   : > { %v3228_v42 = vadd.f32 %v8013_v31, %v10467_v61  ;;  %3802 = vmatprep.mubr.bf16.mxu1 %v6885_v34  ;;  %5538 = vmatprep.mubr.bf16.mxu0 %v9265_v9  ;;  %v10736_v14 = vadd.f32 %v8110_v0, %v3225_v56  ;;  %v9588_v34 = vmov 0.0   ;;  %v451_v9 = vld [vmem:[%s9693_s16 + $0x338] sm:$0xff]  ;;  %v6900_v31 = vcombine.low %v435_v26, %v443_v39 }
 0x1cd   : > { %8587 = vmatpush3.bf16.msra.mxu1 %v9305_v27  ;;  %8693 = vmatpush3.bf16.msra.mxu0 %v9307_v16 }
 0x1ce   : > { %v8014_v32 = vpop.f32.mrb[104].mxu1  ;;  %v8114_v61 = vpop.f32.mrb[104].mxu0  ;;  %8588 = vmatprep.subr.bf16.mxu1 %v9311_v5  ;;  %8694 = vmatprep.subr.bf16.mxu0 %v9316_v18  ;;  %v10748_v38 = vadd.f32 %v8113_v13, %v3228_v42  ;;  %v9273_v13 = vld [vmem:[%s10221_s26 + $0x168] ss:$36 sps:$4 sm:$0xff]  }
 0x1cf   : > { %v8015_v62 = vpop.f32.mrb[105].mxu1  ;;  %v8115_v54 = vpop.f32.mrb[105].mxu0 }
 0x1d0   : > { %v8016_v55 = vadd.f32 %v8015_v62, %v8014_v32  ;;  %v8116_v63 = vadd.f32 %v8115_v54, %v8114_v61  ;;  %v8017_v4 = vpop.f32.mrb[106].mxu1  ;;  %v8117_v19 = vpop.f32.mrb[106].mxu0 }
 0x1d1   : > { %v8018_v28 = vpop.f32.mrb[107].mxu1  ;;  %v8118_v17 = vpop.f32.mrb[107].mxu0  ;;  %8589 = vmatpush3.bf16.msra.mxu1 %v9312_v49  ;;  %8695 = vmatpush3.bf16.msra.mxu0 %v9317_v36  ;;  %v6917_v49 = vcombine.high %v451_v9, %v459_v51  ;;  %v9278_v36 = vld [vmem:[%s10221_s26 + $0x1b4] ss:$36 sps:$4 sm:$0xff]  }
 0x1d2   : > { %v3233_v0 = vadd.f32 %v8016_v55, %v10485_v45  ;;  %v8019_v37 = vadd.f32 %v8018_v28, %v8017_v4  ;;  %v8119_v35 = vadd.f32 %v8118_v17, %v8117_v19  ;;  %8786 = vmatprep.subr.bf16.mxu1 %v9324_v48  ;;  %8915 = vmatprep.subr.bf16.mxu0 %v9588_v34 }
 0x1d3   : > { %3803 = vmatmul.mubr.bf16.gmra.mrb[212].mxu1 %v6884_v2  ;;  %5539 = vmatmul.mubr.bf16.gmra.mrb[212].mxu0 %v9269_v60  ;;  %v467_v2 = vld [vmem:[%s9693_s16 + $0x3b8] sm:$0xff] }
 0x1d4   : > { %v3236_v33 = vadd.f32 %v8019_v37, %v10489_v50  ;;  %3810 = vmatprep.mubr.bf16.mxu1 %v6901_v6  ;;  %5546 = vmatprep.mubr.bf16.mxu0 %v9271_v59  ;;  %v10757_v57 = vadd.f32 %v8116_v63, %v3233_v0  ;;  %v475_v60 = vld [vmem:[%s9693_s16 + $0x3f8] sm:$0xff]  ;;  %v6916_v6 = vcombine.low %v451_v9, %v459_v51  ;;  %v9280_v59 = vld [vmem:[%s10221_s26 + $0x1b0] ss:$36 sps:$4 sm:$0xff]  }
 0x1d5   : > { %v6933_v37 = vcombine.high %v467_v2, %v475_v60 }
 0x1d6   : > { %v8020_v52 = vpop.f32.mrb[108].mxu1  ;;  %v8120_v45 = vpop.f32.mrb[108].mxu0  ;;  %v10761_v27 = vadd.f32 %v8119_v35, %v3236_v33  ;;  %v9281_v35 = vld [vmem:[%s10221_s26 + $0x1fc] ss:$36 sps:$4 sm:$0xff]  }
 0x1d7   : > { %v8021_v16 = vpop.f32.mrb[109].mxu1  ;;  %v8121_v56 = vpop.f32.mrb[109].mxu0 }
 0x1d8   : > { %v8022_v5 = vadd.f32 %v8021_v16, %v8020_v52  ;;  %v8122_v18 = vadd.f32 %v8121_v56, %v8120_v45  ;;  %v8023_v42 = vpop.f32.mrb[110].mxu1  ;;  %v8123_v50 = vpop.f32.mrb[110].mxu0 }
 0x1d9   : > { %v8024_v32 = vpop.f32.mrb[111].mxu1  ;;  %v8124_v61 = vpop.f32.mrb[111].mxu0 }
 0x1da   : > { %v3241_v48 = vadd.f32 %v8022_v5, %v10505_v24  ;;  %v8025_v62 = vadd.f32 %v8024_v32, %v8023_v42  ;;  %v8125_v54 = vadd.f32 %v8124_v61, %v8123_v50 }
 0x1db   : > { %3811 = vmatmul.mubr.bf16.gmra.mrb[216].mxu1 %v6900_v31  ;;  %5547 = vmatmul.mubr.bf16.gmra.mrb[216].mxu0 %v9273_v13  ;;  %v483_v31 = vld [vmem:[%s9693_s16 + $0x438] sm:$0xff] }
 0x1dc   : > { %v3244_v26 = vadd.f32 %v8025_v62, %v10507_v11  ;;  %3818 = vmatprep.mubr.bf16.mxu1 %v6917_v49  ;;  %5554 = vmatprep.mubr.bf16.mxu0 %v9278_v36  ;;  %v10767_v39 = vadd.f32 %v8122_v18, %v3241_v48  ;;  %v491_v13 = vld [vmem:[%s9693_s16 + $0x478] sm:$0xff]  ;;  %v6932_v49 = vcombine.low %v467_v2, %v475_v60 }
 0x1dd   : > { %v9283_v36 = vld [vmem:[%s10221_s26 + $0x1f8] ss:$36 sps:$4 sm:$0xff]   ;;  %v6949_v62 = vcombine.high %v483_v31, %v491_v13 }
 0x1de   : > { %v8026_v55 = vpop.f32.mrb[112].mxu1  ;;  %v8126_v63 = vpop.f32.mrb[112].mxu0  ;;  %v10771_v4 = vadd.f32 %v8125_v54, %v3244_v26  ;;  %v9288_v54 = vld [vmem:[%s10221_s26 + $0x244] ss:$36 sps:$4 sm:$0xff]  }
 0x1df   : > { %v8027_v19 = vpop.f32.mrb[113].mxu1  ;;  %v8127_v24 = vpop.f32.mrb[113].mxu0 }
 0x1e0   : > { %v8028_v28 = vadd.f32 %v8027_v19, %v8026_v55  ;;  %v8128_v17 = vadd.f32 %v8127_v24, %v8126_v63  ;;  %v8029_v0 = vpop.f32.mrb[114].mxu1  ;;  %v8129_v11 = vpop.f32.mrb[114].mxu0 }
 0x1e1   : > { %v8030_v33 = vpop.f32.mrb[115].mxu1  ;;  %v8130_v52 = vpop.f32.mrb[115].mxu0 }
 0x1e2   : > { %v3249_v45 = vadd.f32 %v8028_v28, %v10512_v44  ;;  %v8031_v16 = vadd.f32 %v8030_v33, %v8029_v0  ;;  %v8131_v56 = vadd.f32 %v8130_v52, %v8129_v11 }
 0x1e3   : > { %3819 = vmatmul.mubr.bf16.gmra.mrb[220].mxu1 %v6916_v6  ;;  %5555 = vmatmul.mubr.bf16.gmra.mrb[220].mxu0 %v9280_v59  ;;  %v499_v6 = vld [vmem:[%s9693_s16 + $0x4b8] sm:$0xff] }
 0x1e4   : > { %v3252_v9 = vadd.f32 %v8031_v16, %v10518_v8  ;;  %3826 = vmatprep.mubr.bf16.mxu1 %v6933_v37  ;;  %5562 = vmatprep.mubr.bf16.mxu0 %v9281_v35  ;;  %v10777_v51 = vadd.f32 %v8128_v17, %v3249_v45  ;;  %v507_v59 = vld [vmem:[%s9693_s16 + $0x4f8] sm:$0xff]  ;;  %v6948_v37 = vcombine.low %v483_v31, %v491_v13  ;;  %v9290_v35 = vld [vmem:[%s10221_s26 + $0x240] ss:$36 sps:$4 sm:$0xff]  }
 0x1e5   : > { %v6965_v16 = vcombine.high %v499_v6, %v507_v59  ;;  %v515_v13 = vld [vmem:[%s9693_s16 + $0x538] sm:$0xff] }
 0x1e6   : > { %v8032_v5 = vpop.f32.mrb[116].mxu1  ;;  %v8132_v18 = vpop.f32.mrb[116].mxu0  ;;  %v10781_v42 = vadd.f32 %v8131_v56, %v3252_v9  ;;  %v9291_v56 = vld [vmem:[%s10221_s26 + $0x28c] ss:$36 sps:$4 sm:$0xff]  }
 0x1e7   : > { %v8033_v50 = vpop.f32.mrb[117].mxu1  ;;  %v8133_v44 = vpop.f32.mrb[117].mxu0 }
 0x1e8   : > { %v8034_v32 = vadd.f32 %v8033_v50, %v8032_v5  ;;  %v8134_v61 = vadd.f32 %v8133_v44, %v8132_v18  ;;  %v8035_v48 = vpop.f32.mrb[118].mxu1  ;;  %v8135_v8 = vpop.f32.mrb[118].mxu0 }
 0x1e9   : > { %v8036_v26 = vpop.f32.mrb[119].mxu1  ;;  %v8136_v55 = vpop.f32.mrb[119].mxu0 }
 0x1ea   : > { %v3257_v63 = vadd.f32 %v8034_v32, %v10523_v23  ;;  %v8037_v19 = vadd.f32 %v8036_v26, %v8035_v48  ;;  %v8137_v24 = vadd.f32 %v8136_v55, %v8135_v8 }
 0x1eb   : > { %3827 = vmatmul.mubr.bf16.gmra.mrb[224].mxu1 %v6932_v49  ;;  %5563 = vmatmul.mubr.bf16.gmra.mrb[224].mxu0 %v9283_v36  ;;  %v523_v36 = vld [vmem:[%s9693_s16 + $0x578] sm:$0xff] }
 0x1ec   : > { %v3260_v2 = vadd.f32 %v8037_v19, %v10528_v43  ;;  %3834 = vmatprep.mubr.bf16.mxu1 %v6949_v62  ;;  %5570 = vmatprep.mubr.bf16.mxu0 %v9288_v54  ;;  %v10787_v60 = vadd.f32 %v8134_v61, %v3257_v63  ;;  %v6964_v62 = vcombine.low %v499_v6, %v507_v59  ;;  %v9293_v54 = vld [vmem:[%s10221_s26 + $0x288] ss:$36 sps:$4 sm:$0xff]   ;;  %v531_v59 = vld [vmem:[%s9693_s16 + $0x5b8] sm:$0xff] }
 0x1ee   : > { %v8038_v28 = vpop.f32.mrb[120].mxu1  ;;  %v8138_v17 = vpop.f32.mrb[120].mxu0  ;;  %v10791_v0 = vadd.f32 %v8137_v24, %v3260_v2  ;;  %v9298_v24 = vld [vmem:[%s10221_s26 + $0x2d4] ss:$36 sps:$4 sm:$0xff]  }
 0x1ef   : > { %v8039_v11 = vpop.f32.mrb[121].mxu1  ;;  %v8139_v23 = vpop.f32.mrb[121].mxu0 }
 0x1f0   : > { %v8040_v33 = vadd.f32 %v8039_v11, %v8038_v28  ;;  %v8140_v52 = vadd.f32 %v8139_v23, %v8138_v17  ;;  %v8041_v45 = vpop.f32.mrb[122].mxu1  ;;  %v8141_v43 = vpop.f32.mrb[122].mxu0 }
 0x1f1   : > { %v8042_v9 = vpop.f32.mrb[123].mxu1  ;;  %v8142_v5 = vpop.f32.mrb[123].mxu0 }
 0x1f2   : > { %v3265_v18 = vadd.f32 %v8040_v33, %v10533_v15  ;;  %v8043_v50 = vadd.f32 %v8042_v9, %v8041_v45  ;;  %v8143_v44 = vadd.f32 %v8142_v5, %v8141_v43 }
 0x1f3   : > { %3835 = vmatmul.mubr.bf16.gmra.mrb[228].mxu1 %v6948_v37  ;;  %5571 = vmatmul.mubr.bf16.gmra.mrb[228].mxu0 %v9290_v35  ;;  %v539_v35 = vld [vmem:[%s9693_s16 + $0x5f8] sm:$0xff] }
 0x1f4   : > { %v10796_v49 = vadd.f32 %v8140_v52, %v3265_v18  ;;  %v3268_v31 = vadd.f32 %v8043_v50, %v10538_v1  ;;  %3842 = vmatprep.mubr.bf16.mxu1 %v6965_v16  ;;  %5578 = vmatprep.mubr.bf16.mxu0 %v9291_v56  ;;  %v6981_v1 = vcombine.high %v515_v13, %v523_v36  ;;  %v9300_v56 = vld [vmem:[%s10221_s26 + $0x2d0] ss:$36 sps:$4 sm:$0xff]  }
 0x1f5   : > { %v6980_v16 = vcombine.low %v515_v13, %v523_v36  ;;  %v547_v36 = vld [vmem:[%s9693_s16 + $0x638] sm:$0xff] }
 0x1f6   : > { %v10801_v32 = vadd.f32 %v8143_v44, %v3268_v31  ;;  %v8044_v61 = vpop.f32.mrb[124].mxu1  ;;  %v8144_v48 = vpop.f32.mrb[124].mxu0  ;;  %v9301_v44 = vld [vmem:[%s10221_s26 + $0x31c] ss:$36 sps:$4 sm:$0xff]  }
 0x1f7   : > { %v8045_v8 = vpop.f32.mrb[125].mxu1  ;;  %v8145_v15 = vpop.f32.mrb[125].mxu0 }
 0x1f8   : > { %v8046_v26 = vadd.f32 %v8045_v8, %v8044_v61  ;;  %v8146_v55 = vadd.f32 %v8145_v15, %v8144_v48  ;;  %v8047_v63 = vpop.f32.mrb[126].mxu1  ;;  %v8147_v19 = vpop.f32.mrb[126].mxu0 }
 0x1f9   : > { %v8048_v2 = vpop.f32.mrb[127].mxu1  ;;  %v8148_v28 = vpop.f32.mrb[127].mxu0 }
 0x1fa   : > { %v3273_v17 = vadd.f32 %v8046_v26, %v10543_v29  ;;  %v8049_v11 = vadd.f32 %v8048_v2, %v8047_v63  ;;  %v8149_v23 = vadd.f32 %v8148_v28, %v8147_v19 }
 0x1fb   : > { %3843 = vmatmul.mubr.bf16.gmra.mrb[232].mxu1 %v6964_v62  ;;  %5579 = vmatmul.mubr.bf16.gmra.mrb[232].mxu0 %v9293_v54  ;;  %v555_v54 = vld [vmem:[%s9693_s16 + $0x678] sm:$0xff] }
 0x1fc   : > { %v10806_v37 = vadd.f32 %v8146_v55, %v3273_v17  ;;  %v3276_v6 = vadd.f32 %v8049_v11, %v10548_v3  ;;  %3850 = vmatprep.mubr.bf16.mxu1 %v6981_v1  ;;  %5586 = vmatprep.mubr.bf16.mxu0 %v9298_v24  ;;  %v6997_v3 = vcombine.high %v531_v59, %v539_v35  ;;  %v9304_v24 = vld [vmem:[%s10221_s26 + $0x318] ss:$36 sps:$4 sm:$0xff]  }
 0x1fd   : > { %v6996_v1 = vcombine.low %v531_v59, %v539_v35  ;;  %v563_v35 = vld [vmem:[%s9693_s16 + $0x6b8] sm:$0xff] }
 0x1fe   : > { %v10811_v33 = vadd.f32 %v8149_v23, %v3276_v6  ;;  %v8050_v52 = vpop.f32.mrb[128].mxu1  ;;  %v8150_v45 = vpop.f32.mrb[128].mxu0  ;;  %v9308_v23 = vld [vmem:[%s10221_s26 + $0x364] ss:$36 sps:$4 sm:$0xff]  }
 0x1ff   : > { %v8051_v43 = vpop.f32.mrb[129].mxu1  ;;  %v8151_v29 = vpop.f32.mrb[129].mxu0 }
 0x200   : > { %v8052_v9 = vadd.f32 %v8051_v43, %v8050_v52  ;;  %v8152_v5 = vadd.f32 %v8151_v29, %v8150_v45  ;;  %v8053_v18 = vpop.f32.mrb[130].mxu1  ;;  %v8153_v50 = vpop.f32.mrb[130].mxu0 }
 0x201   : > { %v8054_v31 = vpop.f32.mrb[131].mxu1  ;;  %v8154_v61 = vpop.f32.mrb[131].mxu0 }
 0x202   : > { %v3281_v48 = vadd.f32 %v8052_v9, %v10553_v25  ;;  %v8055_v8 = vadd.f32 %v8054_v31, %v8053_v18  ;;  %v8155_v15 = vadd.f32 %v8154_v61, %v8153_v50 }
 0x203   : > { %3851 = vmatmul.mubr.bf16.gmra.mrb[236].mxu1 %v6980_v16  ;;  %5587 = vmatmul.mubr.bf16.gmra.mrb[236].mxu0 %v9300_v56  ;;  %v571_v56 = vld [vmem:[%s9693_s16 + $0x6f8] sm:$0xff]  ;;  %s11427_s16 = scalar_lea.vmem (%p9655_p4), %s11553_s7, %s7495_s18  }
 0x204   : > { %v10816_v62 = vadd.f32 %v8152_v5, %v3281_v48  ;;  %v3284_v13 = vadd.f32 %v8055_v8, %v10558_v41  ;;  %3858 = vmatprep.mubr.bf16.mxu1 %v6997_v3  ;;  %5594 = vmatprep.mubr.bf16.mxu0 %v9301_v44  ;;  %v7013_v41 = vcombine.high %v547_v36, %v555_v54  ;;  %v9310_v44 = vld [vmem:[%s10221_s26 + $0x360] ss:$36 sps:$4 sm:$0xff]  }
 0x205   : > { %v7012_v3 = vcombine.low %v547_v36, %v555_v54 }
 0x206   : > { %v10821_v26 = vadd.f32 %v8155_v15, %v3284_v13  ;;  %v8056_v55 = vpop.f32.mrb[132].mxu1  ;;  %v8156_v63 = vpop.f32.mrb[132].mxu0  ;;  %v7029_v15 = vcombine.high %v563_v35, %v571_v56  ;;  %v9313_v13 = vld [vmem:[%s10221_s26 + $0x3ac] ss:$36 sps:$4 sm:$0xff]  }
 0x207   : > { %v8057_v19 = vpop.f32.mrb[133].mxu1  ;;  %v8157_v25 = vpop.f32.mrb[133].mxu0 }
 0x208   : > { %v8058_v2 = vadd.f32 %v8057_v19, %v8056_v55  ;;  %v8158_v28 = vadd.f32 %v8157_v25, %v8156_v63  ;;  %v8059_v17 = vpop.f32.mrb[134].mxu1  ;;  %v8159_v11 = vpop.f32.mrb[134].mxu0 }
 0x209   : > { %v8060_v6 = vpop.f32.mrb[135].mxu1  ;;  %v8160_v52 = vpop.f32.mrb[135].mxu0 }
 0x20a   : > { %v3289_v45 = vadd.f32 %v8058_v2, %v10563_v20  ;;  %v8061_v43 = vadd.f32 %v8060_v6, %v8059_v17  ;;  %v8161_v29 = vadd.f32 %v8160_v52, %v8159_v11  ;;  %v7028_v11 = vcombine.low %v563_v35, %v571_v56 }
 0x20b   : > { %3859 = vmatmul.mubr.bf16.gmra.mrb[240].mxu1 %v6996_v1  ;;  %5595 = vmatmul.mubr.bf16.gmra.mrb[240].mxu0 %v9304_v24 }
 0x20c   : > { %v10826_v16 = vadd.f32 %v8158_v28, %v3289_v45  ;;  %v3292_v59 = vadd.f32 %v8061_v43, %v10568_v22  ;;  %3866 = vmatprep.mubr.bf16.mxu1 %v7013_v41  ;;  %5602 = vmatprep.mubr.bf16.mxu0 %v9308_v23  ;;  %v9318_v45 = vld [vmem:[%s10221_s26 + $0x3f4] ss:$36 sps:$4 sm:$0xff]   ;;  %v9322_v43 = vld [vmem:[%s10221_s26 + $0xc] ss:$36 sps:$4 sm:$0xff]  }
 0x20e   : > { %v10831_v9 = vadd.f32 %v8161_v29, %v3292_v59  ;;  %v8062_v5 = vpop.f32.mrb[136].mxu1  ;;  %v8162_v18 = vpop.f32.mrb[136].mxu0 }
 0x20f   : > { %v8063_v50 = vpop.f32.mrb[137].mxu1  ;;  %v8163_v20 = vpop.f32.mrb[137].mxu0 }
 0x210   : > { %v8064_v31 = vadd.f32 %v8063_v50, %v8062_v5  ;;  %v8164_v61 = vadd.f32 %v8163_v20, %v8162_v18  ;;  %v8065_v48 = vpop.f32.mrb[138].mxu1  ;;  %v8165_v8 = vpop.f32.mrb[138].mxu0 }
 0x211   : > { %v8066_v22 = vpop.f32.mrb[139].mxu1  ;;  %v8166_v55 = vpop.f32.mrb[139].mxu0 }
 0x212   : > { %v3297_v63 = vadd.f32 %v8064_v31, %v10572_v7  ;;  %v8067_v19 = vadd.f32 %v8066_v22, %v8065_v48  ;;  %v8167_v25 = vadd.f32 %v8166_v55, %v8165_v8  ;;  %v9315_v7 = vld [vmem:[%s10221_s26 + $0x3a8] ss:$36 sps:$4 sm:$0xff]   ;;  %v9325_v22 = vld [vmem:[%s11550_s4 + $0x180] sm:$0xff]  }
 0x213   : > { %3867 = vmatmul.mubr.bf16.gmra.mrb[244].mxu1 %v7012_v3  ;;  %5603 = vmatmul.mubr.bf16.gmra.mrb[244].mxu0 %v9310_v44 }
 0x214   : > { %v10836_v1 = vadd.f32 %v8164_v61, %v3297_v63  ;;  %v3300_v36 = vadd.f32 %v8067_v19, %v10576_v30  ;;  %3874 = vmatprep.mubr.bf16.mxu1 %v7029_v15  ;;  %5610 = vmatprep.mubr.bf16.mxu0 %v9313_v13  ;;  %v9320_v61 = vld [vmem:[%s10221_s26 + $0x8] ss:$36 sps:$4 sm:$0xff]   ;;  %v9331_v19 = vld [vmem:[%s10221_s26 + $0x14] ss:$36 sps:$4 sm:$0xff]  }
 0x216   : > { %v10839_v54 = vadd.f32 %v8167_v25, %v3300_v36  ;;  %v8184_v24 = vpop.f32.mrb[140].mxu1  ;;  %v8284_v2 = vpop.f32.mrb[140].mxu0  ;;  %v9339_v25 = vld [vmem:[%s11550_s4 + $0x1c8] sm:$0xff]  }
 0x217   : > { %v8185_v28 = vpop.f32.mrb[141].mxu1  ;;  %v8285_v17 = vpop.f32.mrb[141].mxu0 }
 0x218   : > { %v8186_v41 = vadd.f32 %v8185_v28, %v8184_v24  ;;  %v8286_v23 = vadd.f32 %v8285_v17, %v8284_v2  ;;  %v8187_v6 = vpop.f32.mrb[142].mxu1  ;;  %v8287_v52 = vpop.f32.mrb[142].mxu0 }
 0x219   : > { %v8188_v29 = vpop.f32.mrb[143].mxu1  ;;  %v8288_v59 = vpop.f32.mrb[143].mxu0 }
 0x21a   : > { %v3483_v30 = vadd.f32 %v8186_v41, %v10581_v58  ;;  %v8189_v5 = vadd.f32 %v8188_v29, %v8187_v6  ;;  %v8289_v18 = vadd.f32 %v8288_v59, %v8287_v52  ;;  %v9323_v58 = vld [vmem:[%s10221_s26 + $0x3f0] ss:$36 sps:$4 sm:$0xff]  }
 0x21b   : > { %3875 = vmatmul.mubr.bf16.gmra.mrb[248].mxu1 %v7028_v11  ;;  %5611 = vmatmul.mubr.bf16.gmra.mrb[248].mxu0 %v9315_v7  ;;  %v9340_v11 = vld [vmem:[%s11550_s4 + $0x188] sm:$0xff]   ;;  %v9326_v52 = vld [vmem:[%s10221_s26 + $0x50] ss:$36 sps:$4 sm:$0xff]  }
 0x21c   : > { %v10845_v50 = vadd.f32 %v8286_v23, %v3483_v30  ;;  %v3486_v35 = vadd.f32 %v8189_v5, %v10589_v53  ;;  %5618 = vmatprep.mubr.bf16.mxu0 %v9318_v45  ;;  %5659 = vmatprep.mubr.bf16.mxu1 %v9322_v43  ;;  %v9328_v53 = vld [vmem:[%s10221_s26 + $0x54] ss:$36 sps:$4 sm:$0xff]   ;;  %v9332_v5 = vld [vmem:[%s11550_s4 + $0x200] sm:$0xff]  }
 0x21d   : > { %v9329_v45 = vld [vmem:[%s10221_s26 + $0x10] ss:$36 sps:$4 sm:$0xff]  }
 0x21e   : > { %v10848_v56 = vadd.f32 %v8289_v18, %v3486_v35  ;;  %v8190_v20 = vpop.f32.mrb[144].mxu1  ;;  %v8290_v3 = vpop.f32.mrb[144].mxu0  ;;  %v9335_v18 = vld [vmem:[%s10221_s26 + $0x9c] ss:$36 sps:$4 sm:$0xff]  }
 0x21f   : > { %v8191_v44 = vpop.f32.mrb[145].mxu1  ;;  %v8291_v31 = vpop.f32.mrb[145].mxu0 }
 0x220   : > { %v8192_v48 = vadd.f32 %v8191_v44, %v8190_v20  ;;  %v8292_v8 = vadd.f32 %v8291_v31, %v8290_v3  ;;  %v8193_v15 = vpop.f32.mrb[146].mxu1  ;;  %v8293_v13 = vpop.f32.mrb[146].mxu0  ;;  %v9338_v3 = vld [vmem:[%s10221_s26 + $0x5c] ss:$36 sps:$4 sm:$0xff]  }
 0x221   : > { %v8194_v55 = vpop.f32.mrb[147].mxu1  ;;  %v8294_v63 = vpop.f32.mrb[147].mxu0 }
 0x222   : > { %v3491_v36 = vadd.f32 %v8192_v48, %v10618_v47  ;;  %v8195_v24 = vadd.f32 %v8194_v55, %v8193_v15  ;;  %v8295_v2 = vadd.f32 %v8294_v63, %v8293_v13  ;;  %v9354_v47 = vld [vmem:[%s11550_s4 + $0x1d0] sm:$0xff]   ;;  %v9369_v48 = vld [vmem:[%s11550_s4 + $0x1d8] sm:$0xff]  }
 0x223   : > { %5619 = vmatmul.mubr.bf16.gmra.mrb[252].mxu0 %v9323_v58  ;;  %5660 = vmatmul.mubr.bf16.vlgmr.msra.gmra.mrb[252].mxu1 %v9320_v61  ;;  %v9355_v58 = vld [vmem:[%s11550_s4 + $0x190] sm:$0xff]  }
 0x224   : > { %v10861_v28 = vadd.f32 %v8292_v8, %v3491_v36  ;;  %v3494_v17 = vadd.f32 %v8195_v24, %v10629_v40  ;;  %8787 = vmatpush3.bf16.msra.mxu1 %v9325_v22  ;;  %5667 = vmatprep.mubr.bf16.mxu1 %v9328_v53 }
 0x225   : > { %5812 = vmatprep.mubr.bf16.mxu0 %v9331_v19  ;;  %8788 = vmatprep.subr.bf16.mxu1 %v9339_v25  ;;  %v9333_v19 = vld [vmem:[%s10221_s26 + $0x98] ss:$36 sps:$4 sm:$0xff]  }
 0x226   : > { %v10870_v7 = vadd.f32 %v8295_v2, %v3494_v17  ;;  %v8196_v41 = vpop.f32.mrb[148].mxu1  ;;  %v8296_v23 = vpop.f32.mrb[148].mxu0  ;;  %v9336_v25 = vld [vmem:[%s10221_s26 + $0x58] ss:$36 sps:$4 sm:$0xff]  }
 0x227   : > { %v8197_v6 = vpop.f32.mrb[149].mxu1  ;;  %v8297_v40 = vpop.f32.mrb[149].mxu0 }
 0x228   : > { %v8198_v43 = vadd.f32 %v8197_v6, %v8196_v41  ;;  %v8298_v29 = vadd.f32 %v8297_v40, %v8296_v23  ;;  %v8199_v59 = vpop.f32.mrb[150].mxu1  ;;  %v8299_v30 = vpop.f32.mrb[150].mxu0  ;;  %8789 = vmatpush3.bf16.msra.mxu1 %v9340_v11  ;;  %v9343_v11 = vld [vmem:[%s10221_s26 + $0xe4] ss:$36 sps:$4 sm:$0xff]   ;;  %v9362_v6 = vld [vmem:[%s11550_s4 + $0x210] sm:$0xff]  }
 0x229   : > { %v8200_v35 = vpop.f32.mrb[151].mxu1  ;;  %v8300_v20 = vpop.f32.mrb[151].mxu0  ;;  %8790 = vmatprep.subr.bf16.mxu1 %v9354_v47  ;;  %v9346_v47 = vld [vmem:[%s10221_s26 + $0xa4] ss:$36 sps:$4 sm:$0xff]  }
 0x22a   : > { %v3499_v44 = vadd.f32 %v8198_v43, %v10654_v21  ;;  %v8201_v31 = vadd.f32 %v8200_v35, %v8199_v59  ;;  %v8301_v61 = vadd.f32 %v8300_v20, %v8299_v30  ;;  %v9347_v21 = vld [vmem:[%s11550_s4 + $0x208] sm:$0xff]   ;;  %v9384_v40 = vld [vmem:[%s11550_s4 + $0x1e0] sm:$0xff]  }
 0x22b   : > { %5668 = vmatmul.mubr.bf16.gmra.mrb[0].mxu1 %v9326_v52  ;;  %5813 = vmatmul.mubr.bf16.vlgmr.msra.gmra.mrb[0].mxu0 %v9329_v45  ;;  %v9393_v59 = vld [vmem:[%s11550_s4 + $0x1e8] sm:$0xff]  }
 0x22c   : > { %v10886_v8 = vadd.f32 %v8298_v29, %v3499_v44  ;;  %v3502_v15 = vadd.f32 %v8201_v31, %v10671_v10  ;;  %8916 = vmatpush3.bf16.msra.mxu0 %v9332_v5  ;;  %5675 = vmatprep.mubr.bf16.mxu1 %v9335_v18  ;;  %v9370_v10 = vld [vmem:[%s11550_s4 + $0x198] sm:$0xff]   ;;  %v9385_v29 = vld [vmem:[%s11550_s4 + $0x1a0] sm:$0xff]  }
 0x22d   : > { %5820 = vmatprep.mubr.bf16.mxu0 %v9338_v3  ;;  %8917 = vmatprep.subr.bf16.mxu0 %v9588_v34  ;;  %v9341_v31 = vld [vmem:[%s10221_s26 + $0xe0] ss:$36 sps:$4 sm:$0xff]  }
 0x22e   : > { %v10893_v13 = vadd.f32 %v8301_v61, %v3502_v15  ;;  %v8202_v22 = vpop.f32.mrb[152].mxu1  ;;  %v8302_v53 = vpop.f32.mrb[152].mxu0  ;;  %8791 = vmatpush3.bf16.msra.mxu1 %v9355_v58  ;;  %v9344_v61 = vld [vmem:[%s10221_s26 + $0xa0] ss:$36 sps:$4 sm:$0xff]  }
 0x22f   : > { %v8203_v55 = vpop.f32.mrb[153].mxu1  ;;  %v8303_v63 = vpop.f32.mrb[153].mxu0  ;;  %8792 = vmatprep.subr.bf16.mxu1 %v9369_v48 }
 0x230   : > { %v8204_v36 = vadd.f32 %v8203_v55, %v8202_v22  ;;  %v8304_v24 = vadd.f32 %v8303_v63, %v8302_v53  ;;  %v8205_v2 = vpop.f32.mrb[154].mxu1  ;;  %v8305_v17 = vpop.f32.mrb[154].mxu0  ;;  %8918 = vmatpush3.bf16.msra.mxu0 %v9347_v21  ;;  %v9350_v22 = vld [vmem:[%s10221_s26 + $0x12c] ss:$36 sps:$4 sm:$0xff]   ;;  %v9386_v63 = vld [vmem:[%s11550_s4 + $0x220] sm:$0xff]  }
 0x231   : > { %v8206_v41 = vpop.f32.mrb[155].mxu1  ;;  %v8306_v23 = vpop.f32.mrb[155].mxu0  ;;  %8919 = vmatprep.subr.bf16.mxu0 %v9588_v34  ;;  %v9353_v53 = vld [vmem:[%s10221_s26 + $0xec] ss:$36 sps:$4 sm:$0xff]  }
 0x232   : > { %v3507_v52 = vadd.f32 %v8204_v36, %v10696_v46  ;;  %v8207_v45 = vadd.f32 %v8206_v41, %v8205_v2  ;;  %v8307_v43 = vadd.f32 %v8306_v23, %v8305_v17  ;;  %8793 = vmatpush3.bf16.msra.mxu1 %v9370_v10  ;;  %v9371_v46 = vld [vmem:[%s11550_s4 + $0x218] sm:$0xff]   ;;  %v9409_v2 = vld [vmem:[%s11550_s4 + $0x1b0] sm:$0xff]  }
 0x233   : > { %5676 = vmatmul.mubr.bf16.gmra.mrb[4].mxu1 %v9333_v19  ;;  %5821 = vmatmul.mubr.bf16.gmra.mrb[4].mxu0 %v9336_v25  ;;  %v9408_v19 = vld [vmem:[%s11550_s4 + $0x1f0] sm:$0xff]   ;;  %v9423_v17 = vld [vmem:[%s11550_s4 + $0x1f8] sm:$0xff]  }
 0x234   : > { %v10916_v30 = vadd.f32 %v8304_v24, %v3507_v52  ;;  %v3510_v5 = vadd.f32 %v8207_v45, %v10713_v12  ;;  %5683 = vmatprep.mubr.bf16.mxu1 %v9343_v11  ;;  %5828 = vmatprep.mubr.bf16.mxu0 %v9346_v47  ;;  %v9400_v12 = vld [vmem:[%s11550_s4 + $0x1a8] sm:$0xff]  }
 0x235   : > { %8920 = vmatpush3.bf16.msra.mxu0 %v9362_v6  ;;  %8794 = vmatprep.subr.bf16.mxu1 %v9384_v40  ;;  %v9401_v47 = vld [vmem:[%s11550_s4 + $0x228] sm:$0xff]  }
 0x236   : > { %v10922_v18 = vadd.f32 %v8307_v43, %v3510_v5  ;;  %v8208_v35 = vpop.f32.mrb[156].mxu1  ;;  %v8308_v20 = vpop.f32.mrb[156].mxu0  ;;  %8921 = vmatprep.subr.bf16.mxu0 %v9588_v34  ;;  %8795 = vmatpush3.bf16.msra.mxu1 %v9385_v29  ;;  %v9348_v45 = vld [vmem:[%s10221_s26 + $0x128] ss:$36 sps:$4 sm:$0xff]  }
 0x237   : > { %v8209_v3 = vpop.f32.mrb[157].mxu1  ;;  %v8309_v44 = vpop.f32.mrb[157].mxu0  ;;  %8796 = vmatprep.subr.bf16.mxu1 %v9393_v59  ;;  %v9351_v43 = vld [vmem:[%s10221_s26 + $0xe8] ss:$36 sps:$4 sm:$0xff]  }
 0x238   : > { %v8210_v58 = vadd.f32 %v8209_v3, %v8208_v35  ;;  %v8310_v48 = vadd.f32 %v8309_v44, %v8308_v20  ;;  %v8211_v15 = vpop.f32.mrb[158].mxu1  ;;  %v8311_v21 = vpop.f32.mrb[158].mxu0  ;;  %v9358_v35 = vld [vmem:[%s10221_s26 + $0x174] ss:$36 sps:$4 sm:$0xff]  }
 0x239   : > { %v8212_v10 = vpop.f32.mrb[159].mxu1  ;;  %v8312_v55 = vpop.f32.mrb[159].mxu0  ;;  %8922 = vmatpush3.bf16.msra.mxu0 %v9371_v46  ;;  %v9361_v20 = vld [vmem:[%s10221_s26 + $0x134] ss:$36 sps:$4 sm:$0xff]  }
 0x23a   : > { %v3515_v25 = vadd.f32 %v8210_v58, %v10736_v14  ;;  %v8213_v36 = vadd.f32 %v8212_v10, %v8211_v15  ;;  %v8313_v24 = vadd.f32 %v8312_v55, %v8311_v21  ;;  %8923 = vmatprep.subr.bf16.mxu0 %v9588_v34  ;;  %8797 = vmatpush3.bf16.msra.mxu1 %v9400_v12  ;;  %v9416_v44 = vld [vmem:[%s11550_s4 + $0x230] sm:$0xff]  }
 0x23b   : > { %5684 = vmatmul.mubr.bf16.gmra.mrb[8].mxu1 %v9341_v31  ;;  %5829 = vmatmul.mubr.bf16.gmra.mrb[8].mxu0 %v9344_v61 }
 0x23c   : > { %v10946_v11 = vadd.f32 %v8310_v48, %v3515_v25  ;;  %v3518_v14 = vadd.f32 %v8213_v36, %v10748_v38  ;;  %5691 = vmatprep.mubr.bf16.mxu1 %v9350_v22  ;;  %5836 = vmatprep.mubr.bf16.mxu0 %v9353_v53  ;;  %v9424_v38 = vld [vmem:[%s11550_s4 + $0x1b8] sm:$0xff]  }
 0x23d   : > { %8924 = vmatpush3.bf16.msra.mxu0 %v9386_v63  ;;  %8798 = vmatprep.subr.bf16.mxu1 %v9408_v19  ;;  %v9356_v63 = vld [vmem:[%s10221_s26 + $0x170] ss:$36 sps:$4 sm:$0xff]  }
 0x23e   : > { %v10952_v41 = vadd.f32 %v8313_v24, %v3518_v14  ;;  %v8214_v23 = vpop.f32.mrb[160].mxu1  ;;  %v8314_v6 = vpop.f32.mrb[160].mxu0  ;;  %8925 = vmatprep.subr.bf16.mxu0 %v9588_v34  ;;  %8799 = vmatpush3.bf16.msra.mxu1 %v9409_v2  ;;  %v9359_v19 = vld [vmem:[%s10221_s26 + $0x130] ss:$36 sps:$4 sm:$0xff]   ;;  %v9365_v2 = vld [vmem:[%s10221_s26 + $0x1bc] ss:$36 sps:$4 sm:$0xff]  }
 0x23f   : > { %v8215_v40 = vpop.f32.mrb[161].mxu1  ;;  %v8315_v52 = vpop.f32.mrb[161].mxu0  ;;  %8800 = vmatprep.subr.bf16.mxu1 %v9423_v17  ;;  %v9368_v17 = vld [vmem:[%s10221_s26 + $0x17c] ss:$36 sps:$4 sm:$0xff]  }
 0x240   : > { %v8216_v29 = vadd.f32 %v8215_v40, %v8214_v23  ;;  %v8316_v59 = vadd.f32 %v8315_v52, %v8314_v6  ;;  %v8217_v5 = vpop.f32.mrb[162].mxu1  ;;  %v8317_v46 = vpop.f32.mrb[162].mxu0 }
 0x241   : > { %v8218_v12 = vpop.f32.mrb[163].mxu1  ;;  %v8318_v3 = vpop.f32.mrb[163].mxu0  ;;  %8926 = vmatpush3.bf16.msra.mxu0 %v9401_v47 }
 0x242   : > { %v3523_v31 = vadd.f32 %v8216_v29, %v10757_v57  ;;  %v8219_v61 = vadd.f32 %v8218_v12, %v8217_v5  ;;  %v8319_v58 = vadd.f32 %v8318_v3, %v8317_v46  ;;  %8927 = vmatprep.subr.bf16.mxu0 %v9588_v34  ;;  %8801 = vmatpush3.bf16.msra.mxu1 %v9424_v38  ;;  %v9431_v57 = vld [vmem:[%s11550_s4 + $0x238] sm:$0xff]  }
 0x243   : > { %5692 = vmatmul.mubr.bf16.gmra.mrb[12].mxu1 %v9348_v45  ;;  %5837 = vmatmul.mubr.bf16.gmra.mrb[12].mxu0 %v9351_v43  ;;  %v9363_v46 = vld [vmem:[%s10221_s26 + $0x1b8] ss:$36 sps:$4 sm:$0xff]  }
 0x244   : > { %v10967_v48 = vadd.f32 %v8316_v59, %v3523_v31  ;;  %v3526_v15 = vadd.f32 %v8219_v61, %v10761_v27  ;;  %5699 = vmatprep.mubr.bf16.mxu1 %v9358_v35  ;;  %5844 = vmatprep.mubr.bf16.mxu0 %v9361_v20  ;;  %v9377_v31 = vld [vmem:[%s10221_s26 + $0x1c4] ss:$36 sps:$4 sm:$0xff]  }
 0x245   : > { %8928 = vmatpush3.bf16.msra.mxu0 %v9416_v44  ;;  %v9374_v44 = vld [vmem:[%s10221_s26 + $0x204] ss:$36 sps:$4 sm:$0xff]  }
 0x246   : > { %v10973_v21 = vadd.f32 %v8319_v58, %v3526_v15  ;;  %v8220_v22 = vpop.f32.mrb[164].mxu1  ;;  %v8320_v53 = vpop.f32.mrb[164].mxu0  ;;  %8929 = vmatprep.subr.bf16.mxu0 %v9588_v34 }
 0x247   : > { %v8221_v10 = vpop.f32.mrb[165].mxu1  ;;  %v8321_v55 = vpop.f32.mrb[165].mxu0 }
 0x248   : > { %v8222_v27 = vadd.f32 %v8221_v10, %v8220_v22  ;;  %v8322_v25 = vadd.f32 %v8321_v55, %v8320_v53  ;;  %v8223_v36 = vpop.f32.mrb[166].mxu1  ;;  %v8323_v24 = vpop.f32.mrb[166].mxu0 }
 0x249   : > { %v8224_v14 = vpop.f32.mrb[167].mxu1  ;;  %v8324_v47 = vpop.f32.mrb[167].mxu0  ;;  %8930 = vmatpush3.bf16.msra.mxu0 %v9431_v57 }
 0x24a   : > { %v3531_v23 = vadd.f32 %v8222_v27, %v10767_v39  ;;  %v8225_v6 = vadd.f32 %v8224_v14, %v8223_v36  ;;  %v8325_v38 = vadd.f32 %v8324_v47, %v8323_v24  ;;  %v9366_v39 = vld [vmem:[%s10221_s26 + $0x178] ss:$36 sps:$4 sm:$0xff]   ;;  %v9380_v14 = vld [vmem:[%s10221_s26 + $0x24c] ss:$36 sps:$4 sm:$0xff]  }
 0x24b   : > { %5700 = vmatmul.mubr.bf16.gmra.mrb[16].mxu1 %v9356_v63  ;;  %5845 = vmatmul.mubr.bf16.gmra.mrb[16].mxu0 %v9359_v19  ;;  %v9383_v47 = vld [vmem:[%s10221_s26 + $0x20c] ss:$36 sps:$4 sm:$0xff]  }
 0x24c   : > { %v10981_v40 = vadd.f32 %v8322_v25, %v3531_v23  ;;  %v3534_v52 = vadd.f32 %v8225_v6, %v10771_v4  ;;  %5707 = vmatprep.mubr.bf16.mxu1 %v9365_v2  ;;  %5852 = vmatprep.mubr.bf16.mxu0 %v9368_v17  ;;  %v9372_v25 = vld [vmem:[%s10221_s26 + $0x200] ss:$36 sps:$4 sm:$0xff]  }
 0x24e   : > { %v10984_v45 = vadd.f32 %v8325_v38, %v3534_v52  ;;  %v8226_v43 = vpop.f32.mrb[168].mxu1  ;;  %v8326_v29 = vpop.f32.mrb[168].mxu0 }
 0x24f   : > { %v8227_v59 = vpop.f32.mrb[169].mxu1  ;;  %v8327_v5 = vpop.f32.mrb[169].mxu0 }
 0x250   : > { %v8228_v35 = vadd.f32 %v8227_v59, %v8226_v43  ;;  %v8328_v20 = vadd.f32 %v8327_v5, %v8326_v29  ;;  %v8229_v12 = vpop.f32.mrb[170].mxu1  ;;  %v8329_v3 = vpop.f32.mrb[170].mxu0 }
 0x251   : > { %v8230_v61 = vpop.f32.mrb[171].mxu1  ;;  %v8330_v58 = vpop.f32.mrb[171].mxu0 }
 0x252   : > { %v3539_v4 = vadd.f32 %v8228_v35, %v10777_v51  ;;  %v8231_v15 = vadd.f32 %v8230_v61, %v8229_v12  ;;  %v8331_v57 = vadd.f32 %v8330_v58, %v8329_v3  ;;  %v9375_v51 = vld [vmem:[%s10221_s26 + $0x1c0] ss:$36 sps:$4 sm:$0xff]   ;;  %v9389_v61 = vld [vmem:[%s10221_s26 + $0x294] ss:$36 sps:$4 sm:$0xff]  }
 0x253   : > { %5708 = vmatmul.mubr.bf16.gmra.mrb[20].mxu1 %v9363_v46  ;;  %5853 = vmatmul.mubr.bf16.gmra.mrb[20].mxu0 %v9366_v39  ;;  %v9392_v58 = vld [vmem:[%s10221_s26 + $0x254] ss:$36 sps:$4 sm:$0xff]  }
 0x254   : > { %v10991_v22 = vadd.f32 %v8328_v20, %v3539_v4  ;;  %v3542_v53 = vadd.f32 %v8231_v15, %v10781_v42  ;;  %5715 = vmatprep.mubr.bf16.mxu1 %v9374_v44  ;;  %5860 = vmatprep.mubr.bf16.mxu0 %v9377_v31  ;;  %v9378_v20 = vld [vmem:[%s10221_s26 + $0x248] ss:$36 sps:$4 sm:$0xff]  }
 0x256   : > { %v10994_v10 = vadd.f32 %v8331_v57, %v3542_v53  ;;  %v8232_v55 = vpop.f32.mrb[172].mxu1  ;;  %v8332_v63 = vpop.f32.mrb[172].mxu0 }
 0x257   : > { %v8233_v19 = vpop.f32.mrb[173].mxu1  ;;  %v8333_v27 = vpop.f32.mrb[173].mxu0 }
 0x258   : > { %v8234_v36 = vadd.f32 %v8233_v19, %v8232_v55  ;;  %v8334_v24 = vadd.f32 %v8333_v27, %v8332_v63  ;;  %v8235_v2 = vpop.f32.mrb[174].mxu1  ;;  %v8335_v17 = vpop.f32.mrb[174].mxu0 }
 0x259   : > { %v8236_v23 = vpop.f32.mrb[175].mxu1  ;;  %v8336_v6 = vpop.f32.mrb[175].mxu0 }
 0x25a   : > { %v3547_v42 = vadd.f32 %v8234_v36, %v10787_v60  ;;  %v8237_v38 = vadd.f32 %v8236_v23, %v8235_v2  ;;  %v8337_v52 = vadd.f32 %v8336_v6, %v8335_v17  ;;  %v9381_v60 = vld [vmem:[%s10221_s26 + $0x208] ss:$36 sps:$4 sm:$0xff]   ;;  %v9396_v23 = vld [vmem:[%s10221_s26 + $0x2dc] ss:$36 sps:$4 sm:$0xff]  }
 0x25b   : > { %5716 = vmatmul.mubr.bf16.gmra.mrb[24].mxu1 %v9372_v25  ;;  %5861 = vmatmul.mubr.bf16.gmra.mrb[24].mxu0 %v9375_v51  ;;  %v9399_v6 = vld [vmem:[%s10221_s26 + $0x29c] ss:$36 sps:$4 sm:$0xff]  }
 0x25c   : > { %v11001_v43 = vadd.f32 %v8334_v24, %v3547_v42  ;;  %v3550_v29 = vadd.f32 %v8237_v38, %v10791_v0  ;;  %5723 = vmatprep.mubr.bf16.mxu1 %v9380_v14  ;;  %5868 = vmatprep.mubr.bf16.mxu0 %v9383_v47  ;;  %v9387_v24 = vld [vmem:[%s10221_s26 + $0x290] ss:$36 sps:$4 sm:$0xff]  }
 0x25e   : > { %v11004_v59 = vadd.f32 %v8337_v52, %v3550_v29  ;;  %v8238_v5 = vpop.f32.mrb[176].mxu1  ;;  %v8338_v46 = vpop.f32.mrb[176].mxu0 }
 0x25f   : > { %v8239_v39 = vpop.f32.mrb[177].mxu1  ;;  %v8339_v35 = vpop.f32.mrb[177].mxu0 }
 0x260   : > { %v8240_v12 = vadd.f32 %v8239_v39, %v8238_v5  ;;  %v8340_v3 = vadd.f32 %v8339_v35, %v8338_v46  ;;  %v8241_v44 = vpop.f32.mrb[178].mxu1  ;;  %v8341_v31 = vpop.f32.mrb[178].mxu0 }
 0x261   : > { %v8242_v4 = vpop.f32.mrb[179].mxu1  ;;  %v8342_v15 = vpop.f32.mrb[179].mxu0 }
 0x262   : > { %v3555_v0 = vadd.f32 %v8240_v12, %v10796_v49  ;;  %v8243_v57 = vadd.f32 %v8242_v4, %v8241_v44  ;;  %v8343_v53 = vadd.f32 %v8342_v15, %v8341_v31  ;;  %v9390_v49 = vld [vmem:[%s10221_s26 + $0x250] ss:$36 sps:$4 sm:$0xff]   ;;  %v9404_v4 = vld [vmem:[%s10221_s26 + $0x324] ss:$36 sps:$4 sm:$0xff]  }
 0x263   : > { %5724 = vmatmul.mubr.bf16.gmra.mrb[28].mxu1 %v9378_v20  ;;  %5869 = vmatmul.mubr.bf16.gmra.mrb[28].mxu0 %v9381_v60  ;;  %v9407_v15 = vld [vmem:[%s10221_s26 + $0x2e4] ss:$36 sps:$4 sm:$0xff]  }
 0x264   : > { %v11011_v55 = vadd.f32 %v8340_v3, %v3555_v0  ;;  %v3558_v63 = vadd.f32 %v8243_v57, %v10801_v32  ;;  %5731 = vmatprep.mubr.bf16.mxu1 %v9389_v61  ;;  %5876 = vmatprep.mubr.bf16.mxu0 %v9392_v58  ;;  %v9394_v3 = vld [vmem:[%s10221_s26 + $0x2d8] ss:$36 sps:$4 sm:$0xff]  }
 0x266   : > { %v11014_v19 = vadd.f32 %v8343_v53, %v3558_v63  ;;  %v8244_v27 = vpop.f32.mrb[180].mxu1  ;;  %v8344_v25 = vpop.f32.mrb[180].mxu0 }
 0x267   : > { %v8245_v51 = vpop.f32.mrb[181].mxu1  ;;  %v8345_v36 = vpop.f32.mrb[181].mxu0 }
 0x268   : > { %v8246_v2 = vadd.f32 %v8245_v51, %v8244_v27  ;;  %v8346_v17 = vadd.f32 %v8345_v36, %v8344_v25  ;;  %v8247_v14 = vpop.f32.mrb[182].mxu1  ;;  %v8347_v47 = vpop.f32.mrb[182].mxu0 }
 0x269   : > { %v8248_v42 = vpop.f32.mrb[183].mxu1  ;;  %v8348_v38 = vpop.f32.mrb[183].mxu0 }
 0x26a   : > { %v3563_v32 = vadd.f32 %v8246_v2, %v10806_v37  ;;  %v8249_v52 = vadd.f32 %v8248_v42, %v8247_v14  ;;  %v8349_v29 = vadd.f32 %v8348_v38, %v8347_v47  ;;  %v9397_v37 = vld [vmem:[%s10221_s26 + $0x298] ss:$36 sps:$4 sm:$0xff]   ;;  %v9412_v42 = vld [vmem:[%s10221_s26 + $0x36c] ss:$36 sps:$4 sm:$0xff]  }
 0x26b   : > { %5732 = vmatmul.mubr.bf16.gmra.mrb[32].mxu1 %v9387_v24  ;;  %5877 = vmatmul.mubr.bf16.gmra.mrb[32].mxu0 %v9390_v49  ;;  %v9415_v38 = vld [vmem:[%s10221_s26 + $0x32c] ss:$36 sps:$4 sm:$0xff]  }
 0x26c   : > { %v11021_v5 = vadd.f32 %v8346_v17, %v3563_v32  ;;  %v3566_v46 = vadd.f32 %v8249_v52, %v10811_v33  ;;  %5739 = vmatprep.mubr.bf16.mxu1 %v9396_v23  ;;  %5884 = vmatprep.mubr.bf16.mxu0 %v9399_v6  ;;  %v9402_v17 = vld [vmem:[%s10221_s26 + $0x320] ss:$36 sps:$4 sm:$0xff]  }
 0x26e   : > { %v11024_v39 = vadd.f32 %v8349_v29, %v3566_v46  ;;  %v8250_v35 = vpop.f32.mrb[184].mxu1  ;;  %v8350_v20 = vpop.f32.mrb[184].mxu0 }
 0x26f   : > { %v8251_v60 = vpop.f32.mrb[185].mxu1  ;;  %v8351_v12 = vpop.f32.mrb[185].mxu0 }
 0x270   : > { %v8252_v44 = vadd.f32 %v8251_v60, %v8250_v35  ;;  %v8352_v31 = vadd.f32 %v8351_v12, %v8350_v20  ;;  %v8253_v61 = vpop.f32.mrb[186].mxu1  ;;  %v8353_v58 = vpop.f32.mrb[186].mxu0 }
 0x271   : > { %v8254_v0 = vpop.f32.mrb[187].mxu1  ;;  %v8354_v57 = vpop.f32.mrb[187].mxu0 }
 0x272   : > { %v3571_v33 = vadd.f32 %v8252_v44, %v10816_v62  ;;  %v8255_v53 = vadd.f32 %v8254_v0, %v8253_v61  ;;  %v8355_v63 = vadd.f32 %v8354_v57, %v8353_v58  ;;  %v9405_v62 = vld [vmem:[%s10221_s26 + $0x2e0] ss:$36 sps:$4 sm:$0xff]   ;;  %v9419_v0 = vld [vmem:[%s10221_s26 + $0x3b4] ss:$36 sps:$4 sm:$0xff]  }
 0x273   : > { %5740 = vmatmul.mubr.bf16.gmra.mrb[36].mxu1 %v9394_v3  ;;  %5885 = vmatmul.mubr.bf16.gmra.mrb[36].mxu0 %v9397_v37  ;;  %v9422_v57 = vld [vmem:[%s10221_s26 + $0x374] ss:$36 sps:$4 sm:$0xff]  }
 0x274   : > { %v11031_v27 = vadd.f32 %v8352_v31, %v3571_v33  ;;  %v3574_v25 = vadd.f32 %v8255_v53, %v10821_v26  ;;  %5747 = vmatprep.mubr.bf16.mxu1 %v9404_v4  ;;  %5892 = vmatprep.mubr.bf16.mxu0 %v9407_v15  ;;  %v9410_v31 = vld [vmem:[%s10221_s26 + $0x368] ss:$36 sps:$4 sm:$0xff]  }
 0x276   : > { %v11034_v51 = vadd.f32 %v8355_v63, %v3574_v25  ;;  %v8256_v36 = vpop.f32.mrb[188].mxu1  ;;  %v8356_v24 = vpop.f32.mrb[188].mxu0 }
 0x277   : > { %v8257_v49 = vpop.f32.mrb[189].mxu1  ;;  %v8357_v2 = vpop.f32.mrb[189].mxu0 }
 0x278   : > { %v8258_v14 = vadd.f32 %v8257_v49, %v8256_v36  ;;  %v8358_v47 = vadd.f32 %v8357_v2, %v8356_v24  ;;  %v8259_v23 = vpop.f32.mrb[190].mxu1  ;;  %v8359_v6 = vpop.f32.mrb[190].mxu0 }
 0x279   : > { %v8260_v32 = vpop.f32.mrb[191].mxu1  ;;  %v8360_v52 = vpop.f32.mrb[191].mxu0 }
 0x27a   : > { %v3579_v26 = vadd.f32 %v8258_v14, %v10826_v16  ;;  %v8261_v29 = vadd.f32 %v8260_v32, %v8259_v23  ;;  %v8361_v46 = vadd.f32 %v8360_v52, %v8359_v6  ;;  %v9413_v16 = vld [vmem:[%s10221_s26 + $0x328] ss:$36 sps:$4 sm:$0xff]   ;;  %v9427_v32 = vld [vmem:[%s10221_s26 + $0x3fc] ss:$36 sps:$4 sm:$0xff]  }
 0x27b   : > { %5748 = vmatmul.mubr.bf16.gmra.mrb[40].mxu1 %v9402_v17  ;;  %5893 = vmatmul.mubr.bf16.gmra.mrb[40].mxu0 %v9405_v62  ;;  %v9430_v52 = vld [vmem:[%s10221_s26 + $0x3bc] ss:$36 sps:$4 sm:$0xff]  }
 0x27c   : > { %v11041_v35 = vadd.f32 %v8358_v47, %v3579_v26  ;;  %v3582_v20 = vadd.f32 %v8261_v29, %v10831_v9  ;;  %5755 = vmatprep.mubr.bf16.mxu1 %v9412_v42  ;;  %5900 = vmatprep.mubr.bf16.mxu0 %v9415_v38  ;;  %v9420_v47 = vld [vmem:[%s10221_s26 + $0x370] ss:$36 sps:$4 sm:$0xff]  }
 0x27e   : > { %v11044_v60 = vadd.f32 %v8361_v46, %v3582_v20  ;;  %v8262_v12 = vpop.f32.mrb[192].mxu1  ;;  %v8362_v3 = vpop.f32.mrb[192].mxu0 }
 0x27f   : > { %v8263_v37 = vpop.f32.mrb[193].mxu1  ;;  %v8363_v44 = vpop.f32.mrb[193].mxu0 }
 0x280   : > { %v8264_v61 = vadd.f32 %v8263_v37, %v8262_v12  ;;  %v8364_v58 = vadd.f32 %v8363_v44, %v8362_v3  ;;  %v8265_v4 = vpop.f32.mrb[194].mxu1  ;;  %v8365_v15 = vpop.f32.mrb[194].mxu0 }
 0x281   : > { %v8266_v33 = vpop.f32.mrb[195].mxu1  ;;  %v8366_v53 = vpop.f32.mrb[195].mxu0 }
 0x282   : > { %v3587_v9 = vadd.f32 %v8264_v61, %v10836_v1  ;;  %v8267_v63 = vadd.f32 %v8266_v33, %v8265_v4  ;;  %v8367_v25 = vadd.f32 %v8366_v53, %v8365_v15  ;;  %v9417_v1 = vld [vmem:[%s10221_s26 + $0x3b0] ss:$36 sps:$4 sm:$0xff]   ;;  %v9425_v61 = vld [vmem:[%s10221_s26 + $0x3f8] ss:$36 sps:$4 sm:$0xff]   ;;  %v9434_v33 = vld [vmem:[%s10221_s26 + $0x404] ss:$36 sps:$4 sm:$0xff]  }
 0x283   : > { %5756 = vmatmul.mubr.bf16.gmra.mrb[44].mxu1 %v9410_v31  ;;  %5901 = vmatmul.mubr.bf16.gmra.mrb[44].mxu0 %v9413_v16  ;;  %v9437_v53 = vld [vmem:[%s10221_s26 + $0x1c] ss:$36 sps:$4 sm:$0xff]  }
 0x284   : > { %v11051_v36 = vadd.f32 %v8364_v58, %v3587_v9  ;;  %v3590_v24 = vadd.f32 %v8267_v63, %v10839_v54  ;;  %5763 = vmatprep.mubr.bf16.mxu1 %v9419_v0  ;;  %5908 = vmatprep.mubr.bf16.mxu0 %v9422_v57  ;;  %v9428_v58 = vld [vmem:[%s10221_s26 + $0x3b8] ss:$36 sps:$4 sm:$0xff]  }
 0x286   : > { %v11054_v49 = vadd.f32 %v8367_v25, %v3590_v24  ;;  %v8384_v2 = vpop.f32.mrb[196].mxu1  ;;  %v8484_v17 = vpop.f32.mrb[196].mxu0 }
 0x287   : > { %v8385_v62 = vpop.f32.mrb[197].mxu1  ;;  %v8485_v14 = vpop.f32.mrb[197].mxu0 }
 0x288   : > { %v8386_v23 = vadd.f32 %v8385_v62, %v8384_v2  ;;  %v11058_v6 = vadd.f32 %v8485_v14, %v8484_v17  ;;  %v8387_v42 = vpop.f32.mrb[198].mxu1  ;;  %v8487_v38 = vpop.f32.mrb[198].mxu0 }
 0x289   : > { %v8388_v26 = vpop.f32.mrb[199].mxu1  ;;  %v8488_v54 = vpop.f32.mrb[199].mxu0 }
 0x28a   : > { %v3773_v29 = vadd.f32 %v8386_v23, %v10845_v50  ;;  %v8389_v46 = vadd.f32 %v8388_v26, %v8387_v42  ;;  %v11063_v20 = vadd.f32 %v8488_v54, %v8487_v38  ;;  %v9432_v38 = vld [vmem:[%s10221_s26 + $0x400] ss:$36 sps:$4 sm:$0xff]  }
 0x28b   : > { %5764 = vmatmul.mubr.bf16.gmra.mrb[48].mxu1 %v9417_v1  ;;  %5909 = vmatmul.mubr.bf16.gmra.mrb[48].mxu0 %v9420_v47 }
 0x28c   : > { %v3776_v12 = vadd.f32 %v8389_v46, %v10848_v56  ;;  %5771 = vmatprep.mubr.bf16.mxu1 %v9427_v32  ;;  %5916 = vmatprep.mubr.bf16.mxu0 %v9430_v52  ;;  %v3883_v3 = vmax.f32 %v3773_v29, 0.0  ;;  %v9435_v32 = vld [vmem:[%s10221_s26 + $0x18] ss:$36 sps:$4 sm:$0xff]   ;;  %v9440_v46 = vld [vmem:[%s10221_s26 + $0x64] ss:$36 sps:$4 sm:$0xff]  }
 0x28e   : > { %v3884_v37 = vmax.f32 %v3776_v12, 0.0  ;;  %v8390_v44 = vpop.f32.mrb[200].mxu1  ;;  %v8490_v31 = vpop.f32.mrb[200].mxu0 }
 0x28f   : > { %v8391_v50 = vpop.f32.mrb[201].mxu1  ;;  %v8491_v16 = vpop.f32.mrb[201].mxu0 }
 0x290   : > { %v7499_v4 = vpack.c.bf16 %v3884_v37, %v3883_v3  ;;  %v8392_v56 = vadd.f32 %v8391_v50, %v8390_v44  ;;  %v11074_v15 = vadd.f32 %v8491_v16, %v8490_v31  ;;  %v8393_v0 = vpop.f32.mrb[202].mxu1  ;;  %v8493_v57 = vpop.f32.mrb[202].mxu0 }
 0x291   : > { %v8394_v9 = vpop.f32.mrb[203].mxu1  ;;  %v8494_v63 = vpop.f32.mrb[203].mxu0 }
 0x292   : > { %7500 = vst [vmem:[%s11070_s13] sm:$0xff] %v7499_v4   ;;  %v3781_v25 = vadd.f32 %v8392_v56, %v10861_v28  ;;  %v8395_v24 = vadd.f32 %v8394_v9, %v8393_v0  ;;  %v11080_v2 = vadd.f32 %v8494_v63, %v8493_v57  ;;  %v9438_v56 = vld [vmem:[%s10221_s26 + $0x60] ss:$36 sps:$4 sm:$0xff]   ;;  %v9444_v63 = vld [vmem:[%s10221_s26 + $0xac] ss:$36 sps:$4 sm:$0xff]  }
 0x293   : > { %5772 = vmatmul.mubr.bf16.gmra.mrb[52].mxu1 %v9425_v61  ;;  %5917 = vmatmul.mubr.bf16.gmra.mrb[52].mxu0 %v9428_v58  ;;  %v9441_v0 = vld [vmem:[%s10221_s26 + $0x20] ss:$36 sps:$4 sm:$0xff]  }
 0x294   : > { %v3784_v17 = vadd.f32 %v8395_v24, %v10870_v7  ;;  %5924 = vmatprep.mubr.bf16.mxu0 %v9434_v33  ;;  %5965 = vmatprep.mubr.bf16.mxu1 %v9437_v53  ;;  %v3885_v62 = vmax.f32 %v3781_v25, 0.0 }
 0x296   : > { %v3886_v14 = vmax.f32 %v3784_v17, 0.0  ;;  %v8396_v1 = vpop.f32.mrb[204].mxu1  ;;  %v8496_v47 = vpop.f32.mrb[204].mxu0 }
 0x297   : > { %v8397_v23 = vpop.f32.mrb[205].mxu1  ;;  %v8497_v42 = vpop.f32.mrb[205].mxu0 }
 0x298   : > { %v7504_v28 = vpack.c.bf16 %v3886_v14, %v3885_v62  ;;  %v8398_v52 = vadd.f32 %v8397_v23, %v8396_v1  ;;  %v11085_v26 = vadd.f32 %v8497_v42, %v8496_v47  ;;  %v8399_v54 = vpop.f32.mrb[206].mxu1  ;;  %v8499_v29 = vpop.f32.mrb[206].mxu0 }
 0x299   : > { %v8400_v7 = vpop.f32.mrb[207].mxu1  ;;  %v8500_v12 = vpop.f32.mrb[207].mxu0 }
 0x29a   : > { %7641 = vst [vmem:[%s11070_s13 + $0x8] sm:$0xff] %v7504_v28   ;;  %v3789_v3 = vadd.f32 %v8398_v52, %v10886_v8  ;;  %v8401_v37 = vadd.f32 %v8400_v7, %v8399_v54  ;;  %v11090_v44 = vadd.f32 %v8500_v12, %v8499_v29  ;;  %v9445_v52 = vld [vmem:[%s10221_s26 + $0x68] ss:$36 sps:$4 sm:$0xff]   ;;  %v9448_v12 = vld [vmem:[%s10221_s26 + $0xf4] ss:$36 sps:$4 sm:$0xff]  }
 0x29b   : > { %5925 = vmatmul.mubr.bf16.gmra.mrb[56].mxu0 %v9432_v38  ;;  %5966 = vmatmul.mubr.bf16.vlgmr.msra.gmra.mrb[56].mxu1 %v9435_v32 }
 0x29c   : > { %v3792_v31 = vadd.f32 %v8401_v37, %v10893_v13  ;;  %5973 = vmatprep.mubr.bf16.mxu1 %v9440_v46  ;;  %8931 = vmatprep.mubr.msk.bf16.mxu0 %vm9589_vm0, %v9588_v34  ;;  %v3887_v50 = vmax.f32 %v3789_v3, 0.0 }
 0x29e   : > { %v3888_v16 = vmax.f32 %v3792_v31, 0.0  ;;  %v8402_v61 = vpop.f32.mrb[208].mxu1  ;;  %v8502_v58 = vpop.f32.mrb[208].mxu0 }
 0x29f   : > { %v8403_v8 = vpop.f32.mrb[209].mxu1  ;;  %v8503_v4 = vpop.f32.mrb[209].mxu0 }
 0x2a0   : > { %v7509_v57 = vpack.c.bf16 %v3888_v16, %v3887_v50  ;;  %v8404_v33 = vadd.f32 %v8403_v8, %v8402_v61  ;;  %v11097_v53 = vadd.f32 %v8503_v4, %v8502_v58  ;;  %v8405_v13 = vpop.f32.mrb[210].mxu1  ;;  %v8505_v9 = vpop.f32.mrb[210].mxu0 }
 0x2a1   : > { %v8406_v25 = vpop.f32.mrb[211].mxu1  ;;  %v8506_v24 = vpop.f32.mrb[211].mxu0 }
 0x2a2   : > { %7642 = vst [vmem:[%s11070_s13 + $0x10] sm:$0xff] %v7509_v57   ;;  %v3797_v17 = vadd.f32 %v8404_v33, %v10916_v30  ;;  %v8407_v62 = vadd.f32 %v8406_v25, %v8405_v13  ;;  %v11102_v14 = vadd.f32 %v8506_v24, %v8505_v9  ;;  %v9442_v30 = vld [vmem:[%s10221_s26 + $0xa8] ss:$36 sps:$4 sm:$0xff]   ;;  %v9449_v33 = vld [vmem:[%s10221_s26 + $0xb0] ss:$36 sps:$4 sm:$0xff]  }
 0x2a3   : > { %5974 = vmatmul.mubr.bf16.gmra.mrb[60].mxu1 %v9438_v56  ;;  %8932 = vmatmul.mubr.bf16.vlgmr.msra.gmra.mrb[60].mxu0 %v9441_v0  ;;  %v9452_v24 = vld [vmem:[%s10221_s26 + $0x13c] ss:$36 sps:$4 sm:$0xff]  }
 0x2a4   : > { %v3800_v1 = vadd.f32 %v8407_v62, %v10922_v18  ;;  %5981 = vmatprep.mubr.bf16.mxu1 %v9444_v63  ;;  %8935 = vmatprep.mubr.msk.bf16.mxu0 %vm9589_vm0, %v9588_v34  ;;  %v3889_v47 = vmax.f32 %v3797_v17, 0.0 }
 0x2a6   : > { %v3890_v23 = vmax.f32 %v3800_v1, 0.0  ;;  %v8408_v42 = vpop.f32.mrb[212].mxu1  ;;  %v8508_v38 = vpop.f32.mrb[212].mxu0 }
 0x2a7   : > { %v8409_v32 = vpop.f32.mrb[213].mxu1  ;;  %v8509_v28 = vpop.f32.mrb[213].mxu0 }
 0x2a8   : > { %v7514_v54 = vpack.c.bf16 %v3890_v23, %v3889_v47  ;;  %v8410_v29 = vadd.f32 %v8409_v32, %v8408_v42  ;;  %v11109_v46 = vadd.f32 %v8509_v28, %v8508_v38  ;;  %v8411_v7 = vpop.f32.mrb[214].mxu1  ;;  %v8511_v18 = vpop.f32.mrb[214].mxu0 }
 0x2a9   : > { %v8412_v3 = vpop.f32.mrb[215].mxu1  ;;  %v8512_v37 = vpop.f32.mrb[215].mxu0 }
 0x2aa   : > { %7643 = vst [vmem:[%s11070_s13 + $0x18] sm:$0xff] %v7514_v54   ;;  %v3805_v31 = vadd.f32 %v8410_v29, %v10946_v11  ;;  %v8413_v50 = vadd.f32 %v8412_v3, %v8411_v7  ;;  %v11114_v16 = vadd.f32 %v8512_v37, %v8511_v18  ;;  %v9446_v11 = vld [vmem:[%s10221_s26 + $0xf0] ss:$36 sps:$4 sm:$0xff]   ;;  %v9453_v29 = vld [vmem:[%s10221_s26 + $0xf8] ss:$36 sps:$4 sm:$0xff]  }
 0x2ab   : > { %5982 = vmatmul.mubr.bf16.gmra.mrb[64].mxu1 %v9442_v30  ;;  %8936 = vmatmul.mubr.bf16.gmra.mrb[64].mxu0 %v9445_v52  ;;  %v9456_v37 = vld [vmem:[%s10221_s26 + $0x184] ss:$36 sps:$4 sm:$0xff]  }
 0x2ac   : > { %v3808_v61 = vadd.f32 %v8413_v50, %v10952_v41  ;;  %5989 = vmatprep.mubr.bf16.mxu1 %v9448_v12  ;;  %8939 = vmatprep.mubr.msk.bf16.mxu0 %vm9589_vm0, %v9588_v34  ;;  %v3891_v58 = vmax.f32 %v3805_v31, 0.0 }
 0x2ae   : > { %v3892_v8 = vmax.f32 %v3808_v61, 0.0  ;;  %v8414_v4 = vpop.f32.mrb[216].mxu1  ;;  %v8514_v56 = vpop.f32.mrb[216].mxu0 }
 0x2af   : > { %v8415_v0 = vpop.f32.mrb[217].mxu1  ;;  %v8515_v57 = vpop.f32.mrb[217].mxu0 }
 0x2b0   : > { %v7519_v13 = vpack.c.bf16 %v3892_v8, %v3891_v58  ;;  %v8416_v9 = vadd.f32 %v8415_v0, %v8414_v4  ;;  %v11121_v63 = vadd.f32 %v8515_v57, %v8514_v56  ;;  %v8417_v25 = vpop.f32.mrb[218].mxu1  ;;  %v8517_v41 = vpop.f32.mrb[218].mxu0 }
 0x2b1   : > { %v8418_v17 = vpop.f32.mrb[219].mxu1  ;;  %v8518_v62 = vpop.f32.mrb[219].mxu0 }
 0x2b2   : > { %7644 = vst [vmem:[%s11070_s13 + $0x20] sm:$0xff] %v7519_v13   ;;  %v3813_v1 = vadd.f32 %v8416_v9, %v10967_v48  ;;  %v8419_v47 = vadd.f32 %v8418_v17, %v8417_v25  ;;  %v11126_v23 = vadd.f32 %v8518_v62, %v8517_v41  ;;  %v9450_v48 = vld [vmem:[%s10221_s26 + $0x138] ss:$36 sps:$4 sm:$0xff]   ;;  %v9457_v9 = vld [vmem:[%s10221_s26 + $0x140] ss:$36 sps:$4 sm:$0xff]  }
 0x2b3   : > { %5990 = vmatmul.mubr.bf16.gmra.mrb[68].mxu1 %v9446_v11  ;;  %8940 = vmatmul.mubr.bf16.gmra.mrb[68].mxu0 %v9449_v33  ;;  %v9460_v62 = vld [vmem:[%s10221_s26 + $0x1cc] ss:$36 sps:$4 sm:$0xff]  }
 0x2b4   : > { %v3816_v42 = vadd.f32 %v8419_v47, %v10973_v21  ;;  %5997 = vmatprep.mubr.bf16.mxu1 %v9452_v24  ;;  %8943 = vmatprep.mubr.msk.bf16.mxu0 %vm9589_vm0, %v9588_v34  ;;  %v3893_v38 = vmax.f32 %v3813_v1, 0.0 }
 0x2b6   : > { %v3894_v32 = vmax.f32 %v3816_v42, 0.0  ;;  %v8420_v28 = vpop.f32.mrb[220].mxu1  ;;  %v8520_v30 = vpop.f32.mrb[220].mxu0 }
 0x2b7   : > { %v8421_v52 = vpop.f32.mrb[221].mxu1  ;;  %v8521_v54 = vpop.f32.mrb[221].mxu0 }
 0x2b8   : > { %v7524_v7 = vpack.c.bf16 %v3894_v32, %v3893_v38  ;;  %v8422_v18 = vadd.f32 %v8421_v52, %v8420_v28  ;;  %v11133_v12 = vadd.f32 %v8521_v54, %v8520_v30  ;;  %v8423_v3 = vpop.f32.mrb[222].mxu1  ;;  %v8523_v21 = vpop.f32.mrb[222].mxu0 }
 0x2b9   : > { %v8424_v31 = vpop.f32.mrb[223].mxu1  ;;  %v8524_v50 = vpop.f32.mrb[223].mxu0 }
 0x2ba   : > { %7645 = vst [vmem:[%s11070_s13 + $0x28] sm:$0xff] %v7524_v7   ;;  %v3821_v61 = vadd.f32 %v8422_v18, %v10981_v40  ;;  %v8425_v58 = vadd.f32 %v8424_v31, %v8423_v3  ;;  %v11138_v8 = vadd.f32 %v8524_v50, %v8523_v21  ;;  %v9454_v40 = vld [vmem:[%s10221_s26 + $0x180] ss:$36 sps:$4 sm:$0xff]   ;;  %v9461_v18 = vld [vmem:[%s10221_s26 + $0x188] ss:$36 sps:$4 sm:$0xff]  }
 0x2bb   : > { %5998 = vmatmul.mubr.bf16.gmra.mrb[72].mxu1 %v9450_v48  ;;  %8944 = vmatmul.mubr.bf16.gmra.mrb[72].mxu0 %v9453_v29  ;;  %v9464_v50 = vld [vmem:[%s10221_s26 + $0x214] ss:$36 sps:$4 sm:$0xff]  }
 0x2bc   : > { %v3824_v4 = vadd.f32 %v8425_v58, %v10984_v45  ;;  %6005 = vmatprep.mubr.bf16.mxu1 %v9456_v37  ;;  %8947 = vmatprep.mubr.msk.bf16.mxu0 %vm9589_vm0, %v9588_v34  ;;  %v3895_v56 = vmax.f32 %v3821_v61, 0.0 }
 0x2be   : > { %v3896_v0 = vmax.f32 %v3824_v4, 0.0  ;;  %v8426_v57 = vpop.f32.mrb[224].mxu1  ;;  %v8526_v11 = vpop.f32.mrb[224].mxu0 }
 0x2bf   : > { %v8427_v33 = vpop.f32.mrb[225].mxu1  ;;  %v8527_v13 = vpop.f32.mrb[225].mxu0 }
 0x2c0   : > { %v7529_v25 = vpack.c.bf16 %v3896_v0, %v3895_v56  ;;  %v8428_v41 = vadd.f32 %v8427_v33, %v8426_v57  ;;  %v11145_v24 = vadd.f32 %v8527_v13, %v8526_v11  ;;  %v8429_v17 = vpop.f32.mrb[226].mxu1  ;;  %v8529_v45 = vpop.f32.mrb[226].mxu0 }
 0x2c1   : > { %v8430_v1 = vpop.f32.mrb[227].mxu1  ;;  %v8530_v47 = vpop.f32.mrb[227].mxu0 }
 0x2c2   : > { %7646 = vst [vmem:[%s11070_s13 + $0x30] sm:$0xff] %v7529_v25   ;;  %v3829_v42 = vadd.f32 %v8428_v41, %v10991_v22  ;;  %v8431_v38 = vadd.f32 %v8430_v1, %v8429_v17  ;;  %v11150_v32 = vadd.f32 %v8530_v47, %v8529_v45  ;;  %v9458_v22 = vld [vmem:[%s10221_s26 + $0x1c8] ss:$36 sps:$4 sm:$0xff]   ;;  %v9465_v41 = vld [vmem:[%s10221_s26 + $0x1d0] ss:$36 sps:$4 sm:$0xff]  }
 0x2c3   : > { %6006 = vmatmul.mubr.bf16.gmra.mrb[76].mxu1 %v9454_v40  ;;  %8948 = vmatmul.mubr.bf16.gmra.mrb[76].mxu0 %v9457_v9  ;;  %v9468_v47 = vld [vmem:[%s10221_s26 + $0x25c] ss:$36 sps:$4 sm:$0xff]  }
 0x2c4   : > { %v3832_v28 = vadd.f32 %v8431_v38, %v10994_v10  ;;  %6013 = vmatprep.mubr.bf16.mxu1 %v9460_v62  ;;  %8951 = vmatprep.mubr.msk.bf16.mxu0 %vm9589_vm0, %v9588_v34  ;;  %v3897_v30 = vmax.f32 %v3829_v42, 0.0 }
 0x2c6   : > { %v3898_v52 = vmax.f32 %v3832_v28, 0.0  ;;  %v8432_v54 = vpop.f32.mrb[228].mxu1  ;;  %v8532_v48 = vpop.f32.mrb[228].mxu0 }
 0x2c7   : > { %v8433_v29 = vpop.f32.mrb[229].mxu1  ;;  %v8533_v7 = vpop.f32.mrb[229].mxu0 }
 0x2c8   : > { %v7534_v3 = vpack.c.bf16 %v3898_v52, %v3897_v30  ;;  %v8434_v21 = vadd.f32 %v8433_v29, %v8432_v54  ;;  %v11157_v37 = vadd.f32 %v8533_v7, %v8532_v48  ;;  %v8435_v31 = vpop.f32.mrb[230].mxu1  ;;  %v8535_v10 = vpop.f32.mrb[230].mxu0 }
 0x2c9   : > { %v8436_v61 = vpop.f32.mrb[231].mxu1  ;;  %v8536_v58 = vpop.f32.mrb[231].mxu0 }
 0x2ca   : > { %7647 = vst [vmem:[%s11070_s13 + $0x38] sm:$0xff] %v7534_v3   ;;  %v3837_v4 = vadd.f32 %v8434_v21, %v11001_v43  ;;  %v8437_v56 = vadd.f32 %v8436_v61, %v8435_v31  ;;  %v11162_v0 = vadd.f32 %v8536_v58, %v8535_v10  ;;  %v9462_v43 = vld [vmem:[%s10221_s26 + $0x210] ss:$36 sps:$4 sm:$0xff]   ;;  %v9469_v21 = vld [vmem:[%s10221_s26 + $0x218] ss:$36 sps:$4 sm:$0xff]  }
 0x2cb   : > { %6014 = vmatmul.mubr.bf16.gmra.mrb[80].mxu1 %v9458_v22  ;;  %8952 = vmatmul.mubr.bf16.gmra.mrb[80].mxu0 %v9461_v18  ;;  %v9472_v58 = vld [vmem:[%s10221_s26 + $0x2a4] ss:$36 sps:$4 sm:$0xff]  }
 0x2cc   : > { %v3840_v57 = vadd.f32 %v8437_v56, %v11004_v59  ;;  %6021 = vmatprep.mubr.bf16.mxu1 %v9464_v50  ;;  %8955 = vmatprep.mubr.msk.bf16.mxu0 %vm9589_vm0, %v9588_v34  ;;  %v3899_v11 = vmax.f32 %v3837_v4, 0.0 }
 0x2ce   : > { %v3900_v33 = vmax.f32 %v3840_v57, 0.0  ;;  %v8438_v13 = vpop.f32.mrb[232].mxu1  ;;  %v8538_v40 = vpop.f32.mrb[232].mxu0 }
 0x2cf   : > { %v8439_v9 = vpop.f32.mrb[233].mxu1  ;;  %v8539_v25 = vpop.f32.mrb[233].mxu0 }
 0x2d0   : > { %v7539_v17 = vpack.c.bf16 %v3900_v33, %v3899_v11  ;;  %v8440_v45 = vadd.f32 %v8439_v9, %v8438_v13  ;;  %v11169_v62 = vadd.f32 %v8539_v25, %v8538_v40  ;;  %v8441_v1 = vpop.f32.mrb[234].mxu1  ;;  %v8541_v59 = vpop.f32.mrb[234].mxu0 }
 0x2d1   : > { %v8442_v42 = vpop.f32.mrb[235].mxu1  ;;  %v8542_v38 = vpop.f32.mrb[235].mxu0 }
 0x2d2   : > { %7648 = vst [vmem:[%s11070_s13 + $0x40] sm:$0xff] %v7539_v17   ;;  %v3845_v28 = vadd.f32 %v8440_v45, %v11011_v55  ;;  %v8443_v30 = vadd.f32 %v8442_v42, %v8441_v1  ;;  %v11174_v52 = vadd.f32 %v8542_v38, %v8541_v59  ;;  %v9466_v55 = vld [vmem:[%s10221_s26 + $0x258] ss:$36 sps:$4 sm:$0xff]   ;;  %v9473_v45 = vld [vmem:[%s10221_s26 + $0x260] ss:$36 sps:$4 sm:$0xff]  }
 0x2d3   : > { %6022 = vmatmul.mubr.bf16.gmra.mrb[84].mxu1 %v9462_v43  ;;  %8956 = vmatmul.mubr.bf16.gmra.mrb[84].mxu0 %v9465_v41  ;;  %v9476_v38 = vld [vmem:[%s10221_s26 + $0x2ec] ss:$36 sps:$4 sm:$0xff]  }
 0x2d4   : > { %v3848_v54 = vadd.f32 %v8443_v30, %v11014_v19  ;;  %6029 = vmatprep.mubr.bf16.mxu1 %v9468_v47  ;;  %8959 = vmatprep.mubr.msk.bf16.mxu0 %vm9589_vm0, %v9588_v34  ;;  %v3901_v48 = vmax.f32 %v3845_v28, 0.0 }
 0x2d6   : > { %v3902_v29 = vmax.f32 %v3848_v54, 0.0  ;;  %v8444_v7 = vpop.f32.mrb[236].mxu1  ;;  %v8544_v22 = vpop.f32.mrb[236].mxu0 }
 0x2d7   : > { %v8445_v18 = vpop.f32.mrb[237].mxu1  ;;  %v8545_v3 = vpop.f32.mrb[237].mxu0 }
 0x2d8   : > { %v7544_v31 = vpack.c.bf16 %v3902_v29, %v3901_v48  ;;  %v8446_v10 = vadd.f32 %v8445_v18, %v8444_v7  ;;  %v11181_v50 = vadd.f32 %v8545_v3, %v8544_v22  ;;  %v8447_v61 = vpop.f32.mrb[238].mxu1  ;;  %v8547_v19 = vpop.f32.mrb[238].mxu0 }
 0x2d9   : > { %v8448_v4 = vpop.f32.mrb[239].mxu1  ;;  %v8548_v56 = vpop.f32.mrb[239].mxu0 }
 0x2da   : > { %7649 = vst [vmem:[%s11070_s13 + $0x48] sm:$0xff] %v7544_v31   ;;  %v3853_v57 = vadd.f32 %v8446_v10, %v11021_v5  ;;  %v8449_v11 = vadd.f32 %v8448_v4, %v8447_v61  ;;  %v11186_v33 = vadd.f32 %v8548_v56, %v8547_v19  ;;  %v9470_v5 = vld [vmem:[%s10221_s26 + $0x2a0] ss:$36 sps:$4 sm:$0xff]   ;;  %v9477_v10 = vld [vmem:[%s10221_s26 + $0x2a8] ss:$36 sps:$4 sm:$0xff]  }
 0x2db   : > { %6030 = vmatmul.mubr.bf16.gmra.mrb[88].mxu1 %v9466_v55  ;;  %8960 = vmatmul.mubr.bf16.gmra.mrb[88].mxu0 %v9469_v21  ;;  %v9480_v56 = vld [vmem:[%s10221_s26 + $0x334] ss:$36 sps:$4 sm:$0xff]  }
 0x2dc   : > { %v3856_v13 = vadd.f32 %v8449_v11, %v11024_v39  ;;  %6037 = vmatprep.mubr.bf16.mxu1 %v9472_v58  ;;  %8963 = vmatprep.mubr.msk.bf16.mxu0 %vm9589_vm0, %v9588_v34  ;;  %v3903_v40 = vmax.f32 %v3853_v57, 0.0 }
 0x2de   : > { %v3904_v9 = vmax.f32 %v3856_v13, 0.0  ;;  %v8450_v25 = vpop.f32.mrb[240].mxu1  ;;  %v8550_v43 = vpop.f32.mrb[240].mxu0 }
 0x2df   : > { %v8451_v41 = vpop.f32.mrb[241].mxu1  ;;  %v8551_v17 = vpop.f32.mrb[241].mxu0 }
 0x2e0   : > { %v7549_v1 = vpack.c.bf16 %v3904_v9, %v3903_v40  ;;  %v8452_v59 = vadd.f32 %v8451_v41, %v8450_v25  ;;  %v11193_v47 = vadd.f32 %v8551_v17, %v8550_v43  ;;  %v8453_v42 = vpop.f32.mrb[242].mxu1  ;;  %v8553_v39 = vpop.f32.mrb[242].mxu0 }
 0x2e1   : > { %v8454_v28 = vpop.f32.mrb[243].mxu1  ;;  %v8554_v30 = vpop.f32.mrb[243].mxu0 }
 0x2e2   : > { %7650 = vst [vmem:[%s11070_s13 + $0x50] sm:$0xff] %v7549_v1   ;;  %v3861_v54 = vadd.f32 %v8452_v59, %v11031_v27  ;;  %v8455_v48 = vadd.f32 %v8454_v28, %v8453_v42  ;;  %v11198_v29 = vadd.f32 %v8554_v30, %v8553_v39  ;;  %v9474_v27 = vld [vmem:[%s10221_s26 + $0x2e8] ss:$36 sps:$4 sm:$0xff]   ;;  %v9481_v59 = vld [vmem:[%s10221_s26 + $0x2f0] ss:$36 sps:$4 sm:$0xff]  }
 0x2e3   : > { %6038 = vmatmul.mubr.bf16.gmra.mrb[92].mxu1 %v9470_v5  ;;  %8964 = vmatmul.mubr.bf16.gmra.mrb[92].mxu0 %v9473_v45  ;;  %v9484_v30 = vld [vmem:[%s10221_s26 + $0x37c] ss:$36 sps:$4 sm:$0xff]  }
 0x2e4   : > { %v3864_v7 = vadd.f32 %v8455_v48, %v11034_v51  ;;  %6045 = vmatprep.mubr.bf16.mxu1 %v9476_v38  ;;  %8967 = vmatprep.mubr.msk.bf16.mxu0 %vm9589_vm0, %v9588_v34  ;;  %v3905_v22 = vmax.f32 %v3861_v54, 0.0 }
 0x2e6   : > { %v3906_v18 = vmax.f32 %v3864_v7, 0.0  ;;  %v8456_v3 = vpop.f32.mrb[244].mxu1  ;;  %v8556_v55 = vpop.f32.mrb[244].mxu0 }
 0x2e7   : > { %v8457_v21 = vpop.f32.mrb[245].mxu1  ;;  %v8557_v31 = vpop.f32.mrb[245].mxu0 }
 0x2e8   : > { %v7554_v61 = vpack.c.bf16 %v3906_v18, %v3905_v22  ;;  %v8458_v19 = vadd.f32 %v8457_v21, %v8456_v3  ;;  %v11205_v58 = vadd.f32 %v8557_v31, %v8556_v55  ;;  %v8459_v4 = vpop.f32.mrb[246].mxu1  ;;  %v8559_v51 = vpop.f32.mrb[246].mxu0  ;;  %v11230_v55 = vld [vmem:[%s11551_s5] ss:$0 sm:$0xff] }
 0x2e9   : > { %v8460_v57 = vpop.f32.mrb[247].mxu1  ;;  %v8560_v11 = vpop.f32.mrb[247].mxu0 }
 0x2ea   : > { %7651 = vst [vmem:[%s11070_s13 + $0x58] sm:$0xff] %v7554_v61   ;;  %v3869_v13 = vadd.f32 %v8458_v19, %v11041_v35  ;;  %v8461_v40 = vadd.f32 %v8460_v57, %v8459_v4  ;;  %v11210_v9 = vadd.f32 %v8560_v11, %v8559_v51  ;;  %v9478_v35 = vld [vmem:[%s10221_s26 + $0x330] ss:$36 sps:$4 sm:$0xff]   ;;  %v9482_v19 = vld [vmem:[%s10221_s26 + $0x378] ss:$36 sps:$4 sm:$0xff]  }
 0x2eb   : > { %6046 = vmatmul.mubr.bf16.gmra.mrb[96].mxu1 %v9474_v27  ;;  %8968 = vmatmul.mubr.bf16.gmra.mrb[96].mxu0 %v9477_v10  ;;  %v9485_v4 = vld [vmem:[%s10221_s26 + $0x338] ss:$36 sps:$4 sm:$0xff]  }
 0x2ec   : > { %v3872_v25 = vadd.f32 %v8461_v40, %v11044_v60  ;;  %6053 = vmatprep.mubr.bf16.mxu1 %v9480_v56  ;;  %8971 = vmatprep.mubr.msk.bf16.mxu0 %vm9589_vm0, %v9588_v34  ;;  %v3907_v43 = vmax.f32 %v3869_v13, 0.0  ;;  %v9488_v40 = vld [vmem:[%s10221_s26 + $0x3c4] ss:$36 sps:$4 sm:$0xff]  }
 0x2ee   : > { %v3908_v41 = vmax.f32 %v3872_v25, 0.0  ;;  %v8462_v17 = vpop.f32.mrb[248].mxu1  ;;  %v8562_v5 = vpop.f32.mrb[248].mxu0 }
 0x2ef   : > { %v8463_v45 = vpop.f32.mrb[249].mxu1  ;;  %v8563_v1 = vpop.f32.mrb[249].mxu0 }
 0x2f0   : > { %v7559_v42 = vpack.c.bf16 %v3908_v41, %v3907_v43  ;;  %v8464_v39 = vadd.f32 %v8463_v45, %v8462_v17  ;;  %v11217_v38 = vadd.f32 %v8563_v1, %v8562_v5  ;;  %v8465_v28 = vpop.f32.mrb[250].mxu1  ;;  %v8565_v60 = vpop.f32.mrb[250].mxu0  ;;  %v5512_v41 = vadd.f32 %v11063_v20, %v11230_v55 }
 0x2f1   : > { %v8466_v54 = vpop.f32.mrb[251].mxu1  ;;  %v8566_v48 = vpop.f32.mrb[251].mxu0  ;;  %v5517_v20 = vadd.f32 %v11074_v15, %v11230_v55 }
 0x2f2   : > { %7652 = vst [vmem:[%s11070_s13 + $0x60] sm:$0xff] %v7559_v42   ;;  %v3877_v7 = vadd.f32 %v8464_v39, %v11051_v36  ;;  %v8467_v22 = vadd.f32 %v8466_v54, %v8465_v28  ;;  %v11222_v18 = vadd.f32 %v8566_v48, %v8565_v60  ;;  %v9486_v39 = vld [vmem:[%s10221_s26 + $0x3c0] ss:$36 sps:$4 sm:$0xff]  }
 0x2f3   : > { %6054 = vmatmul.mubr.bf16.gmra.mrb[100].mxu1 %v9478_v35  ;;  %8972 = vmatmul.mubr.bf16.gmra.mrb[100].mxu0 %v9481_v59  ;;  %v9489_v28 = vld [vmem:[%s10221_s26 + $0x380] ss:$36 sps:$4 sm:$0xff]  }
 0x2f4   : > { %v3880_v3 = vadd.f32 %v8467_v22, %v11054_v49  ;;  %6061 = vmatprep.mubr.bf16.mxu1 %v9484_v30  ;;  %8975 = vmatprep.mubr.msk.bf16.mxu0 %vm9589_vm0, %v9588_v34  ;;  %v3909_v21 = vmax.f32 %v3877_v7, 0.0  ;;  %v5509_v49 = vadd.f32 %v11058_v6, %v11230_v55  ;;  %v9492_v7 = vld [vmem:[%s10221_s26 + $0x40c] ss:$36 sps:$4 sm:$0xff]   ;;  %v5520_v22 = vadd.f32 %v11080_v2, %v11230_v55 }
 0x2f6   : > { %v3910_v36 = vmax.f32 %v3880_v3, 0.0  ;;  %v8568_v31 = vpop.f32.mrb[252].mxu0  ;;  %v8590_v27 = vpop.f32.mrb[252].mxu1 }
 0x2f7   : > { %v8569_v10 = vpop.f32.mrb[253].mxu0  ;;  %v8591_v61 = vpop.f32.mrb[253].mxu1 }
 0x2f8   : > { %v7564_v51 = vpack.c.bf16 %v3910_v36, %v3909_v21  ;;  %v11236_v56 = vadd.f32 %v8569_v10, %v8568_v31  ;;  %v8592_v57 = vadd.f32 %v8591_v61, %v8590_v27  ;;  %v8571_v11 = vpop.f32.mrb[254].mxu0  ;;  %v8593_v13 = vpop.f32.mrb[254].mxu1 }
 0x2f9   : > { %v8572_v25 = vpop.f32.mrb[255].mxu0  ;;  %v8594_v43 = vpop.f32.mrb[255].mxu1 }
 0x2fa   : > { %7653 = vst [vmem:[%s11070_s13 + $0x68] sm:$0xff] %v7564_v51   ;;  %v5662_v17 = vadd.f32 %v8592_v57, %v5509_v49  ;;  %v11242_v5 = vadd.f32 %v8572_v25, %v8571_v11  ;;  %v8595_v45 = vadd.f32 %v8594_v43, %v8593_v13  ;;  %v9490_v51 = vld [vmem:[%s10221_s26 + $0x408] ss:$36 sps:$4 sm:$0xff]   ;;  %v5525_v11 = vadd.f32 %v11085_v26, %v11230_v55 }
 0x2fb   : > { %6062 = vmatmul.mubr.bf16.gmra.mrb[104].mxu1 %v9482_v19  ;;  %8976 = vmatmul.mubr.bf16.gmra.mrb[104].mxu0 %v9485_v4  ;;  %v9493_v57 = vld [vmem:[%s10221_s26 + $0x3c8] ss:$36 sps:$4 sm:$0xff]  }
 0x2fc   : > { %v5665_v6 = vadd.f32 %v8595_v45, %v5512_v41  ;;  %6069 = vmatprep.mubr.bf16.mxu1 %v9488_v40  ;;  %8979 = vmatprep.mubr.msk.bf16.mxu0 %vm9589_vm0, %v9588_v34  ;;  %v5528_v41 = vadd.f32 %v11090_v44, %v11230_v55 }
 0x2fe   : > { %v8596_v1 = vpop.f32.mrb[0].mxu1  ;;  %v8696_v35 = vpop.f32.mrb[0].mxu0 }
 0x2ff   : > { %v8597_v59 = vpop.f32.mrb[1].mxu1  ;;  %v8697_v42 = vpop.f32.mrb[1].mxu0 }
 0x300   : > { %v8598_v60 = vadd.f32 %v8597_v59, %v8596_v1  ;;  %v8698_v30 = vadd.f32 %v8697_v42, %v8696_v35  ;;  %v8599_v54 = vpop.f32.mrb[2].mxu1  ;;  %v8699_v48 = vpop.f32.mrb[2].mxu0 }
 0x301   : > { %v8600_v3 = vpop.f32.mrb[3].mxu1  ;;  %v8700_v21 = vpop.f32.mrb[3].mxu0 }
 0x302   : > { %v5670_v36 = vadd.f32 %v8598_v60, %v5517_v20  ;;  %v11253_v31 = vadd.f32 %v8698_v30, %v5662_v17  ;;  %v8601_v27 = vadd.f32 %v8600_v3, %v8599_v54  ;;  %v8701_v10 = vadd.f32 %v8700_v21, %v8699_v48  ;;  %v9494_v60 = vld [vmem:[%s10221_s26 + $0x410] ss:$36 sps:$4 sm:$0xff]   ;;  %s309_s26 = sand.u32 1, %s9546_s24  }
 0x303   : > { %6070 = vmatmul.mubr.bf16.gmra.mrb[108].mxu1 %v9486_v39  ;;  %8980 = vmatmul.mubr.bf16.gmra.mrb[108].mxu0 %v9489_v28  ;;  %v5533_v30 = vadd.f32 %v11097_v53, %v11230_v55  ;;  %v5536_v3 = vadd.f32 %v11102_v14, %v11230_v55  ;;  %s9007_s15 = smul.u32 120, %s309_s26 }
 0x304   : > { %v5673_v15 = vadd.f32 %v8601_v27, %v5520_v22  ;;  %v11255_v61 = vadd.f32 %v8701_v10, %v5665_v6  ;;  %6077 = vmatprep.mubr.bf16.mxu1 %v9492_v7  ;;  %8983 = vmatprep.mubr.msk.bf16.mxu0 %vm9589_vm0, %v9588_v34 }
 0x305   : > { %s11377_s24 = scalar_lea.vmem [#allocation2], %s9007_s15  }
 0x306   : > { %v8602_v19 = vpop.f32.mrb[4].mxu1  ;;  %v8702_v2 = vpop.f32.mrb[4].mxu0 }
 0x307   : > { %v8603_v4 = vpop.f32.mrb[5].mxu1  ;;  %v8703_v49 = vpop.f32.mrb[5].mxu0 }
 0x308   : > { %v8604_v13 = vadd.f32 %v8603_v4, %v8602_v19  ;;  %v8704_v40 = vadd.f32 %v8703_v49, %v8702_v2  ;;  %v8605_v25 = vpop.f32.mrb[6].mxu1  ;;  %v8705_v43 = vpop.f32.mrb[6].mxu0 }
 0x309   : > { %v8606_v17 = vpop.f32.mrb[7].mxu1  ;;  %v8706_v45 = vpop.f32.mrb[7].mxu0 }
 0x30a   : > { %v5678_v6 = vadd.f32 %v8604_v13, %v5525_v11  ;;  %v11265_v1 = vadd.f32 %v8704_v40, %v5670_v36  ;;  %v8607_v35 = vadd.f32 %v8606_v17, %v8605_v25  ;;  %v8707_v59 = vadd.f32 %v8706_v45, %v8705_v43 }
 0x30b   : > { %6078 = vmatmul.mubr.bf16.gmra.mrb[112].mxu1 %v9490_v51  ;;  %8984 = vmatmul.mubr.bf16.gmra.mrb[112].mxu0 %v9493_v57  ;;  %v5541_v57 = vadd.f32 %v11109_v46, %v11230_v55  ;;  %v5544_v25 = vadd.f32 %v11114_v16, %v11230_v55 }
 0x30c   : > { %v5681_v42 = vadd.f32 %v8607_v35, %v5528_v41  ;;  %v11267_v39 = vadd.f32 %v8707_v59, %v5673_v15  ;;  %8987 = vmatprep.mubr.msk.bf16.mxu0 %vm9589_vm0, %v9588_v34 }
 0x30e   : > { %v8608_v26 = vpop.f32.mrb[8].mxu1  ;;  %v8708_v28 = vpop.f32.mrb[8].mxu0 }
 0x30f   : > { %v8609_v20 = vpop.f32.mrb[9].mxu1  ;;  %v8709_v44 = vpop.f32.mrb[9].mxu0 }
 0x310   : > { %v8610_v54 = vadd.f32 %v8609_v20, %v8608_v26  ;;  %v8710_v48 = vadd.f32 %v8709_v44, %v8708_v28  ;;  %v8611_v7 = vpop.f32.mrb[10].mxu1  ;;  %v8711_v22 = vpop.f32.mrb[10].mxu0  ;;  %v5549_v44 = vadd.f32 %v11121_v63, %v11230_v55 }
 0x311   : > { %v8612_v21 = vpop.f32.mrb[11].mxu1  ;;  %v8712_v36 = vpop.f32.mrb[11].mxu0 }
 0x312   : > { %v5686_v27 = vadd.f32 %v8610_v54, %v5533_v30  ;;  %v11276_v10 = vadd.f32 %v8710_v48, %v5678_v6  ;;  %v8613_v34 = vadd.f32 %v8612_v21, %v8611_v7  ;;  %v8713_v15 = vadd.f32 %v8712_v36, %v8711_v22 }
 0x313   : > { %8988 = vmatmul.mubr.bf16.gmra.mrb[116].mxu0 %v9494_v60  ;;  %v5552_v48 = vadd.f32 %v11126_v23, %v11230_v55 }
 0x314   : > { %v5689_v19 = vadd.f32 %v8613_v34, %v5536_v3  ;;  %v11278_v2 = vadd.f32 %v8713_v15, %v5681_v42 }
 0x316   : > { %v8614_v4 = vpop.f32.mrb[12].mxu1  ;;  %v8714_v53 = vpop.f32.mrb[12].mxu0 }
 0x317   : > { %v8615_v49 = vpop.f32.mrb[13].mxu1  ;;  %v8715_v51 = vpop.f32.mrb[13].mxu0 }
 0x318   : > { %v8616_v11 = vadd.f32 %v8615_v49, %v8614_v4  ;;  %v8716_v14 = vadd.f32 %v8715_v51, %v8714_v53  ;;  %v8617_v13 = vpop.f32.mrb[14].mxu1  ;;  %v8717_v40 = vpop.f32.mrb[14].mxu0  ;;  %v5557_v49 = vadd.f32 %v11133_v12, %v11230_v55 }
 0x319   : > { %v8618_v43 = vpop.f32.mrb[15].mxu1  ;;  %v8718_v41 = vpop.f32.mrb[15].mxu0 }
 0x31a   : > { %v5694_v17 = vadd.f32 %v8616_v11, %v5541_v57  ;;  %v11284_v45 = vadd.f32 %v8716_v14, %v5686_v27  ;;  %v8619_v6 = vadd.f32 %v8618_v43, %v8617_v13  ;;  %v8719_v35 = vadd.f32 %v8718_v41, %v8717_v40 }
 0x31b   : > { %v5560_v14 = vadd.f32 %v11138_v8, %v11230_v55 }
 0x31c   : > { %v5697_v59 = vadd.f32 %v8619_v6, %v5544_v25  ;;  %v11286_v42 = vadd.f32 %v8719_v35, %v5689_v19 }
 0x31e   : > { %v8620_v26 = vpop.f32.mrb[16].mxu1  ;;  %v8720_v28 = vpop.f32.mrb[16].mxu0 }
 0x31f   : > { %v8621_v46 = vpop.f32.mrb[17].mxu1  ;;  %v8721_v20 = vpop.f32.mrb[17].mxu0 }
 0x320   : > { %v8622_v60 = vadd.f32 %v8621_v46, %v8620_v26  ;;  %v8722_v30 = vadd.f32 %v8721_v20, %v8720_v28  ;;  %v8623_v16 = vpop.f32.mrb[18].mxu1  ;;  %v8723_v54 = vpop.f32.mrb[18].mxu0  ;;  %v5565_v46 = vadd.f32 %v11145_v24, %v11230_v55 }
 0x321   : > { %v8624_v7 = vpop.f32.mrb[19].mxu1  ;;  %v8724_v22 = vpop.f32.mrb[19].mxu0 }
 0x322   : > { %v5702_v3 = vadd.f32 %v8622_v60, %v5549_v44  ;;  %v11292_v21 = vadd.f32 %v8722_v30, %v5694_v17  ;;  %v8625_v36 = vadd.f32 %v8624_v7, %v8623_v16  ;;  %v8725_v27 = vadd.f32 %v8724_v22, %v8723_v54 }
 0x323   : > { %v5568_v30 = vadd.f32 %v11150_v32, %v11230_v55 }
 0x324   : > { %v5705_v34 = vadd.f32 %v8625_v36, %v5552_v48  ;;  %v11294_v15 = vadd.f32 %v8725_v27, %v5697_v59 }
 0x326   : > { %v8626_v19 = vpop.f32.mrb[20].mxu1  ;;  %v8726_v4 = vpop.f32.mrb[20].mxu0 }
 0x327   : > { %v8627_v63 = vpop.f32.mrb[21].mxu1  ;;  %v8727_v53 = vpop.f32.mrb[21].mxu0 }
 0x328   : > { %v8628_v51 = vadd.f32 %v8627_v63, %v8626_v19  ;;  %v8728_v57 = vadd.f32 %v8727_v53, %v8726_v4  ;;  %v8629_v23 = vpop.f32.mrb[22].mxu1  ;;  %v8729_v11 = vpop.f32.mrb[22].mxu0  ;;  %v5573_v63 = vadd.f32 %v11157_v37, %v11230_v55 }
 0x329   : > { %v8630_v13 = vpop.f32.mrb[23].mxu1  ;;  %v8730_v40 = vpop.f32.mrb[23].mxu0 }
 0x32a   : > { %v5710_v25 = vadd.f32 %v8628_v51, %v5557_v49  ;;  %v11300_v43 = vadd.f32 %v8728_v57, %v5702_v3  ;;  %v8631_v41 = vadd.f32 %v8630_v13, %v8629_v23  ;;  %v8731_v17 = vadd.f32 %v8730_v40, %v8729_v11 }
 0x32b   : > { %v5576_v57 = vadd.f32 %v11162_v0, %v11230_v55 }
 0x32c   : > { %v5713_v6 = vadd.f32 %v8631_v41, %v5560_v14  ;;  %v11302_v35 = vadd.f32 %v8731_v17, %v5705_v34 }
 0x32e   : > { %v8632_v59 = vpop.f32.mrb[24].mxu1  ;;  %v8732_v26 = vpop.f32.mrb[24].mxu0 }
 0x32f   : > { %v8633_v12 = vpop.f32.mrb[25].mxu1  ;;  %v8733_v28 = vpop.f32.mrb[25].mxu0 }
 0x330   : > { %v8634_v20 = vadd.f32 %v8633_v12, %v8632_v59  ;;  %v8734_v44 = vadd.f32 %v8733_v28, %v8732_v26  ;;  %v8635_v8 = vpop.f32.mrb[26].mxu1  ;;  %v8735_v60 = vpop.f32.mrb[26].mxu0  ;;  %v5581_v12 = vadd.f32 %v11169_v62, %v11230_v55 }
 0x331   : > { %v8636_v16 = vpop.f32.mrb[27].mxu1  ;;  %v8736_v54 = vpop.f32.mrb[27].mxu0 }
 0x332   : > { %v5718_v48 = vadd.f32 %v8634_v20, %v5565_v46  ;;  %v11308_v7 = vadd.f32 %v8734_v44, %v5710_v25  ;;  %v8637_v22 = vadd.f32 %v8636_v16, %v8635_v8  ;;  %v8737_v3 = vadd.f32 %v8736_v54, %v8735_v60 }
 0x333   : > { %v5584_v44 = vadd.f32 %v11174_v52, %v11230_v55 }
 0x334   : > { %v5721_v36 = vadd.f32 %v8637_v22, %v5568_v30  ;;  %v11310_v27 = vadd.f32 %v8737_v3, %v5713_v6 }
 0x336   : > { %v8638_v34 = vpop.f32.mrb[28].mxu1  ;;  %v8738_v19 = vpop.f32.mrb[28].mxu0 }
 0x337   : > { %v8639_v24 = vpop.f32.mrb[29].mxu1  ;;  %v8739_v4 = vpop.f32.mrb[29].mxu0 }
 0x338   : > { %v8640_v53 = vadd.f32 %v8639_v24, %v8638_v34  ;;  %v8740_v49 = vadd.f32 %v8739_v4, %v8738_v19  ;;  %v8641_v32 = vpop.f32.mrb[30].mxu1  ;;  %v8741_v51 = vpop.f32.mrb[30].mxu0  ;;  %v5589_v24 = vadd.f32 %v11181_v50, %v11230_v55 }
 0x339   : > { %v8642_v23 = vpop.f32.mrb[31].mxu1  ;;  %v8742_v11 = vpop.f32.mrb[31].mxu0 }
 0x33a   : > { %v5726_v14 = vadd.f32 %v8640_v53, %v5573_v63  ;;  %v11316_v13 = vadd.f32 %v8740_v49, %v5718_v48  ;;  %v8643_v40 = vadd.f32 %v8642_v23, %v8641_v32  ;;  %v8743_v25 = vadd.f32 %v8742_v11, %v8741_v51 }
 0x33b   : > { %v5592_v49 = vadd.f32 %v11186_v33, %v11230_v55 }
 0x33c   : > { %v5729_v41 = vadd.f32 %v8643_v40, %v5576_v57  ;;  %v11318_v17 = vadd.f32 %v8743_v25, %v5721_v36 }
 0x33e   : > { %v8644_v6 = vpop.f32.mrb[32].mxu1  ;;  %v8744_v59 = vpop.f32.mrb[32].mxu0 }
 0x33f   : > { %v8645_v37 = vpop.f32.mrb[33].mxu1  ;;  %v8745_v26 = vpop.f32.mrb[33].mxu0 }
 0x340   : > { %v8646_v28 = vadd.f32 %v8645_v37, %v8644_v6  ;;  %v8746_v46 = vadd.f32 %v8745_v26, %v8744_v59  ;;  %v8647_v0 = vpop.f32.mrb[34].mxu1  ;;  %v8747_v20 = vpop.f32.mrb[34].mxu0  ;;  %v5597_v37 = vadd.f32 %v11193_v47, %v11230_v55 }
 0x341   : > { %v8648_v8 = vpop.f32.mrb[35].mxu1  ;;  %v8748_v60 = vpop.f32.mrb[35].mxu0 }
 0x342   : > { %v5734_v30 = vadd.f32 %v8646_v28, %v5581_v12  ;;  %v11324_v16 = vadd.f32 %v8746_v46, %v5726_v14  ;;  %v8649_v54 = vadd.f32 %v8648_v8, %v8647_v0  ;;  %v8749_v48 = vadd.f32 %v8748_v60, %v8747_v20 }
 0x343   : > { %v5600_v46 = vadd.f32 %v11198_v29, %v11230_v55 }
 0x344   : > { %v5737_v22 = vadd.f32 %v8649_v54, %v5584_v44  ;;  %v11326_v3 = vadd.f32 %v8749_v48, %v5729_v41 }
 0x346   : > { %v8650_v36 = vpop.f32.mrb[36].mxu1  ;;  %v8750_v34 = vpop.f32.mrb[36].mxu0 }
 0x347   : > { %v8651_v62 = vpop.f32.mrb[37].mxu1  ;;  %v8751_v19 = vpop.f32.mrb[37].mxu0 }
 0x348   : > { %v8652_v4 = vadd.f32 %v8651_v62, %v8650_v36  ;;  %v8752_v63 = vadd.f32 %v8751_v19, %v8750_v34  ;;  %v8653_v52 = vpop.f32.mrb[38].mxu1  ;;  %v8753_v53 = vpop.f32.mrb[38].mxu0  ;;  %v5605_v62 = vadd.f32 %v11205_v58, %v11230_v55 }
 0x349   : > { %v8654_v32 = vpop.f32.mrb[39].mxu1  ;;  %v8754_v51 = vpop.f32.mrb[39].mxu0 }
 0x34a   : > { %v5742_v57 = vadd.f32 %v8652_v4, %v5589_v24  ;;  %v11332_v23 = vadd.f32 %v8752_v63, %v5734_v30  ;;  %v8655_v11 = vadd.f32 %v8654_v32, %v8653_v52  ;;  %v8755_v14 = vadd.f32 %v8754_v51, %v8753_v53 }
 0x34b   : > { %v5608_v63 = vadd.f32 %v11210_v9, %v11230_v55 }
 0x34c   : > { %v5745_v40 = vadd.f32 %v8655_v11, %v5592_v49  ;;  %v11334_v25 = vadd.f32 %v8755_v14, %v5737_v22 }
 0x34e   : > { %v8656_v41 = vpop.f32.mrb[40].mxu1  ;;  %v8756_v6 = vpop.f32.mrb[40].mxu0 }
 0x34f   : > { %v8657_v50 = vpop.f32.mrb[41].mxu1  ;;  %v8757_v59 = vpop.f32.mrb[41].mxu0 }
 0x350   : > { %v8658_v26 = vadd.f32 %v8657_v50, %v8656_v41  ;;  %v8758_v12 = vadd.f32 %v8757_v59, %v8756_v6  ;;  %v8659_v33 = vpop.f32.mrb[42].mxu1  ;;  %v8759_v28 = vpop.f32.mrb[42].mxu0  ;;  %v5613_v50 = vadd.f32 %v11217_v38, %v11230_v55 }
 0x351   : > { %v8660_v0 = vpop.f32.mrb[43].mxu1  ;;  %v8760_v20 = vpop.f32.mrb[43].mxu0 }
 0x352   : > { %v5750_v44 = vadd.f32 %v8658_v26, %v5597_v37  ;;  %v11340_v8 = vadd.f32 %v8758_v12, %v5742_v57  ;;  %v8661_v60 = vadd.f32 %v8660_v0, %v8659_v33  ;;  %v8761_v30 = vadd.f32 %v8760_v20, %v8759_v28 }
 0x353   : > { %v5616_v12 = vadd.f32 %v11222_v18, %v11230_v55 }
 0x354   : > { %v5753_v54 = vadd.f32 %v8661_v60, %v5600_v46  ;;  %v11342_v48 = vadd.f32 %v8761_v30, %v5745_v40 }
 0x356   : > { %v8662_v22 = vpop.f32.mrb[44].mxu1  ;;  %v8762_v36 = vpop.f32.mrb[44].mxu0 }
 0x357   : > { %v8663_v47 = vpop.f32.mrb[45].mxu1  ;;  %v8763_v34 = vpop.f32.mrb[45].mxu0 }
 0x358   : > { %v8664_v19 = vadd.f32 %v8663_v47, %v8662_v22  ;;  %v8764_v24 = vadd.f32 %v8763_v34, %v8762_v36  ;;  %v8665_v29 = vpop.f32.mrb[46].mxu1  ;;  %v8765_v4 = vpop.f32.mrb[46].mxu0  ;;  %v5621_v47 = vadd.f32 %v11236_v56, %v11230_v55 }
 0x359   : > { %v8666_v52 = vpop.f32.mrb[47].mxu1  ;;  %v8766_v53 = vpop.f32.mrb[47].mxu0 }
 0x35a   : > { %v5758_v49 = vadd.f32 %v8664_v19, %v5605_v62  ;;  %v11348_v32 = vadd.f32 %v8764_v24, %v5750_v44  ;;  %v8667_v51 = vadd.f32 %v8666_v52, %v8665_v29  ;;  %v8767_v57 = vadd.f32 %v8766_v53, %v8765_v4 }
 0x35b   : > { %v5624_v24 = vadd.f32 %v11242_v5, %v11230_v55 }
 0x35c   : > { %v5761_v11 = vadd.f32 %v8667_v51, %v5608_v63  ;;  %v11350_v14 = vadd.f32 %v8767_v57, %v5753_v54 }
 0x35e   : > { %v8668_v40 = vpop.f32.mrb[48].mxu1  ;;  %v8768_v41 = vpop.f32.mrb[48].mxu0 }
 0x35f   : > { %v8669_v58 = vpop.f32.mrb[49].mxu1  ;;  %v8769_v6 = vpop.f32.mrb[49].mxu0 }
 0x360   : > { %v8670_v59 = vadd.f32 %v8669_v58, %v8668_v40  ;;  %v8770_v37 = vadd.f32 %v8769_v6, %v8768_v41  ;;  %v8671_v9 = vpop.f32.mrb[50].mxu1  ;;  %v8771_v26 = vpop.f32.mrb[50].mxu0 }
 0x361   : > { %v8672_v33 = vpop.f32.mrb[51].mxu1  ;;  %v8772_v28 = vpop.f32.mrb[51].mxu0 }
 0x362   : > { %v5766_v46 = vadd.f32 %v8670_v59, %v5613_v50  ;;  %v11356_v0 = vadd.f32 %v8770_v37, %v5758_v49  ;;  %v8673_v20 = vadd.f32 %v8672_v33, %v8671_v9  ;;  %v8773_v44 = vadd.f32 %v8772_v28, %v8771_v26 }
 0x364   : > { %v5769_v60 = vadd.f32 %v8673_v20, %v5616_v12  ;;  %v11358_v30 = vadd.f32 %v8773_v44, %v5761_v11 }
 0x366   : > { %v8674_v54 = vpop.f32.mrb[52].mxu1  ;;  %v8774_v22 = vpop.f32.mrb[52].mxu0 }
 0x367   : > { %v8675_v38 = vpop.f32.mrb[53].mxu1  ;;  %v8775_v36 = vpop.f32.mrb[53].mxu0 }
 0x368   : > { %v8676_v34 = vadd.f32 %v8675_v38, %v8674_v54  ;;  %v8776_v62 = vadd.f32 %v8775_v36, %v8774_v22  ;;  %v8677_v18 = vpop.f32.mrb[54].mxu1  ;;  %v8777_v19 = vpop.f32.mrb[54].mxu0 }
 0x369   : > { %v8678_v29 = vpop.f32.mrb[55].mxu1  ;;  %v8778_v4 = vpop.f32.mrb[55].mxu0 }
 0x36a   : > { %v5774_v63 = vadd.f32 %v8676_v34, %v5621_v47  ;;  %v11364_v52 = vadd.f32 %v8776_v62, %v5766_v46  ;;  %v8679_v53 = vadd.f32 %v8678_v29, %v8677_v18  ;;  %v8779_v49 = vadd.f32 %v8778_v4, %v8777_v19 }
 0x36c   : > { %v5777_v51 = vadd.f32 %v8679_v53, %v5624_v24  ;;  %v11366_v57 = vadd.f32 %v8779_v49, %v5769_v60 }
 0x36e   : > { %v8780_v11 = vpop.f32.mrb[56].mxu0  ;;  %v8802_v56 = vpop.f32.mrb[56].mxu1 }
 0x36f   : > { %v8781_v40 = vpop.f32.mrb[57].mxu0  ;;  %v8803_v41 = vpop.f32.mrb[57].mxu1 }
 0x370   : > { %v8782_v58 = vadd.f32 %v8781_v40, %v8780_v11  ;;  %v8804_v6 = vadd.f32 %v8803_v41, %v8802_v56  ;;  %v8783_v50 = vpop.f32.mrb[58].mxu0  ;;  %v8805_v59 = vpop.f32.mrb[58].mxu1 }
 0x371   : > { %v8784_v55 = vpop.f32.mrb[59].mxu0  ;;  %v8806_v5 = vpop.f32.mrb[59].mxu1 }
 0x372   : > { %v11368_v37 = vadd.f32 %v8782_v58, %v5774_v63  ;;  %v8785_v9 = vadd.f32 %v8784_v55, %v8783_v50  ;;  %v8807_v26 = vadd.f32 %v8806_v5, %v8805_v59  ;;  %v5968_v12 = vadd.f32 %v8804_v6, %v11253_v31 }
 0x374   : > { %v11371_v33 = vadd.f32 %v8785_v9, %v5777_v51  ;;  %v5971_v28 = vadd.f32 %v8807_v26, %v11255_v61 }
 0x376   : > { %v8808_v46 = vpop.f32.mrb[60].mxu1  ;;  %v6120_v20 = vpop.f32.mrb[60].mxu0 }
 0x377   : > { %v6121_v44 = vadd.f32 %v6120_v20, %v5968_v12  ;;  %v8809_v60 = vpop.f32.mrb[61].mxu1  ;;  %v8933_v54 = vpop.f32.mrb[61].mxu0 }
 0x378   : > { %v8810_v22 = vadd.f32 %v8809_v60, %v8808_v46  ;;  %v8811_v38 = vpop.f32.mrb[62].mxu1  ;;  %v6123_v36 = vpop.f32.mrb[62].mxu0 }
 0x379   : > { %v6124_v47 = vadd.f32 %v6123_v36, %v5971_v28  ;;  %v8812_v34 = vpop.f32.mrb[63].mxu1  ;;  %v8934_v62 = vpop.f32.mrb[63].mxu0  ;;  %v6239_v19 = vmax.f32 %v6121_v44, 0.0 }
 0x37a   : > { %v8813_v18 = vadd.f32 %v8812_v34, %v8811_v38  ;;  %v5976_v31 = vadd.f32 %v8810_v22, %v11265_v1 }
 0x37b   : > { %v6240_v24 = vmax.f32 %v6124_v47, 0.0 }
 0x37c   : > { %v5979_v61 = vadd.f32 %v8813_v18, %v11267_v39 }
 0x37d   : > { %v7569_v29 = vpack.c.bf16 %v6240_v24, %v6239_v19 }
 0x37e   : > { %v8814_v4 = vpop.f32.mrb[64].mxu1  ;;  %v6128_v63 = vpop.f32.mrb[64].mxu0 }
 0x37f   : > { %7570 = vst [vmem:[%s11377_s24] sm:$0xff] %v7569_v29   ;;  %v6129_v53 = vadd.f32 %v6128_v63, %v5976_v31  ;;  %v8815_v49 = vpop.f32.mrb[65].mxu1  ;;  %v8937_v51 = vpop.f32.mrb[65].mxu0 }
 0x380   : > { %v8816_v11 = vadd.f32 %v8815_v49, %v8814_v4  ;;  %v8817_v56 = vpop.f32.mrb[66].mxu1  ;;  %v6131_v40 = vpop.f32.mrb[66].mxu0 }
 0x381   : > { %v6132_v41 = vadd.f32 %v6131_v40, %v5979_v61  ;;  %v8818_v1 = vpop.f32.mrb[67].mxu1  ;;  %v8938_v58 = vpop.f32.mrb[67].mxu0  ;;  %v6241_v50 = vmax.f32 %v6129_v53, 0.0 }
 0x382   : > { %v8819_v6 = vadd.f32 %v8818_v1, %v8817_v56  ;;  %v5984_v39 = vadd.f32 %v8816_v11, %v11276_v10 }
 0x383   : > { %v6242_v59 = vmax.f32 %v6132_v41, 0.0 }
 0x384   : > { %v5987_v55 = vadd.f32 %v8819_v6, %v11278_v2 }
 0x385   : > { %v7574_v5 = vpack.c.bf16 %v6242_v59, %v6241_v50 }
 0x386   : > { %v8820_v9 = vpop.f32.mrb[68].mxu1  ;;  %v6136_v26 = vpop.f32.mrb[68].mxu0 }
 0x387   : > { %7654 = vst [vmem:[%s11377_s24 + $0x8] sm:$0xff] %v7574_v5   ;;  %v6137_v12 = vadd.f32 %v6136_v26, %v5984_v39  ;;  %v8821_v28 = vpop.f32.mrb[69].mxu1  ;;  %v8941_v46 = vpop.f32.mrb[69].mxu0 }
 0x388   : > { %v8822_v20 = vadd.f32 %v8821_v28, %v8820_v9  ;;  %v8823_v44 = vpop.f32.mrb[70].mxu1  ;;  %v6139_v60 = vpop.f32.mrb[70].mxu0 }
 0x389   : > { %v6140_v54 = vadd.f32 %v6139_v60, %v5987_v55  ;;  %v8824_v22 = vpop.f32.mrb[71].mxu1  ;;  %v8942_v38 = vpop.f32.mrb[71].mxu0  ;;  %v6243_v47 = vmax.f32 %v6137_v12, 0.0 }
 0x38a   : > { %v8825_v36 = vadd.f32 %v8824_v22, %v8823_v44  ;;  %v5992_v10 = vadd.f32 %v8822_v20, %v11284_v45 }
 0x38b   : > { %v6244_v34 = vmax.f32 %v6140_v54, 0.0 }
 0x38c   : > { %v5995_v2 = vadd.f32 %v8825_v36, %v11286_v42 }
 0x38d   : > { %v7579_v62 = vpack.c.bf16 %v6244_v34, %v6243_v47 }
 0x38e   : > { %v8826_v18 = vpop.f32.mrb[72].mxu1  ;;  %v6144_v31 = vpop.f32.mrb[72].mxu0 }
 0x38f   : > { %7655 = vst [vmem:[%s11377_s24 + $0x10] sm:$0xff] %v7579_v62   ;;  %v6145_v19 = vadd.f32 %v6144_v31, %v5992_v10  ;;  %v8827_v24 = vpop.f32.mrb[73].mxu1  ;;  %v8945_v61 = vpop.f32.mrb[73].mxu0 }
 0x390   : > { %v8828_v29 = vadd.f32 %v8827_v24, %v8826_v18  ;;  %v8829_v4 = vpop.f32.mrb[74].mxu1  ;;  %v6147_v63 = vpop.f32.mrb[74].mxu0 }
 0x391   : > { %v6148_v53 = vadd.f32 %v6147_v63, %v5995_v2  ;;  %v8830_v49 = vpop.f32.mrb[75].mxu1  ;;  %v8946_v51 = vpop.f32.mrb[75].mxu0  ;;  %v6245_v56 = vmax.f32 %v6145_v19, 0.0 }
 0x392   : > { %v8831_v11 = vadd.f32 %v8830_v49, %v8829_v4  ;;  %v6000_v45 = vadd.f32 %v8828_v29, %v11292_v21 }
 0x393   : > { %v6246_v40 = vmax.f32 %v6148_v53, 0.0 }
 0x394   : > { %v6003_v42 = vadd.f32 %v8831_v11, %v11294_v15 }
 0x395   : > { %v7584_v41 = vpack.c.bf16 %v6246_v40, %v6245_v56 }
 0x396   : > { %v8832_v1 = vpop.f32.mrb[76].mxu1  ;;  %v6152_v58 = vpop.f32.mrb[76].mxu0 }
 0x397   : > { %7656 = vst [vmem:[%s11377_s24 + $0x18] sm:$0xff] %v7584_v41   ;;  %v6153_v6 = vadd.f32 %v6152_v58, %v6000_v45  ;;  %v8833_v39 = vpop.f32.mrb[77].mxu1  ;;  %v8949_v50 = vpop.f32.mrb[77].mxu0 }
 0x398   : > { %v8834_v59 = vadd.f32 %v8833_v39, %v8832_v1  ;;  %v8835_v55 = vpop.f32.mrb[78].mxu1  ;;  %v6155_v5 = vpop.f32.mrb[78].mxu0 }
 0x399   : > { %v6156_v9 = vadd.f32 %v6155_v5, %v6003_v42  ;;  %v8836_v26 = vpop.f32.mrb[79].mxu1  ;;  %v8950_v12 = vpop.f32.mrb[79].mxu0  ;;  %v6247_v46 = vmax.f32 %v6153_v6, 0.0 }
 0x39a   : > { %v8837_v28 = vadd.f32 %v8836_v26, %v8835_v55  ;;  %v6008_v21 = vadd.f32 %v8834_v59, %v11300_v43 }
 0x39b   : > { %v6248_v20 = vmax.f32 %v6156_v9, 0.0 }
 0x39c   : > { %v6011_v15 = vadd.f32 %v8837_v28, %v11302_v35 }
 0x39d   : > { %v7589_v44 = vpack.c.bf16 %v6248_v20, %v6247_v46 }
 0x39e   : > { %v8838_v60 = vpop.f32.mrb[80].mxu1  ;;  %v6160_v54 = vpop.f32.mrb[80].mxu0 }
 0x39f   : > { %7657 = vst [vmem:[%s11377_s24 + $0x20] sm:$0xff] %v7589_v44   ;;  %v6161_v22 = vadd.f32 %v6160_v54, %v6008_v21  ;;  %v8839_v38 = vpop.f32.mrb[81].mxu1  ;;  %v8953_v36 = vpop.f32.mrb[81].mxu0 }
 0x3a0   : > { %v8840_v10 = vadd.f32 %v8839_v38, %v8838_v60  ;;  %v8841_v47 = vpop.f32.mrb[82].mxu1  ;;  %v6163_v34 = vpop.f32.mrb[82].mxu0 }
 0x3a1   : > { %v6164_v2 = vadd.f32 %v6163_v34, %v6011_v15  ;;  %v8842_v62 = vpop.f32.mrb[83].mxu1  ;;  %v8954_v18 = vpop.f32.mrb[83].mxu0  ;;  %v6249_v19 = vmax.f32 %v6161_v22, 0.0 }
 0x3a2   : > { %v8843_v31 = vadd.f32 %v8842_v62, %v8841_v47  ;;  %v6016_v43 = vadd.f32 %v8840_v10, %v11308_v7 }
 0x3a3   : > { %v6250_v24 = vmax.f32 %v6164_v2, 0.0 }
 0x3a4   : > { %v6019_v35 = vadd.f32 %v8843_v31, %v11310_v27 }
 0x3a5   : > { %v7594_v61 = vpack.c.bf16 %v6250_v24, %v6249_v19 }
 0x3a6   : > { %v8844_v29 = vpop.f32.mrb[84].mxu1  ;;  %v6168_v4 = vpop.f32.mrb[84].mxu0 }
 0x3a7   : > { %7658 = vst [vmem:[%s11377_s24 + $0x28] sm:$0xff] %v7594_v61   ;;  %v6169_v63 = vadd.f32 %v6168_v4, %v6016_v43  ;;  %v8845_v53 = vpop.f32.mrb[85].mxu1  ;;  %v8957_v49 = vpop.f32.mrb[85].mxu0 }
 0x3a8   : > { %v8846_v51 = vadd.f32 %v8845_v53, %v8844_v29  ;;  %v8847_v11 = vpop.f32.mrb[86].mxu1  ;;  %v6171_v45 = vpop.f32.mrb[86].mxu0 }
 0x3a9   : > { %v6172_v56 = vadd.f32 %v6171_v45, %v6019_v35  ;;  %v8848_v40 = vpop.f32.mrb[87].mxu1  ;;  %v8958_v42 = vpop.f32.mrb[87].mxu0  ;;  %v6251_v1 = vmax.f32 %v6169_v63, 0.0 }
 0x3aa   : > { %v8849_v41 = vadd.f32 %v8848_v40, %v8847_v11  ;;  %v6024_v7 = vadd.f32 %v8846_v51, %v11316_v13 }
 0x3ab   : > { %v6252_v58 = vmax.f32 %v6172_v56, 0.0 }
 0x3ac   : > { %v6027_v27 = vadd.f32 %v8849_v41, %v11318_v17 }
 0x3ad   : > { %v7599_v6 = vpack.c.bf16 %v6252_v58, %v6251_v1 }
 0x3ae   : > { %v8850_v39 = vpop.f32.mrb[88].mxu1  ;;  %v6176_v50 = vpop.f32.mrb[88].mxu0 }
 0x3af   : > { %7659 = vst [vmem:[%s11377_s24 + $0x30] sm:$0xff] %v7599_v6   ;;  %v6177_v59 = vadd.f32 %v6176_v50, %v6024_v7  ;;  %v8851_v55 = vpop.f32.mrb[89].mxu1  ;;  %v8961_v5 = vpop.f32.mrb[89].mxu0 }
 0x3b0   : > { %v8852_v9 = vadd.f32 %v8851_v55, %v8850_v39  ;;  %v8853_v26 = vpop.f32.mrb[90].mxu1  ;;  %v6179_v12 = vpop.f32.mrb[90].mxu0 }
 0x3b1   : > { %v6180_v28 = vadd.f32 %v6179_v12, %v6027_v27  ;;  %v8854_v21 = vpop.f32.mrb[91].mxu1  ;;  %v8962_v46 = vpop.f32.mrb[91].mxu0  ;;  %v6253_v15 = vmax.f32 %v6177_v59, 0.0 }
 0x3b2   : > { %v8855_v20 = vadd.f32 %v8854_v21, %v8853_v26  ;;  %v6032_v13 = vadd.f32 %v8852_v9, %v11324_v16 }
 0x3b3   : > { %v6254_v44 = vmax.f32 %v6180_v28, 0.0 }
 0x3b4   : > { %v6035_v17 = vadd.f32 %v8855_v20, %v11326_v3 }
 0x3b5   : > { %v7604_v60 = vpack.c.bf16 %v6254_v44, %v6253_v15 }
 0x3b6   : > { %v8856_v54 = vpop.f32.mrb[92].mxu1  ;;  %v6184_v22 = vpop.f32.mrb[92].mxu0 }
 0x3b7   : > { %7660 = vst [vmem:[%s11377_s24 + $0x38] sm:$0xff] %v7604_v60   ;;  %v6185_v38 = vadd.f32 %v6184_v22, %v6032_v13  ;;  %v8857_v36 = vpop.f32.mrb[93].mxu1  ;;  %v8965_v10 = vpop.f32.mrb[93].mxu0 }
 0x3b8   : > { %v8858_v47 = vadd.f32 %v8857_v36, %v8856_v54  ;;  %v8859_v34 = vpop.f32.mrb[94].mxu1  ;;  %v6187_v2 = vpop.f32.mrb[94].mxu0 }
 0x3b9   : > { %v6188_v62 = vadd.f32 %v6187_v2, %v6035_v17  ;;  %v8860_v18 = vpop.f32.mrb[95].mxu1  ;;  %v8966_v31 = vpop.f32.mrb[95].mxu0  ;;  %v6255_v19 = vmax.f32 %v6185_v38, 0.0 }
 0x3ba   : > { %v8861_v43 = vadd.f32 %v8860_v18, %v8859_v34  ;;  %v6040_v16 = vadd.f32 %v8858_v47, %v11332_v23 }
 0x3bb   : > { %v6256_v24 = vmax.f32 %v6188_v62, 0.0 }
 0x3bc   : > { %v6043_v3 = vadd.f32 %v8861_v43, %v11334_v25 }
 0x3bd   : > { %v7609_v35 = vpack.c.bf16 %v6256_v24, %v6255_v19 }
 0x3be   : > { %v8862_v61 = vpop.f32.mrb[96].mxu1  ;;  %v6192_v29 = vpop.f32.mrb[96].mxu0 }
 0x3bf   : > { %7661 = vst [vmem:[%s11377_s24 + $0x40] sm:$0xff] %v7609_v35   ;;  %v6193_v4 = vadd.f32 %v6192_v29, %v6040_v16  ;;  %v8863_v63 = vpop.f32.mrb[97].mxu1  ;;  %v8969_v53 = vpop.f32.mrb[97].mxu0 }
 0x3c0   : > { %v8864_v49 = vadd.f32 %v8863_v63, %v8862_v61  ;;  %v8865_v51 = vpop.f32.mrb[98].mxu1  ;;  %v6195_v11 = vpop.f32.mrb[98].mxu0 }
 0x3c1   : > { %v6196_v45 = vadd.f32 %v6195_v11, %v6043_v3  ;;  %v8866_v56 = vpop.f32.mrb[99].mxu1  ;;  %v8970_v40 = vpop.f32.mrb[99].mxu0  ;;  %v6257_v41 = vmax.f32 %v6193_v4, 0.0 }
 0x3c2   : > { %v8867_v42 = vadd.f32 %v8866_v56, %v8865_v51  ;;  %v6048_v23 = vadd.f32 %v8864_v49, %v11340_v8 }
 0x3c3   : > { %v6258_v7 = vmax.f32 %v6196_v45, 0.0 }
 0x3c4   : > { %v6051_v25 = vadd.f32 %v8867_v42, %v11342_v48 }
 0x3c5   : > { %v7614_v1 = vpack.c.bf16 %v6258_v7, %v6257_v41 }
 0x3c6   : > { %v8868_v58 = vpop.f32.mrb[100].mxu1  ;;  %v6200_v27 = vpop.f32.mrb[100].mxu0 }
 0x3c7   : > { %7662 = vst [vmem:[%s11377_s24 + $0x48] sm:$0xff] %v7614_v1   ;;  %v6201_v6 = vadd.f32 %v6200_v27, %v6048_v23  ;;  %v8869_v39 = vpop.f32.mrb[101].mxu1  ;;  %v8973_v50 = vpop.f32.mrb[101].mxu0 }
 0x3c8   : > { %v8870_v59 = vadd.f32 %v8869_v39, %v8868_v58  ;;  %v8871_v55 = vpop.f32.mrb[102].mxu1  ;;  %v6203_v5 = vpop.f32.mrb[102].mxu0 }
 0x3c9   : > { %v6204_v9 = vadd.f32 %v6203_v5, %v6051_v25  ;;  %v8872_v26 = vpop.f32.mrb[103].mxu1  ;;  %v8974_v12 = vpop.f32.mrb[103].mxu0  ;;  %v6259_v21 = vmax.f32 %v6201_v6, 0.0 }
 0x3ca   : > { %v8873_v28 = vadd.f32 %v8872_v26, %v8871_v55  ;;  %v6056_v8 = vadd.f32 %v8870_v59, %v11348_v32 }
 0x3cb   : > { %v6260_v46 = vmax.f32 %v6204_v9, 0.0 }
 0x3cc   : > { %v6059_v48 = vadd.f32 %v8873_v28, %v11350_v14 }
 0x3cd   : > { %v7619_v20 = vpack.c.bf16 %v6260_v46, %v6259_v21 }
 0x3ce   : > { %v8874_v13 = vpop.f32.mrb[104].mxu1  ;;  %v6208_v15 = vpop.f32.mrb[104].mxu0 }
 0x3cf   : > { %7663 = vst [vmem:[%s11377_s24 + $0x50] sm:$0xff] %v7619_v20   ;;  %v6209_v44 = vadd.f32 %v6208_v15, %v6056_v8  ;;  %v8875_v17 = vpop.f32.mrb[105].mxu1  ;;  %v8977_v60 = vpop.f32.mrb[105].mxu0 }
 0x3d0   : > { %v8876_v54 = vadd.f32 %v8875_v17, %v8874_v13  ;;  %v8877_v22 = vpop.f32.mrb[106].mxu1  ;;  %v6211_v38 = vpop.f32.mrb[106].mxu0 }
 0x3d1   : > { %v6212_v36 = vadd.f32 %v6211_v38, %v6059_v48  ;;  %v8878_v10 = vpop.f32.mrb[107].mxu1  ;;  %v8978_v47 = vpop.f32.mrb[107].mxu0  ;;  %v6261_v2 = vmax.f32 %v6209_v44, 0.0 }
 0x3d2   : > { %v8879_v34 = vadd.f32 %v8878_v10, %v8877_v22  ;;  %v6064_v32 = vadd.f32 %v8876_v54, %v11356_v0 }
 0x3d3   : > { %v6262_v62 = vmax.f32 %v6212_v36, 0.0 }
 0x3d4   : > { %v6067_v14 = vadd.f32 %v8879_v34, %v11358_v30 }
 0x3d5   : > { %v7624_v18 = vpack.c.bf16 %v6262_v62, %v6261_v2 }
 0x3d6   : > { %v8880_v31 = vpop.f32.mrb[108].mxu1  ;;  %v6216_v43 = vpop.f32.mrb[108].mxu0 }
 0x3d7   : > { %7664 = vst [vmem:[%s11377_s24 + $0x58] sm:$0xff] %v7624_v18   ;;  %v6217_v16 = vadd.f32 %v6216_v43, %v6064_v32  ;;  %v8881_v19 = vpop.f32.mrb[109].mxu1  ;;  %v8981_v24 = vpop.f32.mrb[109].mxu0 }
 0x3d8   : > { %v8882_v3 = vadd.f32 %v8881_v19, %v8880_v31  ;;  %v8883_v35 = vpop.f32.mrb[110].mxu1  ;;  %v6219_v61 = vpop.f32.mrb[110].mxu0 }
 0x3d9   : > { %v6220_v29 = vadd.f32 %v6219_v61, %v6067_v14  ;;  %v8884_v4 = vpop.f32.mrb[111].mxu1  ;;  %v8982_v63 = vpop.f32.mrb[111].mxu0  ;;  %v6263_v49 = vmax.f32 %v6217_v16, 0.0 }
 0x3da   : > { %v8885_v53 = vadd.f32 %v8884_v4, %v8883_v35  ;;  %v6072_v0 = vadd.f32 %v8882_v3, %v11364_v52 }
 0x3db   : > { %v6264_v51 = vmax.f32 %v6220_v29, 0.0 }
 0x3dc   : > { %v6075_v30 = vadd.f32 %v8885_v53, %v11366_v57 }
 0x3dd   : > { %v7629_v11 = vpack.c.bf16 %v6264_v51, %v6263_v49 }
 0x3de   : > { %v8886_v45 = vpop.f32.mrb[112].mxu1  ;;  %v6224_v56 = vpop.f32.mrb[112].mxu0 }
 0x3df   : > { %7665 = vst [vmem:[%s11377_s24 + $0x60] sm:$0xff] %v7629_v11   ;;  %v6225_v40 = vadd.f32 %v6224_v56, %v6072_v0  ;;  %v8887_v42 = vpop.f32.mrb[113].mxu1  ;;  %v8985_v23 = vpop.f32.mrb[113].mxu0 }
 0x3e0   : > { %v8888_v41 = vadd.f32 %v8887_v42, %v8886_v45  ;;  %v8889_v7 = vpop.f32.mrb[114].mxu1  ;;  %v6227_v25 = vpop.f32.mrb[114].mxu0 }
 0x3e1   : > { %v6228_v1 = vadd.f32 %v6227_v25, %v6075_v30  ;;  %v8890_v58 = vpop.f32.mrb[115].mxu1  ;;  %v8986_v27 = vpop.f32.mrb[115].mxu0  ;;  %v6265_v39 = vmax.f32 %v6225_v40, 0.0 }
 0x3e2   : > { %v8891_v6 = vadd.f32 %v8890_v58, %v8889_v7  ;;  %v6080_v52 = vadd.f32 %v8888_v41, %v11368_v37 }
 0x3e3   : > { %v6266_v57 = vmax.f32 %v6228_v1, 0.0 }
 0x3e4   : > { %v6083_v50 = vadd.f32 %v8891_v6, %v11371_v33 }
 0x3e5   : > { %v7634_v59 = vpack.c.bf16 %v6266_v57, %v6265_v39 }
 0x3e6   : > { %v6232_v55 = vpop.f32.mrb[116].mxu0 }
 0x3e7   : > { %7666 = vst [vmem:[%s11377_s24 + $0x68] sm:$0xff] %v7634_v59   ;;  %v6233_v5 = vadd.f32 %v6232_v55, %v6080_v52  ;;  %v8989_v9 = vpop.f32.mrb[117].mxu0 }
 0x3e8   : > { %v6235_v26 = vpop.f32.mrb[118].mxu0 }
 0x3e9   : > { %v6236_v12 = vadd.f32 %v6235_v26, %v6083_v50  ;;  %v8990_v28 = vpop.f32.mrb[119].mxu0  ;;  %v6267_v8 = vmax.f32 %v6233_v5, 0.0  ;;  %6434 = sbr.rel (!%p9655_p4) target bundleno = 1089 (0x441), region = 52 }
 0x3eb   : > { %v6268_v21 = vmax.f32 %v6236_v12, 0.0 }
 0x3ed   : > { %v7639_v46 = vpack.c.bf16 %v6268_v21, %v6267_v8 }
 0x3ef   : > { %7667 = vst [vmem:[%s11377_s24 + $0x70] sm:$0xff] %v7639_v46  }
 0x3f0   : > { %s11564_s17 = smov (!%p6437_p9, %s6436_s17), 30 }
 0x3f1   : > { %s7424_s22 = sshll.u32 %s11564_s17, 6 }
 0x3f2   : > { %p7427_p10 = scmp.eq.s32.totalorder %s7424_s22, 0 }
 0x3f3   : > { %9496 = sdivrem.u32 (!%p7427_p10), %s11564_s17, 30 }
 0x3f4   : > { %6445 = sbr.rel (%p7427_p10) target bundleno = 1089 (0x441), region = 56 }
 0x3fc   : > { %s11433_s9 = spop.drf %9496 }
 0x3fd   : > { %p7428_p11 = scmp.le.s32.totalorder %s11433_s9, 0 }
 0x3fe   : > { %s11555_s27 = smov (!%p7428_p11), %s11427_s16  ;;  %s11556_s19 = smov (!%p7428_p11), %s11377_s24 }
 0x3ff   : > { %6738 = sbr.rel (%p7428_p11) target bundleno = 1060 (0x424), region = 139  ;;  %s11442_s23 = smov (!%p7428_p11), 0  }
 0x400   : > { %s11444_s29 = smov (!%p7428_p11), 0  }
 0x406 LB: >> { %v6462_v37 = vld [vmem:[%s9562_s19] sm:$0xf]  ;;  %v6464_v33 = vld [vmem:[%s9562_s19 + $0x4] sm:$0xf]  ;;  %v6466_v48 = vld [vmem:[%s9562_s19 + $0x8] sm:$0xf]  ;;  %s9570_s29 = sphi %s11444_s29, %s6456_s29   ;;  %s9566_s23 = sphi %s11442_s23, %s11557_s23   ;;  %s9562_s19 = sphi %s11556_s19, %s6527_s19   ;;  %s9558_s27 = sphi %s11555_s27, %s6528_s27  }
 0x407   : >> { %6463 = vst [vmem:[%s9558_s27] sm:$0xf] %v6462_v37  ;;  %6465 = vst [vmem:[%s9558_s27 + $0x4] sm:$0xf] %v6464_v33  ;;  %v6468_v20 = vld [vmem:[%s9562_s19 + $0xc] sm:$0xf]  ;;  %s6522_s30 = sadd.s32 1, %s9566_s23 }
 0x408   : >> { %6467 = vst [vmem:[%s9558_s27 + $0x8] sm:$0xf] %v6466_v48  ;;  %v6470_v13 = vld [vmem:[%s9562_s19 + $0x10] sm:$0xf]  ;;  %v6472_v15 = vld [vmem:[%s9562_s19 + $0x14] sm:$0xf]  ;;  %p6523_p12 = scmp.ge.s32.totalorder %s6522_s30, %s11433_s9 }
 0x409   : >> { %6469 = vst [vmem:[%s9558_s27 + $0xc] sm:$0xf] %v6468_v20  ;;  %6471 = vst [vmem:[%s9558_s27 + $0x10] sm:$0xf] %v6470_v13  ;;  %v6474_v44 = vld [vmem:[%s9562_s19 + $0x18] sm:$0xf] }
 0x40a   : >> { %6473 = vst [vmem:[%s9558_s27 + $0x14] sm:$0xf] %v6472_v15  ;;  %v6476_v17 = vld [vmem:[%s9562_s19 + $0x1c] sm:$0xf]  ;;  %v6478_v60 = vld [vmem:[%s9562_s19 + $0x20] sm:$0xf] }
 0x40b   : >> { %6475 = vst [vmem:[%s9558_s27 + $0x18] sm:$0xf] %v6474_v44  ;;  %6477 = vst [vmem:[%s9558_s27 + $0x1c] sm:$0xf] %v6476_v17  ;;  %v6480_v54 = vld [vmem:[%s9562_s19 + $0x24] sm:$0xf] }
 0x40c   : >> { %6479 = vst [vmem:[%s9558_s27 + $0x20] sm:$0xf] %v6478_v60  ;;  %v6482_v22 = vld [vmem:[%s9562_s19 + $0x28] sm:$0xf]  ;;  %v6484_v38 = vld [vmem:[%s9562_s19 + $0x2c] sm:$0xf] }
 0x40d   : >> { %6481 = vst [vmem:[%s9558_s27 + $0x24] sm:$0xf] %v6480_v54  ;;  %6483 = vst [vmem:[%s9558_s27 + $0x28] sm:$0xf] %v6482_v22  ;;  %v6486_v36 = vld [vmem:[%s9562_s19 + $0x30] sm:$0xf] }
 0x40e   : >> { %6485 = vst [vmem:[%s9558_s27 + $0x2c] sm:$0xf] %v6484_v38  ;;  %v6488_v10 = vld [vmem:[%s9562_s19 + $0x34] sm:$0xf]  ;;  %v6490_v47 = vld [vmem:[%s9562_s19 + $0x38] sm:$0xf] }
 0x40f   : >> { %6487 = vst [vmem:[%s9558_s27 + $0x30] sm:$0xf] %v6486_v36  ;;  %6489 = vst [vmem:[%s9558_s27 + $0x34] sm:$0xf] %v6488_v10  ;;  %v6492_v34 = vld [vmem:[%s9562_s19 + $0x3c] sm:$0xf] }
 0x410   : >> { %6491 = vst [vmem:[%s9558_s27 + $0x38] sm:$0xf] %v6490_v47  ;;  %v6494_v32 = vld [vmem:[%s9562_s19 + $0x40] sm:$0xf]  ;;  %v6496_v2 = vld [vmem:[%s9562_s19 + $0x44] sm:$0xf] }
 0x411   : >> { %6493 = vst [vmem:[%s9558_s27 + $0x3c] sm:$0xf] %v6492_v34  ;;  %6495 = vst [vmem:[%s9558_s27 + $0x40] sm:$0xf] %v6494_v32  ;;  %v6498_v62 = vld [vmem:[%s9562_s19 + $0x48] sm:$0xf] }
 0x412   : >> { %6497 = vst [vmem:[%s9558_s27 + $0x44] sm:$0xf] %v6496_v2  ;;  %v6500_v14 = vld [vmem:[%s9562_s19 + $0x4c] sm:$0xf]  ;;  %v6502_v18 = vld [vmem:[%s9562_s19 + $0x50] sm:$0xf] }
 0x413   : >> { %6499 = vst [vmem:[%s9558_s27 + $0x48] sm:$0xf] %v6498_v62  ;;  %6501 = vst [vmem:[%s9558_s27 + $0x4c] sm:$0xf] %v6500_v14  ;;  %v6504_v31 = vld [vmem:[%s9562_s19 + $0x54] sm:$0xf] }
 0x414   : >> { %6503 = vst [vmem:[%s9558_s27 + $0x50] sm:$0xf] %v6502_v18  ;;  %v6506_v43 = vld [vmem:[%s9562_s19 + $0x58] sm:$0xf]  ;;  %v6508_v16 = vld [vmem:[%s9562_s19 + $0x5c] sm:$0xf] }
 0x415   : >> { %6505 = vst [vmem:[%s9558_s27 + $0x54] sm:$0xf] %v6504_v31  ;;  %6507 = vst [vmem:[%s9558_s27 + $0x58] sm:$0xf] %v6506_v43  ;;  %v6510_v19 = vld [vmem:[%s9562_s19 + $0x60] sm:$0xf] }
 0x416   : >> { %6509 = vst [vmem:[%s9558_s27 + $0x5c] sm:$0xf] %v6508_v16  ;;  %v6512_v24 = vld [vmem:[%s9562_s19 + $0x64] sm:$0xf]  ;;  %v6514_v3 = vld [vmem:[%s9562_s19 + $0x68] sm:$0xf] }
 0x417   : >> { %6511 = vst [vmem:[%s9558_s27 + $0x60] sm:$0xf] %v6510_v19  ;;  %6513 = vst [vmem:[%s9558_s27 + $0x64] sm:$0xf] %v6512_v24  ;;  %v6516_v35 = vld [vmem:[%s9562_s19 + $0x6c] sm:$0xf] }
 0x418   : >> { %6515 = vst [vmem:[%s9558_s27 + $0x68] sm:$0xf] %v6514_v3  ;;  %v6518_v61 = vld [vmem:[%s9562_s19 + $0x70] sm:$0xf]  ;;  %v6520_v29 = vld [vmem:[%s9562_s19 + $0x74] sm:$0xf] }
 0x419   : >> { %6517 = vst [vmem:[%s9558_s27 + $0x6c] sm:$0xf] %v6516_v35  ;;  %6519 = vst [vmem:[%s9558_s27 + $0x70] sm:$0xf] %v6518_v61  ;;  %s11566_s30 = smov (%p6523_p12, %s6522_s30), 0  ;;  %s6456_s29 = sadd.s32 1, %s9570_s29  }
 0x41a   : >> { %6521 = vst [vmem:[%s9558_s27 + $0x74] sm:$0xf] %v6520_v29  ;;  %s6525_s10 = smul.u32 120, %s11566_s30  ;;  %p6455_p13 = scmp.ge.s32.totalorder %s6456_s29, %s11433_s9 }
 0x41b   : >> { %s11557_s23 = smov %s11566_s30 }
 0x41c   : >> { %s6527_s19 = scalar_lea.vmem %s11377_s24, %s6525_s10 [#allocation2]   ;;  %s6528_s27 = scalar_lea.vmem %s11427_s16, %s6525_s10  }
 0x41d   : > { %6458 = sbr.rel (!%p6455_p13) target bundleno = 1030 (0x406), region = 145 }
 0x424 PF: > { %9498 = sdivrem.u32 %s11564_s17, 30 }
 0x425   : > { %s7429_s11 = smul.u32 120, %s11433_s9 }
 0x427   : > { %s6533_s13 = scalar_lea.vmem %s11377_s24, %s7429_s11 [#allocation2]   ;;  %s6535_s12 = scalar_lea.vmem %s11427_s16, %s7429_s11  }
 0x42d   : > { %s9499_s14 = spop.drf %9498 }
 0x42e   : > { %p7431_p0 = scmp.le.s32.totalorder %s9499_s14, 0 }
 0x42f   : > { %s9572_s26 = smov (!%p7431_p0), %s6535_s12   ;;  %s9576_s15 = smov (!%p7431_p0), %s6533_s13  }
 0x430   : > { %6752 = sbr.rel (%p7431_p0) target bundleno = 1089 (0x441), region = 150  ;;  %s9580_s18 = smov (!%p7431_p0), 0  }
 0x431   : > { %s9584_s20 = smov (!%p7431_p0), 0  }
 0x437 LB: >> { %v6545_v4 = vld [vmem:[%s9578_s15] sm:$0xf]  ;;  %s6547_s21 = sadd.s32 1, %s9582_s18  ;;  %s6539_s20 = sadd.s32 1, %s9586_s20   ;;  %s9586_s20 = sphi %s9584_s20, %s6539_s20   ;;  %s9582_s18 = sphi %s9580_s18, %s9581_s18   ;;  %s9578_s15 = sphi %s9576_s15, %s6552_s15   ;;  %s9574_s26 = sphi %s9572_s26, %s6553_s26  }
 0x438   : >> { %6546 = vst [vmem:[%s9574_s26] sm:$0xf] %v6545_v4  ;;  %p6548_p1 = scmp.ge.s32.totalorder %s6547_s21, %s9499_s14  ;;  %p6538_p2 = scmp.ge.s32.totalorder %s6539_s20, %s9499_s14 }
 0x43a   : >> { %s11568_s21 = smov (%p6548_p1, %s6547_s21), 0  ;;  %6541 = sbr.rel (!%p6538_p2) target bundleno = 1079 (0x437), region = 156 }
 0x43b   : >> { %s7432_s24 = sshll.u32 %s11568_s21, 2  ;;  %s9581_s18 = smov %s11568_s21  }
 0x43c   : >> { %s6552_s15 = scalar_lea.vmem %s6533_s13, %s7432_s24 [#allocation2]   ;;  %s6553_s26 = scalar_lea.vmem %s6535_s12, %s7432_s24  }
 0x441 PF: > { %p15_p3 = scmp.ge.s32.totalorder %s9645_s28, 4   ;;  %s11558_s24 = smov %s9550_s25 }
 0x442   : > { %s11559_s25 = smov %s9653_s8  ;;  %s11560_s26 = smov %s9645_s28 }
 0x443   :  { %17 = sbr.rel (!%p15_p3) target bundleno = 2 (0x2), region = 167 }

// kernel: sim_camera_net_forward.6
= control target key start
LH: loop header
LB: loop body
LE: loop exit
PB: predicated region body
PF: predicated region fallthrough
CT: control target
= control target key end

     0   :  { %s6160_s0 = inlined_call_operand.vmem [shape: bf16[84,2048], index: 0, kind: input, shape index: {}]   ;;  %s6161_s1 = inlined_call_operand.vmem [shape: bf16[2048,32], index: 1, kind: input, shape index: {}]   ;;  %s6162_s2 = inlined_call_operand.vmem [shape: f32[1,32], index: 2, kind: input, shape index: {}]   ;;  %s6163_s3 = inlined_call_operand.vmem [shape: bf16[98,1152], index: 3, kind: input, shape index: {}]   ;;  %s6164_s4 = inlined_call_operand.vmem [shape: bf16[1152,32], index: 4, kind: input, shape index: {}]   ;;  %s6165_s5 = inlined_call_operand.vmem [shape: f32[1,32], index: 5, kind: input, shape index: {}]   ;;  %s6166_s6 = inlined_call_operand.vmem [shape: bf16[84,32], index: 6, kind: output, shape index: {0}]   ;;  %s6167_s7 = inlined_call_operand.vmem [shape: bf16[98,32], index: 7, kind: output, shape index: {1}]  }
   0x1   :  { %6168 = sst [smem:[#allocation4_spill]] %s6160_s0 }
   0x2   :  { %s5272_s24 = smov 0   ;;  %s5274_s25 = smov 0  }
   0x3   :  { %s5276_s26 = smov 0  }
   0x4 LB: > { %s5285_s27 = sadd.s32 4294967295, %s5166_s26   ;;  %s5287_s28 = sadd.s32 1, %s5166_s26   ;;  %s5166_s26 = sphi %s5276_s26, %s6179_s26   ;;  %s5162_s25 = sphi %s5274_s25, %s6178_s25   ;;  %s5158_s24 = sphi %s5272_s24, %s6177_s24  }
   0x5   : > { %s158_s29 = ssub.s32 %s5166_s26, %s5287_s28  ;;  %s161_s30 = sadd.s32 1, %s5162_s25 }
   0x6   : > { %p159_p0 = scmp.eq.s32.totalorder %s158_s29, 0  ;;  %p171_p1 = scmp.ne.s32.totalorder %s5162_s25, %s5158_s24 }
   0x7   : > { %p172_p2 = scmp.eq.s32.totalorder %s5285_s27, 1  ;;  %p3833_p3 = scmp.ge.s32.totalorder %s5166_s26, 1 }
   0x8   : > { %s5295_s8 = scalar_select %p159_p0, %s5162_s25, %s161_s30  }
   0x9   : > { %p5297_p4 = por %p172_p2, %p171_p1  ;;  %p274_p5 = scmp.lt.s32.totalorder %s5166_s26, 3 }
   0xb   : > { %p275_p6 = pnand %p3833_p3, %p274_p5 }
   0xc   : > { %v4824_v0 = vld [vmem:[%s6161_s1 + $0x40] sm:$0xff] (!%p275_p6)   ;;  %v4828_v4 = vld [vmem:[%s6161_s1 + $0x48] sm:$0xff] (!%p275_p6)   ;;  %v4832_v8 = vld [vmem:[%s6161_s1 + $0x50] sm:$0xff] (!%p275_p6)   ;;  %s5347_s23 = smul.u32 (!%p275_p6), 6, %s5285_s27  ;;  %s6170_s0 = sld [smem:[#allocation4_spill]] (!%p275_p6)  ;;  %vm2176_vm0 = vcmask (!%p275_p6), 257024  }
   0xd   : > { %278 = sbr.rel (%p275_p6) target bundleno = 587 (0x24b), region = 44  ;;  %v4825_v1 = vld [vmem:[%s6161_s1 + $0xc0] sm:$0xff] (!%p275_p6)   ;;  %4185 = vmatprep.subr.bf16.mxu0 (!%p275_p6), %v4824_v0  ;;  %v4829_v5 = vld [vmem:[%s6161_s1 + $0xc8] sm:$0xff] (!%p275_p6)   ;;  %v4833_v9 = vld [vmem:[%s6161_s1 + $0xd0] sm:$0xff] (!%p275_p6)   ;;  %s5789_s13 = sshll.u32 (!%p275_p6), %s5285_s27, 3 }
   0xe   : > { %v4826_v2 = vld [vmem:[%s6161_s1] sm:$0xff] (!%p275_p6)   ;;  %4219 = vmatprep.subr.bf16.mxu1 (!%p275_p6), %v4825_v1  ;;  %v4830_v6 = vld [vmem:[%s6161_s1 + $0x8] sm:$0xff] (!%p275_p6)   ;;  %v4834_v10 = vld [vmem:[%s6161_s1 + $0x10] sm:$0xff] (!%p275_p6)   ;;  %p332_p7 = scmp.lt.s32.totalorder (!%p275_p6), %s5347_s23, 10  ;;  %p349_p8 = scmp.lt.s32.totalorder (!%p275_p6), %s5789_s13, 12 }
   0xf   : > { %v4827_v3 = vld [vmem:[%s6161_s1 + $0x80] sm:$0xff] (!%p275_p6)   ;;  %4186 = vmatpush3.bf16.msra.mxu0 (!%p275_p6), %v4826_v2  ;;  %v4831_v7 = vld [vmem:[%s6161_s1 + $0x88] sm:$0xff] (!%p275_p6)   ;;  %v4835_v11 = vld [vmem:[%s6161_s1 + $0x90] sm:$0xff] (!%p275_p6)  }
  0x10   : > { %4220 = vmatpush3.bf16.msra.mxu1 (!%p275_p6), %v4827_v3  ;;  %4187 = vmatprep.subr.bf16.mxu0 (!%p275_p6), %v4828_v4  ;;  %v4836_v12 = vld [vmem:[%s6161_s1 + $0x58] sm:$0xff] (!%p275_p6)   ;;  %v4840_v16 = vld [vmem:[%s6161_s1 + $0x60] sm:$0xff] (!%p275_p6)   ;;  %v4844_v20 = vld [vmem:[%s6161_s1 + $0x68] sm:$0xff] (!%p275_p6)  }
  0x11   : > { %4221 = vmatprep.subr.bf16.mxu1 (!%p275_p6), %v4829_v5  ;;  %v4837_v13 = vld [vmem:[%s6161_s1 + $0xd8] sm:$0xff] (!%p275_p6)   ;;  %v4841_v17 = vld [vmem:[%s6161_s1 + $0xe0] sm:$0xff] (!%p275_p6)   ;;  %v4845_v21 = vld [vmem:[%s6161_s1 + $0xe8] sm:$0xff] (!%p275_p6)  }
  0x12   : > { %v4838_v14 = vld [vmem:[%s6161_s1 + $0x18] sm:$0xff] (!%p275_p6)   ;;  %v4842_v18 = vld [vmem:[%s6161_s1 + $0x20] sm:$0xff] (!%p275_p6)   ;;  %v4846_v22 = vld [vmem:[%s6161_s1 + $0x28] sm:$0xff] (!%p275_p6)  }
  0x13   : > { %4188 = vmatpush3.bf16.msra.mxu0 (!%p275_p6), %v4830_v6  ;;  %v4839_v15 = vld [vmem:[%s6161_s1 + $0x98] sm:$0xff] (!%p275_p6)   ;;  %v4843_v19 = vld [vmem:[%s6161_s1 + $0xa0] sm:$0xff] (!%p275_p6)   ;;  %v4847_v23 = vld [vmem:[%s6161_s1 + $0xa8] sm:$0xff] (!%p275_p6)  }
  0x14   : > { %4222 = vmatpush3.bf16.msra.mxu1 %v4831_v7  ;;  %4189 = vmatprep.subr.bf16.mxu0 %v4832_v8  ;;  %s333_s26 = scalar_select %p332_p7, %s5347_s23, 10  ;;  %v4848_v24 = vld [vmem:[%s6161_s1 + $0x70] sm:$0xff]   ;;  %v4852_v28 = vld [vmem:[%s6161_s1 + $0x78] sm:$0xff]   ;;  %v4856_v40 = vld [vmem:[%s6161_s1 + $0x140] sm:$0xff]  }
  0x15   : > { %4223 = vmatprep.subr.bf16.mxu1 %v4833_v9  ;;  %v4849_v25 = vld [vmem:[%s6161_s1 + $0xf0] sm:$0xff]   ;;  %v4853_v29 = vld [vmem:[%s6161_s1 + $0xf8] sm:$0xff]   ;;  %v4857_v41 = vld [vmem:[%s6161_s1 + $0x1c0] sm:$0xff]   ;;  %s4181_s30 = smul.u32 (%p5297_p4), 24, %s5285_s27 }
  0x16   : > { %v4850_v26 = vld [vmem:[%s6161_s1 + $0x30] sm:$0xff]   ;;  %s4166_s16 = sshll.u32 %s333_s26, 6  ;;  %v4854_v30 = vld [vmem:[%s6161_s1 + $0x38] sm:$0xff]   ;;  %v4858_v42 = vld [vmem:[%s6161_s1 + $0x100] sm:$0xff]  }
  0x17   : > { %4190 = vmatpush3.bf16.msra.mxu0 %v4834_v10  ;;  %v4851_v27 = vld [vmem:[%s6161_s1 + $0xb0] sm:$0xff]   ;;  %s5399_s10 = scalar_lea.vmem %s6170_s0, %s4166_s16  ;;  %v4855_v31 = vld [vmem:[%s6161_s1 + $0xb8] sm:$0xff]   ;;  %v4859_v43 = vld [vmem:[%s6161_s1 + $0x180] sm:$0xff]   ;;  %s6060_s14 = scalar_lea.vmem (%p5297_p4), %s6166_s6, %s4181_s30  }
  0x18   : > { %4224 = vmatpush3.bf16.msra.mxu1 %v4835_v11  ;;  %4191 = vmatprep.subr.bf16.mxu0 %v4836_v12  ;;  %v371_v32 = vld [vmem:[%s5399_s10] sm:$0xff]  ;;  %v372_v34 = vld [vmem:[%s5399_s10 + $0x8] sm:$0xff]  ;;  %v4864_v48 = vld [vmem:[%s6161_s1 + $0x150] sm:$0xff]   ;;  %s350_s26 = scalar_select %p349_p8, %s5789_s13, 12 }
  0x19   : > { %4225 = vmatprep.subr.bf16.mxu1 %v4837_v13  ;;  %v379_v33 = vld [vmem:[%s5399_s10 + $0x40] sm:$0xff]  ;;  %v380_v37 = vld [vmem:[%s5399_s10 + $0x48] sm:$0xff]  ;;  %v4865_v49 = vld [vmem:[%s6161_s1 + $0x1d0] sm:$0xff]  }
  0x1a   : > { %v3840_v35 = vcombine.low %v371_v32, %v379_v33  ;;  %v3841_v36 = vcombine.high %v371_v32, %v379_v33  ;;  %v3842_v38 = vcombine.low %v372_v34, %v380_v37  ;;  %v3843_v39 = vcombine.high %v372_v34, %v380_v37  ;;  %v4860_v44 = vld [vmem:[%s6161_s1 + $0x148] sm:$0xff]   ;;  %v4866_v50 = vld [vmem:[%s6161_s1 + $0x110] sm:$0xff]   ;;  %v387_v52 = vld [vmem:[%s5399_s10 + $0x80] sm:$0xff]  ;;  %s4670_s20 = smul.u32 36, %s350_s26 }
  0x1b   : > { %4192 = vmatpush3.bf16.msra.mxu0 %v4838_v14  ;;  %v4861_v45 = vld [vmem:[%s6161_s1 + $0x1c8] sm:$0xff]   ;;  %v4867_v51 = vld [vmem:[%s6161_s1 + $0x190] sm:$0xff]   ;;  %v395_v53 = vld [vmem:[%s5399_s10 + $0xc0] sm:$0xff] }
  0x1c   : > { %4226 = vmatpush3.bf16.msra.mxu1 %v4839_v15  ;;  %4193 = vmatprep.subr.bf16.mxu0 %v4840_v16  ;;  %v4862_v46 = vld [vmem:[%s6161_s1 + $0x108] sm:$0xff]   ;;  %v3857_v54 = vcombine.high %v387_v52, %v395_v53  ;;  %v3856_v55 = vcombine.low %v387_v52, %v395_v53  ;;  %v4868_v56 = vld [vmem:[%s6161_s1 + $0x158] sm:$0xff]   ;;  %v4872_v0 = vld [vmem:[%s6161_s1 + $0x160] sm:$0xff]   ;;  %s5843_s16 = scalar_lea.vmem %s6163_s3, %s4670_s20 }
  0x1d   : > { %4227 = vmatprep.subr.bf16.mxu1 %v4841_v17  ;;  %1722 = vmatprep.mubr.bf16.mxu0 %v3841_v36  ;;  %v4863_v47 = vld [vmem:[%s6161_s1 + $0x188] sm:$0xff]   ;;  %v4869_v57 = vld [vmem:[%s6161_s1 + $0x1d8] sm:$0xff]   ;;  %v4873_v1 = vld [vmem:[%s6161_s1 + $0x1e0] sm:$0xff]  }
  0x1e   : > { %1779 = vmatprep.mubr.bf16.mxu1 %v3843_v39  ;;  %v388_v58 = vld [vmem:[%s5399_s10 + $0x88] sm:$0xff]  ;;  %v4870_v61 = vld [vmem:[%s6161_s1 + $0x118] sm:$0xff]   ;;  %v4874_v2 = vld [vmem:[%s6161_s1 + $0x120] sm:$0xff]  }
  0x1f   : > { %4194 = vmatpush3.bf16.msra.mxu0 %v4842_v18  ;;  %v396_v59 = vld [vmem:[%s5399_s10 + $0xc8] sm:$0xff]  ;;  %v4871_v63 = vld [vmem:[%s6161_s1 + $0x198] sm:$0xff]   ;;  %v4875_v3 = vld [vmem:[%s6161_s1 + $0x1a0] sm:$0xff]  }
  0x20   : > { %4228 = vmatpush3.bf16.msra.mxu1 %v4843_v19  ;;  %4195 = vmatprep.subr.bf16.mxu0 %v4844_v20  ;;  %v3859_v60 = vcombine.high %v388_v58, %v396_v59  ;;  %v3858_v62 = vcombine.low %v388_v58, %v396_v59  ;;  %v403_v4 = vld [vmem:[%s5399_s10 + $0x100] sm:$0xff]  ;;  %v4876_v8 = vld [vmem:[%s6161_s1 + $0x168] sm:$0xff]   ;;  %v4880_v16 = vld [vmem:[%s6161_s1 + $0x170] sm:$0xff]  }
  0x21   : > { %4229 = vmatprep.subr.bf16.mxu1 %v4845_v21  ;;  %v411_v5 = vld [vmem:[%s5399_s10 + $0x140] sm:$0xff]  ;;  %v4877_v9 = vld [vmem:[%s6161_s1 + $0x1e8] sm:$0xff]   ;;  %v4881_v17 = vld [vmem:[%s6161_s1 + $0x1f0] sm:$0xff]  }
  0x22   : > { %v3873_v6 = vcombine.high %v403_v4, %v411_v5  ;;  %v3872_v7 = vcombine.low %v403_v4, %v411_v5  ;;  %v404_v10 = vld [vmem:[%s5399_s10 + $0x108] sm:$0xff]  ;;  %v4882_v18 = vld [vmem:[%s6161_s1 + $0x130] sm:$0xff]   ;;  %v4884_v20 = vld [vmem:[%s6161_s1 + $0x178] sm:$0xff]  }
  0x23   : > { %4196 = vmatpush3.bf16.msra.mxu0 %v4846_v22  ;;  %v412_v11 = vld [vmem:[%s5399_s10 + $0x148] sm:$0xff]  ;;  %v4883_v19 = vld [vmem:[%s6161_s1 + $0x1b0] sm:$0xff]   ;;  %v4885_v21 = vld [vmem:[%s6161_s1 + $0x1f8] sm:$0xff]  }
  0x24   : > { %4230 = vmatpush3.bf16.msra.mxu1 %v4847_v23  ;;  %4197 = vmatprep.subr.bf16.mxu0 %v4848_v24  ;;  %v3875_v12 = vcombine.high %v404_v10, %v412_v11  ;;  %v4878_v13 = vld [vmem:[%s6161_s1 + $0x128] sm:$0xff]   ;;  %v3874_v14 = vcombine.low %v404_v10, %v412_v11  ;;  %v4886_v22 = vld [vmem:[%s6161_s1 + $0x138] sm:$0xff]   ;;  %v373_v24 = vld [vmem:[%s5399_s10 + $0x10] sm:$0xff] }
  0x25   : > { %4231 = vmatprep.subr.bf16.mxu1 %v4849_v25  ;;  %v4879_v15 = vld [vmem:[%s6161_s1 + $0x1a8] sm:$0xff]   ;;  %v4887_v23 = vld [vmem:[%s6161_s1 + $0x1b8] sm:$0xff]   ;;  %v381_v25 = vld [vmem:[%s5399_s10 + $0x50] sm:$0xff] }
  0x26   : > { %v4888_v32 = vld [vmem:[%s6161_s1 + $0x240] sm:$0xff]   ;;  %v4892_v36 = vld [vmem:[%s6161_s1 + $0x248] sm:$0xff]   ;;  %v4900_v52 = vld [vmem:[%s6161_s1 + $0x258] sm:$0xff]  }
  0x27   : > { %4198 = vmatpush3.bf16.msra.mxu0 %v4850_v26  ;;  %v374_v26 = vld [vmem:[%s5399_s10 + $0x18] sm:$0xff]  ;;  %v4889_v33 = vld [vmem:[%s6161_s1 + $0x2c0] sm:$0xff]   ;;  %v4893_v37 = vld [vmem:[%s6161_s1 + $0x2c8] sm:$0xff]  }
  0x28   : > { %4232 = vmatpush3.bf16.msra.mxu1 %v4851_v27  ;;  %4199 = vmatprep.subr.bf16.mxu0 %v4852_v28  ;;  %v3844_v27 = vcombine.low %v373_v24, %v381_v25  ;;  %v3845_v28 = vcombine.high %v373_v24, %v381_v25  ;;  %v4890_v34 = vld [vmem:[%s6161_s1 + $0x200] sm:$0xff]   ;;  %v4895_v39 = vld [vmem:[%s6161_s1 + $0x288] sm:$0xff]   ;;  %v4901_v53 = vld [vmem:[%s6161_s1 + $0x2d8] sm:$0xff]  }
  0x29   : > { %4233 = vmatprep.subr.bf16.mxu1 %v4853_v29  ;;  %v382_v29 = vld [vmem:[%s5399_s10 + $0x58] sm:$0xff]  ;;  %v4908_v4 = vld [vmem:[%s6161_s1 + $0x268] sm:$0xff]   ;;  %v4914_v10 = vld [vmem:[%s6161_s1 + $0x230] sm:$0xff]  }
  0x2a   : > { %v4909_v5 = vld [vmem:[%s6161_s1 + $0x2e8] sm:$0xff]   ;;  %v4915_v11 = vld [vmem:[%s6161_s1 + $0x2b0] sm:$0xff]   ;;  %v4920_v24 = vld [vmem:[%s6161_s1 + $0x340] sm:$0xff]  }
  0x2b   : > { %4200 = vmatpush3.bf16.msra.mxu0 %v4854_v30  ;;  %v3846_v30 = vcombine.low %v374_v26, %v382_v29  ;;  %v4921_v25 = vld [vmem:[%s6161_s1 + $0x3c0] sm:$0xff]  }
  0x2c   : > { %4234 = vmatpush3.bf16.msra.mxu1 %v4855_v31  ;;  %4253 = vmatprep.subr.bf16.mxu0 %v4856_v40  ;;  %v3847_v31 = vcombine.high %v374_v26, %v382_v29  ;;  %v389_v40 = vld [vmem:[%s5399_s10 + $0x90] sm:$0xff]  ;;  %v4922_v26 = vld [vmem:[%s6161_s1 + $0x300] sm:$0xff]   ;;  %v4925_v29 = vld [vmem:[%s6161_s1 + $0x3c8] sm:$0xff]  }
  0x2d   : > { %4287 = vmatprep.subr.bf16.mxu1 %v4857_v41  ;;  %v397_v41 = vld [vmem:[%s5399_s10 + $0xd0] sm:$0xff] }
  0x2e   : > { %1723 = vmatmul.mubr.bf16.vlgmr.msra.gmra.mrb[0].mxu0 %v3840_v35  ;;  %v4891_v35 = vld [vmem:[%s6161_s1 + $0x280] sm:$0xff]  }
  0x2f   : > { %1780 = vmatmul.mubr.bf16.vlgmr.msra.gmra.mrb[0].mxu1 %v3842_v38  ;;  %4254 = vmatpush3.bf16.msra.mxu0 %v4858_v42  ;;  %v4894_v38 = vld [vmem:[%s6161_s1 + $0x208] sm:$0xff]   ;;  %v3861_v42 = vcombine.high %v389_v40, %v397_v41 }
  0x30   : > { %4288 = vmatpush3.bf16.msra.mxu1 %v4859_v43  ;;  %4255 = vmatprep.subr.bf16.mxu0 %v4860_v44  ;;  %v3860_v43 = vcombine.low %v389_v40, %v397_v41  ;;  %v4896_v44 = vld [vmem:[%s6161_s1 + $0x250] sm:$0xff]  }
  0x31   : > { %4289 = vmatprep.subr.bf16.mxu1 %v4861_v45  ;;  %1730 = vmatprep.mubr.bf16.mxu0 %v3857_v54  ;;  %v4897_v45 = vld [vmem:[%s6161_s1 + $0x2d0] sm:$0xff]   ;;  %v4902_v54 = vld [vmem:[%s6161_s1 + $0x218] sm:$0xff]  }
  0x32   : > { %1787 = vmatprep.mubr.bf16.mxu1 %v3859_v60  ;;  %v4904_v60 = vld [vmem:[%s6161_s1 + $0x260] sm:$0xff]   ;;  %v4930_v41 = vld [vmem:[%s6161_s1 + $0x310] sm:$0xff]  }
  0x33   : > { %4256 = vmatpush3.bf16.msra.mxu0 %v4862_v46  ;;  %v390_v46 = vld [vmem:[%s5399_s10 + $0x98] sm:$0xff] }
  0x34   : > { %4290 = vmatpush3.bf16.msra.mxu1 %v4863_v47  ;;  %4257 = vmatprep.subr.bf16.mxu0 %v4864_v48  ;;  %v398_v47 = vld [vmem:[%s5399_s10 + $0xd8] sm:$0xff] }
  0x35   : > { %4291 = vmatprep.subr.bf16.mxu1 %v4865_v49  ;;  %v3863_v48 = vcombine.high %v390_v46, %v398_v47  ;;  %v4898_v49 = vld [vmem:[%s6161_s1 + $0x210] sm:$0xff]  }
  0x36   : > { %1731 = vmatmul.mubr.bf16.gmra.mrb[4].mxu0 %v3856_v55  ;;  %v4903_v55 = vld [vmem:[%s6161_s1 + $0x298] sm:$0xff]  }
  0x37   : > { %4258 = vmatpush3.bf16.msra.mxu0 %v4866_v50  ;;  %1788 = vmatmul.mubr.bf16.gmra.mrb[4].mxu1 %v3858_v62  ;;  %v3862_v50 = vcombine.low %v390_v46, %v398_v47  ;;  %v406_v62 = vld [vmem:[%s5399_s10 + $0x118] sm:$0xff] }
  0x38   : > { %4292 = vmatpush3.bf16.msra.mxu1 %v4867_v51  ;;  %4259 = vmatprep.subr.bf16.mxu0 %v4868_v56  ;;  %v4899_v51 = vld [vmem:[%s6161_s1 + $0x290] sm:$0xff]   ;;  %v4934_v46 = vld [vmem:[%s6161_s1 + $0x318] sm:$0xff]  }
  0x39   : > { %4293 = vmatprep.subr.bf16.mxu1 %v4869_v57  ;;  %1738 = vmatprep.mubr.bf16.mxu0 %v3873_v6  ;;  %v405_v56 = vld [vmem:[%s5399_s10 + $0x110] sm:$0xff]  ;;  %v4910_v6 = vld [vmem:[%s6161_s1 + $0x228] sm:$0xff]   ;;  %v4935_v47 = vld [vmem:[%s6161_s1 + $0x398] sm:$0xff]  }
  0x3a   : > { %1795 = vmatprep.mubr.bf16.mxu1 %v3875_v12  ;;  %v413_v57 = vld [vmem:[%s5399_s10 + $0x150] sm:$0xff]  ;;  %v4916_v12 = vld [vmem:[%s6161_s1 + $0x278] sm:$0xff]  }
  0x3b   : > { %4260 = vmatpush3.bf16.msra.mxu0 %v4870_v61  ;;  %v3877_v58 = vcombine.high %v405_v56, %v413_v57  ;;  %v3876_v59 = vcombine.low %v405_v56, %v413_v57  ;;  %v4905_v61 = vld [vmem:[%s6161_s1 + $0x2e0] sm:$0xff]  }
  0x3c   : > { %4294 = vmatpush3.bf16.msra.mxu1 %v4871_v63  ;;  %4261 = vmatprep.subr.bf16.mxu0 %v4872_v0  ;;  %v414_v63 = vld [vmem:[%s5399_s10 + $0x158] sm:$0xff]  ;;  %v4938_v57 = vld [vmem:[%s6161_s1 + $0x320] sm:$0xff]  }
  0x3d   : > { %4295 = vmatprep.subr.bf16.mxu1 %v4873_v1  ;;  %v3879_v0 = vcombine.high %v406_v62, %v414_v63  ;;  %v4906_v1 = vld [vmem:[%s6161_s1 + $0x220] sm:$0xff]  }
  0x3e   : > { %1739 = vmatmul.mubr.bf16.gmra.mrb[8].mxu0 %v3872_v7  ;;  %v4911_v7 = vld [vmem:[%s6161_s1 + $0x2a8] sm:$0xff]  }
  0x3f   : > { %4262 = vmatpush3.bf16.msra.mxu0 %v4874_v2  ;;  %1796 = vmatmul.mubr.bf16.gmra.mrb[8].mxu1 %v3874_v14  ;;  %v3878_v2 = vcombine.low %v406_v62, %v414_v63  ;;  %v4918_v14 = vld [vmem:[%s6161_s1 + $0x238] sm:$0xff]   ;;  %v4942_v62 = vld [vmem:[%s6161_s1 + $0x328] sm:$0xff]  }
  0x40   : > { %4296 = vmatpush3.bf16.msra.mxu1 %v4875_v3  ;;  %4263 = vmatprep.subr.bf16.mxu0 %v4876_v8  ;;  %v4907_v3 = vld [vmem:[%s6161_s1 + $0x2a0] sm:$0xff]   ;;  %v4912_v8 = vld [vmem:[%s6161_s1 + $0x270] sm:$0xff]   ;;  %v4943_v63 = vld [vmem:[%s6161_s1 + $0x3a8] sm:$0xff]  }
  0x41   : > { %4297 = vmatprep.subr.bf16.mxu1 %v4877_v9  ;;  %1836 = vmatprep.mubr.bf16.mxu0 %v3845_v28  ;;  %v4913_v9 = vld [vmem:[%s6161_s1 + $0x2f0] sm:$0xff]   ;;  %v4924_v28 = vld [vmem:[%s6161_s1 + $0x348] sm:$0xff]  }
  0x42   : > { %1893 = vmatprep.mubr.bf16.mxu1 %v3847_v31  ;;  %v4927_v31 = vld [vmem:[%s6161_s1 + $0x388] sm:$0xff]  }
  0x43   : > { %4264 = vmatpush3.bf16.msra.mxu0 %v4878_v13  ;;  %v4917_v13 = vld [vmem:[%s6161_s1 + $0x2f8] sm:$0xff]  }
  0x44   : > { %4298 = vmatpush3.bf16.msra.mxu1 %v4879_v15  ;;  %4265 = vmatprep.subr.bf16.mxu0 %v4880_v16  ;;  %v4919_v15 = vld [vmem:[%s6161_s1 + $0x2b8] sm:$0xff]   ;;  %v375_v16 = vld [vmem:[%s5399_s10 + $0x20] sm:$0xff] }
  0x45   : > { %4299 = vmatprep.subr.bf16.mxu1 %v4881_v17  ;;  %v383_v17 = vld [vmem:[%s5399_s10 + $0x60] sm:$0xff] }
  0x47   : > { %4266 = vmatpush3.bf16.msra.mxu0 %v4882_v18  ;;  %v376_v18 = vld [vmem:[%s5399_s10 + $0x28] sm:$0xff] }
  0x48   : > { %4300 = vmatpush3.bf16.msra.mxu1 %v4883_v19  ;;  %4267 = vmatprep.subr.bf16.mxu0 %v4884_v20  ;;  %v3848_v19 = vcombine.low %v375_v16, %v383_v17  ;;  %v3849_v20 = vcombine.high %v375_v16, %v383_v17  ;;  %v4952_v16 = vld [vmem:[%s6164_s4 + $0x40] sm:$0xff]  }
  0x49   : > { %4301 = vmatprep.subr.bf16.mxu1 %v4885_v21  ;;  %v384_v21 = vld [vmem:[%s5399_s10 + $0x68] sm:$0xff]  ;;  %v4953_v17 = vld [vmem:[%s6164_s4 + $0xc0] sm:$0xff]  }
  0x4b   : > { %4268 = vmatpush3.bf16.msra.mxu0 %v4886_v22  ;;  %v3850_v22 = vcombine.low %v376_v18, %v384_v21 }
  0x4c   : > { %4302 = vmatpush3.bf16.msra.mxu1 %v4887_v23  ;;  %4321 = vmatprep.subr.bf16.mxu0 %v4888_v32  ;;  %v3851_v23 = vcombine.high %v376_v18, %v384_v21  ;;  %v391_v32 = vld [vmem:[%s5399_s10 + $0xa0] sm:$0xff]  ;;  %v4957_v21 = vld [vmem:[%s6164_s4 + $0xc8] sm:$0xff]  }
  0x4d   : > { %4355 = vmatprep.subr.bf16.mxu1 %v4889_v33  ;;  %v399_v33 = vld [vmem:[%s5399_s10 + $0xe0] sm:$0xff] }
  0x4e   : > { %1837 = vmatmul.mubr.bf16.vlgmr.msra.gmra.mrb[12].mxu0 %v3844_v27  ;;  %v4923_v27 = vld [vmem:[%s6161_s1 + $0x380] sm:$0xff]  }
  0x4f   : > { %1894 = vmatmul.mubr.bf16.vlgmr.msra.gmra.mrb[12].mxu1 %v3846_v30  ;;  %4322 = vmatpush3.bf16.msra.mxu0 %v4890_v34  ;;  %v4926_v30 = vld [vmem:[%s6161_s1 + $0x308] sm:$0xff]   ;;  %v3865_v34 = vcombine.high %v391_v32, %v399_v33  ;;  %v4954_v18 = vld [vmem:[%s6164_s4] sm:$0xff]  }
  0x50   : > { %4356 = vmatpush3.bf16.msra.mxu1 %v4891_v35  ;;  %4323 = vmatprep.subr.bf16.mxu0 %v4892_v36  ;;  %v3864_v35 = vcombine.low %v391_v32, %v399_v33  ;;  %v4928_v36 = vld [vmem:[%s6161_s1 + $0x350] sm:$0xff]  }
  0x51   : > { %4357 = vmatprep.subr.bf16.mxu1 %v4893_v37  ;;  %1844 = vmatprep.mubr.bf16.mxu0 %v3861_v42  ;;  %v4929_v37 = vld [vmem:[%s6161_s1 + $0x3d0] sm:$0xff]  }
  0x52   : > { %1901 = vmatprep.mubr.bf16.mxu1 %v3863_v48  ;;  %v407_v48 = vld [vmem:[%s5399_s10 + $0x120] sm:$0xff]  ;;  %v4962_v33 = vld [vmem:[%s6164_s4 + $0x10] sm:$0xff]  }
  0x53   : > { %4324 = vmatpush3.bf16.msra.mxu0 %v4894_v38  ;;  %v392_v38 = vld [vmem:[%s5399_s10 + $0xa8] sm:$0xff] }
  0x54   : > { %4358 = vmatpush3.bf16.msra.mxu1 %v4895_v39  ;;  %4325 = vmatprep.subr.bf16.mxu0 %v4896_v44  ;;  %v400_v39 = vld [vmem:[%s5399_s10 + $0xe8] sm:$0xff]  ;;  %v4932_v44 = vld [vmem:[%s6161_s1 + $0x358] sm:$0xff]  }
  0x55   : > { %4359 = vmatprep.subr.bf16.mxu1 %v4897_v45  ;;  %v3867_v40 = vcombine.high %v392_v38, %v400_v39  ;;  %v3866_v42 = vcombine.low %v392_v38, %v400_v39  ;;  %v4933_v45 = vld [vmem:[%s6161_s1 + $0x3d8] sm:$0xff]  }
  0x56   : > { %1845 = vmatmul.mubr.bf16.gmra.mrb[16].mxu0 %v3860_v43  ;;  %v4931_v43 = vld [vmem:[%s6161_s1 + $0x390] sm:$0xff]   ;;  %v4966_v38 = vld [vmem:[%s6164_s4 + $0x18] sm:$0xff]  }
  0x57   : > { %4326 = vmatpush3.bf16.msra.mxu0 %v4898_v49  ;;  %1902 = vmatmul.mubr.bf16.gmra.mrb[16].mxu1 %v3862_v50  ;;  %v415_v49 = vld [vmem:[%s5399_s10 + $0x160] sm:$0xff]  ;;  %v4967_v39 = vld [vmem:[%s6164_s4 + $0x98] sm:$0xff]  }
  0x58   : > { %4360 = vmatpush3.bf16.msra.mxu1 %v4899_v51  ;;  %4327 = vmatprep.subr.bf16.mxu0 %v4900_v52  ;;  %v3881_v50 = vcombine.high %v407_v48, %v415_v49  ;;  %v3880_v51 = vcombine.low %v407_v48, %v415_v49  ;;  %v4936_v52 = vld [vmem:[%s6161_s1 + $0x360] sm:$0xff]  }
  0x59   : > { %4361 = vmatprep.subr.bf16.mxu1 %v4901_v53  ;;  %1852 = vmatprep.mubr.bf16.mxu0 %v3877_v58  ;;  %v4937_v53 = vld [vmem:[%s6161_s1 + $0x3e0] sm:$0xff]  }
  0x5a   : > { %1909 = vmatprep.mubr.bf16.mxu1 %v3879_v0  ;;  %v4944_v0 = vld [vmem:[%s6161_s1 + $0x370] sm:$0xff]   ;;  %v4970_v49 = vld [vmem:[%s6164_s4 + $0x20] sm:$0xff]  }
  0x5b   : > { %4328 = vmatpush3.bf16.msra.mxu0 %v4902_v54  ;;  %v408_v54 = vld [vmem:[%s5399_s10 + $0x128] sm:$0xff] }
  0x5c   : > { %4362 = vmatpush3.bf16.msra.mxu1 %v4903_v55  ;;  %4329 = vmatprep.subr.bf16.mxu0 %v4904_v60  ;;  %v416_v55 = vld [vmem:[%s5399_s10 + $0x168] sm:$0xff] }
  0x5d   : > { %4363 = vmatprep.subr.bf16.mxu1 %v4905_v61  ;;  %v3883_v56 = vcombine.high %v408_v54, %v416_v55  ;;  %v3882_v58 = vcombine.low %v408_v54, %v416_v55  ;;  %v4940_v60 = vld [vmem:[%s6161_s1 + $0x368] sm:$0xff]  }
  0x5e   : > { %1853 = vmatmul.mubr.bf16.gmra.mrb[20].mxu0 %v3876_v59  ;;  %v4939_v59 = vld [vmem:[%s6161_s1 + $0x3a0] sm:$0xff]   ;;  %v4941_v61 = vld [vmem:[%s6161_s1 + $0x3e8] sm:$0xff]  }
  0x5f   : > { %4330 = vmatpush3.bf16.msra.mxu0 %v4906_v1  ;;  %1910 = vmatmul.mubr.bf16.gmra.mrb[20].mxu1 %v3878_v2  ;;  %v4945_v1 = vld [vmem:[%s6161_s1 + $0x3f0] sm:$0xff]   ;;  %v4974_v54 = vld [vmem:[%s6164_s4 + $0x28] sm:$0xff]  }
  0x60   : > { %4364 = vmatpush3.bf16.msra.mxu1 %v4907_v3  ;;  %4331 = vmatprep.subr.bf16.mxu0 %v4908_v4  ;;  %v4946_v2 = vld [vmem:[%s6161_s1 + $0x330] sm:$0xff]   ;;  %v4948_v4 = vld [vmem:[%s6161_s1 + $0x378] sm:$0xff]   ;;  %v4975_v55 = vld [vmem:[%s6164_s4 + $0xa8] sm:$0xff]  }
  0x61   : > { %4365 = vmatprep.subr.bf16.mxu1 %v4909_v5  ;;  %1950 = vmatprep.mubr.bf16.mxu0 %v3849_v20  ;;  %v4947_v3 = vld [vmem:[%s6161_s1 + $0x3b0] sm:$0xff]   ;;  %v4949_v5 = vld [vmem:[%s6161_s1 + $0x3f8] sm:$0xff]   ;;  %v4956_v20 = vld [vmem:[%s6164_s4 + $0x48] sm:$0xff]  }
  0x62   : > { %2007 = vmatprep.mubr.bf16.mxu1 %v3851_v23  ;;  %v4959_v23 = vld [vmem:[%s6164_s4 + $0x88] sm:$0xff]  }
  0x63   : > { %4332 = vmatpush3.bf16.msra.mxu0 %v4910_v6  ;;  %v4950_v6 = vld [vmem:[%s6161_s1 + $0x338] sm:$0xff]  }
  0x64   : > { %4366 = vmatpush3.bf16.msra.mxu1 %v4911_v7  ;;  %4333 = vmatprep.subr.bf16.mxu0 %v4912_v8  ;;  %v4951_v7 = vld [vmem:[%s6161_s1 + $0x3b8] sm:$0xff]   ;;  %v377_v8 = vld [vmem:[%s5399_s10 + $0x30] sm:$0xff] }
  0x65   : > { %4367 = vmatprep.subr.bf16.mxu1 %v4913_v9  ;;  %v385_v9 = vld [vmem:[%s5399_s10 + $0x70] sm:$0xff] }
  0x67   : > { %4334 = vmatpush3.bf16.msra.mxu0 %v4914_v10  ;;  %v378_v10 = vld [vmem:[%s5399_s10 + $0x38] sm:$0xff] }
  0x68   : > { %4368 = vmatpush3.bf16.msra.mxu1 %v4915_v11  ;;  %4335 = vmatprep.subr.bf16.mxu0 %v4916_v12  ;;  %v3852_v11 = vcombine.low %v377_v8, %v385_v9  ;;  %v3853_v12 = vcombine.high %v377_v8, %v385_v9  ;;  %v4994_v8 = vld [vmem:[%s6164_s4 + $0x148] sm:$0xff]  }
  0x69   : > { %4369 = vmatprep.subr.bf16.mxu1 %v4917_v13  ;;  %v386_v13 = vld [vmem:[%s5399_s10 + $0x78] sm:$0xff]  ;;  %v4995_v9 = vld [vmem:[%s6164_s4 + $0x1c8] sm:$0xff]  }
  0x6b   : > { %4336 = vmatpush3.bf16.msra.mxu0 %v4918_v14  ;;  %v3854_v14 = vcombine.low %v378_v10, %v386_v13 }
  0x6c   : > { %4370 = vmatpush3.bf16.msra.mxu1 %v4919_v15  ;;  %4389 = vmatprep.subr.bf16.mxu0 %v4920_v24  ;;  %v3855_v15 = vcombine.high %v378_v10, %v386_v13  ;;  %v393_v24 = vld [vmem:[%s5399_s10 + $0xb0] sm:$0xff]  ;;  %v4996_v10 = vld [vmem:[%s6164_s4 + $0x108] sm:$0xff]  }
  0x6d   : > { %4423 = vmatprep.subr.bf16.mxu1 %v4921_v25  ;;  %v401_v25 = vld [vmem:[%s5399_s10 + $0xf0] sm:$0xff] }
  0x6e   : > { %1951 = vmatmul.mubr.bf16.vlgmr.msra.gmra.mrb[24].mxu0 %v3848_v19  ;;  %v4955_v19 = vld [vmem:[%s6164_s4 + $0x80] sm:$0xff]   ;;  %v5000_v13 = vld [vmem:[%s5843_s16 + $0x54] ss:$36 sps:$4 sm:$0xff]  }
  0x6f   : > { %2008 = vmatmul.mubr.bf16.vlgmr.msra.gmra.mrb[24].mxu1 %v3850_v22  ;;  %4390 = vmatpush3.bf16.msra.mxu0 %v4922_v26  ;;  %v4958_v22 = vld [vmem:[%s6164_s4 + $0x8] sm:$0xff]   ;;  %v3869_v26 = vcombine.high %v393_v24, %v401_v25 }
  0x70   : > { %4424 = vmatpush3.bf16.msra.mxu1 %v4923_v27  ;;  %4391 = vmatprep.subr.bf16.mxu0 %v4924_v28  ;;  %v3868_v27 = vcombine.low %v393_v24, %v401_v25  ;;  %v4960_v28 = vld [vmem:[%s6164_s4 + $0x50] sm:$0xff]   ;;  %v5014_v25 = vld [vmem:[%s5843_s16 + $0x9c] ss:$36 sps:$4 sm:$0xff]  }
  0x71   : > { %4425 = vmatprep.subr.bf16.mxu1 %v4925_v29  ;;  %1958 = vmatprep.mubr.bf16.mxu0 %v3865_v34  ;;  %v4961_v29 = vld [vmem:[%s6164_s4 + $0xd0] sm:$0xff]  }
  0x72   : > { %2015 = vmatprep.mubr.bf16.mxu1 %v3867_v40  ;;  %v409_v40 = vld [vmem:[%s5399_s10 + $0x130] sm:$0xff] }
  0x73   : > { %4392 = vmatpush3.bf16.msra.mxu0 %v4926_v30  ;;  %v394_v30 = vld [vmem:[%s5399_s10 + $0xb8] sm:$0xff] }
  0x74   : > { %4426 = vmatpush3.bf16.msra.mxu1 %v4927_v31  ;;  %4393 = vmatprep.subr.bf16.mxu0 %v4928_v36  ;;  %v402_v31 = vld [vmem:[%s5399_s10 + $0xf8] sm:$0xff] }
  0x75   : > { %4427 = vmatprep.subr.bf16.mxu1 %v4929_v37  ;;  %v3871_v32 = vcombine.high %v394_v30, %v402_v31  ;;  %v3870_v34 = vcombine.low %v394_v30, %v402_v31  ;;  %v4964_v36 = vld [vmem:[%s6164_s4 + $0x58] sm:$0xff]   ;;  %v5020_v30 = vld [vmem:[%s6164_s4 + $0x120] sm:$0xff]  }
  0x76   : > { %1959 = vmatmul.mubr.bf16.gmra.mrb[28].mxu0 %v3864_v35  ;;  %v4963_v35 = vld [vmem:[%s6164_s4 + $0x90] sm:$0xff]   ;;  %v4965_v37 = vld [vmem:[%s6164_s4 + $0xd8] sm:$0xff]   ;;  %v5021_v31 = vld [vmem:[%s6164_s4 + $0x1a0] sm:$0xff]  }
  0x77   : > { %4394 = vmatpush3.bf16.msra.mxu0 %v4930_v41  ;;  %2016 = vmatmul.mubr.bf16.gmra.mrb[28].mxu1 %v3866_v42  ;;  %v417_v41 = vld [vmem:[%s5399_s10 + $0x170] sm:$0xff] }
  0x78   : > { %4428 = vmatpush3.bf16.msra.mxu1 %v4931_v43  ;;  %4395 = vmatprep.subr.bf16.mxu0 %v4932_v44  ;;  %v3885_v42 = vcombine.high %v409_v40, %v417_v41  ;;  %v3884_v43 = vcombine.low %v409_v40, %v417_v41  ;;  %v4968_v44 = vld [vmem:[%s6164_s4 + $0x60] sm:$0xff]   ;;  %v5012_v24 = vld [vmem:[%s5843_s16 + $0x94] ss:$36 sps:$4 sm:$0xff]  }
  0x79   : > { %4429 = vmatprep.subr.bf16.mxu1 %v4933_v45  ;;  %1966 = vmatprep.mubr.bf16.mxu0 %v3881_v50  ;;  %v4969_v45 = vld [vmem:[%s6164_s4 + $0xe0] sm:$0xff]   ;;  %v5032_v40 = vld [vmem:[%s6164_s4 + $0x170] sm:$0xff]  }
  0x7a   : > { %2023 = vmatprep.mubr.bf16.mxu1 %v3883_v56  ;;  %v4976_v56 = vld [vmem:[%s6164_s4 + $0x70] sm:$0xff]  }
  0x7b   : > { %4396 = vmatpush3.bf16.msra.mxu0 %v4934_v46  ;;  %v410_v46 = vld [vmem:[%s5399_s10 + $0x138] sm:$0xff]  ;;  %v5033_v41 = vld [vmem:[%s6164_s4 + $0x1f0] sm:$0xff]  }
  0x7c   : > { %4430 = vmatpush3.bf16.msra.mxu1 %v4935_v47  ;;  %4397 = vmatprep.subr.bf16.mxu0 %v4936_v52  ;;  %v418_v47 = vld [vmem:[%s5399_s10 + $0x178] sm:$0xff]  ;;  %v4972_v52 = vld [vmem:[%s6164_s4 + $0x68] sm:$0xff]   ;;  %s3375_s10 = ssub.s32 (%p5297_p4), 11, %s5347_s23 }
  0x7d   : > { %4431 = vmatprep.subr.bf16.mxu1 %v4937_v53  ;;  %v3887_v48 = vcombine.high %v410_v46, %v418_v47  ;;  %v3886_v50 = vcombine.low %v410_v46, %v418_v47  ;;  %v4973_v53 = vld [vmem:[%s6164_s4 + $0xe8] sm:$0xff]   ;;  %v5038_v46 = vld [vmem:[%s6164_s4 + $0x138] sm:$0xff]   ;;  %p3376_p9 = scmp.lt.s32.totalorder (%p5297_p4), %s3375_s10, 6 }
  0x7e   : > { %1967 = vmatmul.mubr.bf16.gmra.mrb[32].mxu0 %v3880_v51  ;;  %v4971_v51 = vld [vmem:[%s6164_s4 + $0xa0] sm:$0xff]   ;;  %v5039_v47 = vld [vmem:[%s6164_s4 + $0x1b8] sm:$0xff]  }
  0x7f   : > { %4398 = vmatpush3.bf16.msra.mxu0 %v4938_v57  ;;  %2024 = vmatmul.mubr.bf16.gmra.mrb[32].mxu1 %v3882_v58  ;;  %v4977_v57 = vld [vmem:[%s6164_s4 + $0xf0] sm:$0xff]  }
  0x80   : > { %4432 = vmatpush3.bf16.msra.mxu1 %v4939_v59  ;;  %4399 = vmatprep.subr.bf16.mxu0 %v4940_v60  ;;  %v4978_v58 = vld [vmem:[%s6164_s4 + $0x30] sm:$0xff]   ;;  %v4980_v60 = vld [vmem:[%s6164_s4 + $0x78] sm:$0xff]  }
  0x81   : > { %4433 = vmatprep.subr.bf16.mxu1 %v4941_v61  ;;  %2064 = vmatprep.mubr.bf16.mxu0 %v3853_v12  ;;  %v4979_v59 = vld [vmem:[%s6164_s4 + $0xb0] sm:$0xff]   ;;  %v4981_v61 = vld [vmem:[%s6164_s4 + $0xf8] sm:$0xff]  }
  0x82   : > { %2121 = vmatprep.mubr.bf16.mxu1 %v3855_v15  ;;  %v4998_v12 = vld [vmem:[%s5843_s16 + $0x4c] ss:$36 sps:$4 sm:$0xff]  }
  0x83   : > { %4400 = vmatpush3.bf16.msra.mxu0 %v4942_v62  ;;  %v4982_v62 = vld [vmem:[%s6164_s4 + $0x38] sm:$0xff]   ;;  %v5003_v15 = vld [vmem:[%s5843_s16 + $0x50] ss:$36 sps:$4 sm:$0xff]  }
  0x84   : > { %4434 = vmatpush3.bf16.msra.mxu1 %v4943_v63  ;;  %4401 = vmatprep.subr.bf16.mxu0 %v4944_v0  ;;  %v4983_v63 = vld [vmem:[%s6164_s4 + $0xb8] sm:$0xff]   ;;  %v4984_v0 = vld [vmem:[%s5843_s16] ss:$36 sps:$4 sm:$0xff]  }
  0x85   : > { %4435 = vmatprep.subr.bf16.mxu1 %v4945_v1  ;;  %v4986_v1 = vld [vmem:[%s5843_s16 + $0x4] ss:$36 sps:$4 sm:$0xff]  }
  0x87   : > { %4402 = vmatpush3.bf16.msra.mxu0 %v4946_v2  ;;  %v4987_v2 = vld [vmem:[%s5843_s16 + $0x8] ss:$36 sps:$4 sm:$0xff]  }
  0x88   : > { %4436 = vmatpush3.bf16.msra.mxu1 %v4947_v3  ;;  %4403 = vmatprep.subr.bf16.mxu0 %v4948_v4  ;;  %v4989_v3 = vld [vmem:[%s5843_s16 + $0xc] ss:$36 sps:$4 sm:$0xff]   ;;  %v4990_v4 = vld [vmem:[%s6164_s4 + $0x140] sm:$0xff]  }
  0x89   : > { %4437 = vmatprep.subr.bf16.mxu1 %v4949_v5  ;;  %v4991_v5 = vld [vmem:[%s6164_s4 + $0x1c0] sm:$0xff]  }
  0x8b   : > { %4404 = vmatpush3.bf16.msra.mxu0 %v4950_v6  ;;  %v4992_v6 = vld [vmem:[%s6164_s4 + $0x100] sm:$0xff]  }
  0x8c   : > { %4438 = vmatpush3.bf16.msra.mxu1 %v4951_v7  ;;  %4457 = vmatprep.subr.bf16.mxu0 %v4952_v16  ;;  %v4993_v7 = vld [vmem:[%s6164_s4 + $0x180] sm:$0xff]   ;;  %v5004_v16 = vld [vmem:[%s6164_s4 + $0x150] sm:$0xff]  }
  0x8d   : > { %4497 = vmatprep.subr.bf16.mxu1 %v4953_v17  ;;  %v5005_v17 = vld [vmem:[%s6164_s4 + $0x1d0] sm:$0xff]  }
  0x8e   : > { %2065 = vmatmul.mubr.bf16.vlgmr.msra.gmra.mrb[36].mxu0 %v3852_v11  ;;  %v4997_v11 = vld [vmem:[%s6164_s4 + $0x188] sm:$0xff]  }
  0x8f   : > { %2122 = vmatmul.mubr.bf16.vlgmr.msra.gmra.mrb[36].mxu1 %v3854_v14  ;;  %4458 = vmatpush3.bf16.msra.mxu0 %v4954_v18  ;;  %v5002_v14 = vld [vmem:[%s5843_s16 + $0x48] ss:$36 sps:$4 sm:$0xff]   ;;  %v5006_v18 = vld [vmem:[%s6164_s4 + $0x110] sm:$0xff]  }
  0x90   : > { %4498 = vmatpush3.bf16.msra.mxu1 %v4955_v19  ;;  %4459 = vmatprep.subr.bf16.mxu0 %v4956_v20  ;;  %v5007_v19 = vld [vmem:[%s6164_s4 + $0x190] sm:$0xff]   ;;  %v5008_v20 = vld [vmem:[%s6164_s4 + $0x158] sm:$0xff]  }
  0x91   : > { %4499 = vmatprep.subr.bf16.mxu1 %v4957_v21  ;;  %2072 = vmatprep.mubr.bf16.mxu0 %v3869_v26  ;;  %v5009_v21 = vld [vmem:[%s6164_s4 + $0x1d8] sm:$0xff]   ;;  %v5016_v26 = vld [vmem:[%s5843_s16 + $0x90] ss:$36 sps:$4 sm:$0xff]  }
  0x92   : > { %2129 = vmatprep.mubr.bf16.mxu1 %v3871_v32  ;;  %v5022_v32 = vld [vmem:[%s6164_s4 + $0x168] sm:$0xff]  }
  0x93   : > { %4460 = vmatpush3.bf16.msra.mxu0 %v4958_v22  ;;  %v5010_v22 = vld [vmem:[%s6164_s4 + $0x118] sm:$0xff]  }
  0x94   : > { %4500 = vmatpush3.bf16.msra.mxu1 %v4959_v23  ;;  %4461 = vmatprep.subr.bf16.mxu0 %v4960_v28  ;;  %v5011_v23 = vld [vmem:[%s6164_s4 + $0x198] sm:$0xff]   ;;  %v5018_v28 = vld [vmem:[%s6164_s4 + $0x160] sm:$0xff]  }
  0x95   : > { %4501 = vmatprep.subr.bf16.mxu1 %v4961_v29  ;;  %v5019_v29 = vld [vmem:[%s6164_s4 + $0x1e0] sm:$0xff]  }
  0x96   : > { %2073 = vmatmul.mubr.bf16.gmra.mrb[40].mxu0 %v3868_v27  ;;  %v5017_v27 = vld [vmem:[%s5843_s16 + $0x98] ss:$36 sps:$4 sm:$0xff]  }
  0x97   : > { %4462 = vmatpush3.bf16.msra.mxu0 %v4962_v33  ;;  %2130 = vmatmul.mubr.bf16.gmra.mrb[40].mxu1 %v3870_v34  ;;  %v5023_v33 = vld [vmem:[%s6164_s4 + $0x1e8] sm:$0xff]  }
  0x98   : > { %4502 = vmatpush3.bf16.msra.mxu1 %v4963_v35  ;;  %4463 = vmatprep.subr.bf16.mxu0 %v4964_v36  ;;  %v5024_v34 = vld [vmem:[%s6164_s4 + $0x128] sm:$0xff]   ;;  %v5026_v36 = vld [vmem:[%s5843_s16 + $0xdc] ss:$36 sps:$4 sm:$0xff]  }
  0x99   : > { %4503 = vmatprep.subr.bf16.mxu1 %v4965_v37  ;;  %2080 = vmatprep.mubr.bf16.mxu0 %v3885_v42  ;;  %v5025_v35 = vld [vmem:[%s6164_s4 + $0x1a8] sm:$0xff]   ;;  %v5034_v42 = vld [vmem:[%s6164_s4 + $0x130] sm:$0xff]  }
  0x9a   : > { %2137 = vmatprep.mubr.bf16.mxu1 %v3887_v48  ;;  %v5028_v37 = vld [vmem:[%s5843_s16 + $0xe4] ss:$36 sps:$4 sm:$0xff]   ;;  %v5040_v48 = vld [vmem:[%s5843_s16 + $0x10] ss:$36 sps:$4 sm:$0xff]  }
  0x9b   : > { %4464 = vmatpush3.bf16.msra.mxu0 %v4966_v38  ;;  %v5030_v38 = vld [vmem:[%s5843_s16 + $0xd8] ss:$36 sps:$4 sm:$0xff]  }
  0x9c   : > { %4504 = vmatpush3.bf16.msra.mxu1 %v4967_v39  ;;  %4465 = vmatprep.subr.bf16.mxu0 %v4968_v44  ;;  %v5031_v39 = vld [vmem:[%s5843_s16 + $0xe0] ss:$36 sps:$4 sm:$0xff]   ;;  %v5036_v44 = vld [vmem:[%s6164_s4 + $0x178] sm:$0xff]  }
  0x9d   : > { %4505 = vmatprep.subr.bf16.mxu1 %v4969_v45  ;;  %v5037_v45 = vld [vmem:[%s6164_s4 + $0x1f8] sm:$0xff]  }
  0x9e   : > { %2081 = vmatmul.mubr.bf16.gmra.mrb[44].mxu0 %v3884_v43  ;;  %v5035_v43 = vld [vmem:[%s6164_s4 + $0x1b0] sm:$0xff]  }
  0x9f   : > { %4466 = vmatpush3.bf16.msra.mxu0 %v4970_v49  ;;  %2138 = vmatmul.mubr.bf16.gmra.mrb[44].mxu1 %v3886_v50  ;;  %v5042_v49 = vld [vmem:[%s5843_s16 + $0x14] ss:$36 sps:$4 sm:$0xff]  }
  0xa0   : > { %4506 = vmatpush3.bf16.msra.mxu1 %v4971_v51  ;;  %4467 = vmatprep.subr.bf16.mxu0 %v4972_v52  ;;  %v5043_v50 = vld [vmem:[%s5843_s16 + $0x18] ss:$36 sps:$4 sm:$0xff]   ;;  %v5046_v52 = vld [vmem:[%s6164_s4 + $0x200] sm:$0xff]  }
  0xa1   : > { %4507 = vmatprep.subr.bf16.mxu1 %v4973_v53  ;;  %3022 = vmatprep.mubr.bf16.mxu0 %v4986_v1  ;;  %v5045_v51 = vld [vmem:[%s5843_s16 + $0x1c] ss:$36 sps:$4 sm:$0xff]   ;;  %v5047_v53 = vld [vmem:[%s6164_s4 + $0x208] sm:$0xff]  }
  0xa2   : > { %3087 = vmatprep.mubr.bf16.mxu1 %v4989_v3  ;;  %v5064_v1 = vld [vmem:[%s5843_s16 + $0xec] ss:$36 sps:$4 sm:$0xff]  }
  0xa3   : > { %4468 = vmatpush3.bf16.msra.mxu0 %v4974_v54  ;;  %v5048_v54 = vld [vmem:[%s5843_s16 + $0x5c] ss:$36 sps:$4 sm:$0xff]   ;;  %v5063_v3 = vld [vmem:[%s6164_s4 + $0x228] sm:$0xff]  }
  0xa4   : > { %4508 = vmatpush3.bf16.msra.mxu1 %v4975_v55  ;;  %4469 = vmatprep.subr.bf16.mxu0 %v4976_v56  ;;  %v5050_v55 = vld [vmem:[%s5843_s16 + $0x64] ss:$36 sps:$4 sm:$0xff]   ;;  %v5052_v56 = vld [vmem:[%s5843_s16 + $0x58] ss:$36 sps:$4 sm:$0xff]  }
  0xa5   : > { %4509 = vmatprep.subr.bf16.mxu1 %v4977_v57  ;;  %v5053_v57 = vld [vmem:[%s5843_s16 + $0x60] ss:$36 sps:$4 sm:$0xff]  }
  0xa7   : > { %4470 = vmatpush3.bf16.msra.mxu0 %v4978_v58  ;;  %v5054_v58 = vld [vmem:[%s6164_s4 + $0x210] sm:$0xff]  }
  0xa8   : > { %4510 = vmatpush3.bf16.msra.mxu1 %v4979_v59  ;;  %4471 = vmatprep.subr.bf16.mxu0 %v4980_v60  ;;  %v5056_v59 = vld [vmem:[%s5843_s16 + $0xa4] ss:$36 sps:$4 sm:$0xff]   ;;  %v5058_v60 = vld [vmem:[%s5843_s16 + $0xac] ss:$36 sps:$4 sm:$0xff]  }
  0xa9   : > { %4511 = vmatprep.subr.bf16.mxu1 %v4981_v61  ;;  %v5055_v61 = vld [vmem:[%s6164_s4 + $0x218] sm:$0xff]  }
  0xab   : > { %4472 = vmatpush3.bf16.msra.mxu0 %v4982_v62  ;;  %v5060_v62 = vld [vmem:[%s5843_s16 + $0xa0] ss:$36 sps:$4 sm:$0xff]  }
  0xac   : > { %4512 = vmatpush3.bf16.msra.mxu1 %v4983_v63  ;;  %4537 = vmatprep.subr.bf16.mxu0 %v4990_v4  ;;  %v5061_v63 = vld [vmem:[%s5843_s16 + $0xa8] ss:$36 sps:$4 sm:$0xff]  }
  0xad   : > { %4577 = vmatprep.subr.bf16.mxu1 %v4991_v5  ;;  %v5068_v4 = vld [vmem:[%s5843_s16 + $0xe8] ss:$36 sps:$4 sm:$0xff]   ;;  %v5070_v5 = vld [vmem:[%s6164_s4 + $0x230] sm:$0xff]  }
  0xae   : > { %3023 = vmatmul.mubr.bf16.vlgmr.msra.gmra.mrb[48].mxu0 %v4984_v0  ;;  %v5062_v0 = vld [vmem:[%s6164_s4 + $0x220] sm:$0xff]  }
  0xaf   : > { %3088 = vmatmul.mubr.bf16.vlgmr.msra.gmra.mrb[48].mxu1 %v4987_v2  ;;  %4538 = vmatpush3.bf16.msra.mxu0 %v4992_v6  ;;  %v5066_v2 = vld [vmem:[%s5843_s16 + $0xf4] ss:$36 sps:$4 sm:$0xff]  }
  0xb0   : > { %4578 = vmatpush3.bf16.msra.mxu1 %v4993_v7  ;;  %4539 = vmatprep.subr.bf16.mxu0 %v4994_v8  ;;  %v5069_v6 = vld [vmem:[%s5843_s16 + $0xf0] ss:$36 sps:$4 sm:$0xff]   ;;  %v5072_v7 = vld [vmem:[%s5843_s16 + $0x20] ss:$36 sps:$4 sm:$0xff]  }
  0xb1   : > { %4579 = vmatprep.subr.bf16.mxu1 %v4995_v9  ;;  %3030 = vmatprep.mubr.bf16.mxu0 %v4998_v12  ;;  %v5073_v8 = vld [vmem:[%s5843_s16 + $0xb0] ss:$36 sps:$4 sm:$0xff]   ;;  %v5071_v9 = vld [vmem:[%s6164_s4 + $0x238] sm:$0xff]   ;;  %v3839_v12 = vld [vmem:[%s6162_s2] ss:$0 sm:$0xff] }
  0xb2   : > { %3095 = vmatprep.mubr.bf16.mxu1 %v5000_v13 }
  0xb3   : > { %4540 = vmatpush3.bf16.msra.mxu0 %v4996_v10 }
  0xb4   : > { %4580 = vmatpush3.bf16.msra.mxu1 %v4997_v11  ;;  %4541 = vmatprep.subr.bf16.mxu0 %v5004_v16 }
  0xb5   : > { %4581 = vmatprep.subr.bf16.mxu1 %v5005_v17 }
  0xb6   : > { %3031 = vmatmul.mubr.bf16.gmra.mrb[52].mxu0 %v5002_v14 }
  0xb7   : > { %3096 = vmatmul.mubr.bf16.gmra.mrb[52].mxu1 %v5003_v15  ;;  %4542 = vmatpush3.bf16.msra.mxu0 %v5006_v18 }
  0xb8   : > { %4582 = vmatpush3.bf16.msra.mxu1 %v5007_v19  ;;  %4543 = vmatprep.subr.bf16.mxu0 %v5008_v20 }
  0xb9   : > { %4583 = vmatprep.subr.bf16.mxu1 %v5009_v21  ;;  %3038 = vmatprep.mubr.bf16.mxu0 %v5012_v24 }
  0xba   : > { %3103 = vmatprep.mubr.bf16.mxu1 %v5014_v25  ;;  %v5075_v25 = vld [vmem:[%s5843_s16 + $0xf8] ss:$36 sps:$4 sm:$0xff]  }
  0xbb   : > { %4544 = vmatpush3.bf16.msra.mxu0 %v5010_v22 }
  0xbc   : > { %4584 = vmatpush3.bf16.msra.mxu1 %v5011_v23  ;;  %4545 = vmatprep.subr.bf16.mxu0 %v5018_v28  ;;  %v5074_v23 = vld [vmem:[%s5843_s16 + $0x68] ss:$36 sps:$4 sm:$0xff]   ;;  %s317_s16 = sand.u32 1, %s5158_s24  }
  0xbd   : > { %4585 = vmatprep.subr.bf16.mxu1 %v5019_v29  ;;  %s4669_s19 = smul.u32 24, %s317_s16  ;;  %s3834_s29 = sshll.u32 %s317_s16, 5 }
  0xbe   : > { %3039 = vmatmul.mubr.bf16.gmra.mrb[56].mxu0 %v5016_v26  ;;  %s6035_s24 = scalar_lea.vmem [#allocation3], %s3834_s29  }
  0xbf   : > { %3104 = vmatmul.mubr.bf16.gmra.mrb[56].mxu1 %v5017_v27  ;;  %4546 = vmatpush3.bf16.msra.mxu0 %v5020_v30  ;;  %s6013_s21 = scalar_lea.vmem [#allocation2], %s4669_s19  }
  0xc0   : > { %4586 = vmatpush3.bf16.msra.mxu1 %v5021_v31  ;;  %4547 = vmatprep.subr.bf16.mxu0 %v5022_v32 }
  0xc1   : > { %4587 = vmatprep.subr.bf16.mxu1 %v5023_v33  ;;  %3046 = vmatprep.mubr.bf16.mxu0 %v5026_v36 }
  0xc2   : > { %3111 = vmatprep.mubr.bf16.mxu1 %v5028_v37 }
  0xc3   : > { %4548 = vmatpush3.bf16.msra.mxu0 %v5024_v34 }
  0xc4   : > { %4588 = vmatpush3.bf16.msra.mxu1 %v5025_v35  ;;  %4549 = vmatprep.subr.bf16.mxu0 %v5032_v40 }
  0xc5   : > { %4589 = vmatprep.subr.bf16.mxu1 %v5033_v41 }
  0xc6   : > { %3047 = vmatmul.mubr.bf16.gmra.mrb[60].mxu0 %v5030_v38 }
  0xc7   : > { %3112 = vmatmul.mubr.bf16.gmra.mrb[60].mxu1 %v5031_v39  ;;  %4550 = vmatpush3.bf16.msra.mxu0 %v5034_v42 }
  0xc8   : > { %4590 = vmatpush3.bf16.msra.mxu1 %v5035_v43  ;;  %4551 = vmatprep.subr.bf16.mxu0 %v5036_v44 }
  0xc9   : > { %4591 = vmatprep.subr.bf16.mxu1 %v5037_v45  ;;  %3152 = vmatprep.mubr.bf16.mxu0 %v5042_v49 }
  0xca   : > { %3217 = vmatprep.mubr.bf16.mxu1 %v5045_v51 }
  0xcb   : > { %4552 = vmatpush3.bf16.msra.mxu0 %v5038_v46 }
  0xcc   : > { %4592 = vmatpush3.bf16.msra.mxu1 %v5039_v47  ;;  %4629 = vmatprep.subr.bf16.mxu0 %v5046_v52 }
  0xcd   : > { %4653 = vmatprep.subr.bf16.mxu1 %v5046_v52 }
  0xce   : > { %3153 = vmatmul.mubr.bf16.vlgmr.msra.gmra.mrb[64].mxu0 %v5040_v48 }
  0xcf   : > { %3218 = vmatmul.mubr.bf16.vlgmr.msra.gmra.mrb[64].mxu1 %v5043_v50  ;;  %4630 = vmatpush3.bf16.msra.mxu0 %v5046_v52 }
  0xd0   : > { %4661 = vmatpush3.bf16.msra.mxu1 %v5046_v52  ;;  %4631 = vmatprep.subr.bf16.mxu0 %v5047_v53 }
  0xd1   : > { %4654 = vmatprep.subr.bf16.mxu1 %v5047_v53  ;;  %3160 = vmatprep.mubr.bf16.mxu0 %v5048_v54 }
  0xd2   : > { %3225 = vmatprep.mubr.bf16.mxu1 %v5050_v55 }
  0xd3   : > { %4632 = vmatpush3.bf16.msra.mxu0 %v5047_v53 }
  0xd4   : > { %4662 = vmatpush3.bf16.msra.mxu1 %v5047_v53  ;;  %4633 = vmatprep.subr.bf16.mxu0 %v5054_v58 }
  0xd5   : > { %4655 = vmatprep.subr.bf16.mxu1 %v5054_v58 }
  0xd6   : > { %3161 = vmatmul.mubr.bf16.gmra.mrb[68].mxu0 %v5052_v56 }
  0xd7   : > { %3226 = vmatmul.mubr.bf16.gmra.mrb[68].mxu1 %v5053_v57  ;;  %3168 = vmatprep.mubr.bf16.mxu0 %v5056_v59 }
  0xd8   : > { %4634 = vmatpush3.bf16.msra.mxu0 %v5054_v58  ;;  %3233 = vmatprep.mubr.bf16.mxu1 %v5058_v60 }
  0xd9   : > { %4663 = vmatpush3.bf16.msra.mxu1 %v5054_v58  ;;  %4635 = vmatprep.subr.bf16.mxu0 %v5055_v61 }
  0xda   : > { %4656 = vmatprep.subr.bf16.mxu1 %v5055_v61 }
  0xdc   : > { %4636 = vmatpush3.bf16.msra.mxu0 %v5055_v61 }
  0xdd   : > { %4664 = vmatpush3.bf16.msra.mxu1 %v5055_v61  ;;  %4637 = vmatprep.subr.bf16.mxu0 %v5062_v0 }
  0xde   : > { %3169 = vmatmul.mubr.bf16.gmra.mrb[72].mxu0 %v5060_v62  ;;  %4657 = vmatprep.subr.bf16.mxu1 %v5062_v0 }
  0xdf   : > { %3234 = vmatmul.mubr.bf16.gmra.mrb[72].mxu1 %v5061_v63  ;;  %3176 = vmatprep.mubr.bf16.mxu0 %v5064_v1 }
  0xe0   : > { %4638 = vmatpush3.bf16.msra.mxu0 %v5062_v0  ;;  %3241 = vmatprep.mubr.bf16.mxu1 %v5066_v2 }
  0xe1   : > { %4665 = vmatpush3.bf16.msra.mxu1 %v5062_v0  ;;  %4639 = vmatprep.subr.bf16.mxu0 %v5063_v3 }
  0xe2   : > { %4658 = vmatprep.subr.bf16.mxu1 %v5063_v3 }
  0xe4   : > { %4640 = vmatpush3.bf16.msra.mxu0 %v5063_v3 }
  0xe5   : > { %4666 = vmatpush3.bf16.msra.mxu1 %v5063_v3  ;;  %4641 = vmatprep.subr.bf16.mxu0 %v5070_v5 }
  0xe6   : > { %3177 = vmatmul.mubr.bf16.gmra.mrb[76].mxu0 %v5068_v4  ;;  %4659 = vmatprep.subr.bf16.mxu1 %v5070_v5 }
  0xe7   : > { %3242 = vmatmul.mubr.bf16.gmra.mrb[76].mxu1 %v5069_v6  ;;  %4645 = vmatprep.mubr.bf16.mxu0 %v5072_v7 }
  0xe8   : > { %4642 = vmatpush3.bf16.msra.mxu0 %v5070_v5  ;;  %4649 = vmatprep.mubr.bf16.mxu1 %v5073_v8 }
  0xe9   : > { %4667 = vmatpush3.bf16.msra.mxu1 %v5070_v5  ;;  %4643 = vmatprep.subr.bf16.mxu0 %v5071_v9 }
  0xea   : > { %4660 = vmatprep.subr.bf16.mxu1 %v5071_v9 }
  0xec   : > { %4644 = vmatpush3.bf16.msra.mxu0 %v5071_v9 }
  0xed   : > { %4668 = vmatpush3.bf16.msra.mxu1 %v5071_v9 }
  0xef   : > { %4646 = vmatmul.mubr.bf16.vlgmr.msra.gmra.mrb[80].mxu0 %v5074_v23 }
  0xf0   : > { %4650 = vmatmul.mubr.bf16.vlgmr.msra.gmra.mrb[80].mxu1 %v5075_v25 }
 0x101   : > { %v4201_v10 = vpop.f32.mrb[0].mxu0 }
 0x102   : > { %v4235_v11 = vpop.f32.mrb[0].mxu1  ;;  %v4202_v13 = vpop.f32.mrb[1].mxu0 }
 0x103   : > { %v4203_v14 = vadd.f32 %v4202_v13, %v4201_v10  ;;  %v4236_v15 = vpop.f32.mrb[1].mxu1  ;;  %v4204_v16 = vpop.f32.mrb[2].mxu0 }
 0x104   : > { %v4237_v17 = vadd.f32 %v4236_v15, %v4235_v11  ;;  %v4238_v18 = vpop.f32.mrb[2].mxu1  ;;  %v4205_v19 = vpop.f32.mrb[3].mxu0 }
 0x105   : > { %v1725_v20 = vadd.f32 %v4203_v14, %v3839_v12  ;;  %v4206_v21 = vadd.f32 %v4205_v19, %v4204_v16  ;;  %v4239_v22 = vpop.f32.mrb[3].mxu1 }
 0x106   : > { %v4240_v24 = vadd.f32 %v4239_v22, %v4238_v18 }
 0x107   : > { %v1782_v26 = vadd.f32 %v4237_v17, %v1725_v20  ;;  %v1728_v27 = vadd.f32 %v4206_v21, %v3839_v12 }
 0x109   : > { %v1785_v28 = vadd.f32 %v4240_v24, %v1728_v27  ;;  %v4207_v29 = vpop.f32.mrb[4].mxu0 }
 0x10a   : > { %v4208_v30 = vpop.f32.mrb[5].mxu0  ;;  %v4241_v35 = vpop.f32.mrb[4].mxu1 }
 0x10b   : > { %v4209_v31 = vadd.f32 %v4208_v30, %v4207_v29  ;;  %v4210_v32 = vpop.f32.mrb[6].mxu0  ;;  %v4242_v37 = vpop.f32.mrb[5].mxu1 }
 0x10c   : > { %v4211_v33 = vpop.f32.mrb[7].mxu0  ;;  %v4243_v39 = vadd.f32 %v4242_v37, %v4241_v35  ;;  %v4244_v40 = vpop.f32.mrb[6].mxu1 }
 0x10d   : > { %v1733_v34 = vadd.f32 %v4209_v31, %v3839_v12  ;;  %v4212_v36 = vadd.f32 %v4211_v33, %v4210_v32  ;;  %v4245_v41 = vpop.f32.mrb[7].mxu1 }
 0x10e   : > { %v4246_v43 = vadd.f32 %v4245_v41, %v4244_v40 }
 0x10f   : > { %v1736_v38 = vadd.f32 %v4212_v36, %v3839_v12  ;;  %v1790_v42 = vadd.f32 %v4243_v39, %v1733_v34 }
 0x111   : > { %v1793_v44 = vadd.f32 %v4246_v43, %v1736_v38  ;;  %v4213_v45 = vpop.f32.mrb[8].mxu0 }
 0x112   : > { %v4214_v46 = vpop.f32.mrb[9].mxu0  ;;  %v4247_v49 = vpop.f32.mrb[8].mxu1 }
 0x113   : > { %v4215_v47 = vadd.f32 %v4214_v46, %v4213_v45  ;;  %v4216_v48 = vpop.f32.mrb[10].mxu0  ;;  %v4248_v53 = vpop.f32.mrb[9].mxu1 }
 0x114   : > { %v4217_v50 = vpop.f32.mrb[11].mxu0  ;;  %v4249_v54 = vadd.f32 %v4248_v53, %v4247_v49  ;;  %v4250_v55 = vpop.f32.mrb[10].mxu1 }
 0x115   : > { %v1741_v51 = vadd.f32 %v4215_v47, %v3839_v12  ;;  %v4218_v52 = vadd.f32 %v4217_v50, %v4216_v48  ;;  %v4251_v57 = vpop.f32.mrb[11].mxu1 }
 0x116   : > { %v4252_v59 = vadd.f32 %v4251_v57, %v4250_v55 }
 0x117   : > { %v1744_v56 = vadd.f32 %v4218_v52, %v3839_v12  ;;  %v1798_v58 = vadd.f32 %v4249_v54, %v1741_v51 }
 0x119   : > { %v1801_v60 = vadd.f32 %v4252_v59, %v1744_v56 }
 0x121   : > { %v4269_v61 = vpop.f32.mrb[12].mxu0 }
 0x122   : > { %v4303_v62 = vpop.f32.mrb[12].mxu1  ;;  %v4270_v63 = vpop.f32.mrb[13].mxu0 }
 0x123   : > { %v4271_v0 = vadd.f32 %v4270_v63, %v4269_v61  ;;  %v4304_v1 = vpop.f32.mrb[13].mxu1  ;;  %v4272_v2 = vpop.f32.mrb[14].mxu0 }
 0x124   : > { %v4305_v3 = vadd.f32 %v4304_v1, %v4303_v62  ;;  %v4306_v4 = vpop.f32.mrb[14].mxu1  ;;  %v4273_v5 = vpop.f32.mrb[15].mxu0 }
 0x125   : > { %v1839_v6 = vadd.f32 %v4271_v0, %v1782_v26  ;;  %v4274_v7 = vadd.f32 %v4273_v5, %v4272_v2  ;;  %v4307_v8 = vpop.f32.mrb[15].mxu1 }
 0x126   : > { %v4308_v9 = vadd.f32 %v4307_v8, %v4306_v4 }
 0x127   : > { %v1896_v10 = vadd.f32 %v4305_v3, %v1839_v6  ;;  %v1842_v11 = vadd.f32 %v4274_v7, %v1785_v28 }
 0x129   : > { %v1899_v12 = vadd.f32 %v4308_v9, %v1842_v11  ;;  %v4275_v13 = vpop.f32.mrb[16].mxu0 }
 0x12a   : > { %v4276_v14 = vpop.f32.mrb[17].mxu0  ;;  %v4309_v19 = vpop.f32.mrb[16].mxu1 }
 0x12b   : > { %v4277_v15 = vadd.f32 %v4276_v14, %v4275_v13  ;;  %v4278_v16 = vpop.f32.mrb[18].mxu0  ;;  %v4310_v21 = vpop.f32.mrb[17].mxu1 }
 0x12c   : > { %v4279_v17 = vpop.f32.mrb[19].mxu0  ;;  %v4311_v23 = vadd.f32 %v4310_v21, %v4309_v19  ;;  %v4312_v24 = vpop.f32.mrb[18].mxu1 }
 0x12d   : > { %v1847_v18 = vadd.f32 %v4277_v15, %v1790_v42  ;;  %v4280_v20 = vadd.f32 %v4279_v17, %v4278_v16  ;;  %v4313_v25 = vpop.f32.mrb[19].mxu1 }
 0x12e   : > { %v4314_v27 = vadd.f32 %v4313_v25, %v4312_v24 }
 0x12f   : > { %v1850_v22 = vadd.f32 %v4280_v20, %v1793_v44  ;;  %v1904_v26 = vadd.f32 %v4311_v23, %v1847_v18 }
 0x131   : > { %v1907_v29 = vadd.f32 %v4314_v27, %v1850_v22  ;;  %v4281_v30 = vpop.f32.mrb[20].mxu0 }
 0x132   : > { %v4282_v31 = vpop.f32.mrb[21].mxu0  ;;  %v4315_v33 = vpop.f32.mrb[20].mxu1 }
 0x133   : > { %v4283_v28 = vadd.f32 %v4282_v31, %v4281_v30  ;;  %v4284_v32 = vpop.f32.mrb[22].mxu0  ;;  %v4316_v37 = vpop.f32.mrb[21].mxu1 }
 0x134   : > { %v4285_v34 = vpop.f32.mrb[23].mxu0  ;;  %v4317_v38 = vadd.f32 %v4316_v37, %v4315_v33  ;;  %v4318_v39 = vpop.f32.mrb[22].mxu1 }
 0x135   : > { %v1855_v35 = vadd.f32 %v4283_v28, %v1798_v58  ;;  %v4286_v36 = vadd.f32 %v4285_v34, %v4284_v32  ;;  %v4319_v41 = vpop.f32.mrb[23].mxu1 }
 0x136   : > { %v4320_v43 = vadd.f32 %v4319_v41, %v4318_v39 }
 0x137   : > { %v1858_v40 = vadd.f32 %v4286_v36, %v1801_v60  ;;  %v1912_v42 = vadd.f32 %v4317_v38, %v1855_v35 }
 0x139   : > { %v1915_v44 = vadd.f32 %v4320_v43, %v1858_v40 }
 0x141   : > { %v4337_v45 = vpop.f32.mrb[24].mxu0 }
 0x142   : > { %v4371_v46 = vpop.f32.mrb[24].mxu1  ;;  %v4338_v47 = vpop.f32.mrb[25].mxu0 }
 0x143   : > { %v4339_v48 = vadd.f32 %v4338_v47, %v4337_v45  ;;  %v4372_v49 = vpop.f32.mrb[25].mxu1  ;;  %v4340_v50 = vpop.f32.mrb[26].mxu0 }
 0x144   : > { %v4373_v51 = vadd.f32 %v4372_v49, %v4371_v46  ;;  %v4374_v52 = vpop.f32.mrb[26].mxu1  ;;  %v4341_v53 = vpop.f32.mrb[27].mxu0 }
 0x145   : > { %v1953_v54 = vadd.f32 %v4339_v48, %v1896_v10  ;;  %v4342_v55 = vadd.f32 %v4341_v53, %v4340_v50  ;;  %v4375_v56 = vpop.f32.mrb[27].mxu1 }
 0x146   : > { %v4376_v57 = vadd.f32 %v4375_v56, %v4374_v52 }
 0x147   : > { %v2010_v58 = vadd.f32 %v4373_v51, %v1953_v54  ;;  %v1956_v59 = vadd.f32 %v4342_v55, %v1899_v12 }
 0x149   : > { %v2013_v60 = vadd.f32 %v4376_v57, %v1956_v59  ;;  %v4343_v61 = vpop.f32.mrb[28].mxu0 }
 0x14a   : > { %v4344_v62 = vpop.f32.mrb[29].mxu0  ;;  %v4377_v3 = vpop.f32.mrb[28].mxu1 }
 0x14b   : > { %v4345_v63 = vadd.f32 %v4344_v62, %v4343_v61  ;;  %v4346_v0 = vpop.f32.mrb[30].mxu0  ;;  %v4378_v5 = vpop.f32.mrb[29].mxu1 }
 0x14c   : > { %v4347_v1 = vpop.f32.mrb[31].mxu0  ;;  %v4379_v7 = vadd.f32 %v4378_v5, %v4377_v3  ;;  %v4380_v8 = vpop.f32.mrb[30].mxu1 }
 0x14d   : > { %v1961_v2 = vadd.f32 %v4345_v63, %v1904_v26  ;;  %v4348_v4 = vadd.f32 %v4347_v1, %v4346_v0  ;;  %v4381_v9 = vpop.f32.mrb[31].mxu1 }
 0x14e   : > { %v4382_v11 = vadd.f32 %v4381_v9, %v4380_v8 }
 0x14f   : > { %v1964_v6 = vadd.f32 %v4348_v4, %v1907_v29  ;;  %v2018_v10 = vadd.f32 %v4379_v7, %v1961_v2 }
 0x151   : > { %v2021_v13 = vadd.f32 %v4382_v11, %v1964_v6  ;;  %v4349_v14 = vpop.f32.mrb[32].mxu0 }
 0x152   : > { %v4350_v15 = vpop.f32.mrb[33].mxu0  ;;  %v4383_v17 = vpop.f32.mrb[32].mxu1 }
 0x153   : > { %v4351_v12 = vadd.f32 %v4350_v15, %v4349_v14  ;;  %v4352_v16 = vpop.f32.mrb[34].mxu0  ;;  %v4384_v21 = vpop.f32.mrb[33].mxu1 }
 0x154   : > { %v4353_v18 = vpop.f32.mrb[35].mxu0  ;;  %v4385_v22 = vadd.f32 %v4384_v21, %v4383_v17  ;;  %v4386_v23 = vpop.f32.mrb[34].mxu1 }
 0x155   : > { %v1969_v19 = vadd.f32 %v4351_v12, %v1912_v42  ;;  %v4354_v20 = vadd.f32 %v4353_v18, %v4352_v16  ;;  %v4387_v25 = vpop.f32.mrb[35].mxu1 }
 0x156   : > { %v4388_v27 = vadd.f32 %v4387_v25, %v4386_v23 }
 0x157   : > { %v1972_v24 = vadd.f32 %v4354_v20, %v1915_v44  ;;  %v2026_v26 = vadd.f32 %v4385_v22, %v1969_v19 }
 0x159   : > { %v2029_v29 = vadd.f32 %v4388_v27, %v1972_v24  ;;  %v4022_v27 = vld [vmem:[%s6165_s5] ss:$0 sm:$0xff] }
 0x161   : > { %v4405_v30 = vpop.f32.mrb[36].mxu0 }
 0x162   : > { %v4439_v31 = vpop.f32.mrb[36].mxu1  ;;  %v4406_v28 = vpop.f32.mrb[37].mxu0 }
 0x163   : > { %v4407_v32 = vadd.f32 %v4406_v28, %v4405_v30  ;;  %v4440_v33 = vpop.f32.mrb[37].mxu1  ;;  %v4408_v34 = vpop.f32.mrb[38].mxu0 }
 0x164   : > { %v4441_v35 = vadd.f32 %v4440_v33, %v4439_v31  ;;  %v4442_v36 = vpop.f32.mrb[38].mxu1  ;;  %v4409_v37 = vpop.f32.mrb[39].mxu0 }
 0x165   : > { %v2067_v38 = vadd.f32 %v4407_v32, %v2010_v58  ;;  %v4410_v39 = vadd.f32 %v4409_v37, %v4408_v34  ;;  %v4443_v40 = vpop.f32.mrb[39].mxu1 }
 0x166   : > { %v4444_v41 = vadd.f32 %v4443_v40, %v4442_v36 }
 0x167   : > { %v2124_v42 = vadd.f32 %v4441_v35, %v2067_v38  ;;  %v2070_v43 = vadd.f32 %v4410_v39, %v2013_v60 }
 0x169   : > { %v2146_v44 = vmax.f32 %v2124_v42, 0.0  ;;  %v2127_v45 = vadd.f32 %v4444_v41, %v2070_v43  ;;  %v4411_v46 = vpop.f32.mrb[40].mxu0 }
 0x16a   : > { %v4412_v49 = vpop.f32.mrb[41].mxu0  ;;  %v4445_v55 = vpop.f32.mrb[40].mxu1 }
 0x16b   : > { %v4167_v47 = vpack.c.bf16 %v2146_v44, %v2146_v44  ;;  %v2147_v48 = vmax.f32 %v2127_v45, 0.0  ;;  %v4413_v50 = vadd.f32 %v4412_v49, %v4411_v46  ;;  %v4414_v51 = vpop.f32.mrb[42].mxu0  ;;  %v4446_v57 = vpop.f32.mrb[41].mxu1 }
 0x16c   : > { %v4415_v53 = vpop.f32.mrb[43].mxu0  ;;  %v4447_v59 = vadd.f32 %v4446_v57, %v4445_v55  ;;  %v4448_v60 = vpop.f32.mrb[42].mxu1 }
 0x16d   : > { %2177 = vst.msk [vmem:[%s6013_s21] sm:$0xf] %vm2176_vm0, %v4167_v47  ;;  %v4168_v52 = vpack.c.bf16 %v2147_v48, %v2147_v48  ;;  %v2075_v54 = vadd.f32 %v4413_v50, %v2018_v10  ;;  %v4416_v56 = vadd.f32 %v4415_v53, %v4414_v51  ;;  %v4449_v61 = vpop.f32.mrb[43].mxu1 }
 0x16e   : > { %v4450_v63 = vadd.f32 %v4449_v61, %v4448_v60 }
 0x16f   : > { %2178 = vst.msk [vmem:[%s6013_s21 + $0x4] sm:$0xf] %vm2176_vm0, %v4168_v52  ;;  %v2078_v58 = vadd.f32 %v4416_v56, %v2021_v13  ;;  %v2132_v62 = vadd.f32 %v4447_v59, %v2075_v54 }
 0x171   : > { %v2148_v0 = vmax.f32 %v2132_v62, 0.0  ;;  %v2135_v1 = vadd.f32 %v4450_v63, %v2078_v58  ;;  %v4417_v2 = vpop.f32.mrb[44].mxu0 }
 0x172   : > { %v4418_v3 = vpop.f32.mrb[45].mxu0  ;;  %v4451_v8 = vpop.f32.mrb[44].mxu1 }
 0x173   : > { %v4169_v4 = vpack.c.bf16 %v2148_v0, %v2148_v0  ;;  %v2149_v5 = vmax.f32 %v2135_v1, 0.0  ;;  %v4419_v6 = vadd.f32 %v4418_v3, %v4417_v2  ;;  %v4420_v7 = vpop.f32.mrb[46].mxu0  ;;  %v4452_v14 = vpop.f32.mrb[45].mxu1 }
 0x174   : > { %v4421_v9 = vpop.f32.mrb[47].mxu0  ;;  %v4453_v15 = vadd.f32 %v4452_v14, %v4451_v8  ;;  %v4454_v12 = vpop.f32.mrb[46].mxu1 }
 0x175   : > { %2179 = vst.msk [vmem:[%s6013_s21 + $0x8] sm:$0xf] %vm2176_vm0, %v4169_v4  ;;  %v4170_v10 = vpack.c.bf16 %v2149_v5, %v2149_v5  ;;  %v2083_v11 = vadd.f32 %v4419_v6, %v2026_v26  ;;  %v4422_v13 = vadd.f32 %v4421_v9, %v4420_v7  ;;  %v4455_v17 = vpop.f32.mrb[47].mxu1 }
 0x176   : > { %v4456_v19 = vadd.f32 %v4455_v17, %v4454_v12 }
 0x177   : > { %2180 = vst.msk [vmem:[%s6013_s21 + $0xc] sm:$0xf] %vm2176_vm0, %v4170_v10  ;;  %v2086_v16 = vadd.f32 %v4422_v13, %v2029_v29  ;;  %v2140_v18 = vadd.f32 %v4453_v15, %v2083_v11 }
 0x179   : > { %v2150_v20 = vmax.f32 %v2140_v18, 0.0  ;;  %v2143_v21 = vadd.f32 %v4456_v19, %v2086_v16 }
 0x17b   : > { %v4171_v22 = vpack.c.bf16 %v2150_v20, %v2150_v20  ;;  %v2151_v23 = vmax.f32 %v2143_v21, 0.0 }
 0x17d   : > { %2181 = vst.msk [vmem:[%s6013_s21 + $0x10] sm:$0xf] %vm2176_vm0, %v4171_v22  ;;  %v4172_v24 = vpack.c.bf16 %v2151_v23, %v2151_v23 }
 0x17f   : > { %2182 = vst.msk [vmem:[%s6013_s21 + $0x14] sm:$0xf] %vm2176_vm0, %v4172_v24 }
 0x181   : > { %v4473_v25 = vpop.f32.mrb[48].mxu0 }
 0x182   : > { %v4513_v26 = vpop.f32.mrb[48].mxu1  ;;  %v4474_v30 = vpop.f32.mrb[49].mxu0 }
 0x183   : > { %v4475_v29 = vadd.f32 %v4474_v30, %v4473_v25  ;;  %v4514_v31 = vpop.f32.mrb[49].mxu1  ;;  %v4476_v28 = vpop.f32.mrb[50].mxu0 }
 0x184   : > { %v4515_v32 = vadd.f32 %v4514_v31, %v4513_v26  ;;  %v4516_v33 = vpop.f32.mrb[50].mxu1  ;;  %v4477_v34 = vpop.f32.mrb[51].mxu0 }
 0x185   : > { %v3025_v35 = vadd.f32 %v4475_v29, %v4022_v27  ;;  %v4478_v36 = vadd.f32 %v4477_v34, %v4476_v28  ;;  %v4517_v37 = vpop.f32.mrb[51].mxu1 }
 0x186   : > { %v4518_v38 = vadd.f32 %v4517_v37, %v4516_v33 }
 0x187   : > { %v3090_v39 = vadd.f32 %v4515_v32, %v3025_v35  ;;  %v3028_v40 = vadd.f32 %v4478_v36, %v4022_v27 }
 0x189   : > { %v3093_v41 = vadd.f32 %v4518_v38, %v3028_v40  ;;  %v4479_v42 = vpop.f32.mrb[52].mxu0 }
 0x18a   : > { %v4519_v43 = vpop.f32.mrb[52].mxu1  ;;  %v4480_v44 = vpop.f32.mrb[53].mxu0 }
 0x18b   : > { %v4481_v45 = vadd.f32 %v4480_v44, %v4479_v42  ;;  %v4520_v46 = vpop.f32.mrb[53].mxu1  ;;  %v4482_v47 = vpop.f32.mrb[54].mxu0 }
 0x18c   : > { %v4521_v48 = vadd.f32 %v4520_v46, %v4519_v43  ;;  %v4522_v49 = vpop.f32.mrb[54].mxu1  ;;  %v4483_v50 = vpop.f32.mrb[55].mxu0 }
 0x18d   : > { %v3033_v51 = vadd.f32 %v4481_v45, %v4022_v27  ;;  %v4484_v52 = vadd.f32 %v4483_v50, %v4482_v47  ;;  %v4523_v53 = vpop.f32.mrb[55].mxu1 }
 0x18e   : > { %v4524_v54 = vadd.f32 %v4523_v53, %v4522_v49 }
 0x18f   : > { %v3098_v55 = vadd.f32 %v4521_v48, %v3033_v51  ;;  %v3036_v56 = vadd.f32 %v4484_v52, %v4022_v27 }
 0x191   : > { %v3101_v57 = vadd.f32 %v4524_v54, %v3036_v56  ;;  %v4485_v58 = vpop.f32.mrb[56].mxu0 }
 0x192   : > { %v4525_v59 = vpop.f32.mrb[56].mxu1  ;;  %v4486_v60 = vpop.f32.mrb[57].mxu0 }
 0x193   : > { %v4487_v61 = vadd.f32 %v4486_v60, %v4485_v58  ;;  %v4526_v62 = vpop.f32.mrb[57].mxu1  ;;  %v4488_v63 = vpop.f32.mrb[58].mxu0 }
 0x194   : > { %v4527_v0 = vadd.f32 %v4526_v62, %v4525_v59  ;;  %v4528_v1 = vpop.f32.mrb[58].mxu1  ;;  %v4489_v2 = vpop.f32.mrb[59].mxu0 }
 0x195   : > { %v3041_v3 = vadd.f32 %v4487_v61, %v4022_v27  ;;  %v4490_v4 = vadd.f32 %v4489_v2, %v4488_v63  ;;  %v4529_v5 = vpop.f32.mrb[59].mxu1 }
 0x196   : > { %v4530_v6 = vadd.f32 %v4529_v5, %v4528_v1 }
 0x197   : > { %v3106_v7 = vadd.f32 %v4527_v0, %v3041_v3  ;;  %v3044_v8 = vadd.f32 %v4490_v4, %v4022_v27 }
 0x199   : > { %v3109_v9 = vadd.f32 %v4530_v6, %v3044_v8  ;;  %v4491_v10 = vpop.f32.mrb[60].mxu0 }
 0x19a   : > { %v4531_v11 = vpop.f32.mrb[60].mxu1  ;;  %v4492_v13 = vpop.f32.mrb[61].mxu0 }
 0x19b   : > { %v4532_v14 = vpop.f32.mrb[61].mxu1  ;;  %v4493_v15 = vadd.f32 %v4492_v13, %v4491_v10  ;;  %v4494_v16 = vpop.f32.mrb[62].mxu0 }
 0x19c   : > { %v4533_v12 = vadd.f32 %v4532_v14, %v4531_v11  ;;  %v4534_v17 = vpop.f32.mrb[62].mxu1  ;;  %v4495_v18 = vpop.f32.mrb[63].mxu0 }
 0x19d   : > { %v4535_v19 = vpop.f32.mrb[63].mxu1  ;;  %v3049_v20 = vadd.f32 %v4493_v15, %v4022_v27  ;;  %v4496_v21 = vadd.f32 %v4495_v18, %v4494_v16 }
 0x19e   : > { %v4536_v22 = vadd.f32 %v4535_v19, %v4534_v17 }
 0x19f   : > { %v3114_v23 = vadd.f32 %v4533_v12, %v3049_v20  ;;  %v3052_v24 = vadd.f32 %v4496_v21, %v4022_v27 }
 0x1a1   : > { %v3117_v25 = vadd.f32 %v4536_v22, %v3052_v24  ;;  %v4553_v26 = vpop.f32.mrb[64].mxu0 }
 0x1a2   : > { %v4554_v30 = vpop.f32.mrb[65].mxu0  ;;  %v4593_v29 = vpop.f32.mrb[64].mxu1 }
 0x1a3   : > { %v4555_v31 = vadd.f32 %v4554_v30, %v4553_v26  ;;  %v4556_v28 = vpop.f32.mrb[66].mxu0  ;;  %v4594_v32 = vpop.f32.mrb[65].mxu1 }
 0x1a4   : > { %v4557_v33 = vpop.f32.mrb[67].mxu0  ;;  %v4595_v35 = vadd.f32 %v4594_v32, %v4593_v29  ;;  %v4596_v36 = vpop.f32.mrb[66].mxu1 }
 0x1a5   : > { %v3155_v34 = vadd.f32 %v4555_v31, %v3090_v39  ;;  %v4558_v37 = vadd.f32 %v4557_v33, %v4556_v28  ;;  %v4597_v38 = vpop.f32.mrb[67].mxu1 }
 0x1a6   : > { %v4598_v42 = vadd.f32 %v4597_v38, %v4596_v36 }
 0x1a7   : > { %v3158_v40 = vadd.f32 %v4558_v37, %v3093_v41  ;;  %v3220_v43 = vadd.f32 %v4595_v35, %v3155_v34 }
 0x1a9   : > { %v4559_v44 = vpop.f32.mrb[68].mxu0  ;;  %v6030_v45 = vadd.f32 %v4598_v42, %v3158_v40 }
 0x1aa   : > { %v4560_v27 = vpop.f32.mrb[69].mxu0  ;;  %v4599_v46 = vpop.f32.mrb[68].mxu1 }
 0x1ab   : > { %v4561_v47 = vadd.f32 %v4560_v27, %v4559_v44  ;;  %v4562_v48 = vpop.f32.mrb[70].mxu0  ;;  %v4600_v49 = vpop.f32.mrb[69].mxu1 }
 0x1ac   : > { %v4563_v50 = vpop.f32.mrb[71].mxu0  ;;  %v4601_v52 = vadd.f32 %v4600_v49, %v4599_v46  ;;  %v4602_v53 = vpop.f32.mrb[70].mxu1 }
 0x1ad   : > { %v3163_v51 = vadd.f32 %v4561_v47, %v3098_v55  ;;  %v4564_v39 = vadd.f32 %v4563_v50, %v4562_v48  ;;  %v4603_v54 = vpop.f32.mrb[71].mxu1 }
 0x1ae   : > { %v4604_v58 = vadd.f32 %v4603_v54, %v4602_v53 }
 0x1af   : > { %v3166_v56 = vadd.f32 %v4564_v39, %v3101_v57  ;;  %v3228_v59 = vadd.f32 %v4601_v52, %v3163_v51 }
 0x1b1   : > { %v4565_v41 = vpop.f32.mrb[72].mxu0  ;;  %v3231_v60 = vadd.f32 %v4604_v58, %v3166_v56 }
 0x1b2   : > { %v4566_v61 = vpop.f32.mrb[73].mxu0  ;;  %v4605_v62 = vpop.f32.mrb[72].mxu1 }
 0x1b3   : > { %v4567_v63 = vadd.f32 %v4566_v61, %v4565_v41  ;;  %v4568_v0 = vpop.f32.mrb[74].mxu0  ;;  %v4606_v1 = vpop.f32.mrb[73].mxu1 }
 0x1b4   : > { %v4569_v2 = vpop.f32.mrb[75].mxu0  ;;  %v4607_v4 = vadd.f32 %v4606_v1, %v4605_v62  ;;  %v4608_v5 = vpop.f32.mrb[74].mxu1 }
 0x1b5   : > { %v3171_v3 = vadd.f32 %v4567_v63, %v3106_v7  ;;  %v4570_v6 = vadd.f32 %v4569_v2, %v4568_v0  ;;  %v4609_v55 = vpop.f32.mrb[75].mxu1 }
 0x1b6   : > { %v4610_v10 = vadd.f32 %v4609_v55, %v4608_v5 }
 0x1b7   : > { %v3174_v8 = vadd.f32 %v4570_v6, %v3109_v9  ;;  %v3236_v11 = vadd.f32 %v4607_v4, %v3171_v3 }
 0x1b9   : > { %v4571_v13 = vpop.f32.mrb[76].mxu0  ;;  %v3239_v57 = vadd.f32 %v4610_v10, %v3174_v8 }
 0x1ba   : > { %v4572_v14 = vpop.f32.mrb[77].mxu0  ;;  %v4611_v15 = vpop.f32.mrb[76].mxu1 }
 0x1bb   : > { %v4573_v12 = vadd.f32 %v4572_v14, %v4571_v13  ;;  %v4574_v16 = vpop.f32.mrb[78].mxu0  ;;  %v4612_v17 = vpop.f32.mrb[77].mxu1 }
 0x1bc   : > { %v4575_v18 = vpop.f32.mrb[79].mxu0  ;;  %v4613_v20 = vadd.f32 %v4612_v17, %v4611_v15  ;;  %v4614_v21 = vpop.f32.mrb[78].mxu1 }
 0x1bd   : > { %v3179_v19 = vadd.f32 %v4573_v12, %v3114_v23  ;;  %v4576_v7 = vadd.f32 %v4575_v18, %v4574_v16  ;;  %v4615_v22 = vpop.f32.mrb[79].mxu1 }
 0x1be   : > { %v4616_v26 = vadd.f32 %v4615_v22, %v4614_v21 }
 0x1bf   : > { %v3182_v24 = vadd.f32 %v4576_v7, %v3117_v25  ;;  %v3244_v30 = vadd.f32 %v4613_v20, %v3179_v19 }
 0x1c1   : > { %v3247_v9 = vadd.f32 %v4616_v26, %v3182_v24 }
 0x1c2   : > { %v4647_v29 = vpop.f32.mrb[80].mxu0 }
 0x1c3   : > { %v3293_v31 = vadd.f32 %v4647_v29, %v3228_v59  ;;  %v4651_v28 = vpop.f32.mrb[80].mxu1  ;;  %v3284_v32 = vpop.f32.mrb[81].mxu0 }
 0x1c4   : > { %v3309_v33 = vadd.f32 %v4651_v28, %v3244_v30  ;;  %v3285_v34 = vadd.f32 %v3284_v32, %v3220_v43  ;;  %v3300_v35 = vpop.f32.mrb[81].mxu1  ;;  %v4648_v36 = vpop.f32.mrb[82].mxu0 }
 0x1c5   : > { %v3317_v37 = vmax.f32 %v3293_v31, 0.0  ;;  %v3301_v23 = vadd.f32 %v3300_v35, %v3236_v11  ;;  %v3296_v38 = vadd.f32 %v4648_v36, %v3231_v60  ;;  %v4652_v40 = vpop.f32.mrb[82].mxu1  ;;  %v3287_v42 = vpop.f32.mrb[83].mxu0 }
 0x1c6   : > { %v3321_v44 = vmax.f32 %v3309_v33, 0.0  ;;  %v3315_v25 = vmax.f32 %v3285_v34, 0.0  ;;  %v3312_v27 = vadd.f32 %v4652_v40, %v3247_v9  ;;  %v3288_v46 = vadd.f32 %v3287_v42, %v6030_v45  ;;  %v3303_v47 = vpop.f32.mrb[83].mxu1 }
 0x1c7   : > { %v4175_v48 = vpack.c.bf16 %v3317_v37, %v3317_v37  ;;  %v3319_v49 = vmax.f32 %v3301_v23, 0.0  ;;  %v3318_v50 = vmax.f32 %v3296_v38, 0.0  ;;  %v3304_v51 = vadd.f32 %v3303_v47, %v3239_v57  ;;  %3373 = sbr.rel (!%p5297_p4) target bundleno = 526 (0x20e), region = 48 }
 0x1c8   : > { %v4179_v52 = vpack.c.bf16 %v3321_v44, %v3321_v44  ;;  %v4173_v53 = vpack.c.bf16 %v3315_v25, %v3315_v25  ;;  %v3322_v43 = vmax.f32 %v3312_v27, 0.0  ;;  %v3316_v39 = vmax.f32 %v3288_v46, 0.0 }
 0x1c9   : > { %3357 = vst.msk [vmem:[%s6035_s24 + $0x8] sm:$0xf] %vm2176_vm0, %v4175_v48  ;;  %v4177_v45 = vpack.c.bf16 %v3319_v49, %v3319_v49  ;;  %v4176_v54 = vpack.c.bf16 %v3318_v50, %v3318_v50  ;;  %v3320_v56 = vmax.f32 %v3304_v51, 0.0 }
 0x1ca   : > { %3361 = vst.msk [vmem:[%s6035_s24 + $0x18] sm:$0xf] %vm2176_vm0, %v4179_v52  ;;  %3355 = vst.msk [vmem:[%s6035_s24] sm:$0xf] %vm2176_vm0, %v4173_v53  ;;  %v4180_v58 = vpack.c.bf16 %v3322_v43, %v3322_v43  ;;  %v4174_v59 = vpack.c.bf16 %v3316_v39, %v3316_v39 }
 0x1cb   : > { %3359 = vst.msk [vmem:[%s6035_s24 + $0x10] sm:$0xf] %vm2176_vm0, %v4177_v45  ;;  %3358 = vst.msk [vmem:[%s6035_s24 + $0xc] sm:$0xf] %vm2176_vm0, %v4176_v54  ;;  %v4178_v41 = vpack.c.bf16 %v3320_v56, %v3320_v56 }
 0x1cc   : > { %3362 = vst.msk [vmem:[%s6035_s24 + $0x1c] sm:$0xf] %vm2176_vm0, %v4180_v58  ;;  %3356 = vst.msk [vmem:[%s6035_s24 + $0x4] sm:$0xf] %vm2176_vm0, %v4174_v59 }
 0x1cd   : > { %3360 = vst.msk [vmem:[%s6035_s24 + $0x14] sm:$0xf] %vm2176_vm0, %v4178_v41 }
 0x1ce   : > { %s6181_s10 = smov (!%p3376_p9, %s3375_s10), 6 }
 0x1cf   : > { %s4140_s26 = sshll.u32 %s6181_s10, 6 }
 0x1d0   : > { %p4143_p10 = scmp.eq.s32.totalorder %s4140_s26, 0 }
 0x1d1   : > { %5076 = sdivrem.u32 (!%p4143_p10), %s6181_s10, 6 }
 0x1d2   : > { %3384 = sbr.rel (%p4143_p10) target bundleno = 526 (0x20e), region = 52 }
 0x1da   : > { %s6066_s15 = spop.drf %5076 }
 0x1db   : > { %p4144_p11 = scmp.le.s32.totalorder %s6066_s15, 0 }
 0x1dc   : > { %s6171_s23 = smov (!%p4144_p11), %s6060_s14  ;;  %s6172_s17 = smov (!%p4144_p11), %s6013_s21 }
 0x1dd   : > { %3743 = sbr.rel (%p4144_p11) target bundleno = 497 (0x1f1), region = 195  ;;  %s6075_s18 = smov (!%p4144_p11), 0  }
 0x1de   : > { %s6077_s16 = smov (!%p4144_p11), 0  }
 0x1e4 LB: >> { %v3401_v60 = vld [vmem:[%s5174_s17] sm:$0xf]  ;;  %v3403_v61 = vld [vmem:[%s5174_s17 + $0x4] sm:$0xf]  ;;  %v3405_v62 = vld [vmem:[%s5174_s17 + $0x8] sm:$0xf]  ;;  %s5182_s16 = sphi %s6077_s16, %s3395_s16   ;;  %s5178_s18 = sphi %s6075_s18, %s6173_s18   ;;  %s5174_s17 = sphi %s6172_s17, %s3418_s17   ;;  %s5170_s23 = sphi %s6171_s23, %s3419_s23  }
 0x1e5   : >> { %3402 = vst [vmem:[%s5170_s23] sm:$0xf] %v3401_v60  ;;  %3404 = vst [vmem:[%s5170_s23 + $0x4] sm:$0xf] %v3403_v61  ;;  %v3407_v63 = vld [vmem:[%s5174_s17 + $0xc] sm:$0xf]  ;;  %s3413_s19 = sadd.s32 1, %s5178_s18 }
 0x1e6   : >> { %3406 = vst [vmem:[%s5170_s23 + $0x8] sm:$0xf] %v3405_v62  ;;  %v3409_v0 = vld [vmem:[%s5174_s17 + $0x10] sm:$0xf]  ;;  %v3411_v1 = vld [vmem:[%s5174_s17 + $0x14] sm:$0xf]  ;;  %p3414_p12 = scmp.ge.s32.totalorder %s3413_s19, %s6066_s15 }
 0x1e7   : >> { %3408 = vst [vmem:[%s5170_s23 + $0xc] sm:$0xf] %v3407_v63  ;;  %3410 = vst [vmem:[%s5170_s23 + $0x10] sm:$0xf] %v3409_v0  ;;  %s3395_s16 = sadd.s32 1, %s5182_s16  }
 0x1e8   : >> { %3412 = vst [vmem:[%s5170_s23 + $0x14] sm:$0xf] %v3411_v1  ;;  %s6183_s19 = smov (%p3414_p12, %s3413_s19), 0  ;;  %p3394_p13 = scmp.ge.s32.totalorder %s3395_s16, %s6066_s15 }
 0x1e9   : >> { %s3416_s20 = smul.u32 24, %s6183_s19  ;;  %s6173_s18 = smov %s6183_s19 }
 0x1ea   : > { %3397 = sbr.rel (!%p3394_p13) target bundleno = 484 (0x1e4), region = 201 }
 0x1eb   : >> { %s3418_s17 = scalar_lea.vmem %s6013_s21, %s3416_s20 [#allocation2]   ;;  %s3419_s23 = scalar_lea.vmem %s6060_s14, %s3416_s20  }
 0x1f1 PF: > { %5078 = sdivrem.u32 %s6181_s10, 6 }
 0x1f2   : > { %s4145_s22 = smul.u32 24, %s6066_s15 }
 0x1f4   : > { %s3424_s29 = scalar_lea.vmem %s6013_s21, %s4145_s22 [#allocation2]   ;;  %s3426_s30 = scalar_lea.vmem %s6060_s14, %s4145_s22  }
 0x1fa   : > { %s5079_s11 = spop.drf %5078 }
 0x1fb   : > { %p4147_p0 = scmp.le.s32.totalorder %s5079_s11, 0 }
 0x1fc   : > { %s5184_s12 = smov (!%p4147_p0), %s3426_s30   ;;  %s5188_s26 = smov (!%p4147_p0), %s3424_s29  }
 0x1fd   : > { %3757 = sbr.rel (%p4147_p0) target bundleno = 526 (0x20e), region = 206  ;;  %s5192_s20 = smov (!%p4147_p0), 0  }
 0x1fe   : > { %s5196_s0 = smov (!%p4147_p0), 0  }
 0x204 LB: >> { %v3436_v2 = vld [vmem:[%s5190_s26] sm:$0xf]  ;;  %s3438_s23 = sadd.s32 1, %s5194_s20  ;;  %s3430_s0 = sadd.s32 1, %s5198_s0   ;;  %s5198_s0 = sphi %s5196_s0, %s3430_s0   ;;  %s5194_s20 = sphi %s5192_s20, %s5193_s20   ;;  %s5190_s26 = sphi %s5188_s26, %s3443_s26   ;;  %s5186_s12 = sphi %s5184_s12, %s3444_s12  }
 0x205   : >> { %3437 = vst [vmem:[%s5186_s12] sm:$0xf] %v3436_v2  ;;  %p3439_p1 = scmp.ge.s32.totalorder %s3438_s23, %s5079_s11  ;;  %p3429_p2 = scmp.ge.s32.totalorder %s3430_s0, %s5079_s11 }
 0x207   : >> { %s6185_s23 = smov (%p3439_p1, %s3438_s23), 0  ;;  %3432 = sbr.rel (!%p3429_p2) target bundleno = 516 (0x204), region = 212 }
 0x208   : >> { %s4148_s21 = sshll.u32 %s6185_s23, 2  ;;  %s5193_s20 = smov %s6185_s23  }
 0x209   : >> { %s3443_s26 = scalar_lea.vmem %s3424_s29, %s4148_s21 [#allocation2]   ;;  %s3444_s12 = scalar_lea.vmem %s3426_s30, %s4148_s21  }
 0x20e PF: > { %3506 = sbr.rel (!%p5297_p4) target bundleno = 587 (0x24b), region = 96  ;;  %s3508_s10 = ssub.s32 (%p5297_p4), 13, %s5789_s13 }
 0x20f   : > { %s4182_s14 = sshll.u32 (%p5297_p4), %s5285_s27, 5  ;;  %p3509_p3 = scmp.lt.s32.totalorder (%p5297_p4), %s3508_s10, 8 }
 0x210   : > { %s6106_s18 = scalar_lea.vmem (%p5297_p4), %s6167_s7, %s4182_s14  }
 0x215   : > { %s6187_s10 = smov (!%p3509_p3, %s3508_s10), 8 }
 0x216   : > { %s4151_s0 = sshll.u32 %s6187_s10, 6 }
 0x217   : > { %p4154_p5 = scmp.eq.s32.totalorder %s4151_s0, 0 }
 0x218   : > { %s6112_s16 = sshrl.u32 (!%p4154_p5), %s6187_s10, 3 }
 0x219   : > { %3517 = sbr.rel (%p4154_p5) target bundleno = 587 (0x24b), region = 100  ;;  %p4155_p4 = scmp.le.s32.totalorder (!%p4154_p5), %s6112_s16, 0 }
 0x220   : > { %3771 = sbr.rel (%p4155_p4) target bundleno = 566 (0x236), region = 217  ;;  %s6174_s27 = smov (!%p4155_p4), %s6106_s18 }
 0x221   : > { %s6175_s9 = smov (!%p4155_p4), %s6035_s24  ;;  %s6121_s13 = smov (!%p4155_p4), 0  }
 0x222   : > { %s6123_s19 = smov (!%p4155_p4), 0  }
 0x227 LB: >> { %v3533_v3 = vld [vmem:[%s5206_s9] sm:$0xf]  ;;  %v3535_v4 = vld [vmem:[%s5206_s9 + $0x4] sm:$0xf]  ;;  %v3537_v5 = vld [vmem:[%s5206_s9 + $0x8] sm:$0xf]  ;;  %s5214_s19 = sphi %s6123_s19, %s3527_s19   ;;  %s5210_s13 = sphi %s6121_s13, %s6176_s13   ;;  %s5206_s9 = sphi %s6175_s9, %s3554_s9   ;;  %s5202_s27 = sphi %s6174_s27, %s3555_s27  }
 0x228   : >> { %3534 = vst [vmem:[%s5202_s27] sm:$0xf] %v3533_v3  ;;  %3536 = vst [vmem:[%s5202_s27 + $0x4] sm:$0xf] %v3535_v4  ;;  %v3539_v6 = vld [vmem:[%s5206_s9 + $0xc] sm:$0xf]  ;;  %s3549_s22 = sadd.s32 1, %s5210_s13 }
 0x229   : >> { %3538 = vst [vmem:[%s5202_s27 + $0x8] sm:$0xf] %v3537_v5  ;;  %v3541_v55 = vld [vmem:[%s5206_s9 + $0x10] sm:$0xf]  ;;  %v3543_v8 = vld [vmem:[%s5206_s9 + $0x14] sm:$0xf]  ;;  %p3550_p6 = scmp.ge.s32.totalorder %s3549_s22, %s6112_s16 }
 0x22a   : >> { %3540 = vst [vmem:[%s5202_s27 + $0xc] sm:$0xf] %v3539_v6  ;;  %3542 = vst [vmem:[%s5202_s27 + $0x10] sm:$0xf] %v3541_v55  ;;  %v3545_v10 = vld [vmem:[%s5206_s9 + $0x18] sm:$0xf] }
 0x22b   : >> { %3544 = vst [vmem:[%s5202_s27 + $0x14] sm:$0xf] %v3543_v8  ;;  %v3547_v11 = vld [vmem:[%s5206_s9 + $0x1c] sm:$0xf]  ;;  %3546 = vst [vmem:[%s5202_s27 + $0x18] sm:$0xf] %v3545_v10 }
 0x22c   : >> { %3548 = vst [vmem:[%s5202_s27 + $0x1c] sm:$0xf] %v3547_v11  ;;  %s6189_s22 = smov (%p3550_p6, %s3549_s22), 0  ;;  %s3527_s19 = sadd.s32 1, %s5214_s19  }
 0x22d   : >> { %s4156_s29 = sshll.u32 %s6189_s22, 5  ;;  %p3526_p7 = scmp.ge.s32.totalorder %s3527_s19, %s6112_s16 }
 0x22e   : >> { %s3554_s9 = scalar_lea.vmem %s6035_s24, %s4156_s29 [#allocation3]   ;;  %s3555_s27 = scalar_lea.vmem %s6106_s18, %s4156_s29  }
 0x22f   : >> { %s6176_s13 = smov %s6189_s22  ;;  %3529 = sbr.rel (!%p3526_p7) target bundleno = 551 (0x227), region = 223 }
 0x236 PF: > { %s6142_s30 = sand.u32 7, %s6187_s10   ;;  %s4183_s11 = sshll.u32 %s6112_s16, 5 }
 0x237   : > { %s3560_s12 = scalar_lea.vmem %s6035_s24, %s4183_s11 [#allocation3]   ;;  %s3562_s26 = scalar_lea.vmem %s6106_s18, %s4183_s11  }
 0x238   : > { %p4161_p8 = scmp.le.s32.totalorder %s6142_s30, 0 }
 0x239   : > { %s5216_s20 = smov (!%p4161_p8), %s3562_s26   ;;  %s5220_s23 = smov (!%p4161_p8), %s3560_s12  }
 0x23a   : > { %3785 = sbr.rel (%p4161_p8) target bundleno = 587 (0x24b), region = 228  ;;  %s5224_s21 = smov (!%p4161_p8), 0  }
 0x23b   : > { %s5228_s14 = smov (!%p4161_p8), 0  }
 0x241 LB: >> { %v3572_v13 = vld [vmem:[%s5222_s23] sm:$0xf]  ;;  %s3574_s10 = sadd.s32 1, %s5226_s21  ;;  %s3566_s14 = sadd.s32 1, %s5230_s14   ;;  %s5230_s14 = sphi %s5228_s14, %s3566_s14   ;;  %s5226_s21 = sphi %s5224_s21, %s5225_s21   ;;  %s5222_s23 = sphi %s5220_s23, %s3579_s23   ;;  %s5218_s20 = sphi %s5216_s20, %s3580_s20  }
 0x242   : >> { %3573 = vst [vmem:[%s5218_s20] sm:$0xf] %v3572_v13  ;;  %p3575_p9 = scmp.ge.s32.totalorder %s3574_s10, %s6142_s30  ;;  %p3565_p10 = scmp.ge.s32.totalorder %s3566_s14, %s6142_s30 }
 0x244   : >> { %s6191_s10 = smov (%p3575_p9, %s3574_s10), 0  ;;  %3568 = sbr.rel (!%p3565_p10) target bundleno = 577 (0x241), region = 234 }
 0x245   : >> { %s4162_s24 = sshll.u32 %s6191_s10, 2  ;;  %s5225_s21 = smov %s6191_s10  }
 0x246   : >> { %s3579_s23 = scalar_lea.vmem %s3560_s12, %s4162_s24 [#allocation3]   ;;  %s3580_s20 = scalar_lea.vmem %s3562_s26, %s4162_s24  }
 0x24b PF: > { %p15_p11 = scmp.ge.s32.totalorder %s5287_s28, 4   ;;  %s6177_s24 = smov %s5162_s25 }
 0x24c   : > { %s6178_s25 = smov %s5295_s8  ;;  %s6179_s26 = smov %s5287_s28 }
 0x24d   :  { %17 = sbr.rel (!%p15_p11) target bundleno = 4 (0x4), region = 245 }

// kernel: sim_camera_net_forward.7
= control target key start
LH: loop header
LB: loop body
LE: loop exit
PB: predicated region body
PF: predicated region fallthrough
CT: control target
= control target key end

     0   :  { %v391_v38 = vlaneseq  ;;  %v4077_v39 = vmov 1966171168   ;;  %s5425_s0 = inlined_call_operand.vmem [shape: bf16[2,2912], index: 0, kind: input, shape index: {}]   ;;  %s5426_s1 = inlined_call_operand.vmem [shape: bf16[2912,256], index: 1, kind: input, shape index: {}]   ;;  %s5427_s2 = inlined_call_operand.vmem [shape: f32[1,256], index: 2, kind: input, shape index: {}]   ;;  %s5428_s3 = inlined_call_operand.vmem [shape: f32[256,9], index: 3, kind: input, shape index: {}]   ;;  %s5429_s4 = inlined_call_operand.vmem [shape: f32[1,9], index: 4, kind: input, shape index: {}]   ;;  %s5430_s5 = inlined_call_operand.hbm [shape: f32[2,9], index: 5, kind: output, shape index: {}]  }
   0x1   :  { %v3500_v0 = vld [vmem:[%s5426_s1 + $0x4] ss:$8 sps:$4 sm:$0xff]   ;;  %v3504_v2 = vld [vmem:[%s5426_s1] ss:$8 sps:$4 sm:$0xff]   ;;  %v3506_v4 = vld [vmem:[%s5426_s1 + $0x14] ss:$8 sps:$4 sm:$0xff]   ;;  %v406_v40 = vunpack.c.l.s4 %v4077_v39 }
   0x2   :  { %v3502_v1 = vld [vmem:[%s5426_s1 + $0x504] ss:$8 sps:$4 sm:$0xff]   ;;  %2396 = vmatprep.subr.bf16.mxu1 %v3500_v0  ;;  %v3505_v3 = vld [vmem:[%s5426_s1 + $0x500] ss:$8 sps:$4 sm:$0xff]   ;;  %v3508_v5 = vld [vmem:[%s5426_s1 + $0x514] ss:$8 sps:$4 sm:$0xff]  }
   0x3   :  { %2601 = vmatprep.subr.bf16.mxu0 %v3502_v1  ;;  %2397 = vmatpush1.bf16.msra.mxu1 %v3504_v2  ;;  %v3510_v6 = vld [vmem:[%s5426_s1 + $0x10] ss:$8 sps:$4 sm:$0xff]   ;;  %v3512_v8 = vld [vmem:[%s5426_s1 + $0x24] ss:$8 sps:$4 sm:$0xff]   ;;  %v3516_v10 = vld [vmem:[%s5426_s1 + $0x20] ss:$8 sps:$4 sm:$0xff]   ;;  %v407_v46 = vunpack.c.0.s8 %v406_v40 }
   0x4   :  { %2602 = vmatpush1.bf16.msra.mxu0 %v3505_v3  ;;  %2398 = vmatprep.subr.bf16.mxu1 %v3506_v4  ;;  %v3511_v7 = vld [vmem:[%s5426_s1 + $0x510] ss:$8 sps:$4 sm:$0xff]   ;;  %v3514_v9 = vld [vmem:[%s5426_s1 + $0x524] ss:$8 sps:$4 sm:$0xff]   ;;  %v3517_v11 = vld [vmem:[%s5426_s1 + $0x520] ss:$8 sps:$4 sm:$0xff]  }
   0x5   :  { %2603 = vmatprep.subr.bf16.mxu0 %v3508_v5  ;;  %v3518_v12 = vld [vmem:[%s5426_s1 + $0x34] ss:$8 sps:$4 sm:$0xff]   ;;  %v3522_v14 = vld [vmem:[%s5426_s1 + $0x30] ss:$8 sps:$4 sm:$0xff]   ;;  %v3524_v16 = vld [vmem:[%s5426_s1 + $0x44] ss:$8 sps:$4 sm:$0xff]  }
   0x6   :  { %v3520_v13 = vld [vmem:[%s5426_s1 + $0x534] ss:$8 sps:$4 sm:$0xff]   ;;  %v3523_v15 = vld [vmem:[%s5426_s1 + $0x530] ss:$8 sps:$4 sm:$0xff]   ;;  %v3526_v17 = vld [vmem:[%s5426_s1 + $0x544] ss:$8 sps:$4 sm:$0xff]  }
   0x7   :  { %2399 = vmatpush1.bf16.msra.mxu1 %v3510_v6  ;;  %v3528_v18 = vld [vmem:[%s5426_s1 + $0x40] ss:$8 sps:$4 sm:$0xff]   ;;  %v3530_v20 = vld [vmem:[%s5426_s1 + $0x54] ss:$8 sps:$4 sm:$0xff]   ;;  %v3534_v22 = vld [vmem:[%s5426_s1 + $0x50] ss:$8 sps:$4 sm:$0xff]  }
   0x8   :  { %2604 = vmatpush1.bf16.msra.mxu0 %v3511_v7  ;;  %2400 = vmatprep.subr.bf16.mxu1 %v3512_v8  ;;  %v3529_v19 = vld [vmem:[%s5426_s1 + $0x540] ss:$8 sps:$4 sm:$0xff]   ;;  %v3532_v21 = vld [vmem:[%s5426_s1 + $0x554] ss:$8 sps:$4 sm:$0xff]   ;;  %v3535_v23 = vld [vmem:[%s5426_s1 + $0x550] ss:$8 sps:$4 sm:$0xff]  }
   0x9   :  { %2605 = vmatprep.subr.bf16.mxu0 %v3514_v9  ;;  %v3536_v24 = vld [vmem:[%s5426_s1 + $0x64] ss:$8 sps:$4 sm:$0xff]   ;;  %v3540_v26 = vld [vmem:[%s5426_s1 + $0x60] ss:$8 sps:$4 sm:$0xff]   ;;  %v3542_v28 = vld [vmem:[%s5426_s1 + $0x74] ss:$8 sps:$4 sm:$0xff]  }
   0xa   :  { %v3538_v25 = vld [vmem:[%s5426_s1 + $0x564] ss:$8 sps:$4 sm:$0xff]   ;;  %v3541_v27 = vld [vmem:[%s5426_s1 + $0x560] ss:$8 sps:$4 sm:$0xff]   ;;  %v3544_v29 = vld [vmem:[%s5426_s1 + $0x574] ss:$8 sps:$4 sm:$0xff]  }
   0xb   :  { %2401 = vmatpush1.bf16.msra.mxu1 %v3516_v10  ;;  %v3546_v30 = vld [vmem:[%s5426_s1 + $0x70] ss:$8 sps:$4 sm:$0xff]   ;;  %v3548_v32 = vld [vmem:[%s5426_s1 + $0x84] ss:$8 sps:$4 sm:$0xff]   ;;  %v3552_v34 = vld [vmem:[%s5426_s1 + $0x80] ss:$8 sps:$4 sm:$0xff]  }
   0xc   :  { %2606 = vmatpush1.bf16.msra.mxu0 %v3517_v11  ;;  %2402 = vmatprep.subr.bf16.mxu1 %v3518_v12  ;;  %v3547_v31 = vld [vmem:[%s5426_s1 + $0x570] ss:$8 sps:$4 sm:$0xff]   ;;  %v3550_v33 = vld [vmem:[%s5426_s1 + $0x584] ss:$8 sps:$4 sm:$0xff]   ;;  %v3553_v35 = vld [vmem:[%s5426_s1 + $0x580] ss:$8 sps:$4 sm:$0xff]  }
   0xd   :  { %2607 = vmatprep.subr.bf16.mxu0 %v3520_v13  ;;  %v3554_v36 = vld [vmem:[%s5426_s1 + $0x94] ss:$8 sps:$4 sm:$0xff]   ;;  %v3558_v41 = vld [vmem:[%s5426_s1 + $0x90] ss:$8 sps:$4 sm:$0xff]   ;;  %v3560_v43 = vld [vmem:[%s5426_s1 + $0xa4] ss:$8 sps:$4 sm:$0xff]  }
   0xe   :  { %v3556_v37 = vld [vmem:[%s5426_s1 + $0x594] ss:$8 sps:$4 sm:$0xff]   ;;  %v3559_v42 = vld [vmem:[%s5426_s1 + $0x590] ss:$8 sps:$4 sm:$0xff]   ;;  %v3562_v44 = vld [vmem:[%s5426_s1 + $0x5a4] ss:$8 sps:$4 sm:$0xff]  }
   0xf   :  { %2403 = vmatpush1.bf16.msra.mxu1 %v3522_v14  ;;  %v4236_v45 = vshrl.u32 %v391_v38, 7  ;;  %v3564_v47 = vld [vmem:[%s5426_s1 + $0xa0] ss:$8 sps:$4 sm:$0xff]   ;;  %v3566_v49 = vld [vmem:[%s5426_s1 + $0xb4] ss:$8 sps:$4 sm:$0xff]  }
  0x10   :  { %2608 = vmatpush1.bf16.msra.mxu0 %v3523_v15  ;;  %2404 = vmatprep.subr.bf16.mxu1 %v3524_v16  ;;  %v3565_v48 = vld [vmem:[%s5426_s1 + $0x5a0] ss:$8 sps:$4 sm:$0xff]   ;;  %v3568_v50 = vld [vmem:[%s5426_s1 + $0x5b4] ss:$8 sps:$4 sm:$0xff]   ;;  %v3570_v53 = vld [vmem:[%s5426_s1 + $0xb0] ss:$8 sps:$4 sm:$0xff]  }
  0x11   :  { %2609 = vmatprep.subr.bf16.mxu0 %v3526_v17  ;;  %v4251_v51 = vsub.s32 %v407_v46, %v4236_v45  ;;  %v4256_v52 = vld [vmem:[%s5425_s0] sm:$0xff]  ;;  %v3571_v55 = vld [vmem:[%s5426_s1 + $0x5b0] ss:$8 sps:$4 sm:$0xff]   ;;  %v23_v56 = vld [vmem:[%s5425_s0 + $0x8] sm:$0xff] }
  0x12   :  { %v3572_v57 = vld [vmem:[%s5426_s1 + $0xc4] ss:$8 sps:$4 sm:$0xff]   ;;  %v3576_v63 = vld [vmem:[%s5426_s1 + $0xc0] ss:$8 sps:$4 sm:$0xff]   ;;  %v3578_v1 = vld [vmem:[%s5426_s1 + $0xd4] ss:$8 sps:$4 sm:$0xff]   ;;  %v453_v9 = vcombine.high %v23_v56, %v23_v56 }
  0x13   :  { %2405 = vmatpush1.bf16.msra.mxu1 %v3528_v18  ;;  %v411_v54 = vrot.slane %v4256_v52, %v4251_v51  ;;  %v3574_v58 = vld [vmem:[%s5426_s1 + $0x5c4] ss:$8 sps:$4 sm:$0xff]   ;;  %v460_v60 = vrot.slane %v23_v56, %v4251_v51  ;;  %v3577_v0 = vld [vmem:[%s5426_s1 + $0x5c0] ss:$8 sps:$4 sm:$0xff]   ;;  %v3580_v2 = vld [vmem:[%s5426_s1 + $0x5d4] ss:$8 sps:$4 sm:$0xff]  }
  0x14   :  { %2610 = vmatpush1.bf16.msra.mxu0 %v3529_v19  ;;  %2406 = vmatprep.subr.bf16.mxu1 %v3530_v20  ;;  %v3582_v5 = vld [vmem:[%s5426_s1 + $0xd0] ss:$8 sps:$4 sm:$0xff]   ;;  %v3584_v7 = vld [vmem:[%s5426_s1 + $0xe4] ss:$8 sps:$4 sm:$0xff]   ;;  %v3588_v10 = vld [vmem:[%s5426_s1 + $0xe0] ss:$8 sps:$4 sm:$0xff]   ;;  %v4322_v14 = vrot.slane %v453_v9, %v4251_v51 }
  0x15   :  { %2611 = vmatprep.subr.bf16.mxu0 %v3532_v21  ;;  %v419_v59 = vcombine.high %v411_v54, %v411_v54  ;;  %v468_v62 = vcombine.high %v460_v60, %v460_v60  ;;  %v3583_v6 = vld [vmem:[%s5426_s1 + $0x5d0] ss:$8 sps:$4 sm:$0xff]   ;;  %v3586_v8 = vld [vmem:[%s5426_s1 + $0x5e4] ss:$8 sps:$4 sm:$0xff]   ;;  %v3589_v11 = vld [vmem:[%s5426_s1 + $0x5e0] ss:$8 sps:$4 sm:$0xff]   ;;  %v4325_v15 = vrot.slane %v460_v60, %v4251_v51  ;;  %v4342_v21 = vrot.slane %v411_v54, %v4251_v51 }
  0x16   :  { %v3590_v12 = vld [vmem:[%s5426_s1 + $0xf4] ss:$8 sps:$4 sm:$0xff]   ;;  %v3594_v16 = vld [vmem:[%s5426_s1 + $0xf0] ss:$8 sps:$4 sm:$0xff]   ;;  %v3599_v18 = vld [vmem:[%s5426_s1 + $0x104] ss:$8 sps:$4 sm:$0xff]   ;;  %v469_v20 = vcombine.high %v4322_v14, %v4322_v14 }
  0x17   :  { %2407 = vmatpush1.bf16.msra.mxu1 %v3534_v22  ;;  %v4277_v61 = vrot.slane %v419_v59, %v4251_v51  ;;  %v4292_v3 = vrot.slane %v468_v62, %v4251_v51  ;;  %v3592_v13 = vld [vmem:[%s5426_s1 + $0x5f4] ss:$8 sps:$4 sm:$0xff]   ;;  %v3595_v17 = vld [vmem:[%s5426_s1 + $0x5f0] ss:$8 sps:$4 sm:$0xff]   ;;  %v3603_v19 = vld [vmem:[%s5426_s1 + $0x604] ss:$8 sps:$4 sm:$0xff]   ;;  %v498_v22 = vcombine.high %v4325_v15, %v4325_v15 }
  0x18   :  { %2612 = vmatpush1.bf16.msra.mxu0 %v3535_v23  ;;  %2408 = vmatprep.subr.bf16.mxu1 %v3536_v24  ;;  %v3597_v23 = vld [vmem:[%s5426_s1 + $0x100] ss:$8 sps:$4 sm:$0xff]   ;;  %v3619_v38 = vld [vmem:[%s5426_s1 + $0x630] ss:$8 sps:$4 sm:$0xff]   ;;  %v3624_v39 = vld [vmem:[%s5426_s1 + $0x144] ss:$8 sps:$4 sm:$0xff]  }
  0x19   :  { %2613 = vmatprep.subr.bf16.mxu0 %v3538_v25  ;;  %2428 = vmatprep.mubr.bf16.mxu1 %v4277_v61  ;;  %v500_v4 = vcombine.high %v4292_v3, %v4292_v3  ;;  %v3601_v24 = vld [vmem:[%s5426_s1 + $0x600] ss:$8 sps:$4 sm:$0xff]   ;;  %v3606_v25 = vld [vmem:[%s5426_s1 + $0x114] ss:$8 sps:$4 sm:$0xff]   ;;  %v3627_v40 = vld [vmem:[%s5426_s1 + $0x644] ss:$8 sps:$4 sm:$0xff]  }
  0x1a   :  { %v3628_v46 = vld [vmem:[%s5426_s1 + $0x150] ss:$8 sps:$4 sm:$0xff]   ;;  %v3642_v54 = vld [vmem:[%s5426_s1 + $0x174] ss:$8 sps:$4 sm:$0xff]   ;;  %v3651_v59 = vld [vmem:[%s5426_s1 + $0x684] ss:$8 sps:$4 sm:$0xff]  }
  0x1b   :  { %2409 = vmatpush1.bf16.msra.mxu1 %v3540_v26  ;;  %2633 = vmatprep.mubr.bf16.mxu0 %v500_v4  ;;  %v3609_v26 = vld [vmem:[%s5426_s1 + $0x614] ss:$8 sps:$4 sm:$0xff]   ;;  %v3640_v56 = vld [vmem:[%s5426_s1 + $0x170] ss:$8 sps:$4 sm:$0xff]   ;;  %v3646_v60 = vld [vmem:[%s5426_s1 + $0x180] ss:$8 sps:$4 sm:$0xff]  }
  0x1c   :  { %2614 = vmatpush1.bf16.msra.mxu0 %v3541_v27  ;;  %2410 = vmatprep.subr.bf16.mxu1 %v3542_v28  ;;  %v451_v27 = vcombine.high %v4277_v61, %v4277_v61  ;;  %v4361_v28 = vrot.slane %v469_v20, %v4251_v51  ;;  %v3649_v61 = vld [vmem:[%s5426_s1 + $0x680] ss:$8 sps:$4 sm:$0xff]   ;;  %v3654_v62 = vld [vmem:[%s5426_s1 + $0x194] ss:$8 sps:$4 sm:$0xff]   ;;  %v3663_v4 = vld [vmem:[%s5426_s1 + $0x6a4] ss:$8 sps:$4 sm:$0xff]  }
  0x1d   :  { %2615 = vmatprep.subr.bf16.mxu0 %v3544_v29  ;;  %v3604_v29 = vld [vmem:[%s5426_s1 + $0x110] ss:$8 sps:$4 sm:$0xff]  }
  0x1e   :  { %v3664_v9 = vld [vmem:[%s5426_s1 + $0x1b0] ss:$8 sps:$4 sm:$0xff]  }
  0x1f   :  { %2411 = vmatpush1.bf16.msra.mxu1 %v3546_v30  ;;  %v3607_v30 = vld [vmem:[%s5426_s1 + $0x610] ss:$8 sps:$4 sm:$0xff]  }
  0x20   :  { %2616 = vmatpush1.bf16.msra.mxu0 %v3547_v31  ;;  %2412 = vmatprep.subr.bf16.mxu1 %v3548_v32  ;;  %v3612_v31 = vld [vmem:[%s5426_s1 + $0x124] ss:$8 sps:$4 sm:$0xff]   ;;  %v3679_v20 = vld [vmem:[%s5426_s1 + $0x6d0] ss:$8 sps:$4 sm:$0xff]  }
  0x21   :  { %2617 = vmatprep.subr.bf16.mxu0 %v3550_v33  ;;  %v3615_v32 = vld [vmem:[%s5426_s1 + $0x624] ss:$8 sps:$4 sm:$0xff]   ;;  %v3610_v33 = vld [vmem:[%s5426_s1 + $0x120] ss:$8 sps:$4 sm:$0xff]  }
  0x23   :  { %2413 = vmatpush1.bf16.msra.mxu1 %v3552_v34  ;;  %v3613_v34 = vld [vmem:[%s5426_s1 + $0x620] ss:$8 sps:$4 sm:$0xff]  }
  0x24   :  { %2618 = vmatpush1.bf16.msra.mxu0 %v3553_v35  ;;  %2414 = vmatprep.subr.bf16.mxu1 %v3554_v36  ;;  %v3618_v35 = vld [vmem:[%s5426_s1 + $0x134] ss:$8 sps:$4 sm:$0xff]  }
  0x25   :  { %2619 = vmatprep.subr.bf16.mxu0 %v3556_v37  ;;  %v3621_v36 = vld [vmem:[%s5426_s1 + $0x634] ss:$8 sps:$4 sm:$0xff]   ;;  %v3616_v37 = vld [vmem:[%s5426_s1 + $0x130] ss:$8 sps:$4 sm:$0xff]  }
  0x27   :  { %2415 = vmatpush1.bf16.msra.mxu1 %v3558_v41  ;;  %v3622_v41 = vld [vmem:[%s5426_s1 + $0x140] ss:$8 sps:$4 sm:$0xff]  }
  0x28   :  { %2620 = vmatpush1.bf16.msra.mxu0 %v3559_v42  ;;  %2416 = vmatprep.subr.bf16.mxu1 %v3560_v43  ;;  %v3625_v42 = vld [vmem:[%s5426_s1 + $0x640] ss:$8 sps:$4 sm:$0xff]   ;;  %v3630_v43 = vld [vmem:[%s5426_s1 + $0x154] ss:$8 sps:$4 sm:$0xff]  }
  0x29   :  { %2621 = vmatprep.subr.bf16.mxu0 %v3562_v44  ;;  %v3633_v44 = vld [vmem:[%s5426_s1 + $0x654] ss:$8 sps:$4 sm:$0xff]  }
  0x2b   :  { %2417 = vmatpush1.bf16.msra.mxu1 %v3564_v47  ;;  %v3631_v47 = vld [vmem:[%s5426_s1 + $0x650] ss:$8 sps:$4 sm:$0xff]  }
  0x2c   :  { %2622 = vmatpush1.bf16.msra.mxu0 %v3565_v48  ;;  %2418 = vmatprep.subr.bf16.mxu1 %v3566_v49  ;;  %v3636_v48 = vld [vmem:[%s5426_s1 + $0x164] ss:$8 sps:$4 sm:$0xff]  }
  0x2d   :  { %2623 = vmatprep.subr.bf16.mxu0 %v3568_v50  ;;  %v3639_v49 = vld [vmem:[%s5426_s1 + $0x664] ss:$8 sps:$4 sm:$0xff]   ;;  %v3634_v50 = vld [vmem:[%s5426_s1 + $0x160] ss:$8 sps:$4 sm:$0xff]  }
  0x2f   :  { %2419 = vmatpush1.bf16.msra.mxu1 %v3570_v53  ;;  %v3637_v53 = vld [vmem:[%s5426_s1 + $0x660] ss:$8 sps:$4 sm:$0xff]  }
  0x30   :  { %2624 = vmatpush1.bf16.msra.mxu0 %v3571_v55  ;;  %2420 = vmatprep.subr.bf16.mxu1 %v3572_v57  ;;  %v3645_v55 = vld [vmem:[%s5426_s1 + $0x674] ss:$8 sps:$4 sm:$0xff]   ;;  %v3643_v57 = vld [vmem:[%s5426_s1 + $0x670] ss:$8 sps:$4 sm:$0xff]  }
  0x31   :  { %2625 = vmatprep.subr.bf16.mxu0 %v3574_v58  ;;  %v3648_v58 = vld [vmem:[%s5426_s1 + $0x184] ss:$8 sps:$4 sm:$0xff]  }
  0x33   :  { %2421 = vmatpush1.bf16.msra.mxu1 %v3576_v63  ;;  %v3657_v63 = vld [vmem:[%s5426_s1 + $0x694] ss:$8 sps:$4 sm:$0xff]  }
  0x34   :  { %2626 = vmatpush1.bf16.msra.mxu0 %v3577_v0  ;;  %2422 = vmatprep.subr.bf16.mxu1 %v3578_v1  ;;  %v3652_v0 = vld [vmem:[%s5426_s1 + $0x190] ss:$8 sps:$4 sm:$0xff]  }
  0x35   :  { %2627 = vmatprep.subr.bf16.mxu0 %v3580_v2  ;;  %v3655_v1 = vld [vmem:[%s5426_s1 + $0x690] ss:$8 sps:$4 sm:$0xff]   ;;  %v3660_v2 = vld [vmem:[%s5426_s1 + $0x1a4] ss:$8 sps:$4 sm:$0xff]  }
  0x37   :  { %2423 = vmatpush1.bf16.msra.mxu1 %v3582_v5  ;;  %v3658_v5 = vld [vmem:[%s5426_s1 + $0x1a0] ss:$8 sps:$4 sm:$0xff]  }
  0x38   :  { %2628 = vmatpush1.bf16.msra.mxu0 %v3583_v6  ;;  %2424 = vmatprep.subr.bf16.mxu1 %v3584_v7  ;;  %v3661_v6 = vld [vmem:[%s5426_s1 + $0x6a0] ss:$8 sps:$4 sm:$0xff]   ;;  %v3666_v7 = vld [vmem:[%s5426_s1 + $0x1b4] ss:$8 sps:$4 sm:$0xff]  }
  0x39   :  { %2629 = vmatprep.subr.bf16.mxu0 %v3586_v8  ;;  %v3669_v8 = vld [vmem:[%s5426_s1 + $0x6b4] ss:$8 sps:$4 sm:$0xff]  }
  0x3b   :  { %2425 = vmatpush1.bf16.msra.mxu1 %v3588_v10  ;;  %v3667_v10 = vld [vmem:[%s5426_s1 + $0x6b0] ss:$8 sps:$4 sm:$0xff]  }
  0x3c   :  { %2630 = vmatpush1.bf16.msra.mxu0 %v3589_v11  ;;  %2426 = vmatprep.subr.bf16.mxu1 %v3590_v12  ;;  %v3672_v11 = vld [vmem:[%s5426_s1 + $0x1c4] ss:$8 sps:$4 sm:$0xff]  }
  0x3d   :  { %2631 = vmatprep.subr.bf16.mxu0 %v3592_v13  ;;  %v3675_v12 = vld [vmem:[%s5426_s1 + $0x6c4] ss:$8 sps:$4 sm:$0xff]   ;;  %v3670_v13 = vld [vmem:[%s5426_s1 + $0x1c0] ss:$8 sps:$4 sm:$0xff]  }
  0x3f   :  { %2427 = vmatpush1.bf16.msra.mxu1 %v3594_v16  ;;  %v3673_v16 = vld [vmem:[%s5426_s1 + $0x6c0] ss:$8 sps:$4 sm:$0xff]  }
  0x40   :  { %2632 = vmatpush1.bf16.msra.mxu0 %v3595_v17  ;;  %2437 = vmatprep.subr.bf16.mxu1 %v3599_v18  ;;  %v3678_v17 = vld [vmem:[%s5426_s1 + $0x1d4] ss:$8 sps:$4 sm:$0xff]  }
  0x41   :  { %2642 = vmatprep.subr.bf16.mxu0 %v3603_v19  ;;  %v3681_v18 = vld [vmem:[%s5426_s1 + $0x6d4] ss:$8 sps:$4 sm:$0xff]   ;;  %v3676_v19 = vld [vmem:[%s5426_s1 + $0x1d0] ss:$8 sps:$4 sm:$0xff]  }
  0x42   :  { %2429 = vmatmul.mubr.bf16.vlgmr.msra.gmra.mrb[0].mxu1 %v4342_v21 }
  0x43   :  { %2634 = vmatmul.mubr.bf16.vlgmr.msra.gmra.mrb[0].mxu0 %v498_v22  ;;  %2438 = vmatpush1.bf16.msra.mxu1 %v3597_v23  ;;  %v3684_v22 = vld [vmem:[%s5426_s1 + $0x1e4] ss:$8 sps:$4 sm:$0xff]  }
  0x44   :  { %2643 = vmatpush1.bf16.msra.mxu0 %v3601_v24  ;;  %2439 = vmatprep.subr.bf16.mxu1 %v3606_v25  ;;  %v3687_v23 = vld [vmem:[%s5426_s1 + $0x6e4] ss:$8 sps:$4 sm:$0xff]   ;;  %v404_v24 = vcombine.high %v4256_v52, %v4256_v52  ;;  %v3682_v25 = vld [vmem:[%s5426_s1 + $0x1e0] ss:$8 sps:$4 sm:$0xff]   ;;  %v3693_v52 = vld [vmem:[%s5426_s1 + $0x6f4] ss:$8 sps:$4 sm:$0xff]  }
  0x45   :  { %2644 = vmatprep.subr.bf16.mxu0 %v3609_v26  ;;  %2469 = vmatprep.mubr.bf16.mxu1 %v451_v27  ;;  %v3685_v26 = vld [vmem:[%s5426_s1 + $0x6e0] ss:$8 sps:$4 sm:$0xff]   ;;  %v3690_v27 = vld [vmem:[%s5426_s1 + $0x1f4] ss:$8 sps:$4 sm:$0xff]  }
  0x46   :  { %2674 = vmatprep.mubr.bf16.mxu0 %v4361_v28 }
  0x47   :  { %2440 = vmatpush1.bf16.msra.mxu1 %v3604_v29  ;;  %v4536_v29 = vrot.slane %v404_v24, %v4251_v51  ;;  %v3763_v24 = vld [vmem:[%s5426_s1 + $0x7b0] ss:$8 sps:$4 sm:$0xff]  }
  0x48   :  { %2645 = vmatpush1.bf16.msra.mxu0 %v3607_v30  ;;  %2441 = vmatprep.subr.bf16.mxu1 %v3612_v31  ;;  %v3688_v30 = vld [vmem:[%s5426_s1 + $0x1f0] ss:$8 sps:$4 sm:$0xff]  }
  0x49   :  { %2646 = vmatprep.subr.bf16.mxu0 %v3615_v32  ;;  %v3691_v31 = vld [vmem:[%s5426_s1 + $0x6f0] ss:$8 sps:$4 sm:$0xff]   ;;  %v3696_v32 = vld [vmem:[%s5426_s1 + $0x204] ss:$8 sps:$4 sm:$0xff]  }
  0x4b   :  { %2442 = vmatpush1.bf16.msra.mxu1 %v3610_v33  ;;  %v3699_v33 = vld [vmem:[%s5426_s1 + $0x704] ss:$8 sps:$4 sm:$0xff]  }
  0x4c   :  { %2647 = vmatpush1.bf16.msra.mxu0 %v3613_v34  ;;  %2443 = vmatprep.subr.bf16.mxu1 %v3618_v35  ;;  %v420_v34 = vcombine.high %v4536_v29, %v4536_v29  ;;  %v449_v35 = vcombine.high %v4342_v21, %v4342_v21  ;;  %v3702_v21 = vld [vmem:[%s5426_s1 + $0x214] ss:$8 sps:$4 sm:$0xff]  }
  0x4d   :  { %2648 = vmatprep.subr.bf16.mxu0 %v3621_v36  ;;  %v4556_v36 = vrot.slane %v4322_v14, %v4251_v51  ;;  %v3705_v14 = vld [vmem:[%s5426_s1 + $0x714] ss:$8 sps:$4 sm:$0xff]  }
  0x4f   :  { %2444 = vmatpush1.bf16.msra.mxu1 %v3616_v37  ;;  %v3694_v37 = vld [vmem:[%s5426_s1 + $0x200] ss:$8 sps:$4 sm:$0xff]  }
  0x50   :  { %2649 = vmatpush1.bf16.msra.mxu0 %v3619_v38  ;;  %2445 = vmatprep.subr.bf16.mxu1 %v3624_v39  ;;  %v3697_v38 = vld [vmem:[%s5426_s1 + $0x700] ss:$8 sps:$4 sm:$0xff]   ;;  %v4571_v39 = vrot.slane %v420_v34, %v4251_v51  ;;  %v3780_v34 = vld [vmem:[%s5426_s1 + $0x2e4] ss:$8 sps:$4 sm:$0xff]  }
  0x51   :  { %2650 = vmatprep.subr.bf16.mxu0 %v3627_v40  ;;  %v501_v40 = vcombine.high %v4361_v28, %v4361_v28  ;;  %v3711_v28 = vld [vmem:[%s5426_s1 + $0x724] ss:$8 sps:$4 sm:$0xff]  }
  0x53   :  { %2446 = vmatpush1.bf16.msra.mxu1 %v3622_v41  ;;  %v3700_v41 = vld [vmem:[%s5426_s1 + $0x210] ss:$8 sps:$4 sm:$0xff]  }
  0x54   :  { %2651 = vmatpush1.bf16.msra.mxu0 %v3625_v42  ;;  %2447 = vmatprep.subr.bf16.mxu1 %v3630_v43  ;;  %v3703_v42 = vld [vmem:[%s5426_s1 + $0x710] ss:$8 sps:$4 sm:$0xff]   ;;  %v3708_v43 = vld [vmem:[%s5426_s1 + $0x224] ss:$8 sps:$4 sm:$0xff]  }
  0x55   :  { %2652 = vmatprep.subr.bf16.mxu0 %v3633_v44  ;;  %v3706_v44 = vld [vmem:[%s5426_s1 + $0x220] ss:$8 sps:$4 sm:$0xff]  }
  0x57   :  { %2448 = vmatpush1.bf16.msra.mxu1 %v3628_v46  ;;  %v3709_v46 = vld [vmem:[%s5426_s1 + $0x720] ss:$8 sps:$4 sm:$0xff]  }
  0x58   :  { %2653 = vmatpush1.bf16.msra.mxu0 %v3631_v47  ;;  %2449 = vmatprep.subr.bf16.mxu1 %v3636_v48  ;;  %v3714_v47 = vld [vmem:[%s5426_s1 + $0x234] ss:$8 sps:$4 sm:$0xff]  }
  0x59   :  { %2654 = vmatprep.subr.bf16.mxu0 %v3639_v49  ;;  %v3717_v48 = vld [vmem:[%s5426_s1 + $0x734] ss:$8 sps:$4 sm:$0xff]   ;;  %v3712_v49 = vld [vmem:[%s5426_s1 + $0x230] ss:$8 sps:$4 sm:$0xff]  }
  0x5b   :  { %2450 = vmatpush1.bf16.msra.mxu1 %v3634_v50  ;;  %v3715_v50 = vld [vmem:[%s5426_s1 + $0x730] ss:$8 sps:$4 sm:$0xff]  }
  0x5c   :  { %2655 = vmatpush1.bf16.msra.mxu0 %v3637_v53  ;;  %2451 = vmatprep.subr.bf16.mxu1 %v3642_v54  ;;  %v3720_v53 = vld [vmem:[%s5426_s1 + $0x244] ss:$8 sps:$4 sm:$0xff]  }
  0x5d   :  { %2656 = vmatprep.subr.bf16.mxu0 %v3645_v55  ;;  %v3723_v54 = vld [vmem:[%s5426_s1 + $0x744] ss:$8 sps:$4 sm:$0xff]   ;;  %v3718_v55 = vld [vmem:[%s5426_s1 + $0x240] ss:$8 sps:$4 sm:$0xff]  }
  0x5f   :  { %2452 = vmatpush1.bf16.msra.mxu1 %v3640_v56  ;;  %v3721_v56 = vld [vmem:[%s5426_s1 + $0x740] ss:$8 sps:$4 sm:$0xff]  }
  0x60   :  { %2657 = vmatpush1.bf16.msra.mxu0 %v3643_v57  ;;  %2453 = vmatprep.subr.bf16.mxu1 %v3648_v58  ;;  %v3726_v57 = vld [vmem:[%s5426_s1 + $0x254] ss:$8 sps:$4 sm:$0xff]  }
  0x61   :  { %2658 = vmatprep.subr.bf16.mxu0 %v3651_v59  ;;  %v3729_v58 = vld [vmem:[%s5426_s1 + $0x754] ss:$8 sps:$4 sm:$0xff]   ;;  %v3724_v59 = vld [vmem:[%s5426_s1 + $0x250] ss:$8 sps:$4 sm:$0xff]  }
  0x63   :  { %2454 = vmatpush1.bf16.msra.mxu1 %v3646_v60  ;;  %v3727_v60 = vld [vmem:[%s5426_s1 + $0x750] ss:$8 sps:$4 sm:$0xff]  }
  0x64   :  { %2659 = vmatpush1.bf16.msra.mxu0 %v3649_v61  ;;  %2455 = vmatprep.subr.bf16.mxu1 %v3654_v62  ;;  %v3732_v61 = vld [vmem:[%s5426_s1 + $0x264] ss:$8 sps:$4 sm:$0xff]  }
  0x65   :  { %2660 = vmatprep.subr.bf16.mxu0 %v3657_v63  ;;  %v3735_v62 = vld [vmem:[%s5426_s1 + $0x764] ss:$8 sps:$4 sm:$0xff]   ;;  %v3730_v63 = vld [vmem:[%s5426_s1 + $0x260] ss:$8 sps:$4 sm:$0xff]  }
  0x67   :  { %2456 = vmatpush1.bf16.msra.mxu1 %v3652_v0  ;;  %v3733_v0 = vld [vmem:[%s5426_s1 + $0x760] ss:$8 sps:$4 sm:$0xff]  }
  0x68   :  { %2661 = vmatpush1.bf16.msra.mxu0 %v3655_v1  ;;  %2457 = vmatprep.subr.bf16.mxu1 %v3660_v2  ;;  %v3738_v1 = vld [vmem:[%s5426_s1 + $0x274] ss:$8 sps:$4 sm:$0xff]  }
  0x69   :  { %2662 = vmatprep.subr.bf16.mxu0 %v3663_v4  ;;  %v3741_v2 = vld [vmem:[%s5426_s1 + $0x774] ss:$8 sps:$4 sm:$0xff]   ;;  %v3736_v4 = vld [vmem:[%s5426_s1 + $0x270] ss:$8 sps:$4 sm:$0xff]  }
  0x6b   :  { %2458 = vmatpush1.bf16.msra.mxu1 %v3658_v5  ;;  %v3739_v5 = vld [vmem:[%s5426_s1 + $0x770] ss:$8 sps:$4 sm:$0xff]  }
  0x6c   :  { %2663 = vmatpush1.bf16.msra.mxu0 %v3661_v6  ;;  %2459 = vmatprep.subr.bf16.mxu1 %v3666_v7  ;;  %v3744_v6 = vld [vmem:[%s5426_s1 + $0x284] ss:$8 sps:$4 sm:$0xff]  }
  0x6d   :  { %2664 = vmatprep.subr.bf16.mxu0 %v3669_v8  ;;  %v3747_v7 = vld [vmem:[%s5426_s1 + $0x784] ss:$8 sps:$4 sm:$0xff]   ;;  %v3742_v8 = vld [vmem:[%s5426_s1 + $0x280] ss:$8 sps:$4 sm:$0xff]  }
  0x6f   :  { %2460 = vmatpush1.bf16.msra.mxu1 %v3664_v9  ;;  %v3745_v9 = vld [vmem:[%s5426_s1 + $0x780] ss:$8 sps:$4 sm:$0xff]  }
  0x70   :  { %2665 = vmatpush1.bf16.msra.mxu0 %v3667_v10  ;;  %2461 = vmatprep.subr.bf16.mxu1 %v3672_v11  ;;  %v3750_v10 = vld [vmem:[%s5426_s1 + $0x294] ss:$8 sps:$4 sm:$0xff]  }
  0x71   :  { %2666 = vmatprep.subr.bf16.mxu0 %v3675_v12  ;;  %v3753_v11 = vld [vmem:[%s5426_s1 + $0x794] ss:$8 sps:$4 sm:$0xff]   ;;  %v3748_v12 = vld [vmem:[%s5426_s1 + $0x290] ss:$8 sps:$4 sm:$0xff]  }
  0x73   :  { %2462 = vmatpush1.bf16.msra.mxu1 %v3670_v13  ;;  %v3751_v13 = vld [vmem:[%s5426_s1 + $0x790] ss:$8 sps:$4 sm:$0xff]  }
  0x74   :  { %2667 = vmatpush1.bf16.msra.mxu0 %v3673_v16  ;;  %2463 = vmatprep.subr.bf16.mxu1 %v3678_v17  ;;  %v3756_v16 = vld [vmem:[%s5426_s1 + $0x2a4] ss:$8 sps:$4 sm:$0xff]  }
  0x75   :  { %2668 = vmatprep.subr.bf16.mxu0 %v3681_v18  ;;  %v3759_v17 = vld [vmem:[%s5426_s1 + $0x7a4] ss:$8 sps:$4 sm:$0xff]   ;;  %v3754_v18 = vld [vmem:[%s5426_s1 + $0x2a0] ss:$8 sps:$4 sm:$0xff]  }
  0x77   :  { %2464 = vmatpush1.bf16.msra.mxu1 %v3676_v19  ;;  %v3757_v19 = vld [vmem:[%s5426_s1 + $0x7a0] ss:$8 sps:$4 sm:$0xff]  }
  0x78   :  { %2669 = vmatpush1.bf16.msra.mxu0 %v3679_v20  ;;  %2465 = vmatprep.subr.bf16.mxu1 %v3684_v22  ;;  %v3762_v20 = vld [vmem:[%s5426_s1 + $0x2b4] ss:$8 sps:$4 sm:$0xff]  }
  0x79   :  { %2670 = vmatprep.subr.bf16.mxu0 %v3687_v23  ;;  %v3765_v22 = vld [vmem:[%s5426_s1 + $0x7b4] ss:$8 sps:$4 sm:$0xff]   ;;  %v3760_v23 = vld [vmem:[%s5426_s1 + $0x2b0] ss:$8 sps:$4 sm:$0xff]  }
  0x7b   :  { %2466 = vmatpush1.bf16.msra.mxu1 %v3682_v25  ;;  %v3768_v25 = vld [vmem:[%s5426_s1 + $0x2c4] ss:$8 sps:$4 sm:$0xff]  }
  0x7c   :  { %2671 = vmatpush1.bf16.msra.mxu0 %v3685_v26  ;;  %2467 = vmatprep.subr.bf16.mxu1 %v3690_v27  ;;  %v3771_v26 = vld [vmem:[%s5426_s1 + $0x7c4] ss:$8 sps:$4 sm:$0xff]   ;;  %v3766_v27 = vld [vmem:[%s5426_s1 + $0x2c0] ss:$8 sps:$4 sm:$0xff]  }
  0x7d   :  { %2672 = vmatprep.subr.bf16.mxu0 %v3693_v52  ;;  %v3769_v52 = vld [vmem:[%s5426_s1 + $0x7c0] ss:$8 sps:$4 sm:$0xff]  }
  0x7f   :  { %2468 = vmatpush1.bf16.msra.mxu1 %v3688_v30  ;;  %v3774_v30 = vld [vmem:[%s5426_s1 + $0x2d4] ss:$8 sps:$4 sm:$0xff]  }
  0x80   :  { %2673 = vmatpush1.bf16.msra.mxu0 %v3691_v31  ;;  %2478 = vmatprep.subr.bf16.mxu1 %v3696_v32  ;;  %v3777_v31 = vld [vmem:[%s5426_s1 + $0x7d4] ss:$8 sps:$4 sm:$0xff]   ;;  %v3772_v32 = vld [vmem:[%s5426_s1 + $0x2d0] ss:$8 sps:$4 sm:$0xff]  }
  0x81   :  { %2683 = vmatprep.subr.bf16.mxu0 %v3699_v33  ;;  %v3775_v33 = vld [vmem:[%s5426_s1 + $0x7d0] ss:$8 sps:$4 sm:$0xff]  }
  0x82   :  { %2470 = vmatmul.mubr.bf16.vlgmr.msra.gmra.mrb[0].mxu1 %v449_v35  ;;  %v3783_v35 = vld [vmem:[%s5426_s1 + $0x7e4] ss:$8 sps:$4 sm:$0xff]  }
  0x83   :  { %2675 = vmatmul.mubr.bf16.vlgmr.msra.gmra.mrb[0].mxu0 %v4556_v36  ;;  %2479 = vmatpush1.bf16.msra.mxu1 %v3694_v37  ;;  %v3778_v37 = vld [vmem:[%s5426_s1 + $0x2e0] ss:$8 sps:$4 sm:$0xff]  }
  0x84   :  { %2684 = vmatpush1.bf16.msra.mxu0 %v3697_v38  ;;  %2480 = vmatprep.subr.bf16.mxu1 %v3702_v21  ;;  %v4739_v38 = vld [vmem:[%s5425_s0 + $0x10] sm:$0x7f]  ;;  %v3781_v21 = vld [vmem:[%s5426_s1 + $0x7e0] ss:$8 sps:$4 sm:$0xff]  }
  0x85   :  { %2685 = vmatprep.subr.bf16.mxu0 %v3705_v14  ;;  %2510 = vmatprep.mubr.bf16.mxu1 %v4571_v39  ;;  %v3786_v14 = vld [vmem:[%s5426_s1 + $0x2f4] ss:$8 sps:$4 sm:$0xff]  }
  0x86   :  { %2715 = vmatprep.mubr.bf16.mxu0 %v501_v40  ;;  %v3789_v40 = vld [vmem:[%s5426_s1 + $0x7f4] ss:$8 sps:$4 sm:$0xff]  }
  0x87   :  { %2481 = vmatpush1.bf16.msra.mxu1 %v3700_v41  ;;  %v4752_v41 = vrot.slane %v4739_v38, %v4251_v51 }
  0x88   :  { %2686 = vmatpush1.bf16.msra.mxu0 %v3703_v42  ;;  %2482 = vmatprep.subr.bf16.mxu1 %v3708_v43  ;;  %v3784_v42 = vld [vmem:[%s5426_s1 + $0x2f0] ss:$8 sps:$4 sm:$0xff]  }
  0x89   :  { %2687 = vmatprep.subr.bf16.mxu0 %v3711_v28  ;;  %v3787_v43 = vld [vmem:[%s5426_s1 + $0x7f0] ss:$8 sps:$4 sm:$0xff]   ;;  %v3792_v28 = vld [vmem:[%s5426_s1 + $0x304] ss:$8 sps:$4 sm:$0xff]  }
  0x8b   :  { %2483 = vmatpush1.bf16.msra.mxu1 %v3706_v44  ;;  %v3795_v44 = vld [vmem:[%s5426_s1 + $0x804] ss:$8 sps:$4 sm:$0xff]  }
  0x8c   :  { %2688 = vmatpush1.bf16.msra.mxu0 %v3709_v46  ;;  %2484 = vmatprep.subr.bf16.mxu1 %v3714_v47  ;;  %v517_v46 = vcombine.high %v4752_v41, %v4752_v41  ;;  %v3790_v47 = vld [vmem:[%s5426_s1 + $0x300] ss:$8 sps:$4 sm:$0xff]  }
  0x8d   :  { %2689 = vmatprep.subr.bf16.mxu0 %v3717_v48  ;;  %v4773_v48 = vrot.slane %v4536_v29, %v4251_v51  ;;  %v3801_v29 = vld [vmem:[%s5426_s1 + $0x814] ss:$8 sps:$4 sm:$0xff]  }
  0x8f   :  { %2485 = vmatpush1.bf16.msra.mxu1 %v3712_v49  ;;  %v499_v49 = vcombine.high %v4556_v36, %v4556_v36  ;;  %v4789_v36 = vrot.slane %v517_v46, %v4251_v51 }
  0x90   :  { %2690 = vmatpush1.bf16.msra.mxu0 %v3715_v50  ;;  %2486 = vmatprep.subr.bf16.mxu1 %v3720_v53  ;;  %v3793_v50 = vld [vmem:[%s5426_s1 + $0x800] ss:$8 sps:$4 sm:$0xff]   ;;  %v3798_v53 = vld [vmem:[%s5426_s1 + $0x314] ss:$8 sps:$4 sm:$0xff]  }
  0x91   :  { %2691 = vmatprep.subr.bf16.mxu0 %v3723_v54  ;;  %v452_v54 = vcombine.high %v4571_v39, %v4571_v39  ;;  %v3804_v39 = vld [vmem:[%s5426_s1 + $0x324] ss:$8 sps:$4 sm:$0xff]  }
  0x93   :  { %2487 = vmatpush1.bf16.msra.mxu1 %v3718_v55  ;;  %v3796_v55 = vld [vmem:[%s5426_s1 + $0x310] ss:$8 sps:$4 sm:$0xff]  }
  0x94   :  { %2692 = vmatpush1.bf16.msra.mxu0 %v3721_v56  ;;  %2488 = vmatprep.subr.bf16.mxu1 %v3726_v57  ;;  %v3799_v56 = vld [vmem:[%s5426_s1 + $0x810] ss:$8 sps:$4 sm:$0xff]   ;;  %v3807_v57 = vld [vmem:[%s5426_s1 + $0x824] ss:$8 sps:$4 sm:$0xff]  }
  0x95   :  { %2693 = vmatprep.subr.bf16.mxu0 %v3729_v58  ;;  %v3802_v58 = vld [vmem:[%s5426_s1 + $0x320] ss:$8 sps:$4 sm:$0xff]  }
  0x97   :  { %2489 = vmatpush1.bf16.msra.mxu1 %v3724_v59  ;;  %v3805_v59 = vld [vmem:[%s5426_s1 + $0x820] ss:$8 sps:$4 sm:$0xff]  }
  0x98   :  { %2694 = vmatpush1.bf16.msra.mxu0 %v3727_v60  ;;  %2490 = vmatprep.subr.bf16.mxu1 %v3732_v61  ;;  %v3810_v60 = vld [vmem:[%s5426_s1 + $0x334] ss:$8 sps:$4 sm:$0xff]  }
  0x99   :  { %2695 = vmatprep.subr.bf16.mxu0 %v3735_v62  ;;  %v3813_v61 = vld [vmem:[%s5426_s1 + $0x834] ss:$8 sps:$4 sm:$0xff]   ;;  %v3808_v62 = vld [vmem:[%s5426_s1 + $0x330] ss:$8 sps:$4 sm:$0xff]  }
  0x9b   :  { %2491 = vmatpush1.bf16.msra.mxu1 %v3730_v63  ;;  %v3811_v63 = vld [vmem:[%s5426_s1 + $0x830] ss:$8 sps:$4 sm:$0xff]  }
  0x9c   :  { %2696 = vmatpush1.bf16.msra.mxu0 %v3733_v0  ;;  %2492 = vmatprep.subr.bf16.mxu1 %v3738_v1  ;;  %v3816_v0 = vld [vmem:[%s5426_s1 + $0x344] ss:$8 sps:$4 sm:$0xff]  }
  0x9d   :  { %2697 = vmatprep.subr.bf16.mxu0 %v3741_v2  ;;  %v3819_v1 = vld [vmem:[%s5426_s1 + $0x844] ss:$8 sps:$4 sm:$0xff]   ;;  %v3814_v2 = vld [vmem:[%s5426_s1 + $0x340] ss:$8 sps:$4 sm:$0xff]  }
  0x9f   :  { %2493 = vmatpush1.bf16.msra.mxu1 %v3736_v4  ;;  %v3817_v4 = vld [vmem:[%s5426_s1 + $0x840] ss:$8 sps:$4 sm:$0xff]  }
  0xa0   :  { %2698 = vmatpush1.bf16.msra.mxu0 %v3739_v5  ;;  %2494 = vmatprep.subr.bf16.mxu1 %v3744_v6  ;;  %v3822_v5 = vld [vmem:[%s5426_s1 + $0x354] ss:$8 sps:$4 sm:$0xff]  }
  0xa1   :  { %2699 = vmatprep.subr.bf16.mxu0 %v3747_v7  ;;  %v3825_v6 = vld [vmem:[%s5426_s1 + $0x854] ss:$8 sps:$4 sm:$0xff]   ;;  %v3820_v7 = vld [vmem:[%s5426_s1 + $0x350] ss:$8 sps:$4 sm:$0xff]  }
  0xa3   :  { %2495 = vmatpush1.bf16.msra.mxu1 %v3742_v8  ;;  %v3823_v8 = vld [vmem:[%s5426_s1 + $0x850] ss:$8 sps:$4 sm:$0xff]  }
  0xa4   :  { %2700 = vmatpush1.bf16.msra.mxu0 %v3745_v9  ;;  %2496 = vmatprep.subr.bf16.mxu1 %v3750_v10  ;;  %v3828_v9 = vld [vmem:[%s5426_s1 + $0x364] ss:$8 sps:$4 sm:$0xff]  }
  0xa5   :  { %2701 = vmatprep.subr.bf16.mxu0 %v3753_v11  ;;  %v3831_v10 = vld [vmem:[%s5426_s1 + $0x864] ss:$8 sps:$4 sm:$0xff]   ;;  %v3826_v11 = vld [vmem:[%s5426_s1 + $0x360] ss:$8 sps:$4 sm:$0xff]  }
  0xa7   :  { %2497 = vmatpush1.bf16.msra.mxu1 %v3748_v12  ;;  %v3829_v12 = vld [vmem:[%s5426_s1 + $0x860] ss:$8 sps:$4 sm:$0xff]  }
  0xa8   :  { %2702 = vmatpush1.bf16.msra.mxu0 %v3751_v13  ;;  %2498 = vmatprep.subr.bf16.mxu1 %v3756_v16  ;;  %v3834_v13 = vld [vmem:[%s5426_s1 + $0x374] ss:$8 sps:$4 sm:$0xff]  }
  0xa9   :  { %2703 = vmatprep.subr.bf16.mxu0 %v3759_v17  ;;  %v3837_v16 = vld [vmem:[%s5426_s1 + $0x874] ss:$8 sps:$4 sm:$0xff]   ;;  %v3832_v17 = vld [vmem:[%s5426_s1 + $0x370] ss:$8 sps:$4 sm:$0xff]  }
  0xab   :  { %2499 = vmatpush1.bf16.msra.mxu1 %v3754_v18  ;;  %v3835_v18 = vld [vmem:[%s5426_s1 + $0x870] ss:$8 sps:$4 sm:$0xff]  }
  0xac   :  { %2704 = vmatpush1.bf16.msra.mxu0 %v3757_v19  ;;  %2500 = vmatprep.subr.bf16.mxu1 %v3762_v20  ;;  %v3840_v19 = vld [vmem:[%s5426_s1 + $0x384] ss:$8 sps:$4 sm:$0xff]  }
  0xad   :  { %2705 = vmatprep.subr.bf16.mxu0 %v3765_v22  ;;  %v3843_v20 = vld [vmem:[%s5426_s1 + $0x884] ss:$8 sps:$4 sm:$0xff]   ;;  %v3838_v22 = vld [vmem:[%s5426_s1 + $0x380] ss:$8 sps:$4 sm:$0xff]  }
  0xaf   :  { %2501 = vmatpush1.bf16.msra.mxu1 %v3760_v23  ;;  %v3841_v23 = vld [vmem:[%s5426_s1 + $0x880] ss:$8 sps:$4 sm:$0xff]  }
  0xb0   :  { %2706 = vmatpush1.bf16.msra.mxu0 %v3763_v24  ;;  %2502 = vmatprep.subr.bf16.mxu1 %v3768_v25  ;;  %v3846_v24 = vld [vmem:[%s5426_s1 + $0x394] ss:$8 sps:$4 sm:$0xff]  }
  0xb1   :  { %2707 = vmatprep.subr.bf16.mxu0 %v3771_v26  ;;  %v3849_v25 = vld [vmem:[%s5426_s1 + $0x894] ss:$8 sps:$4 sm:$0xff]   ;;  %v3844_v26 = vld [vmem:[%s5426_s1 + $0x390] ss:$8 sps:$4 sm:$0xff]  }
  0xb3   :  { %2503 = vmatpush1.bf16.msra.mxu1 %v3766_v27  ;;  %v3847_v27 = vld [vmem:[%s5426_s1 + $0x890] ss:$8 sps:$4 sm:$0xff]  }
  0xb4   :  { %2708 = vmatpush1.bf16.msra.mxu0 %v3769_v52  ;;  %2504 = vmatprep.subr.bf16.mxu1 %v3774_v30  ;;  %v3852_v52 = vld [vmem:[%s5426_s1 + $0x3a4] ss:$8 sps:$4 sm:$0xff]  }
  0xb5   :  { %2709 = vmatprep.subr.bf16.mxu0 %v3777_v31  ;;  %v3855_v30 = vld [vmem:[%s5426_s1 + $0x8a4] ss:$8 sps:$4 sm:$0xff]   ;;  %v3850_v31 = vld [vmem:[%s5426_s1 + $0x3a0] ss:$8 sps:$4 sm:$0xff]  }
  0xb7   :  { %2505 = vmatpush1.bf16.msra.mxu1 %v3772_v32  ;;  %v3853_v32 = vld [vmem:[%s5426_s1 + $0x8a0] ss:$8 sps:$4 sm:$0xff]  }
  0xb8   :  { %2710 = vmatpush1.bf16.msra.mxu0 %v3775_v33  ;;  %2506 = vmatprep.subr.bf16.mxu1 %v3780_v34  ;;  %v3858_v33 = vld [vmem:[%s5426_s1 + $0x3b4] ss:$8 sps:$4 sm:$0xff]  }
  0xb9   :  { %2711 = vmatprep.subr.bf16.mxu0 %v3783_v35  ;;  %v3861_v34 = vld [vmem:[%s5426_s1 + $0x8b4] ss:$8 sps:$4 sm:$0xff]   ;;  %v3856_v35 = vld [vmem:[%s5426_s1 + $0x3b0] ss:$8 sps:$4 sm:$0xff]  }
  0xbb   :  { %2507 = vmatpush1.bf16.msra.mxu1 %v3778_v37  ;;  %v3859_v37 = vld [vmem:[%s5426_s1 + $0x8b0] ss:$8 sps:$4 sm:$0xff]  }
  0xbc   :  { %2712 = vmatpush1.bf16.msra.mxu0 %v3781_v21  ;;  %2508 = vmatprep.subr.bf16.mxu1 %v3786_v14  ;;  %v3864_v21 = vld [vmem:[%s5426_s1 + $0x3c4] ss:$8 sps:$4 sm:$0xff]  }
  0xbd   :  { %2713 = vmatprep.subr.bf16.mxu0 %v3789_v40  ;;  %v3867_v14 = vld [vmem:[%s5426_s1 + $0x8c4] ss:$8 sps:$4 sm:$0xff]  }
  0xbf   :  { %2509 = vmatpush1.bf16.msra.mxu1 %v3784_v42 }
  0xc0   :  { %2714 = vmatpush1.bf16.msra.mxu0 %v3787_v43  ;;  %2519 = vmatprep.subr.bf16.mxu1 %v3792_v28 }
  0xc1   :  { %2724 = vmatprep.subr.bf16.mxu0 %v3795_v44 }
  0xc2   :  { %2511 = vmatmul.mubr.bf16.vlgmr.msra.gmra.mrb[0].mxu1 %v4773_v48 }
  0xc3   :  { %2716 = vmatmul.mubr.bf16.vlgmr.msra.gmra.mrb[0].mxu0 %v499_v49  ;;  %2520 = vmatpush1.bf16.msra.mxu1 %v3790_v47 }
  0xc4   :  { %2725 = vmatpush1.bf16.msra.mxu0 %v3793_v50  ;;  %2521 = vmatprep.subr.bf16.mxu1 %v3798_v53 }
  0xc5   :  { %2726 = vmatprep.subr.bf16.mxu0 %v3801_v29  ;;  %2551 = vmatprep.mubr.bf16.mxu1 %v452_v54 }
  0xc6   :  { %2756 = vmatprep.mubr.bf16.mxu0 %v4789_v36 }
  0xc7   :  { %2522 = vmatpush1.bf16.msra.mxu1 %v3796_v55 }
  0xc8   :  { %2727 = vmatpush1.bf16.msra.mxu0 %v3799_v56  ;;  %2523 = vmatprep.subr.bf16.mxu1 %v3804_v39 }
  0xc9   :  { %2728 = vmatprep.subr.bf16.mxu0 %v3807_v57 }
  0xcb   :  { %2524 = vmatpush1.bf16.msra.mxu1 %v3802_v58 }
  0xcc   :  { %2729 = vmatpush1.bf16.msra.mxu0 %v3805_v59  ;;  %2525 = vmatprep.subr.bf16.mxu1 %v3810_v60 }
  0xcd   :  { %2730 = vmatprep.subr.bf16.mxu0 %v3813_v61 }
  0xcf   :  { %2526 = vmatpush1.bf16.msra.mxu1 %v3808_v62 }
  0xd0   :  { %2731 = vmatpush1.bf16.msra.mxu0 %v3811_v63  ;;  %2527 = vmatprep.subr.bf16.mxu1 %v3816_v0 }
  0xd1   :  { %2732 = vmatprep.subr.bf16.mxu0 %v3819_v1 }
  0xd3   :  { %2528 = vmatpush1.bf16.msra.mxu1 %v3814_v2 }
  0xd4   :  { %2733 = vmatpush1.bf16.msra.mxu0 %v3817_v4  ;;  %2529 = vmatprep.subr.bf16.mxu1 %v3822_v5 }
  0xd5   :  { %2734 = vmatprep.subr.bf16.mxu0 %v3825_v6 }
  0xd7   :  { %2530 = vmatpush1.bf16.msra.mxu1 %v3820_v7 }
  0xd8   :  { %2735 = vmatpush1.bf16.msra.mxu0 %v3823_v8  ;;  %2531 = vmatprep.subr.bf16.mxu1 %v3828_v9 }
  0xd9   :  { %2736 = vmatprep.subr.bf16.mxu0 %v3831_v10 }
  0xdb   :  { %2532 = vmatpush1.bf16.msra.mxu1 %v3826_v11 }
  0xdc   :  { %2737 = vmatpush1.bf16.msra.mxu0 %v3829_v12  ;;  %2533 = vmatprep.subr.bf16.mxu1 %v3834_v13 }
  0xdd   :  { %2738 = vmatprep.subr.bf16.mxu0 %v3837_v16 }
  0xdf   :  { %2534 = vmatpush1.bf16.msra.mxu1 %v3832_v17 }
  0xe0   :  { %2739 = vmatpush1.bf16.msra.mxu0 %v3835_v18  ;;  %2535 = vmatprep.subr.bf16.mxu1 %v3840_v19 }
  0xe1   :  { %2740 = vmatprep.subr.bf16.mxu0 %v3843_v20 }
  0xe3   :  { %2536 = vmatpush1.bf16.msra.mxu1 %v3838_v22 }
  0xe4   :  { %2741 = vmatpush1.bf16.msra.mxu0 %v3841_v23  ;;  %2537 = vmatprep.subr.bf16.mxu1 %v3846_v24 }
  0xe5   :  { %2742 = vmatprep.subr.bf16.mxu0 %v3849_v25 }
  0xe7   :  { %2538 = vmatpush1.bf16.msra.mxu1 %v3844_v26 }
  0xe8   :  { %2743 = vmatpush1.bf16.msra.mxu0 %v3847_v27  ;;  %2539 = vmatprep.subr.bf16.mxu1 %v3852_v52 }
  0xe9   :  { %2744 = vmatprep.subr.bf16.mxu0 %v3855_v30 }
  0xeb   :  { %2540 = vmatpush1.bf16.msra.mxu1 %v3850_v31 }
  0xec   :  { %2745 = vmatpush1.bf16.msra.mxu0 %v3853_v32  ;;  %2541 = vmatprep.subr.bf16.mxu1 %v3858_v33 }
  0xed   :  { %2746 = vmatprep.subr.bf16.mxu0 %v3861_v34 }
  0xee   :  { %10 = vsyncpa [#allocation3], 0  ;;  %v3862_v40 = vld [vmem:[%s5426_s1 + $0x3c0] ss:$8 sps:$4 sm:$0xff]   ;;  %v3870_v43 = vld [vmem:[%s5426_s1 + $0x3d4] ss:$8 sps:$4 sm:$0xff]   ;;  %v450_v58 = vcombine.high %v4773_v48, %v4773_v48  ;;  %v4977_v59 = vrot.slane %v4752_v41, %v4251_v51  ;;  %v549_v62 = vcombine.high %v4789_v36, %v4789_v36 }
  0xef   :  { %2542 = vmatpush1.bf16.msra.mxu1 %v3856_v35  ;;  %v3865_v42 = vld [vmem:[%s5426_s1 + $0x8c0] ss:$8 sps:$4 sm:$0xff]   ;;  %v3873_v28 = vld [vmem:[%s5426_s1 + $0x8d4] ss:$8 sps:$4 sm:$0xff]   ;;  %v3868_v44 = vld [vmem:[%s5426_s1 + $0x3d0] ss:$8 sps:$4 sm:$0xff]  }
  0xf0   :  { %2747 = vmatpush1.bf16.msra.mxu0 %v3859_v37  ;;  %2543 = vmatprep.subr.bf16.mxu1 %v3864_v21  ;;  %v3871_v46 = vld [vmem:[%s5426_s1 + $0x8d0] ss:$8 sps:$4 sm:$0xff]   ;;  %v3876_v47 = vld [vmem:[%s5426_s1 + $0x3e4] ss:$8 sps:$4 sm:$0xff]   ;;  %v3874_v50 = vld [vmem:[%s5426_s1 + $0x3e0] ss:$8 sps:$4 sm:$0xff]  }
  0xf1   :  { %2748 = vmatprep.subr.bf16.mxu0 %v3867_v14  ;;  %v3879_v49 = vld [vmem:[%s5426_s1 + $0x8e4] ss:$8 sps:$4 sm:$0xff]   ;;  %v3877_v53 = vld [vmem:[%s5426_s1 + $0x8e0] ss:$8 sps:$4 sm:$0xff]   ;;  %v3882_v29 = vld [vmem:[%s5426_s1 + $0x3f4] ss:$8 sps:$4 sm:$0xff]  }
  0xf2   :  { %v3885_v54 = vld [vmem:[%s5426_s1 + $0x8f4] ss:$8 sps:$4 sm:$0xff]   ;;  %v3880_v55 = vld [vmem:[%s5426_s1 + $0x3f0] ss:$8 sps:$4 sm:$0xff]   ;;  %v3888_v39 = vld [vmem:[%s5426_s1 + $0x404] ss:$8 sps:$4 sm:$0xff]  }
  0xf3   :  { %2544 = vmatpush1.bf16.msra.mxu1 %v3862_v40  ;;  %v3883_v56 = vld [vmem:[%s5426_s1 + $0x8f0] ss:$8 sps:$4 sm:$0xff]   ;;  %v3891_v57 = vld [vmem:[%s5426_s1 + $0x904] ss:$8 sps:$4 sm:$0xff]   ;;  %v3886_v60 = vld [vmem:[%s5426_s1 + $0x400] ss:$8 sps:$4 sm:$0xff]  }
  0xf4   :  { %2749 = vmatpush1.bf16.msra.mxu0 %v3865_v42  ;;  %2545 = vmatprep.subr.bf16.mxu1 %v3870_v43  ;;  %v3889_v61 = vld [vmem:[%s5426_s1 + $0x900] ss:$8 sps:$4 sm:$0xff]   ;;  %v3894_v48 = vld [vmem:[%s5426_s1 + $0x414] ss:$8 sps:$4 sm:$0xff]   ;;  %v3892_v63 = vld [vmem:[%s5426_s1 + $0x410] ss:$8 sps:$4 sm:$0xff]  }
  0xf5   :  { %2750 = vmatprep.subr.bf16.mxu0 %v3873_v28  ;;  %v3897_v41 = vld [vmem:[%s5426_s1 + $0x914] ss:$8 sps:$4 sm:$0xff]   ;;  %v3895_v0 = vld [vmem:[%s5426_s1 + $0x910] ss:$8 sps:$4 sm:$0xff]   ;;  %v3900_v1 = vld [vmem:[%s5426_s1 + $0x424] ss:$8 sps:$4 sm:$0xff]  }
  0xf6   :  { %v3903_v36 = vld [vmem:[%s5426_s1 + $0x924] ss:$8 sps:$4 sm:$0xff]   ;;  %v3898_v2 = vld [vmem:[%s5426_s1 + $0x420] ss:$8 sps:$4 sm:$0xff]   ;;  %v3906_v5 = vld [vmem:[%s5426_s1 + $0x434] ss:$8 sps:$4 sm:$0xff]  }
  0xf7   :  { %2546 = vmatpush1.bf16.msra.mxu1 %v3868_v44  ;;  %v3901_v4 = vld [vmem:[%s5426_s1 + $0x920] ss:$8 sps:$4 sm:$0xff]   ;;  %v3904_v6 = vld [vmem:[%s5426_s1 + $0x430] ss:$8 sps:$4 sm:$0xff]   ;;  %v3912_v8 = vld [vmem:[%s5426_s1 + $0x444] ss:$8 sps:$4 sm:$0xff]  }
  0xf8   :  { %2751 = vmatpush1.bf16.msra.mxu0 %v3871_v46  ;;  %2547 = vmatprep.subr.bf16.mxu1 %v3876_v47  ;;  %v3907_v7 = vld [vmem:[%s5426_s1 + $0x930] ss:$8 sps:$4 sm:$0xff]   ;;  %v3915_v9 = vld [vmem:[%s5426_s1 + $0x944] ss:$8 sps:$4 sm:$0xff]   ;;  %v3910_v10 = vld [vmem:[%s5426_s1 + $0x440] ss:$8 sps:$4 sm:$0xff]  }
  0xf9   :  { %2752 = vmatprep.subr.bf16.mxu0 %v3879_v49  ;;  %v3913_v11 = vld [vmem:[%s5426_s1 + $0x940] ss:$8 sps:$4 sm:$0xff]   ;;  %v3918_v12 = vld [vmem:[%s5426_s1 + $0x454] ss:$8 sps:$4 sm:$0xff]   ;;  %v3916_v16 = vld [vmem:[%s5426_s1 + $0x450] ss:$8 sps:$4 sm:$0xff]  }
  0xfa   :  { %v3921_v13 = vld [vmem:[%s5426_s1 + $0x954] ss:$8 sps:$4 sm:$0xff]   ;;  %v3919_v17 = vld [vmem:[%s5426_s1 + $0x950] ss:$8 sps:$4 sm:$0xff]   ;;  %v3924_v18 = vld [vmem:[%s5426_s1 + $0x464] ss:$8 sps:$4 sm:$0xff]  }
  0xfb   :  { %2548 = vmatpush1.bf16.msra.mxu1 %v3874_v50  ;;  %v3927_v19 = vld [vmem:[%s5426_s1 + $0x964] ss:$8 sps:$4 sm:$0xff]   ;;  %v3922_v20 = vld [vmem:[%s5426_s1 + $0x460] ss:$8 sps:$4 sm:$0xff]   ;;  %v3930_v23 = vld [vmem:[%s5426_s1 + $0x474] ss:$8 sps:$4 sm:$0xff]  }
  0xfc   :  { %2753 = vmatpush1.bf16.msra.mxu0 %v3877_v53  ;;  %2549 = vmatprep.subr.bf16.mxu1 %v3882_v29  ;;  %v3925_v22 = vld [vmem:[%s5426_s1 + $0x960] ss:$8 sps:$4 sm:$0xff]   ;;  %v3933_v24 = vld [vmem:[%s5426_s1 + $0x974] ss:$8 sps:$4 sm:$0xff]   ;;  %v3928_v25 = vld [vmem:[%s5426_s1 + $0x470] ss:$8 sps:$4 sm:$0xff]  }
  0xfd   :  { %2754 = vmatprep.subr.bf16.mxu0 %v3885_v54  ;;  %v3931_v26 = vld [vmem:[%s5426_s1 + $0x970] ss:$8 sps:$4 sm:$0xff]   ;;  %v3936_v27 = vld [vmem:[%s5426_s1 + $0x484] ss:$8 sps:$4 sm:$0xff]   ;;  %v3934_v30 = vld [vmem:[%s5426_s1 + $0x480] ss:$8 sps:$4 sm:$0xff]  }
  0xfe   :  { %v3939_v52 = vld [vmem:[%s5426_s1 + $0x984] ss:$8 sps:$4 sm:$0xff]   ;;  %v3937_v31 = vld [vmem:[%s5426_s1 + $0x980] ss:$8 sps:$4 sm:$0xff]   ;;  %v3942_v32 = vld [vmem:[%s5426_s1 + $0x494] ss:$8 sps:$4 sm:$0xff]  }
  0xff   :  { %2550 = vmatpush1.bf16.msra.mxu1 %v3880_v55  ;;  %v3945_v33 = vld [vmem:[%s5426_s1 + $0x994] ss:$8 sps:$4 sm:$0xff]   ;;  %v3940_v34 = vld [vmem:[%s5426_s1 + $0x490] ss:$8 sps:$4 sm:$0xff]   ;;  %v3948_v37 = vld [vmem:[%s5426_s1 + $0x4a4] ss:$8 sps:$4 sm:$0xff]  }
 0x100   :  { %2755 = vmatpush1.bf16.msra.mxu0 %v3883_v56  ;;  %2560 = vmatprep.subr.bf16.mxu1 %v3888_v39  ;;  %v3943_v35 = vld [vmem:[%s5426_s1 + $0x990] ss:$8 sps:$4 sm:$0xff]   ;;  %v3951_v21 = vld [vmem:[%s5426_s1 + $0x9a4] ss:$8 sps:$4 sm:$0xff]   ;;  %v3946_v14 = vld [vmem:[%s5426_s1 + $0x4a0] ss:$8 sps:$4 sm:$0xff]  }
 0x101   :  { %2765 = vmatprep.subr.bf16.mxu0 %v3891_v57  ;;  %v3949_v40 = vld [vmem:[%s5426_s1 + $0x9a0] ss:$8 sps:$4 sm:$0xff]   ;;  %v3954_v42 = vld [vmem:[%s5426_s1 + $0x4b4] ss:$8 sps:$4 sm:$0xff]   ;;  %v3952_v28 = vld [vmem:[%s5426_s1 + $0x4b0] ss:$8 sps:$4 sm:$0xff]   ;;  %v502_v57 = vcombine.high %v4739_v38, %v4739_v38 }
 0x102   :  { %2552 = vmatmul.mubr.bf16.vlgmr.msra.gmra.mrb[0].mxu1 %v450_v58  ;;  %v3957_v43 = vld [vmem:[%s5426_s1 + $0x9b4] ss:$8 sps:$4 sm:$0xff]   ;;  %v3955_v44 = vld [vmem:[%s5426_s1 + $0x9b0] ss:$8 sps:$4 sm:$0xff]   ;;  %v3960_v46 = vld [vmem:[%s5426_s1 + $0x4c4] ss:$8 sps:$4 sm:$0xff]  }
 0x103   :  { %2757 = vmatmul.mubr.bf16.vlgmr.msra.gmra.mrb[0].mxu0 %v4977_v59  ;;  %2561 = vmatpush1.bf16.msra.mxu1 %v3886_v60  ;;  %v3963_v47 = vld [vmem:[%s5426_s1 + $0x9c4] ss:$8 sps:$4 sm:$0xff]   ;;  %v3958_v49 = vld [vmem:[%s5426_s1 + $0x4c0] ss:$8 sps:$4 sm:$0xff]   ;;  %v3966_v53 = vld [vmem:[%s5426_s1 + $0x4d4] ss:$8 sps:$4 sm:$0xff]  }
 0x104   :  { %2766 = vmatpush1.bf16.msra.mxu0 %v3889_v61  ;;  %2562 = vmatprep.subr.bf16.mxu1 %v3894_v48  ;;  %v3961_v50 = vld [vmem:[%s5426_s1 + $0x9c0] ss:$8 sps:$4 sm:$0xff]   ;;  %v3969_v29 = vld [vmem:[%s5426_s1 + $0x9d4] ss:$8 sps:$4 sm:$0xff]   ;;  %v3964_v54 = vld [vmem:[%s5426_s1 + $0x4d0] ss:$8 sps:$4 sm:$0xff]   ;;  %v516_v48 = vrot.slane %v502_v57, %v4251_v51 }
 0x105   :  { %2767 = vmatprep.subr.bf16.mxu0 %v3897_v41  ;;  %2592 = vmatprep.mubr.bf16.mxu1 %v4292_v3  ;;  %v3909_v3 = vld [vmem:[%s5426_s1 + $0x934] ss:$8 sps:$4 sm:$0xff]   ;;  %v3967_v55 = vld [vmem:[%s5426_s1 + $0x9d0] ss:$8 sps:$4 sm:$0xff]   ;;  %v3972_v56 = vld [vmem:[%s5426_s1 + $0x4e4] ss:$8 sps:$4 sm:$0xff]  }
 0x106   :  { %2797 = vmatprep.mubr.bf16.mxu0 %v549_v62  ;;  %v3975_v39 = vld [vmem:[%s5426_s1 + $0x9e4] ss:$8 sps:$4 sm:$0xff]   ;;  %v3970_v58 = vld [vmem:[%s5426_s1 + $0x4e0] ss:$8 sps:$4 sm:$0xff]   ;;  %v3978_v61 = vld [vmem:[%s5426_s1 + $0x4f4] ss:$8 sps:$4 sm:$0xff]  }
 0x107   :  { %2563 = vmatpush1.bf16.msra.mxu1 %v3892_v63  ;;  %v3973_v60 = vld [vmem:[%s5426_s1 + $0x9e0] ss:$8 sps:$4 sm:$0xff]   ;;  %v3981_v38 = vld [vmem:[%s5426_s1 + $0x9f4] ss:$8 sps:$4 sm:$0xff]   ;;  %v3976_v41 = vld [vmem:[%s5426_s1 + $0x4f0] ss:$8 sps:$4 sm:$0xff]  }
 0x108   :  { %2768 = vmatpush1.bf16.msra.mxu0 %v3895_v0  ;;  %2564 = vmatprep.subr.bf16.mxu1 %v3900_v1  ;;  %v3979_v62 = vld [vmem:[%s5426_s1 + $0x9f0] ss:$8 sps:$4 sm:$0xff]   ;;  %v3984_v63 = vld [vmem:[%s5426_s1 + $0xa04] ss:$8 sps:$4 sm:$0xff]   ;;  %v518_v1 = vcombine.high %v516_v48, %v516_v48  ;;  %vm2392_vm0 = vcmask 785408   ;;  %s4079_s24 = smov [#allocation2]  }
 0x109   :  { %2769 = vmatprep.subr.bf16.mxu0 %v3903_v36  ;;  %v4014_v0 = vld [vmem:[%s5426_s1 + $0xb04] ss:$8 sps:$4 sm:$0xff]   ;;  %v547_v36 = vcombine.high %v4977_v59, %v4977_v59  ;;  %v4020_v59 = vld [vmem:[%s5426_s1 + $0xb14] ss:$8 sps:$4 sm:$0xff]   ;;  %s3013_s25 = sshll.u32 %s4079_s24, 4  ;;  %vm3005_vm1 = vcmask 66560   ;;  %s3014_s25 = int_to_ptr.vmem [resolvable:$true] %s3013_s25 }
 0x10a   :  { %v2908_v57 = vld [vmem:[%s5428_s3 + $0x90] sm:$0xff]  ;;  %s4053_s26 = scalar_lea.vmem %s3014_s25, 32  ;;  %p4058_p1 = scmp.lt.s32.totalorder %s3014_s25, %s3014_s25 }
 0x10b   :  { %2565 = vmatpush1.bf16.msra.mxu1 %v3898_v2  ;;  %v3982_v2 = vld [vmem:[%s5426_s1 + $0xa00] ss:$8 sps:$4 sm:$0xff]   ;;  %p4054_p0 = scmp.ne.s32.totalorder %s3014_s25, %s4053_s26  ;;  %p4059_p2 = scmp.lt.s32.totalorder %s4053_s26, %s4053_s26 }
 0x10c   :  { %2770 = vmatpush1.bf16.msra.mxu0 %v3901_v4  ;;  %2566 = vmatprep.subr.bf16.mxu1 %v3906_v5  ;;  %v4012_v4 = vld [vmem:[%s5426_s1 + $0xb00] ss:$8 sps:$4 sm:$0xff]   ;;  %v3987_v5 = vld [vmem:[%s5426_s1 + $0xa14] ss:$8 sps:$4 sm:$0xff]  }
 0x10d   :  { %2771 = vmatprep.subr.bf16.mxu0 %v3909_v3  ;;  %v546_v3 = vrot.slane %v518_v1, %v4251_v51  ;;  %v2894_v1 = vld [vmem:[%s5428_s3 + $0x20] sm:$0xff]  ;;  %p4060_p3 = por %p4059_p2, %p4058_p1 }
 0x10f   :  { %2567 = vmatpush1.bf16.msra.mxu1 %v3904_v6  ;;  %v3985_v6 = vld [vmem:[%s5426_s1 + $0xa10] ss:$8 sps:$4 sm:$0xff]   ;;  %p4061_p4 = pnand %p4060_p3, %p4054_p0 }
 0x110   :  { %2772 = vmatpush1.bf16.msra.mxu0 %v3907_v7  ;;  %2568 = vmatprep.subr.bf16.mxu1 %v3912_v8  ;;  %v4018_v7 = vld [vmem:[%s5426_s1 + $0xb10] ss:$8 sps:$4 sm:$0xff]   ;;  %v3990_v8 = vld [vmem:[%s5426_s1 + $0xa24] ss:$8 sps:$4 sm:$0xff]  }
 0x111   :  { %2773 = vmatprep.subr.bf16.mxu0 %v3915_v9  ;;  %v4078_v9 = vmov 0  }
 0x113   :  { %2569 = vmatpush1.bf16.msra.mxu1 %v3910_v10  ;;  %v3988_v10 = vld [vmem:[%s5426_s1 + $0xa20] ss:$8 sps:$4 sm:$0xff]  }
 0x114   :  { %2774 = vmatpush1.bf16.msra.mxu0 %v3913_v11  ;;  %2570 = vmatprep.subr.bf16.mxu1 %v3918_v12  ;;  %v4024_v11 = vld [vmem:[%s5426_s1 + $0xb20] ss:$8 sps:$4 sm:$0xff]   ;;  %v3993_v12 = vld [vmem:[%s5426_s1 + $0xa34] ss:$8 sps:$4 sm:$0xff]  }
 0x115   :  { %2775 = vmatprep.subr.bf16.mxu0 %v3921_v13  ;;  %v4032_v13 = vld [vmem:[%s5426_s1 + $0xb34] ss:$8 sps:$4 sm:$0xff]  }
 0x117   :  { %2571 = vmatpush1.bf16.msra.mxu1 %v3916_v16  ;;  %v3991_v16 = vld [vmem:[%s5426_s1 + $0xa30] ss:$8 sps:$4 sm:$0xff]  }
 0x118   :  { %2776 = vmatpush1.bf16.msra.mxu0 %v3919_v17  ;;  %2572 = vmatprep.subr.bf16.mxu1 %v3924_v18  ;;  %v4030_v17 = vld [vmem:[%s5426_s1 + $0xb30] ss:$8 sps:$4 sm:$0xff]   ;;  %v3996_v18 = vld [vmem:[%s5426_s1 + $0xa44] ss:$8 sps:$4 sm:$0xff]  }
 0x119   :  { %2777 = vmatprep.subr.bf16.mxu0 %v3927_v19  ;;  %v4038_v19 = vld [vmem:[%s5426_s1 + $0xb44] ss:$8 sps:$4 sm:$0xff]  }
 0x11b   :  { %2573 = vmatpush1.bf16.msra.mxu1 %v3922_v20  ;;  %v3994_v20 = vld [vmem:[%s5426_s1 + $0xa40] ss:$8 sps:$4 sm:$0xff]  }
 0x11c   :  { %2778 = vmatpush1.bf16.msra.mxu0 %v3925_v22  ;;  %2574 = vmatprep.subr.bf16.mxu1 %v3930_v23  ;;  %v4036_v22 = vld [vmem:[%s5426_s1 + $0xb40] ss:$8 sps:$4 sm:$0xff]   ;;  %v3999_v23 = vld [vmem:[%s5426_s1 + $0xa54] ss:$8 sps:$4 sm:$0xff]  }
 0x11d   :  { %2779 = vmatprep.subr.bf16.mxu0 %v3933_v24  ;;  %v4044_v24 = vld [vmem:[%s5426_s1 + $0xb54] ss:$8 sps:$4 sm:$0xff]  }
 0x11f   :  { %2575 = vmatpush1.bf16.msra.mxu1 %v3928_v25  ;;  %v532_v25 = vrot.slane %v516_v48, %v4251_v51  ;;  %v4000_v51 = vld [vmem:[%s5426_s1 + $0xa60] ss:$8 sps:$4 sm:$0xff]   ;;  %v2893_v48 = vld [vmem:[%s5428_s3 + $0x18] sm:$0xff] }
 0x120   :  { %2780 = vmatpush1.bf16.msra.mxu0 %v3931_v26  ;;  %2576 = vmatprep.subr.bf16.mxu1 %v3936_v27  ;;  %v3997_v26 = vld [vmem:[%s5426_s1 + $0xa50] ss:$8 sps:$4 sm:$0xff]  }
 0x121   :  { %2781 = vmatprep.subr.bf16.mxu0 %v3939_v52  ;;  %v4042_v27 = vld [vmem:[%s5426_s1 + $0xb50] ss:$8 sps:$4 sm:$0xff]   ;;  %v4002_v52 = vld [vmem:[%s5426_s1 + $0xa64] ss:$8 sps:$4 sm:$0xff]  }
 0x123   :  { %2577 = vmatpush1.bf16.msra.mxu1 %v3934_v30  ;;  %v548_v30 = vcombine.high %v532_v25, %v532_v25 }
 0x124   :  { %2782 = vmatpush1.bf16.msra.mxu0 %v3937_v31  ;;  %2578 = vmatprep.subr.bf16.mxu1 %v3942_v32  ;;  %v4005_v31 = vld [vmem:[%s5426_s1 + $0xa74] ss:$8 sps:$4 sm:$0xff]   ;;  %v4003_v32 = vld [vmem:[%s5426_s1 + $0xa70] ss:$8 sps:$4 sm:$0xff]  }
 0x125   :  { %2783 = vmatprep.subr.bf16.mxu0 %v3945_v33  ;;  %v4008_v33 = vld [vmem:[%s5426_s1 + $0xa84] ss:$8 sps:$4 sm:$0xff]  }
 0x127   :  { %2579 = vmatpush1.bf16.msra.mxu1 %v3940_v34  ;;  %v4006_v34 = vld [vmem:[%s5426_s1 + $0xa80] ss:$8 sps:$4 sm:$0xff]  }
 0x128   :  { %2784 = vmatpush1.bf16.msra.mxu0 %v3943_v35  ;;  %2580 = vmatprep.subr.bf16.mxu1 %v3948_v37  ;;  %v4011_v35 = vld [vmem:[%s5426_s1 + $0xa94] ss:$8 sps:$4 sm:$0xff]   ;;  %v4009_v37 = vld [vmem:[%s5426_s1 + $0xa90] ss:$8 sps:$4 sm:$0xff]  }
 0x129   :  { %2785 = vmatprep.subr.bf16.mxu0 %v3951_v21  ;;  %v4017_v21 = vld [vmem:[%s5426_s1 + $0xaa4] ss:$8 sps:$4 sm:$0xff]  }
 0x12b   :  { %2581 = vmatpush1.bf16.msra.mxu1 %v3946_v14  ;;  %v4015_v14 = vld [vmem:[%s5426_s1 + $0xaa0] ss:$8 sps:$4 sm:$0xff]  }
 0x12c   :  { %2786 = vmatpush1.bf16.msra.mxu0 %v3949_v40  ;;  %2582 = vmatprep.subr.bf16.mxu1 %v3954_v42  ;;  %v4023_v40 = vld [vmem:[%s5426_s1 + $0xab4] ss:$8 sps:$4 sm:$0xff]   ;;  %v4021_v42 = vld [vmem:[%s5426_s1 + $0xab0] ss:$8 sps:$4 sm:$0xff]  }
 0x12d   :  { %2787 = vmatprep.subr.bf16.mxu0 %v3957_v43  ;;  %v4029_v43 = vld [vmem:[%s5426_s1 + $0xac4] ss:$8 sps:$4 sm:$0xff]  }
 0x12f   :  { %2583 = vmatpush1.bf16.msra.mxu1 %v3952_v28  ;;  %v4027_v28 = vld [vmem:[%s5426_s1 + $0xac0] ss:$8 sps:$4 sm:$0xff]  }
 0x130   :  { %2788 = vmatpush1.bf16.msra.mxu0 %v3955_v44  ;;  %2584 = vmatprep.subr.bf16.mxu1 %v3960_v46  ;;  %v4035_v44 = vld [vmem:[%s5426_s1 + $0xad4] ss:$8 sps:$4 sm:$0xff]   ;;  %v4033_v46 = vld [vmem:[%s5426_s1 + $0xad0] ss:$8 sps:$4 sm:$0xff]  }
 0x131   :  { %2789 = vmatprep.subr.bf16.mxu0 %v3963_v47  ;;  %v4041_v47 = vld [vmem:[%s5426_s1 + $0xae4] ss:$8 sps:$4 sm:$0xff]  }
 0x133   :  { %2585 = vmatpush1.bf16.msra.mxu1 %v3958_v49  ;;  %v4039_v49 = vld [vmem:[%s5426_s1 + $0xae0] ss:$8 sps:$4 sm:$0xff]  }
 0x134   :  { %2790 = vmatpush1.bf16.msra.mxu0 %v3961_v50  ;;  %2586 = vmatprep.subr.bf16.mxu1 %v3966_v53  ;;  %v4047_v50 = vld [vmem:[%s5426_s1 + $0xaf4] ss:$8 sps:$4 sm:$0xff]   ;;  %v4045_v53 = vld [vmem:[%s5426_s1 + $0xaf0] ss:$8 sps:$4 sm:$0xff]  }
 0x135   :  { %2791 = vmatprep.subr.bf16.mxu0 %v3969_v29  ;;  %v2906_v29 = vld [vmem:[%s5428_s3 + $0x80] sm:$0xff] }
 0x137   :  { %2587 = vmatpush1.bf16.msra.mxu1 %v3964_v54  ;;  %v2907_v54 = vld [vmem:[%s5428_s3 + $0x88] sm:$0xff] }
 0x138   :  { %2792 = vmatpush1.bf16.msra.mxu0 %v3967_v55  ;;  %2588 = vmatprep.subr.bf16.mxu1 %v3972_v56  ;;  %v2890_v55 = vld [vmem:[%s5428_s3] sm:$0xff]  ;;  %v3423_v56 = vpack.c.bf16 %v2907_v54, %v2906_v29 }
 0x139   :  { %2793 = vmatprep.subr.bf16.mxu0 %v3975_v39  ;;  %v2891_v39 = vld [vmem:[%s5428_s3 + $0x8] sm:$0xff] }
 0x13b   :  { %2589 = vmatpush1.bf16.msra.mxu1 %v3970_v58  ;;  %v2909_v58 = vld [vmem:[%s5428_s3 + $0x98] sm:$0xff] }
 0x13c   :  { %2794 = vmatpush1.bf16.msra.mxu0 %v3973_v60  ;;  %2590 = vmatprep.subr.bf16.mxu1 %v3978_v61  ;;  %v3425_v60 = vpack.c.bf16 %v2891_v39, %v2890_v55  ;;  %v3427_v61 = vpack.c.bf16 %v2909_v58, %v2908_v57 }
 0x13d   :  { %2795 = vmatprep.subr.bf16.mxu0 %v3981_v38  ;;  %v2892_v38 = vld [vmem:[%s5428_s3 + $0x10] sm:$0xff] }
 0x13f   :  { %2591 = vmatpush1.bf16.msra.mxu1 %v3976_v41  ;;  %v2910_v41 = vld [vmem:[%s5428_s3 + $0xa0] sm:$0xff] }
 0x140   :  { %2796 = vmatpush1.bf16.msra.mxu0 %v3979_v62  ;;  %2847 = vmatprep.subr.bf16.mxu1 %v4014_v0  ;;  %v2911_v62 = vld [vmem:[%s5428_s3 + $0xa8] sm:$0xff] }
 0x141   :  { %2806 = vmatprep.subr.bf16.mxu0 %v3984_v63  ;;  %v3429_v63 = vpack.c.bf16 %v2893_v48, %v2892_v38  ;;  %v3431_v0 = vpack.c.bf16 %v2911_v62, %v2910_v41 }
 0x142   :  { %2593 = vmatmul.mubr.bf16.vlgmr.msra.gmra.mrb[0].mxu1 %v4325_v15  ;;  %v4026_v15 = vld [vmem:[%s5426_s1 + $0xb24] ss:$8 sps:$4 sm:$0xff]  }
 0x143   :  { %2798 = vmatmul.mubr.bf16.vlgmr.msra.gmra.mrb[0].mxu0 %v547_v36  ;;  %2848 = vmatpush1.bf16.msra.mxu1 %v4012_v4  ;;  %v2895_v36 = vld [vmem:[%s5428_s3 + $0x28] sm:$0xff]  ;;  %v2913_v4 = vld [vmem:[%s5428_s3 + $0xb8] sm:$0xff] }
 0x144   :  { %2807 = vmatpush1.bf16.msra.mxu0 %v3982_v2  ;;  %2849 = vmatprep.subr.bf16.mxu1 %v4020_v59  ;;  %v2912_v2 = vld [vmem:[%s5428_s3 + $0xb0] sm:$0xff] }
 0x145   :  { %2808 = vmatprep.subr.bf16.mxu0 %v3987_v5  ;;  %2879 = vmatprep.mubr.bf16.mxu1 %v4078_v9  ;;  %v3433_v5 = vpack.c.bf16 %v2895_v36, %v2894_v1  ;;  %v3435_v59 = vpack.c.bf16 %v2913_v4, %v2912_v2 }
 0x146   :  { %2838 = vmatprep.mubr.bf16.mxu0 %v546_v3  ;;  %v2896_v3 = vld [vmem:[%s5428_s3 + $0x30] sm:$0xff] }
 0x147   :  { %2850 = vmatpush1.bf16.msra.mxu1 %v4018_v7  ;;  %v2914_v7 = vld [vmem:[%s5428_s3 + $0xc0] sm:$0xff] }
 0x148   :  { %2809 = vmatpush1.bf16.msra.mxu0 %v3985_v6  ;;  %2851 = vmatprep.subr.bf16.mxu1 %v4026_v15  ;;  %v2897_v6 = vld [vmem:[%s5428_s3 + $0x38] sm:$0xff] }
 0x149   :  { %2810 = vmatprep.subr.bf16.mxu0 %v3990_v8  ;;  %v2915_v8 = vld [vmem:[%s5428_s3 + $0xc8] sm:$0xff]  ;;  %v3437_v15 = vpack.c.bf16 %v2897_v6, %v2896_v3 }
 0x14a   :  { %v3439_v9 = vpack.c.bf16 %v2915_v8, %v2914_v7 }
 0x14b   :  { %2852 = vmatpush1.bf16.msra.mxu1 %v4024_v11  ;;  %v2899_v11 = vld [vmem:[%s5428_s3 + $0x48] sm:$0xff] }
 0x14c   :  { %2811 = vmatpush1.bf16.msra.mxu0 %v3988_v10  ;;  %2853 = vmatprep.subr.bf16.mxu1 %v4032_v13  ;;  %v2898_v10 = vld [vmem:[%s5428_s3 + $0x40] sm:$0xff]  ;;  %v2917_v13 = vld [vmem:[%s5428_s3 + $0xd8] sm:$0xff] }
 0x14d   :  { %2812 = vmatprep.subr.bf16.mxu0 %v3993_v12  ;;  %v2916_v12 = vld [vmem:[%s5428_s3 + $0xd0] sm:$0xff] }
 0x14f   :  { %2854 = vmatpush1.bf16.msra.mxu1 %v4030_v17  ;;  %v3443_v17 = vpack.c.bf16 %v2917_v13, %v2916_v12 }
 0x150   :  { %2813 = vmatpush1.bf16.msra.mxu0 %v3991_v16  ;;  %2855 = vmatprep.subr.bf16.mxu1 %v4038_v19  ;;  %v3441_v16 = vpack.c.bf16 %v2899_v11, %v2898_v10  ;;  %v2901_v19 = vld [vmem:[%s5428_s3 + $0x58] sm:$0xff] }
 0x151   :  { %2814 = vmatprep.subr.bf16.mxu0 %v3996_v18  ;;  %v2900_v18 = vld [vmem:[%s5428_s3 + $0x50] sm:$0xff] }
 0x153   :  { %2856 = vmatpush1.bf16.msra.mxu1 %v4036_v22  ;;  %v2918_v22 = vld [vmem:[%s5428_s3 + $0xe0] sm:$0xff] }
 0x154   :  { %2815 = vmatpush1.bf16.msra.mxu0 %v3994_v20  ;;  %2857 = vmatprep.subr.bf16.mxu1 %v4044_v24  ;;  %v3445_v20 = vpack.c.bf16 %v2901_v19, %v2900_v18 }
 0x155   :  { %2816 = vmatprep.subr.bf16.mxu0 %v3999_v23  ;;  %v2919_v23 = vld [vmem:[%s5428_s3 + $0xe8] sm:$0xff] }
 0x156   :  { %v3447_v24 = vpack.c.bf16 %v2919_v23, %v2918_v22 }
 0x157   :  { %2858 = vmatpush1.bf16.msra.mxu1 %v4042_v27 }
 0x158   :  { %2817 = vmatpush1.bf16.msra.mxu0 %v3997_v26  ;;  %3424 = vmatprep.subr.bf16.mxu1 %v3423_v56  ;;  %v2903_v26 = vld [vmem:[%s5428_s3 + $0x68] sm:$0xff] }
 0x159   :  { %2818 = vmatprep.subr.bf16.mxu0 %v4002_v52  ;;  %v2920_v52 = vld [vmem:[%s5428_s3 + $0xf0] sm:$0xff] }
 0x15a   :  { %3385 = vmatmul.mubr.msk.bf16.vlgmr.msra.gmra.mrb[4].mxu1 %vm2392_vm0, %v548_v30  ;;  %v2921_v30 = vld [vmem:[%s5428_s3 + $0xf8] sm:$0xff] }
 0x15b   :  { %3426 = vmatpush3.bf16.msra.mxu1 %v3425_v60 }
 0x15c   :  { %2819 = vmatpush1.bf16.msra.mxu0 %v4000_v51  ;;  %3428 = vmatprep.subr.bf16.mxu1 %v3427_v61  ;;  %v3451_v51 = vpack.c.bf16 %v2921_v30, %v2920_v52 }
 0x15d   :  { %2820 = vmatprep.subr.bf16.mxu0 %v4005_v31  ;;  %v2904_v31 = vld [vmem:[%s5428_s3 + $0x70] sm:$0xff] }
 0x15f   :  { %3430 = vmatpush3.bf16.msra.mxu1 %v3429_v63 }
 0x160   :  { %2821 = vmatpush1.bf16.msra.mxu0 %v4003_v32  ;;  %3432 = vmatprep.subr.bf16.mxu1 %v3431_v0  ;;  %v2905_v32 = vld [vmem:[%s5428_s3 + $0x78] sm:$0xff] }
 0x161   :  { %2822 = vmatprep.subr.bf16.mxu0 %v4008_v33  ;;  %v3453_v33 = vpack.c.bf16 %v2905_v32, %v2904_v31 }
 0x163   :  { %3434 = vmatpush3.bf16.msra.mxu1 %v3433_v5 }
 0x164   :  { %2823 = vmatpush1.bf16.msra.mxu0 %v4006_v34  ;;  %3436 = vmatprep.subr.bf16.mxu1 %v3435_v59 }
 0x165   :  { %2824 = vmatprep.subr.bf16.mxu0 %v4011_v35 }
 0x167   :  { %3438 = vmatpush3.bf16.msra.mxu1 %v3437_v15 }
 0x168   :  { %2825 = vmatpush1.bf16.msra.mxu0 %v4009_v37  ;;  %3440 = vmatprep.subr.bf16.mxu1 %v3439_v9 }
 0x169   :  { %2826 = vmatprep.subr.bf16.mxu0 %v4017_v21 }
 0x16b   :  { %3442 = vmatpush3.bf16.msra.mxu1 %v3441_v16 }
 0x16c   :  { %2827 = vmatpush1.bf16.msra.mxu0 %v4015_v14  ;;  %3444 = vmatprep.subr.bf16.mxu1 %v3443_v17 }
 0x16d   :  { %2828 = vmatprep.subr.bf16.mxu0 %v4023_v40 }
 0x16f   :  { %3446 = vmatpush3.bf16.msra.mxu1 %v3445_v20 }
 0x170   :  { %2829 = vmatpush1.bf16.msra.mxu0 %v4021_v42  ;;  %3448 = vmatprep.subr.bf16.mxu1 %v3447_v24 }
 0x171   :  { %2830 = vmatprep.subr.bf16.mxu0 %v4029_v43 }
 0x174   :  { %2831 = vmatpush1.bf16.msra.mxu0 %v4027_v28  ;;  %v393_v28 = vsub.s32 0, %v4236_v45 }
 0x175   :  { %2832 = vmatprep.subr.bf16.mxu0 %v4035_v44  ;;  %v389_v44 = vld [vmem:[%s5427_s2] sm:$0x3] }
 0x178   :  { %2833 = vmatpush1.bf16.msra.mxu0 %v4033_v46  ;;  %v397_v46 = vsub.s32 1, %v4236_v45  ;;  %v3386_v45 = vld [vmem:[%s5429_s4] ss:$0 sm:$0xff] }
 0x179   :  { %2834 = vmatprep.subr.bf16.mxu0 %v4041_v47  ;;  %v394_v47 = vrot.slane %v389_v44, %v393_v28 }
 0x17c   :  { %2835 = vmatpush1.bf16.msra.mxu0 %v4039_v49  ;;  %v398_v49 = vrot.slane %v389_v44, %v397_v46 }
 0x17d   :  { %2836 = vmatprep.subr.bf16.mxu0 %v4047_v50 }
 0x180   :  { %2837 = vmatpush1.bf16.msra.mxu0 %v4045_v53 }
 0x183   :  { %2839 = vmatmul.mubr.bf16.vlgmr.msra.gmra.mrb[0].mxu0 %v532_v25  ;;  %v2902_v25 = vld [vmem:[%s5428_s3 + $0x60] sm:$0xff] }
 0x184   :  { %v3449_v27 = vpack.c.bf16 %v2903_v26, %v2902_v25 }
 0x186   :  { %3450 = vmatpush3.bf16.msra.mxu1 %v3449_v27 }
 0x187   :  { %3452 = vmatprep.subr.bf16.mxu1 %v3451_v51 }
 0x18a   :  { %3454 = vmatpush3.bf16.msra.mxu1 %v3453_v33 }
 0x215   :  { %v2594_v34 = vpop.f32.mrb[0].mxu1 }
 0x216   :  { %v2596_v35 = vpop.f32.mrb[1].mxu1  ;;  %v3455_v50 = vadd.f32 %v2594_v34, %v394_v47 }
 0x217   :  { %v2598_v37 = vpop.f32.mrb[2].mxu1  ;;  %v3458_v53 = vadd.f32 %v2596_v35, %v398_v49 }
 0x218   :  { %v2599_v21 = vpop.f32.mrb[3].mxu1 }
 0x22d   :  { %v2881_v14 = vpop.f32.mrb[4].mxu1 }
 0x22e   :  { %v2883_v40 = vpop.f32.mrb[5].mxu1 }
 0x22f   :  { %v2885_v42 = vpop.f32.mrb[6].mxu1 }
 0x230   :  { %v2886_v43 = vpop.f32.mrb[7].mxu1 }
 0x256   :  { %v2840_v29 = vpop.f32.mrb[0].mxu0 }
 0x257   :  { %v3456_v54 = vadd.f32 %v3455_v50, %v2840_v29  ;;  %v2842_v55 = vpop.f32.mrb[1].mxu0 }
 0x258   :  { %v3459_v56 = vadd.f32 %v3458_v53, %v2842_v55  ;;  %v2844_v39 = vpop.f32.mrb[2].mxu0 }
 0x259   :  { %v3457_v57 = vadd.f32 %v3456_v54, %v2881_v14  ;;  %v2845_v58 = vpop.f32.mrb[3].mxu0 }
 0x25a   :  { %v3460_v60 = vadd.f32 %v3459_v56, %v2883_v40 }
 0x25b   :  { %v2888_v38 = vmax.f32 %v3457_v57, 0.0 }
 0x25c   :  { %v2889_v61 = vmax.f32 %v3460_v60, 0.0 }
 0x25e   :  { %2993 = vmatprep.mubr.f32.mxu1 %v2889_v61 }
 0x25f   :  { %2994 = vmatmul.mubr.f32.vlgmr.msra.gmra.mrb[8].mxu1 %v2888_v38 }
 0x332   :  { %v3420_v48 = vpop.f32.mrb[8].mxu1 }
 0x333   :  { %v3421_v41 = vpop.f32.mrb[9].mxu1 }
 0x334   :  { %v3422_v62 = vadd.f32 %v3421_v41, %v3420_v48 }
 0x336   :  { %v2996_v63 = vadd.f32 %v3422_v62, %v3386_v45 }
 0x338   :  { %v3387_v0 = vmul.f32 -1.442695, %v2996_v63 }
 0x33a   :  { %4049 = vpow2.f32 %v3387_v0 }
 0x344   :  { %v4050_v1 = vpop.eup %4049 }
 0x345   :  { %v3002_v36 = vadd.f32 1.0, %v4050_v1 }
 0x347   :  { %4051 = vrcp.f32 %v3002_v36 }
 0x351   :  { %v4052_v2 = vpop.eup %4051 }
 0x352   :  { %3006 = vst.msk [vmem:[#allocation2] sm:$0x3] %vm3005_vm1, %v4052_v2 }
 0x353   :  { %4064 = shalt.err (!%p4061_p4)
}
 0x354   :  { %s4065_s28 = scalar_lea.hbm %s5430_s5, 32 }
 0x355   :  { %p4066_p5 = scmp.ne.s32.totalorder %s5430_s5, %s4065_s28  ;;  %p4069_p6 = scmp.lt.u32.totalorder %s4065_s28, %s5430_s5 }
 0x357   :  { %p4071_p7 = pnand %p4069_p6, %p4066_p5 }
 0x359   :  { %4074 = shalt.err (!%p4071_p7)
}
 0x35a   :  { %3016 = dma.vmem_to_hbm [thread:$0]  %s3014_s25, 32, %s5430_s5, [#allocation3]  }
 0x35b   :  { %4075 = dma.done.wait [#allocation3], 32  }
 0x35c   :  { %4076 = vsyncadd [#allocation3], 4294967264 }
 0x35d   :  { %3020 = vsyncpa [#allocation3], 1 }

</bundles_post_ra>
